<compile_context>
chip_gen: v7x
topology: tpu7x:2x2x1
jax: 0.10.0
libtpu: 0.0.40
codegen_flags: <defaults>
</compile_context>

<pallas_src>
import functools

import jax
import jax.numpy as jnp
from jax import lax
from jax.experimental import pallas as pl
from jax.experimental.pallas import tpu as pltpu

# Whole-array-in-VMEM spec for the small, grid-less calls.
VMEM_SPEC = pl.BlockSpec(memory_space=pltpu.MemorySpace.VMEM)
# Safe on v5e (raises its 16 MiB scoped default) and <= physical on v6e/v7x.
_VMEM_LIMIT = 32 * 1024 * 1024


# ---------------------------------------------------------------------------
# Kernel 1: fused 3x3 conv (+ folded BN) + ReLU + MaxPool  (one call per layer)
# ---------------------------------------------------------------------------

def _conv_bn_relu_pool_kernel(e_ref, o_ref, w_ref, b_ref, out_ref,
                              *, ph, Th, Fo, Cin):
    """Per-batch fused CNN block.

    e_ref / o_ref : (F+2, Th+1, Cin)  even / odd time-parity planes of the
                    zero-padded input (Th = T_in // 2).
    w_ref         : (3, 3, Cin, Cout) conv weights with the BN scale folded in.
    b_ref         : (1, Cout)         folded BN bias.
    out_ref       : (Fo, Th, Cout)    pooled output (Fo = F // ph).
    """
    cout = out_ref.shape[-1]

    def conv_row(f):
        # Conv output row `f` (pre-pool in F), already max-pooled over time.
        acc_e = jnp.zeros((Th, cout), jnp.float32)
        acc_o = jnp.zeros((Th, cout), jnp.float32)
        for dh in range(3):
            er = e_ref[f + dh]            # (Th+1, Cin)
            og = o_ref[f + dh]            # (Th+1, Cin)
            e0, e1 = er[0:Th, :], er[1:Th + 1, :]
            o0, o1 = og[0:Th, :], og[1:Th + 1, :]
            taps_even = (e0, o0, e1)      # padded cols (t, t+1, t+2) for even t_out
            taps_odd = (o0, e1, o1)       # and for odd t_out
            for dw in range(3):
                w_tap = w_ref[dh, dw]     # (Cin, Cout)
                if Cin == 1:
                    # K == 1: a broadcast multiply beats an MXU matmul.
                    acc_e = acc_e + taps_even[dw] * w_tap
                    acc_o = acc_o + taps_odd[dw] * w_tap
                else:
                    acc_e = acc_e + jnp.dot(taps_even[dw], w_tap,
                                            preferred_element_type=jnp.float32)
                    acc_o = acc_o + jnp.dot(taps_odd[dw], w_tap,
                                            preferred_element_type=jnp.float32)
        return jnp.maximum(acc_e, acc_o)  # (., 2) time max-pool

    def body(fo, carry):
        if ph == 2:
            row = jnp.maximum(conv_row(2 * fo), conv_row(2 * fo + 1))
        else:
            row = conv_row(fo)
        # per-channel bias + ReLU commute with the max (bias constant, ReLU monotone)
        out_ref[fo] = jnp.maximum(row + b_ref[...], 0.0)
        return carry

    lax.fori_loop(0, Fo, body, 0)


def conv_bn_relu_pool(a, w_hwio, conv_b, gamma, beta, mean, var, ph, eps=1e-5):
    """a: (B, F, T, Cin) -> (B, F//ph, T//2, Cout); conv+BN+ReLU+pool fused."""
    B, F, T, Cin = a.shape
    Cout = w_hwio.shape[-1]
    Th, Fo = T // 2, F // ph

    scale = gamma * lax.rsqrt(var + eps)
    w_fold = (w_hwio * scale).astype(jnp.float32)             # fold BN scale into W
    bias = ((conv_b - mean) * scale + beta).reshape(1, Cout)  # folded BN bias

    xp = jnp.pad(a, ((0, 0), (1, 1), (1, 1), (0, 0)))
    even = xp[:, :, 0::2, :]   # (B, F+2, Th+1, Cin)
    odd = xp[:, :, 1::2, :]

    kernel = functools.partial(_conv_bn_relu_pool_kernel,
                               ph=ph, Th=Th, Fo=Fo, Cin=Cin)
    return pl.pallas_call(
        kernel,
        out_shape=jax.ShapeDtypeStruct((B, Fo, Th, Cout), jnp.float32),
        grid=(B,),
        in_specs=[
            pl.BlockSpec((None, F + 2, Th + 1, Cin), lambda b: (b, 0, 0, 0)),
            pl.BlockSpec((None, F + 2, Th + 1, Cin), lambda b: (b, 0, 0, 0)),
            pl.BlockSpec((3, 3, Cin, Cout), lambda b: (0, 0, 0, 0)),
            pl.BlockSpec((1, Cout), lambda b: (0, 0)),
        ],
        out_specs=pl.BlockSpec((None, Fo, Th, Cout), lambda b: (b, 0, 0, 0)),
        compiler_params=pltpu.CompilerParams(
            dimension_semantics=("parallel",),
            vmem_limit_bytes=_VMEM_LIMIT),
    )(even, odd, w_fold, bias)


# ---------------------------------------------------------------------------
# Kernel 2: fused bidirectional LSTM layer (one call per layer)
# ---------------------------------------------------------------------------

def _bilstm_kernel(x_ref, wih_ref, whh_f_ref, whh_b_ref, b_ref, out_ref,
                   *, T, B, H):
    """x_ref: (T*B, Din) time-major rows; wih_ref: (Din, 8H) = [fwd | bwd];
    whh_*: (H, 4H); b_ref: (1, 8H) = [b_ih+b_hh fwd | bwd];
    out_ref: (T, B, 2H) = [h_fwd | h_bwd].  PyTorch gate order i, f, g, o."""
    H4 = 4 * H
    # Hoisted input projection: one wide matmul for all timesteps & directions.
    gx = jnp.dot(x_ref[...], wih_ref[...],
                 preferred_element_type=jnp.float32) + b_ref[...]
    whh_f = whh_f_ref[...]
    whh_b = whh_b_ref[...]

    def cell(g, c):
        i = jax.nn.sigmoid(g[:, 0:H])
        f = jax.nn.sigmoid(g[:, H:2 * H])
        gg = jnp.tanh(g[:, 2 * H:3 * H])
        o = jax.nn.sigmoid(g[:, 3 * H:4 * H])
        c_new = f * c + i * gg
        return o * jnp.tanh(c_new), c_new

    zeros = jnp.zeros((B, H), jnp.float32)
    h_f, c_f, h_b, c_b = zeros, zeros, zeros, zeros
    # T' = T_in/16 is small and static; unrolling keeps all slicing static.
    # TODO(synk): for very long T' switch to lax.fori_loop + pl.ds reads.
    for s in range(T):
        r = T - 1 - s
        g_f = gx[s * B:(s + 1) * B, 0:H4] + jnp.dot(
            h_f, whh_f, preferred_element_type=jnp.float32)
        g_b = gx[r * B:(r + 1) * B, H4:2 * H4] + jnp.dot(
            h_b, whh_b, preferred_element_type=jnp.float32)
        h_f, c_f = cell(g_f, c_f)
        h_b, c_b = cell(g_b, c_b)
        out_ref[s, :, 0:H] = h_f
        out_ref[r, :, H:2 * H] = h_b


def bilstm_layer(x_2d, T, B, H, wih_f, whh_f, b_f, wih_b, whh_b, b_b):
    wih = jnp.concatenate([wih_f, wih_b], axis=1)    # (Din, 8H) -> N = 8H matmul
    bias = jnp.concatenate([b_f, b_b], axis=1)       # (1, 8H)
    kernel = functools.partial(_bilstm_kernel, T=T, B=B, H=H)
    return pl.pallas_call(
        kernel,
        out_shape=jax.ShapeDtypeStruct((T, B, 2 * H), jnp.float32),
        in_specs=[VMEM_SPEC] * 5,
        out_specs=VMEM_SPEC,
        compiler_params=pltpu.CompilerParams(vmem_limit_bytes=_VMEM_LIMIT),
    )(x_2d, wih, whh_f, whh_b, bias)


# ---------------------------------------------------------------------------
# Kernel 3: fused LayerNorm + Linear + log_softmax head
# ---------------------------------------------------------------------------

def _ln_fc_logsoftmax_kernel(x_ref, g_ref, b_ref, w_ref, fb_ref, o_ref):
    x = x_ref[...]
    mean = jnp.mean(x, axis=-1, keepdims=True)
    cen = x - mean
    var = jnp.mean(cen * cen, axis=-1, keepdims=True)
    ln = cen * lax.rsqrt(var + 1e-5) * g_ref[...] + b_ref[...]
    logits = jnp.dot(ln, w_ref[...],
                     preferred_element_type=jnp.float32) + fb_ref[...]
    z = logits - jnp.max(logits, axis=-1, keepdims=True)
    o_ref[...] = z - jnp.log(jnp.sum(jnp.exp(z), axis=-1, keepdims=True))


def ln_fc_logsoftmax(x_2d, ln_g, ln_b, fc_w, fc_b):
    n = x_2d.shape[0]
    nc = fc_w.shape[-1]
    return pl.pallas_call(
        _ln_fc_logsoftmax_kernel,
        out_shape=jax.ShapeDtypeStruct((n, nc), jnp.float32),
        in_specs=[VMEM_SPEC] * 5,
        out_specs=VMEM_SPEC,
    )(x_2d, ln_g, ln_b, fc_w, fc_b)


# ---------------------------------------------------------------------------
# Forward pass (jitted)
# ---------------------------------------------------------------------------

def _crnn_forward(params, x, input_lengths, *, hidden):
    """x: (B, n_features, T) float32; input_lengths: (B,) int32."""
    B, F, T = x.shape
    a = x[:, :, :, None]                 # (B, F, T, 1)

    pools_f = (2, 2, 1, 1)               # frequency pool per layer (time pool always 2)
    for (w, cb, g, be, m, v), ph in zip(params['convs'], pools_f):
        a = conv_bn_relu_pool(a, w, cb, g, be, m, v, ph)
        # Dropout2d(p=0.15) -> identity at inference

    _, Fp, Tp, C = a.shape
    # PyTorch: (B,C,F',T') -> permute(3,0,1,2).view(T',B,C*F')  (C-major, then F').
    # TODO(synk): could be folded into the last conv kernel's output index_map;
    # at these sizes XLA fuses this transpose under jit.
    feat = jnp.transpose(a, (2, 0, 3, 1)).reshape(Tp * B, C * Fp)

    rnn = feat
    for (wih_f, whh_f, b_f, wih_b, whh_b, b_b) in params['lstm']:
        rnn = bilstm_layer(rnn, Tp, B, hidden,
                           wih_f, whh_f, b_f, wih_b, whh_b, b_b)
        rnn = rnn.reshape(Tp * B, 2 * hidden)
        # inter-layer LSTM dropout -> identity at inference

    logp = ln_fc_logsoftmax(rnn, params['ln_g'], params['ln_b'],
                            params['fc_w'], params['fc_b'])
    log_probs = logp.reshape(Tp, B, -1)

    out_lens = jnp.clip(input_lengths // 16, 1, Tp).astype(jnp.int32)
    return log_probs, out_lens


crnn_forward = jax.jit(_crnn_forward, static_argnames=('hidden',))


# ---------------------------------------------------------------------------
# Pure-JAX (non-Pallas) reference of the same forward, for verification
# ---------------------------------------------------------------------------

def _reference_forward(params, x, input_lengths, hidden):
    a = x[:, None, :, :]                                   # NCHW
    pools = ((2, 2), (2, 2), (1, 2), (1, 2))
    for (w, cb, g, be, m, v), pool in zip(params['convs'], pools):
        y = lax.conv_general_dilated(
            a, w, window_strides=(1, 1), padding=((1, 1), (1, 1)),
            dimension_numbers=('NCHW', 'HWIO', 'NCHW'))
        y = y + cb[None, :, None, None]
        y = ((y - m[None, :, None, None])
             * (g / jnp.sqrt(v + 1e-5))[None, :, None, None]
             + be[None, :, None, None])
        y = jnp.maximum(y, 0.0)
        a = lax.reduce_window(y, -jnp.inf, lax.max,
                              (1, 1) + pool, (1, 1) + pool, 'VALID')
    B, C, Fp, Tp = a.shape
    feat = jnp.transpose(a, (3, 0, 1, 2)).reshape(Tp, B, C * Fp)

    def run_dir(xs, wih, whh, bias):
        h = jnp.zeros((xs.shape[1], hidden), jnp.float32)
        c = jnp.zeros((xs.shape[1], hidden), jnp.float32)
        outs = []
        for t in range(xs.shape[0]):
            gates = xs[t] @ wih + h @ whh + bias
            i = jax.nn.sigmoid(gates[:, 0:hidden])
            f = jax.nn.sigmoid(gates[:, hidden:2 * hidden])
            gg = jnp.tanh(gates[:, 2 * hidden:3 * hidden])
            o = jax.nn.sigmoid(gates[:, 3 * hidden:4 * hidden])
            c = f * c + i * gg
            h = o * jnp.tanh(c)
            outs.append(h)
        return jnp.stack(outs)

    rnn = feat
    for (wih_f, whh_f, b_f, wih_b, whh_b, b_b) in params['lstm']:
        hf = run_dir(rnn, wih_f, whh_f, b_f)
        hb = run_dir(rnn[::-1], wih_b, whh_b, b_b)[::-1]
        rnn = jnp.concatenate([hf, hb], axis=-1)

    mean = jnp.mean(rnn, axis=-1, keepdims=True)
    var = jnp.mean((rnn - mean) ** 2, axis=-1, keepdims=True)
    ln = (rnn - mean) / jnp.sqrt(var + 1e-5) * params['ln_g'][0] + params['ln_b'][0]
    logits = ln @ params['fc_w'] + params['fc_b'][0]
    logp = jax.nn.log_softmax(logits, axis=-1)
    out_lens = jnp.clip(input_lengths // 16, 1, Tp).astype(jnp.int32)
    return logp, out_lens


# ---------------------------------------------------------------------------
# Deterministic synthetic parameters (shapes match the PyTorch module)
# ---------------------------------------------------------------------------

def init_params(key, n_features, num_classes, hidden):
    keys = iter(jax.random.split(key, 64))

    def nrm(shape, scale):
        return jax.random.normal(next(keys), shape, jnp.float32) * scale

    params = {}
    convs = []
    for cin, cout in [(1, 32), (32, 64), (64, 128), (128, 128)]:
        w = nrm((3, 3, cin, cout), 1.0 / (9.0 * cin) ** 0.5)   # HWIO
        b = nrm((cout,), 0.1)
        gamma = 1.0 + nrm((cout,), 0.1)
        beta = nrm((cout,), 0.1)
        mean = nrm((cout,), 0.1)
        var = 1.0 + jnp.abs(nrm((cout,), 0.1))
        convs.append((w, b, gamma, beta, mean, var))
    params['convs'] = convs

    lstm = []
    d_in = 128 * (n_features // 4)          # cnn_output_features = C * F'
    for layer in range(2):
        layer_in = d_in if layer == 0 else 2 * hidden
        dir_params = []
        for _ in range(2):                  # forward, backward
            wih = nrm((layer_in, 4 * hidden), 1.0 / layer_in ** 0.5)
            whh = nrm((hidden, 4 * hidden), 1.0 / hidden ** 0.5)
            # NOTE: single combined bias = b_ih + b_hh (sum the two when porting
            # real PyTorch weights).
            bias = nrm((1, 4 * hidden), 0.1)
            dir_params.extend([wih, whh, bias])
        lstm.append(tuple(dir_params))
    params['lstm'] = lstm

    params['ln_g'] = 1.0 + nrm((1, 2 * hidden), 0.1)
    params['ln_b'] = nrm((1, 2 * hidden), 0.1)
    params['fc_w'] = nrm((2 * hidden, num_classes), 1.0 / (2 * hidden) ** 0.5)
    params['fc_b'] = nrm((1, num_classes), 0.1)
    return params


if __name__ == "__main__":
    B, n_features, T = 2, 16, 32        # -> F' = 4, T' = 2, cnn_features = 512
    hidden = 32
    num_classes = 10

    key = jax.random.PRNGKey(0)
    kx, kp = jax.random.split(key)
    x = jax.random.normal(kx, (B, n_features, T), jnp.float32)
    input_lengths = jnp.array([32, 24], dtype=jnp.int32)

    params = init_params(kp, n_features, num_classes, hidden)

    log_probs, out_lens = crnn_forward(params, x, input_lengths, hidden=hidden)
    jax.block_until_ready(log_probs)
    jax.block_until_ready(out_lens)

    assert log_probs.shape == (T // 16, B, num_classes), log_probs.shape
    assert out_lens.shape == (B,)
    assert bool(jnp.all(jnp.isfinite(log_probs)))
    # log_softmax rows should sum to ~1 in prob space
    assert bool(jnp.allclose(jnp.sum(jnp.exp(log_probs), axis=-1), 1.0, atol=1e-4))

    # Cross-check against a pure-JAX (non-Pallas) reference of the same forward.
    ref_logp, ref_lens = _reference_forward(params, x, input_lengths, hidden)
    assert bool(jnp.array_equal(out_lens, ref_lens))
    max_err = float(jnp.max(jnp.abs(log_probs - ref_logp)))
    assert max_err < 2e-2, max_err

    print("KERNEL_OK")
</pallas_src>

<mosaic_0001>
module attributes {stable_mosaic.version = 11 : i64} {
  func.func @_conv_bn_relu_pool_kernel(%arg0: i32, %arg1: memref<1x18x17x1xf32, #tpu.memory_space<vmem>>, %arg2: memref<1x18x17x1xf32, #tpu.memory_space<vmem>>, %arg3: memref<3x3x1x32xf32, #tpu.memory_space<vmem>>, %arg4: memref<1x32xf32, #tpu.memory_space<vmem>>, %arg5: memref<1x8x16x32xf32, #tpu.memory_space<vmem>>) attributes {dimension_semantics = [#tpu.dimension_semantics<parallel>], iteration_bounds = array<i64: 2>, scalar_prefetch = 0 : i64, scratch_operands = 0 : i64, tpu.core_type = #tpu.core_type<tc>, window_params = [{transform_indices = @transform_0, window_bounds = array<i64: 1, 18, 17, 1>}, {transform_indices = @transform_1, window_bounds = array<i64: 1, 18, 17, 1>}, {pipeline_mode = #tpu.pipeline_mode<synchronous>, transform_indices = @transform_2, window_bounds = array<i64: 3, 3, 1, 32>}, {pipeline_mode = #tpu.pipeline_mode<synchronous>, transform_indices = @transform_3, window_bounds = array<i64: 1, 32>}, {transform_indices = @transform_4, window_bounds = array<i64: 1, 8, 16, 32>}]} {
    %c0_i32 = arith.constant 0 : i32
    %c8_i32 = arith.constant 8 : i32
    %0 = arith.addi %c0_i32, %c8_i32 : i32
    %c1_i32 = arith.constant 1 : i32
    scf.for %arg6 = %c0_i32 to %0 step %c1_i32  : i32 {
      %c2_i32 = arith.constant 2 : i32
      %1 = arith.muli %c2_i32, %arg6 : i32
      %cst = arith.constant 0.000000e+00 : f32
      %2 = vector.broadcast %cst : f32 to vector<16x32xf32>
      %cst_1 = arith.constant 0.000000e+00 : f32
      %3 = vector.broadcast %cst_1 : f32 to vector<16x32xf32>
      %c0_i32_2 = arith.constant 0 : i32
      %4 = arith.addi %1, %c0_i32_2 : i32
      %c0 = arith.constant 0 : index
      %5 = arith.index_cast %4 : i32 to index
      %c0_3 = arith.constant 0 : index
      %c0_4 = arith.constant 0 : index
      %6 = vector.load %arg1[%c0, %5, %c0_3, %c0_4] : memref<1x18x17x1xf32, #tpu.memory_space<vmem>>, vector<1x1x17x1xf32>
      %7 = vector.shape_cast %6 : vector<1x1x17x1xf32> to vector<17x1xf32>
      %c0_i32_5 = arith.constant 0 : i32
      %8 = arith.addi %1, %c0_i32_5 : i32
      %c0_6 = arith.constant 0 : index
      %9 = arith.index_cast %8 : i32 to index
      %c0_7 = arith.constant 0 : index
      %c0_8 = arith.constant 0 : index
      %10 = vector.load %arg2[%c0_6, %9, %c0_7, %c0_8] : memref<1x18x17x1xf32, #tpu.memory_space<vmem>>, vector<1x1x17x1xf32>
      %11 = vector.shape_cast %10 : vector<1x1x17x1xf32> to vector<17x1xf32>
      %12 = vector.extract_strided_slice %7 {offsets = [0, 0], sizes = [16, 1], strides = [1, 1]} : vector<17x1xf32> to vector<16x1xf32>
      %13 = vector.extract_strided_slice %7 {offsets = [1, 0], sizes = [16, 1], strides = [1, 1]} : vector<17x1xf32> to vector<16x1xf32>
      %14 = vector.extract_strided_slice %11 {offsets = [0, 0], sizes = [16, 1], strides = [1, 1]} : vector<17x1xf32> to vector<16x1xf32>
      %15 = vector.extract_strided_slice %11 {offsets = [1, 0], sizes = [16, 1], strides = [1, 1]} : vector<17x1xf32> to vector<16x1xf32>
      %c0_9 = arith.constant 0 : index
      %c0_10 = arith.constant 0 : index
      %c0_11 = arith.constant 0 : index
      %c0_12 = arith.constant 0 : index
      %16 = vector.load %arg3[%c0_9, %c0_10, %c0_11, %c0_12] : memref<3x3x1x32xf32, #tpu.memory_space<vmem>>, vector<1x1x1x32xf32>
      %17 = vector.shape_cast %16 : vector<1x1x1x32xf32> to vector<1x32xf32>
      %18 = vector.broadcast %12 : vector<16x1xf32> to vector<16x32xf32>
      %19 = vector.broadcast %17 : vector<1x32xf32> to vector<16x32xf32>
      %20 = arith.mulf %18, %19 : vector<16x32xf32>
      %21 = arith.addf %2, %20 : vector<16x32xf32>
      %22 = vector.broadcast %14 : vector<16x1xf32> to vector<16x32xf32>
      %23 = vector.broadcast %17 : vector<1x32xf32> to vector<16x32xf32>
      %24 = arith.mulf %22, %23 : vector<16x32xf32>
      %25 = arith.addf %3, %24 : vector<16x32xf32>
      %c0_13 = arith.constant 0 : index
      %c1 = arith.constant 1 : index
      %c0_14 = arith.constant 0 : index
      %c0_15 = arith.constant 0 : index
      %26 = vector.load %arg3[%c0_13, %c1, %c0_14, %c0_15] : memref<3x3x1x32xf32, #tpu.memory_space<vmem>>, vector<1x1x1x32xf32>
      %27 = vector.shape_cast %26 : vector<1x1x1x32xf32> to vector<1x32xf32>
      %28 = vector.broadcast %14 : vector<16x1xf32> to vector<16x32xf32>
      %29 = vector.broadcast %27 : vector<1x32xf32> to vector<16x32xf32>
      %30 = arith.mulf %28, %29 : vector<16x32xf32>
      %31 = arith.addf %21, %30 : vector<16x32xf32>
      %32 = vector.broadcast %13 : vector<16x1xf32> to vector<16x32xf32>
      %33 = vector.broadcast %27 : vector<1x32xf32> to vector<16x32xf32>
      %34 = arith.mulf %32, %33 : vector<16x32xf32>
      %35 = arith.addf %25, %34 : vector<16x32xf32>
      %c0_16 = arith.constant 0 : index
      %c2 = arith.constant 2 : index
      %c0_17 = arith.constant 0 : index
      %c0_18 = arith.constant 0 : index
      %36 = vector.load %arg3[%c0_16, %c2, %c0_17, %c0_18] : memref<3x3x1x32xf32, #tpu.memory_space<vmem>>, vector<1x1x1x32xf32>
      %37 = vector.shape_cast %36 : vector<1x1x1x32xf32> to vector<1x32xf32>
      %38 = vector.broadcast %13 : vector<16x1xf32> to vector<16x32xf32>
      %39 = vector.broadcast %37 : vector<1x32xf32> to vector<16x32xf32>
      %40 = arith.mulf %38, %39 : vector<16x32xf32>
      %41 = arith.addf %31, %40 : vector<16x32xf32>
      %42 = vector.broadcast %15 : vector<16x1xf32> to vector<16x32xf32>
      %43 = vector.broadcast %37 : vector<1x32xf32> to vector<16x32xf32>
      %44 = arith.mulf %42, %43 : vector<16x32xf32>
      %45 = arith.addf %35, %44 : vector<16x32xf32>
      %c1_i32_19 = arith.constant 1 : i32
      %46 = arith.addi %1, %c1_i32_19 : i32
      %c0_20 = arith.constant 0 : index
      %47 = arith.index_cast %46 : i32 to index
      %c0_21 = arith.constant 0 : index
      %c0_22 = arith.constant 0 : index
      %48 = vector.load %arg1[%c0_20, %47, %c0_21, %c0_22] : memref<1x18x17x1xf32, #tpu.memory_space<vmem>>, vector<1x1x17x1xf32>
      %49 = vector.shape_cast %48 : vector<1x1x17x1xf32> to vector<17x1xf32>
      %c1_i32_23 = arith.constant 1 : i32
      %50 = arith.addi %1, %c1_i32_23 : i32
      %c0_24 = arith.constant 0 : index
      %51 = arith.index_cast %50 : i32 to index
      %c0_25 = arith.constant 0 : index
      %c0_26 = arith.constant 0 : index
      %52 = vector.load %arg2[%c0_24, %51, %c0_25, %c0_26] : memref<1x18x17x1xf32, #tpu.memory_space<vmem>>, vector<1x1x17x1xf32>
      %53 = vector.shape_cast %52 : vector<1x1x17x1xf32> to vector<17x1xf32>
      %54 = vector.extract_strided_slice %49 {offsets = [0, 0], sizes = [16, 1], strides = [1, 1]} : vector<17x1xf32> to vector<16x1xf32>
      %55 = vector.extract_strided_slice %49 {offsets = [1, 0], sizes = [16, 1], strides = [1, 1]} : vector<17x1xf32> to vector<16x1xf32>
      %56 = vector.extract_strided_slice %53 {offsets = [0, 0], sizes = [16, 1], strides = [1, 1]} : vector<17x1xf32> to vector<16x1xf32>
      %57 = vector.extract_strided_slice %53 {offsets = [1, 0], sizes = [16, 1], strides = [1, 1]} : vector<17x1xf32> to vector<16x1xf32>
      %c1_27 = arith.constant 1 : index
      %c0_28 = arith.constant 0 : index
      %c0_29 = arith.constant 0 : index
      %c0_30 = arith.constant 0 : index
      %58 = vector.load %arg3[%c1_27, %c0_28, %c0_29, %c0_30] : memref<3x3x1x32xf32, #tpu.memory_space<vmem>>, vector<1x1x1x32xf32>
      %59 = vector.shape_cast %58 : vector<1x1x1x32xf32> to vector<1x32xf32>
      %60 = vector.broadcast %54 : vector<16x1xf32> to vector<16x32xf32>
      %61 = vector.broadcast %59 : vector<1x32xf32> to vector<16x32xf32>
      %62 = arith.mulf %60, %61 : vector<16x32xf32>
      %63 = arith.addf %41, %62 : vector<16x32xf32>
      %64 = vector.broadcast %56 : vector<16x1xf32> to vector<16x32xf32>
      %65 = vector.broadcast %59 : vector<1x32xf32> to vector<16x32xf32>
      %66 = arith.mulf %64, %65 : vector<16x32xf32>
      %67 = arith.addf %45, %66 : vector<16x32xf32>
      %c1_31 = arith.constant 1 : index
      %c1_32 = arith.constant 1 : index
      %c0_33 = arith.constant 0 : index
      %c0_34 = arith.constant 0 : index
      %68 = vector.load %arg3[%c1_31, %c1_32, %c0_33, %c0_34] : memref<3x3x1x32xf32, #tpu.memory_space<vmem>>, vector<1x1x1x32xf32>
      %69 = vector.shape_cast %68 : vector<1x1x1x32xf32> to vector<1x32xf32>
      %70 = vector.broadcast %56 : vector<16x1xf32> to vector<16x32xf32>
      %71 = vector.broadcast %69 : vector<1x32xf32> to vector<16x32xf32>
      %72 = arith.mulf %70, %71 : vector<16x32xf32>
      %73 = arith.addf %63, %72 : vector<16x32xf32>
      %74 = vector.broadcast %55 : vector<16x1xf32> to vector<16x32xf32>
      %75 = vector.broadcast %69 : vector<1x32xf32> to vector<16x32xf32>
      %76 = arith.mulf %74, %75 : vector<16x32xf32>
      %77 = arith.addf %67, %76 : vector<16x32xf32>
      %c1_35 = arith.constant 1 : index
      %c2_36 = arith.constant 2 : index
      %c0_37 = arith.constant 0 : index
      %c0_38 = arith.constant 0 : index
      %78 = vector.load %arg3[%c1_35, %c2_36, %c0_37, %c0_38] : memref<3x3x1x32xf32, #tpu.memory_space<vmem>>, vector<1x1x1x32xf32>
      %79 = vector.shape_cast %78 : vector<1x1x1x32xf32> to vector<1x32xf32>
      %80 = vector.broadcast %55 : vector<16x1xf32> to vector<16x32xf32>
      %81 = vector.broadcast %79 : vector<1x32xf32> to vector<16x32xf32>
      %82 = arith.mulf %80, %81 : vector<16x32xf32>
      %83 = arith.addf %73, %82 : vector<16x32xf32>
      %84 = vector.broadcast %57 : vector<16x1xf32> to vector<16x32xf32>
      %85 = vector.broadcast %79 : vector<1x32xf32> to vector<16x32xf32>
      %86 = arith.mulf %84, %85 : vector<16x32xf32>
      %87 = arith.addf %77, %86 : vector<16x32xf32>
      %c2_i32_39 = arith.constant 2 : i32
      %88 = arith.addi %1, %c2_i32_39 : i32
      %c0_40 = arith.constant 0 : index
      %89 = arith.index_cast %88 : i32 to index
      %c0_41 = arith.constant 0 : index
      %c0_42 = arith.constant 0 : index
      %90 = vector.load %arg1[%c0_40, %89, %c0_41, %c0_42] : memref<1x18x17x1xf32, #tpu.memory_space<vmem>>, vector<1x1x17x1xf32>
      %91 = vector.shape_cast %90 : vector<1x1x17x1xf32> to vector<17x1xf32>
      %c2_i32_43 = arith.constant 2 : i32
      %92 = arith.addi %1, %c2_i32_43 : i32
      %c0_44 = arith.constant 0 : index
      %93 = arith.index_cast %92 : i32 to index
      %c0_45 = arith.constant 0 : index
      %c0_46 = arith.constant 0 : index
      %94 = vector.load %arg2[%c0_44, %93, %c0_45, %c0_46] : memref<1x18x17x1xf32, #tpu.memory_space<vmem>>, vector<1x1x17x1xf32>
      %95 = vector.shape_cast %94 : vector<1x1x17x1xf32> to vector<17x1xf32>
      %96 = vector.extract_strided_slice %91 {offsets = [0, 0], sizes = [16, 1], strides = [1, 1]} : vector<17x1xf32> to vector<16x1xf32>
      %97 = vector.extract_strided_slice %91 {offsets = [1, 0], sizes = [16, 1], strides = [1, 1]} : vector<17x1xf32> to vector<16x1xf32>
      %98 = vector.extract_strided_slice %95 {offsets = [0, 0], sizes = [16, 1], strides = [1, 1]} : vector<17x1xf32> to vector<16x1xf32>
      %99 = vector.extract_strided_slice %95 {offsets = [1, 0], sizes = [16, 1], strides = [1, 1]} : vector<17x1xf32> to vector<16x1xf32>
      %c2_47 = arith.constant 2 : index
      %c0_48 = arith.constant 0 : index
      %c0_49 = arith.constant 0 : index
      %c0_50 = arith.constant 0 : index
      %100 = vector.load %arg3[%c2_47, %c0_48, %c0_49, %c0_50] : memref<3x3x1x32xf32, #tpu.memory_space<vmem>>, vector<1x1x1x32xf32>
      %101 = vector.shape_cast %100 : vector<1x1x1x32xf32> to vector<1x32xf32>
      %102 = vector.broadcast %96 : vector<16x1xf32> to vector<16x32xf32>
      %103 = vector.broadcast %101 : vector<1x32xf32> to vector<16x32xf32>
      %104 = arith.mulf %102, %103 : vector<16x32xf32>
      %105 = arith.addf %83, %104 : vector<16x32xf32>
      %106 = vector.broadcast %98 : vector<16x1xf32> to vector<16x32xf32>
      %107 = vector.broadcast %101 : vector<1x32xf32> to vector<16x32xf32>
      %108 = arith.mulf %106, %107 : vector<16x32xf32>
      %109 = arith.addf %87, %108 : vector<16x32xf32>
      %c2_51 = arith.constant 2 : index
      %c1_52 = arith.constant 1 : index
      %c0_53 = arith.constant 0 : index
      %c0_54 = arith.constant 0 : index
      %110 = vector.load %arg3[%c2_51, %c1_52, %c0_53, %c0_54] : memref<3x3x1x32xf32, #tpu.memory_space<vmem>>, vector<1x1x1x32xf32>
      %111 = vector.shape_cast %110 : vector<1x1x1x32xf32> to vector<1x32xf32>
      %112 = vector.broadcast %98 : vector<16x1xf32> to vector<16x32xf32>
      %113 = vector.broadcast %111 : vector<1x32xf32> to vector<16x32xf32>
      %114 = arith.mulf %112, %113 : vector<16x32xf32>
      %115 = arith.addf %105, %114 : vector<16x32xf32>
      %116 = vector.broadcast %97 : vector<16x1xf32> to vector<16x32xf32>
      %117 = vector.broadcast %111 : vector<1x32xf32> to vector<16x32xf32>
      %118 = arith.mulf %116, %117 : vector<16x32xf32>
      %119 = arith.addf %109, %118 : vector<16x32xf32>
      %c2_55 = arith.constant 2 : index
      %c2_56 = arith.constant 2 : index
      %c0_57 = arith.constant 0 : index
      %c0_58 = arith.constant 0 : index
      %120 = vector.load %arg3[%c2_55, %c2_56, %c0_57, %c0_58] : memref<3x3x1x32xf32, #tpu.memory_space<vmem>>, vector<1x1x1x32xf32>
      %121 = vector.shape_cast %120 : vector<1x1x1x32xf32> to vector<1x32xf32>
      %122 = vector.broadcast %97 : vector<16x1xf32> to vector<16x32xf32>
      %123 = vector.broadcast %121 : vector<1x32xf32> to vector<16x32xf32>
      %124 = arith.mulf %122, %123 : vector<16x32xf32>
      %125 = arith.addf %115, %124 : vector<16x32xf32>
      %126 = vector.broadcast %99 : vector<16x1xf32> to vector<16x32xf32>
      %127 = vector.broadcast %121 : vector<1x32xf32> to vector<16x32xf32>
      %128 = arith.mulf %126, %127 : vector<16x32xf32>
      %129 = arith.addf %119, %128 : vector<16x32xf32>
      %130 = arith.maximumf %125, %129 : vector<16x32xf32>
      %c2_i32_59 = arith.constant 2 : i32
      %131 = arith.muli %c2_i32_59, %arg6 : i32
      %c1_i32_60 = arith.constant 1 : i32
      %132 = arith.addi %131, %c1_i32_60 : i32
      %cst_61 = arith.constant 0.000000e+00 : f32
      %133 = vector.broadcast %cst_61 : f32 to vector<16x32xf32>
      %cst_62 = arith.constant 0.000000e+00 : f32
      %134 = vector.broadcast %cst_62 : f32 to vector<16x32xf32>
      %c0_i32_63 = arith.constant 0 : i32
      %135 = arith.addi %132, %c0_i32_63 : i32
      %c0_64 = arith.constant 0 : index
      %136 = arith.index_cast %135 : i32 to index
      %c0_65 = arith.constant 0 : index
      %c0_66 = arith.constant 0 : index
      %137 = vector.load %arg1[%c0_64, %136, %c0_65, %c0_66] : memref<1x18x17x1xf32, #tpu.memory_space<vmem>>, vector<1x1x17x1xf32>
      %138 = vector.shape_cast %137 : vector<1x1x17x1xf32> to vector<17x1xf32>
      %c0_i32_67 = arith.constant 0 : i32
      %139 = arith.addi %132, %c0_i32_67 : i32
      %c0_68 = arith.constant 0 : index
      %140 = arith.index_cast %139 : i32 to index
      %c0_69 = arith.constant 0 : index
      %c0_70 = arith.constant 0 : index
      %141 = vector.load %arg2[%c0_68, %140, %c0_69, %c0_70] : memref<1x18x17x1xf32, #tpu.memory_space<vmem>>, vector<1x1x17x1xf32>
      %142 = vector.shape_cast %141 : vector<1x1x17x1xf32> to vector<17x1xf32>
      %143 = vector.extract_strided_slice %138 {offsets = [0, 0], sizes = [16, 1], strides = [1, 1]} : vector<17x1xf32> to vector<16x1xf32>
      %144 = vector.extract_strided_slice %138 {offsets = [1, 0], sizes = [16, 1], strides = [1, 1]} : vector<17x1xf32> to vector<16x1xf32>
      %145 = vector.extract_strided_slice %142 {offsets = [0, 0], sizes = [16, 1], strides = [1, 1]} : vector<17x1xf32> to vector<16x1xf32>
      %146 = vector.extract_strided_slice %142 {offsets = [1, 0], sizes = [16, 1], strides = [1, 1]} : vector<17x1xf32> to vector<16x1xf32>
      %c0_71 = arith.constant 0 : index
      %c0_72 = arith.constant 0 : index
      %c0_73 = arith.constant 0 : index
      %c0_74 = arith.constant 0 : index
      %147 = vector.load %arg3[%c0_71, %c0_72, %c0_73, %c0_74] : memref<3x3x1x32xf32, #tpu.memory_space<vmem>>, vector<1x1x1x32xf32>
      %148 = vector.shape_cast %147 : vector<1x1x1x32xf32> to vector<1x32xf32>
      %149 = vector.broadcast %143 : vector<16x1xf32> to vector<16x32xf32>
      %150 = vector.broadcast %148 : vector<1x32xf32> to vector<16x32xf32>
      %151 = arith.mulf %149, %150 : vector<16x32xf32>
      %152 = arith.addf %133, %151 : vector<16x32xf32>
      %153 = vector.broadcast %145 : vector<16x1xf32> to vector<16x32xf32>
      %154 = vector.broadcast %148 : vector<1x32xf32> to vector<16x32xf32>
      %155 = arith.mulf %153, %154 : vector<16x32xf32>
      %156 = arith.addf %134, %155 : vector<16x32xf32>
      %c0_75 = arith.constant 0 : index
      %c1_76 = arith.constant 1 : index
      %c0_77 = arith.constant 0 : index
      %c0_78 = arith.constant 0 : index
      %157 = vector.load %arg3[%c0_75, %c1_76, %c0_77, %c0_78] : memref<3x3x1x32xf32, #tpu.memory_space<vmem>>, vector<1x1x1x32xf32>
      %158 = vector.shape_cast %157 : vector<1x1x1x32xf32> to vector<1x32xf32>
      %159 = vector.broadcast %145 : vector<16x1xf32> to vector<16x32xf32>
      %160 = vector.broadcast %158 : vector<1x32xf32> to vector<16x32xf32>
      %161 = arith.mulf %159, %160 : vector<16x32xf32>
      %162 = arith.addf %152, %161 : vector<16x32xf32>
      %163 = vector.broadcast %144 : vector<16x1xf32> to vector<16x32xf32>
      %164 = vector.broadcast %158 : vector<1x32xf32> to vector<16x32xf32>
      %165 = arith.mulf %163, %164 : vector<16x32xf32>
      %166 = arith.addf %156, %165 : vector<16x32xf32>
      %c0_79 = arith.constant 0 : index
      %c2_80 = arith.constant 2 : index
      %c0_81 = arith.constant 0 : index
      %c0_82 = arith.constant 0 : index
      %167 = vector.load %arg3[%c0_79, %c2_80, %c0_81, %c0_82] : memref<3x3x1x32xf32, #tpu.memory_space<vmem>>, vector<1x1x1x32xf32>
      %168 = vector.shape_cast %167 : vector<1x1x1x32xf32> to vector<1x32xf32>
      %169 = vector.broadcast %144 : vector<16x1xf32> to vector<16x32xf32>
      %170 = vector.broadcast %168 : vector<1x32xf32> to vector<16x32xf32>
      %171 = arith.mulf %169, %170 : vector<16x32xf32>
      %172 = arith.addf %162, %171 : vector<16x32xf32>
      %173 = vector.broadcast %146 : vector<16x1xf32> to vector<16x32xf32>
      %174 = vector.broadcast %168 : vector<1x32xf32> to vector<16x32xf32>
      %175 = arith.mulf %173, %174 : vector<16x32xf32>
      %176 = arith.addf %166, %175 : vector<16x32xf32>
      %c1_i32_83 = arith.constant 1 : i32
      %177 = arith.addi %132, %c1_i32_83 : i32
      %c0_84 = arith.constant 0 : index
      %178 = arith.index_cast %177 : i32 to index
      %c0_85 = arith.constant 0 : index
      %c0_86 = arith.constant 0 : index
      %179 = vector.load %arg1[%c0_84, %178, %c0_85, %c0_86] : memref<1x18x17x1xf32, #tpu.memory_space<vmem>>, vector<1x1x17x1xf32>
      %180 = vector.shape_cast %179 : vector<1x1x17x1xf32> to vector<17x1xf32>
      %c1_i32_87 = arith.constant 1 : i32
      %181 = arith.addi %132, %c1_i32_87 : i32
      %c0_88 = arith.constant 0 : index
      %182 = arith.index_cast %181 : i32 to index
      %c0_89 = arith.constant 0 : index
      %c0_90 = arith.constant 0 : index
      %183 = vector.load %arg2[%c0_88, %182, %c0_89, %c0_90] : memref<1x18x17x1xf32, #tpu.memory_space<vmem>>, vector<1x1x17x1xf32>
      %184 = vector.shape_cast %183 : vector<1x1x17x1xf32> to vector<17x1xf32>
      %185 = vector.extract_strided_slice %180 {offsets = [0, 0], sizes = [16, 1], strides = [1, 1]} : vector<17x1xf32> to vector<16x1xf32>
      %186 = vector.extract_strided_slice %180 {offsets = [1, 0], sizes = [16, 1], strides = [1, 1]} : vector<17x1xf32> to vector<16x1xf32>
      %187 = vector.extract_strided_slice %184 {offsets = [0, 0], sizes = [16, 1], strides = [1, 1]} : vector<17x1xf32> to vector<16x1xf32>
      %188 = vector.extract_strided_slice %184 {offsets = [1, 0], sizes = [16, 1], strides = [1, 1]} : vector<17x1xf32> to vector<16x1xf32>
      %c1_91 = arith.constant 1 : index
      %c0_92 = arith.constant 0 : index
      %c0_93 = arith.constant 0 : index
      %c0_94 = arith.constant 0 : index
      %189 = vector.load %arg3[%c1_91, %c0_92, %c0_93, %c0_94] : memref<3x3x1x32xf32, #tpu.memory_space<vmem>>, vector<1x1x1x32xf32>
      %190 = vector.shape_cast %189 : vector<1x1x1x32xf32> to vector<1x32xf32>
      %191 = vector.broadcast %185 : vector<16x1xf32> to vector<16x32xf32>
      %192 = vector.broadcast %190 : vector<1x32xf32> to vector<16x32xf32>
      %193 = arith.mulf %191, %192 : vector<16x32xf32>
      %194 = arith.addf %172, %193 : vector<16x32xf32>
      %195 = vector.broadcast %187 : vector<16x1xf32> to vector<16x32xf32>
      %196 = vector.broadcast %190 : vector<1x32xf32> to vector<16x32xf32>
      %197 = arith.mulf %195, %196 : vector<16x32xf32>
      %198 = arith.addf %176, %197 : vector<16x32xf32>
      %c1_95 = arith.constant 1 : index
      %c1_96 = arith.constant 1 : index
      %c0_97 = arith.constant 0 : index
      %c0_98 = arith.constant 0 : index
      %199 = vector.load %arg3[%c1_95, %c1_96, %c0_97, %c0_98] : memref<3x3x1x32xf32, #tpu.memory_space<vmem>>, vector<1x1x1x32xf32>
      %200 = vector.shape_cast %199 : vector<1x1x1x32xf32> to vector<1x32xf32>
      %201 = vector.broadcast %187 : vector<16x1xf32> to vector<16x32xf32>
      %202 = vector.broadcast %200 : vector<1x32xf32> to vector<16x32xf32>
      %203 = arith.mulf %201, %202 : vector<16x32xf32>
      %204 = arith.addf %194, %203 : vector<16x32xf32>
      %205 = vector.broadcast %186 : vector<16x1xf32> to vector<16x32xf32>
      %206 = vector.broadcast %200 : vector<1x32xf32> to vector<16x32xf32>
      %207 = arith.mulf %205, %206 : vector<16x32xf32>
      %208 = arith.addf %198, %207 : vector<16x32xf32>
      %c1_99 = arith.constant 1 : index
      %c2_100 = arith.constant 2 : index
      %c0_101 = arith.constant 0 : index
      %c0_102 = arith.constant 0 : index
      %209 = vector.load %arg3[%c1_99, %c2_100, %c0_101, %c0_102] : memref<3x3x1x32xf32, #tpu.memory_space<vmem>>, vector<1x1x1x32xf32>
      %210 = vector.shape_cast %209 : vector<1x1x1x32xf32> to vector<1x32xf32>
      %211 = vector.broadcast %186 : vector<16x1xf32> to vector<16x32xf32>
      %212 = vector.broadcast %210 : vector<1x32xf32> to vector<16x32xf32>
      %213 = arith.mulf %211, %212 : vector<16x32xf32>
      %214 = arith.addf %204, %213 : vector<16x32xf32>
      %215 = vector.broadcast %188 : vector<16x1xf32> to vector<16x32xf32>
      %216 = vector.broadcast %210 : vector<1x32xf32> to vector<16x32xf32>
      %217 = arith.mulf %215, %216 : vector<16x32xf32>
      %218 = arith.addf %208, %217 : vector<16x32xf32>
      %c2_i32_103 = arith.constant 2 : i32
      %219 = arith.addi %132, %c2_i32_103 : i32
      %c0_104 = arith.constant 0 : index
      %220 = arith.index_cast %219 : i32 to index
      %c0_105 = arith.constant 0 : index
      %c0_106 = arith.constant 0 : index
      %221 = vector.load %arg1[%c0_104, %220, %c0_105, %c0_106] : memref<1x18x17x1xf32, #tpu.memory_space<vmem>>, vector<1x1x17x1xf32>
      %222 = vector.shape_cast %221 : vector<1x1x17x1xf32> to vector<17x1xf32>
      %c2_i32_107 = arith.constant 2 : i32
      %223 = arith.addi %132, %c2_i32_107 : i32
      %c0_108 = arith.constant 0 : index
      %224 = arith.index_cast %223 : i32 to index
      %c0_109 = arith.constant 0 : index
      %c0_110 = arith.constant 0 : index
      %225 = vector.load %arg2[%c0_108, %224, %c0_109, %c0_110] : memref<1x18x17x1xf32, #tpu.memory_space<vmem>>, vector<1x1x17x1xf32>
      %226 = vector.shape_cast %225 : vector<1x1x17x1xf32> to vector<17x1xf32>
      %227 = vector.extract_strided_slice %222 {offsets = [0, 0], sizes = [16, 1], strides = [1, 1]} : vector<17x1xf32> to vector<16x1xf32>
      %228 = vector.extract_strided_slice %222 {offsets = [1, 0], sizes = [16, 1], strides = [1, 1]} : vector<17x1xf32> to vector<16x1xf32>
      %229 = vector.extract_strided_slice %226 {offsets = [0, 0], sizes = [16, 1], strides = [1, 1]} : vector<17x1xf32> to vector<16x1xf32>
      %230 = vector.extract_strided_slice %226 {offsets = [1, 0], sizes = [16, 1], strides = [1, 1]} : vector<17x1xf32> to vector<16x1xf32>
      %c2_111 = arith.constant 2 : index
      %c0_112 = arith.constant 0 : index
      %c0_113 = arith.constant 0 : index
      %c0_114 = arith.constant 0 : index
      %231 = vector.load %arg3[%c2_111, %c0_112, %c0_113, %c0_114] : memref<3x3x1x32xf32, #tpu.memory_space<vmem>>, vector<1x1x1x32xf32>
      %232 = vector.shape_cast %231 : vector<1x1x1x32xf32> to vector<1x32xf32>
      %233 = vector.broadcast %227 : vector<16x1xf32> to vector<16x32xf32>
      %234 = vector.broadcast %232 : vector<1x32xf32> to vector<16x32xf32>
      %235 = arith.mulf %233, %234 : vector<16x32xf32>
      %236 = arith.addf %214, %235 : vector<16x32xf32>
      %237 = vector.broadcast %229 : vector<16x1xf32> to vector<16x32xf32>
      %238 = vector.broadcast %232 : vector<1x32xf32> to vector<16x32xf32>
      %239 = arith.mulf %237, %238 : vector<16x32xf32>
      %240 = arith.addf %218, %239 : vector<16x32xf32>
      %c2_115 = arith.constant 2 : index
      %c1_116 = arith.constant 1 : index
      %c0_117 = arith.constant 0 : index
      %c0_118 = arith.constant 0 : index
      %241 = vector.load %arg3[%c2_115, %c1_116, %c0_117, %c0_118] : memref<3x3x1x32xf32, #tpu.memory_space<vmem>>, vector<1x1x1x32xf32>
      %242 = vector.shape_cast %241 : vector<1x1x1x32xf32> to vector<1x32xf32>
      %243 = vector.broadcast %229 : vector<16x1xf32> to vector<16x32xf32>
      %244 = vector.broadcast %242 : vector<1x32xf32> to vector<16x32xf32>
      %245 = arith.mulf %243, %244 : vector<16x32xf32>
      %246 = arith.addf %236, %245 : vector<16x32xf32>
      %247 = vector.broadcast %228 : vector<16x1xf32> to vector<16x32xf32>
      %248 = vector.broadcast %242 : vector<1x32xf32> to vector<16x32xf32>
      %249 = arith.mulf %247, %248 : vector<16x32xf32>
      %250 = arith.addf %240, %249 : vector<16x32xf32>
      %c2_119 = arith.constant 2 : index
      %c2_120 = arith.constant 2 : index
      %c0_121 = arith.constant 0 : index
      %c0_122 = arith.constant 0 : index
      %251 = vector.load %arg3[%c2_119, %c2_120, %c0_121, %c0_122] : memref<3x3x1x32xf32, #tpu.memory_space<vmem>>, vector<1x1x1x32xf32>
      %252 = vector.shape_cast %251 : vector<1x1x1x32xf32> to vector<1x32xf32>
      %253 = vector.broadcast %228 : vector<16x1xf32> to vector<16x32xf32>
      %254 = vector.broadcast %252 : vector<1x32xf32> to vector<16x32xf32>
      %255 = arith.mulf %253, %254 : vector<16x32xf32>
      %256 = arith.addf %246, %255 : vector<16x32xf32>
      %257 = vector.broadcast %230 : vector<16x1xf32> to vector<16x32xf32>
      %258 = vector.broadcast %252 : vector<1x32xf32> to vector<16x32xf32>
      %259 = arith.mulf %257, %258 : vector<16x32xf32>
      %260 = arith.addf %250, %259 : vector<16x32xf32>
      %261 = arith.maximumf %256, %260 : vector<16x32xf32>
      %262 = arith.maximumf %130, %261 : vector<16x32xf32>
      %c0_123 = arith.constant 0 : index
      %c0_124 = arith.constant 0 : index
      %263 = vector.load %arg4[%c0_123, %c0_124] : memref<1x32xf32, #tpu.memory_space<vmem>>, vector<1x32xf32>
      %264 = vector.broadcast %263 : vector<1x32xf32> to vector<16x32xf32>
      %265 = arith.addf %262, %264 : vector<16x32xf32>
      %cst_125 = arith.constant 0.000000e+00 : f32
      %266 = vector.broadcast %cst_125 : f32 to vector<16x32xf32>
      %267 = arith.maximumf %265, %266 : vector<16x32xf32>
      %c0_126 = arith.constant 0 : index
      %268 = arith.index_cast %arg6 : i32 to index
      %c0_127 = arith.constant 0 : index
      %c0_128 = arith.constant 0 : index
      %269 = vector.load %arg5[%c0_126, %268, %c0_127, %c0_128] : memref<1x8x16x32xf32, #tpu.memory_space<vmem>>, vector<1x1x16x32xf32>
      %270 = vector.shape_cast %269 : vector<1x1x16x32xf32> to vector<16x32xf32>
      %271 = vector.shape_cast %267 : vector<16x32xf32> to vector<1x1x16x32xf32>
      tpu.vector_store %arg5[%c0_126, %268, %c0_127, %c0_128], %271 {strides = array<i32>} : memref<1x8x16x32xf32, #tpu.memory_space<vmem>>, vector<1x1x16x32xf32>,
    }
    %c8_i32_0 = arith.constant 8 : i32
    return
  }
  func.func @transform_0(%arg0: i32) -> (i32, i32, i32, i32) {
    %c0_i32 = arith.constant 0 : i32
    %c0_i32_0 = arith.constant 0 : i32
    %c0_i32_1 = arith.constant 0 : i32
    %c0_i32_2 = arith.constant 0 : i32
    return %arg0, %c0_i32, %c0_i32_0, %c0_i32_1 : i32, i32, i32, i32
  }
  func.func @transform_1(%arg0: i32) -> (i32, i32, i32, i32) {
    %c0_i32 = arith.constant 0 : i32
    %c0_i32_0 = arith.constant 0 : i32
    %c0_i32_1 = arith.constant 0 : i32
    %c0_i32_2 = arith.constant 0 : i32
    return %arg0, %c0_i32, %c0_i32_0, %c0_i32_1 : i32, i32, i32, i32
  }
  func.func @transform_2(%arg0: i32) -> (i32, i32, i32, i32) {
    %c0_i32 = arith.constant 0 : i32
    %c0_i32_0 = arith.constant 0 : i32
    %c0_i32_1 = arith.constant 0 : i32
    %c0_i32_2 = arith.constant 0 : i32
    %c0_i32_3 = arith.constant 0 : i32
    return %c0_i32, %c0_i32_0, %c0_i32_1, %c0_i32_2 : i32, i32, i32, i32
  }
  func.func @transform_3(%arg0: i32) -> (i32, i32) {
    %c0_i32 = arith.constant 0 : i32
    %c0_i32_0 = arith.constant 0 : i32
    %c0_i32_1 = arith.constant 0 : i32
    return %c0_i32, %c0_i32_0 : i32, i32
  }
  func.func @transform_4(%arg0: i32) -> (i32, i32, i32, i32) {
    %c0_i32 = arith.constant 0 : i32
    %c0_i32_0 = arith.constant 0 : i32
    %c0_i32_1 = arith.constant 0 : i32
    %c0_i32_2 = arith.constant 0 : i32
    return %arg0, %c0_i32, %c0_i32_0, %c0_i32_1 : i32, i32, i32, i32
  }
}

module attributes {stable_mosaic.version = 11 : i64} {
  func.func @_conv_bn_relu_pool_kernel(%arg0: i32, %arg1: memref<1x10x9x32xf32, #tpu.memory_space<vmem>>, %arg2: memref<1x10x9x32xf32, #tpu.memory_space<vmem>>, %arg3: memref<3x3x32x64xf32, #tpu.memory_space<vmem>>, %arg4: memref<1x64xf32, #tpu.memory_space<vmem>>, %arg5: memref<1x4x8x64xf32, #tpu.memory_space<vmem>>) attributes {dimension_semantics = [#tpu.dimension_semantics<parallel>], iteration_bounds = array<i64: 2>, scalar_prefetch = 0 : i64, scratch_operands = 0 : i64, tpu.core_type = #tpu.core_type<tc>, window_params = [{transform_indices = @transform_0, window_bounds = array<i64: 1, 10, 9, 32>}, {transform_indices = @transform_1, window_bounds = array<i64: 1, 10, 9, 32>}, {pipeline_mode = #tpu.pipeline_mode<synchronous>, transform_indices = @transform_2, window_bounds = array<i64: 3, 3, 32, 64>}, {pipeline_mode = #tpu.pipeline_mode<synchronous>, transform_indices = @transform_3, window_bounds = array<i64: 1, 64>}, {transform_indices = @transform_4, window_bounds = array<i64: 1, 4, 8, 64>}]} {
    %c0_i32 = arith.constant 0 : i32
    %c4_i32 = arith.constant 4 : i32
    %0 = arith.addi %c0_i32, %c4_i32 : i32
    %c1_i32 = arith.constant 1 : i32
    scf.for %arg6 = %c0_i32 to %0 step %c1_i32  : i32 {
      %c2_i32 = arith.constant 2 : i32
      %1 = arith.muli %c2_i32, %arg6 : i32
      %cst = arith.constant 0.000000e+00 : f32
      %2 = vector.broadcast %cst : f32 to vector<8x64xf32>
      %cst_1 = arith.constant 0.000000e+00 : f32
      %3 = vector.broadcast %cst_1 : f32 to vector<8x64xf32>
      %c0_i32_2 = arith.constant 0 : i32
      %4 = arith.addi %1, %c0_i32_2 : i32
      %c0 = arith.constant 0 : index
      %5 = arith.index_cast %4 : i32 to index
      %c0_3 = arith.constant 0 : index
      %c0_4 = arith.constant 0 : index
      %6 = vector.load %arg1[%c0, %5, %c0_3, %c0_4] : memref<1x10x9x32xf32, #tpu.memory_space<vmem>>, vector<1x1x9x32xf32>
      %7 = vector.shape_cast %6 : vector<1x1x9x32xf32> to vector<9x32xf32>
      %c0_i32_5 = arith.constant 0 : i32
      %8 = arith.addi %1, %c0_i32_5 : i32
      %c0_6 = arith.constant 0 : index
      %9 = arith.index_cast %8 : i32 to index
      %c0_7 = arith.constant 0 : index
      %c0_8 = arith.constant 0 : index
      %10 = vector.load %arg2[%c0_6, %9, %c0_7, %c0_8] : memref<1x10x9x32xf32, #tpu.memory_space<vmem>>, vector<1x1x9x32xf32>
      %11 = vector.shape_cast %10 : vector<1x1x9x32xf32> to vector<9x32xf32>
      %12 = vector.extract_strided_slice %7 {offsets = [0, 0], sizes = [8, 32], strides = [1, 1]} : vector<9x32xf32> to vector<8x32xf32>
      %13 = vector.extract_strided_slice %7 {offsets = [1, 0], sizes = [8, 32], strides = [1, 1]} : vector<9x32xf32> to vector<8x32xf32>
      %14 = vector.extract_strided_slice %11 {offsets = [0, 0], sizes = [8, 32], strides = [1, 1]} : vector<9x32xf32> to vector<8x32xf32>
      %15 = vector.extract_strided_slice %11 {offsets = [1, 0], sizes = [8, 32], strides = [1, 1]} : vector<9x32xf32> to vector<8x32xf32>
      %c0_9 = arith.constant 0 : index
      %c0_10 = arith.constant 0 : index
      %c0_11 = arith.constant 0 : index
      %c0_12 = arith.constant 0 : index
      %16 = vector.load %arg3[%c0_9, %c0_10, %c0_11, %c0_12] : memref<3x3x32x64xf32, #tpu.memory_space<vmem>>, vector<1x1x32x64xf32>
      %17 = vector.shape_cast %16 : vector<1x1x32x64xf32> to vector<32x64xf32>
      %cst_13 = arith.constant dense<0.000000e+00> : vector<8x64xf32>
      %18 = tpu.matmul %12, %17, %cst_13 {dimension_numbers = #tpu.dot_dimension_numbers<[1], [0], [0], [1], [0, 0, 1, 1], [], []>} : vector<8x32xf32>, vector<32x64xf32>, vector<8x64xf32> -> vector<8x64xf32>
      %19 = arith.addf %2, %18 : vector<8x64xf32>
      %cst_14 = arith.constant dense<0.000000e+00> : vector<8x64xf32>
      %20 = tpu.matmul %14, %17, %cst_14 {dimension_numbers = #tpu.dot_dimension_numbers<[1], [0], [0], [1], [0, 0, 1, 1], [], []>} : vector<8x32xf32>, vector<32x64xf32>, vector<8x64xf32> -> vector<8x64xf32>
      %21 = arith.addf %3, %20 : vector<8x64xf32>
      %c0_15 = arith.constant 0 : index
      %c1 = arith.constant 1 : index
      %c0_16 = arith.constant 0 : index
      %c0_17 = arith.constant 0 : index
      %22 = vector.load %arg3[%c0_15, %c1, %c0_16, %c0_17] : memref<3x3x32x64xf32, #tpu.memory_space<vmem>>, vector<1x1x32x64xf32>
      %23 = vector.shape_cast %22 : vector<1x1x32x64xf32> to vector<32x64xf32>
      %cst_18 = arith.constant dense<0.000000e+00> : vector<8x64xf32>
      %24 = tpu.matmul %14, %23, %cst_18 {dimension_numbers = #tpu.dot_dimension_numbers<[1], [0], [0], [1], [0, 0, 1, 1], [], []>} : vector<8x32xf32>, vector<32x64xf32>, vector<8x64xf32> -> vector<8x64xf32>
      %25 = arith.addf %19, %24 : vector<8x64xf32>
      %cst_19 = arith.constant dense<0.000000e+00> : vector<8x64xf32>
      %26 = tpu.matmul %13, %23, %cst_19 {dimension_numbers = #tpu.dot_dimension_numbers<[1], [0], [0], [1], [0, 0, 1, 1], [], []>} : vector<8x32xf32>, vector<32x64xf32>, vector<8x64xf32> -> vector<8x64xf32>
      %27 = arith.addf %21, %26 : vector<8x64xf32>
      %c0_20 = arith.constant 0 : index
      %c2 = arith.constant 2 : index
      %c0_21 = arith.constant 0 : index
      %c0_22 = arith.constant 0 : index
      %28 = vector.load %arg3[%c0_20, %c2, %c0_21, %c0_22] : memref<3x3x32x64xf32, #tpu.memory_space<vmem>>, vector<1x1x32x64xf32>
      %29 = vector.shape_cast %28 : vector<1x1x32x64xf32> to vector<32x64xf32>
      %cst_23 = arith.constant dense<0.000000e+00> : vector<8x64xf32>
      %30 = tpu.matmul %13, %29, %cst_23 {dimension_numbers = #tpu.dot_dimension_numbers<[1], [0], [0], [1], [0, 0, 1, 1], [], []>} : vector<8x32xf32>, vector<32x64xf32>, vector<8x64xf32> -> vector<8x64xf32>
      %31 = arith.addf %25, %30 : vector<8x64xf32>
      %cst_24 = arith.constant dense<0.000000e+00> : vector<8x64xf32>
      %32 = tpu.matmul %15, %29, %cst_24 {dimension_numbers = #tpu.dot_dimension_numbers<[1], [0], [0], [1], [0, 0, 1, 1], [], []>} : vector<8x32xf32>, vector<32x64xf32>, vector<8x64xf32> -> vector<8x64xf32>
      %33 = arith.addf %27, %32 : vector<8x64xf32>
      %c1_i32_25 = arith.constant 1 : i32
      %34 = arith.addi %1, %c1_i32_25 : i32
      %c0_26 = arith.constant 0 : index
      %35 = arith.index_cast %34 : i32 to index
      %c0_27 = arith.constant 0 : index
      %c0_28 = arith.constant 0 : index
      %36 = vector.load %arg1[%c0_26, %35, %c0_27, %c0_28] : memref<1x10x9x32xf32, #tpu.memory_space<vmem>>, vector<1x1x9x32xf32>
      %37 = vector.shape_cast %36 : vector<1x1x9x32xf32> to vector<9x32xf32>
      %c1_i32_29 = arith.constant 1 : i32
      %38 = arith.addi %1, %c1_i32_29 : i32
      %c0_30 = arith.constant 0 : index
      %39 = arith.index_cast %38 : i32 to index
      %c0_31 = arith.constant 0 : index
      %c0_32 = arith.constant 0 : index
      %40 = vector.load %arg2[%c0_30, %39, %c0_31, %c0_32] : memref<1x10x9x32xf32, #tpu.memory_space<vmem>>, vector<1x1x9x32xf32>
      %41 = vector.shape_cast %40 : vector<1x1x9x32xf32> to vector<9x32xf32>
      %42 = vector.extract_strided_slice %37 {offsets = [0, 0], sizes = [8, 32], strides = [1, 1]} : vector<9x32xf32> to vector<8x32xf32>
      %43 = vector.extract_strided_slice %37 {offsets = [1, 0], sizes = [8, 32], strides = [1, 1]} : vector<9x32xf32> to vector<8x32xf32>
      %44 = vector.extract_strided_slice %41 {offsets = [0, 0], sizes = [8, 32], strides = [1, 1]} : vector<9x32xf32> to vector<8x32xf32>
      %45 = vector.extract_strided_slice %41 {offsets = [1, 0], sizes = [8, 32], strides = [1, 1]} : vector<9x32xf32> to vector<8x32xf32>
      %c1_33 = arith.constant 1 : index
      %c0_34 = arith.constant 0 : index
      %c0_35 = arith.constant 0 : index
      %c0_36 = arith.constant 0 : index
      %46 = vector.load %arg3[%c1_33, %c0_34, %c0_35, %c0_36] : memref<3x3x32x64xf32, #tpu.memory_space<vmem>>, vector<1x1x32x64xf32>
      %47 = vector.shape_cast %46 : vector<1x1x32x64xf32> to vector<32x64xf32>
      %cst_37 = arith.constant dense<0.000000e+00> : vector<8x64xf32>
      %48 = tpu.matmul %42, %47, %cst_37 {dimension_numbers = #tpu.dot_dimension_numbers<[1], [0], [0], [1], [0, 0, 1, 1], [], []>} : vector<8x32xf32>, vector<32x64xf32>, vector<8x64xf32> -> vector<8x64xf32>
      %49 = arith.addf %31, %48 : vector<8x64xf32>
      %cst_38 = arith.constant dense<0.000000e+00> : vector<8x64xf32>
      %50 = tpu.matmul %44, %47, %cst_38 {dimension_numbers = #tpu.dot_dimension_numbers<[1], [0], [0], [1], [0, 0, 1, 1], [], []>} : vector<8x32xf32>, vector<32x64xf32>, vector<8x64xf32> -> vector<8x64xf32>
      %51 = arith.addf %33, %50 : vector<8x64xf32>
      %c1_39 = arith.constant 1 : index
      %c1_40 = arith.constant 1 : index
      %c0_41 = arith.constant 0 : index
      %c0_42 = arith.constant 0 : index
      %52 = vector.load %arg3[%c1_39, %c1_40, %c0_41, %c0_42] : memref<3x3x32x64xf32, #tpu.memory_space<vmem>>, vector<1x1x32x64xf32>
      %53 = vector.shape_cast %52 : vector<1x1x32x64xf32> to vector<32x64xf32>
      %cst_43 = arith.constant dense<0.000000e+00> : vector<8x64xf32>
      %54 = tpu.matmul %44, %53, %cst_43 {dimension_numbers = #tpu.dot_dimension_numbers<[1], [0], [0], [1], [0, 0, 1, 1], [], []>} : vector<8x32xf32>, vector<32x64xf32>, vector<8x64xf32> -> vector<8x64xf32>
      %55 = arith.addf %49, %54 : vector<8x64xf32>
      %cst_44 = arith.constant dense<0.000000e+00> : vector<8x64xf32>
      %56 = tpu.matmul %43, %53, %cst_44 {dimension_numbers = #tpu.dot_dimension_numbers<[1], [0], [0], [1], [0, 0, 1, 1], [], []>} : vector<8x32xf32>, vector<32x64xf32>, vector<8x64xf32> -> vector<8x64xf32>
      %57 = arith.addf %51, %56 : vector<8x64xf32>
      %c1_45 = arith.constant 1 : index
      %c2_46 = arith.constant 2 : index
      %c0_47 = arith.constant 0 : index
      %c0_48 = arith.constant 0 : index
      %58 = vector.load %arg3[%c1_45, %c2_46, %c0_47, %c0_48] : memref<3x3x32x64xf32, #tpu.memory_space<vmem>>, vector<1x1x32x64xf32>
      %59 = vector.shape_cast %58 : vector<1x1x32x64xf32> to vector<32x64xf32>
      %cst_49 = arith.constant dense<0.000000e+00> : vector<8x64xf32>
      %60 = tpu.matmul %43, %59, %cst_49 {dimension_numbers = #tpu.dot_dimension_numbers<[1], [0], [0], [1], [0, 0, 1, 1], [], []>} : vector<8x32xf32>, vector<32x64xf32>, vector<8x64xf32> -> vector<8x64xf32>
      %61 = arith.addf %55, %60 : vector<8x64xf32>
      %cst_50 = arith.constant dense<0.000000e+00> : vector<8x64xf32>
      %62 = tpu.matmul %45, %59, %cst_50 {dimension_numbers = #tpu.dot_dimension_numbers<[1], [0], [0], [1], [0, 0, 1, 1], [], []>} : vector<8x32xf32>, vector<32x64xf32>, vector<8x64xf32> -> vector<8x64xf32>
      %63 = arith.addf %57, %62 : vector<8x64xf32>
      %c2_i32_51 = arith.constant 2 : i32
      %64 = arith.addi %1, %c2_i32_51 : i32
      %c0_52 = arith.constant 0 : index
      %65 = arith.index_cast %64 : i32 to index
      %c0_53 = arith.constant 0 : index
      %c0_54 = arith.constant 0 : index
      %66 = vector.load %arg1[%c0_52, %65, %c0_53, %c0_54] : memref<1x10x9x32xf32, #tpu.memory_space<vmem>>, vector<1x1x9x32xf32>
      %67 = vector.shape_cast %66 : vector<1x1x9x32xf32> to vector<9x32xf32>
      %c2_i32_55 = arith.constant 2 : i32
      %68 = arith.addi %1, %c2_i32_55 : i32
      %c0_56 = arith.constant 0 : index
      %69 = arith.index_cast %68 : i32 to index
      %c0_57 = arith.constant 0 : index
      %c0_58 = arith.constant 0 : index
      %70 = vector.load %arg2[%c0_56, %69, %c0_57, %c0_58] : memref<1x10x9x32xf32, #tpu.memory_space<vmem>>, vector<1x1x9x32xf32>
      %71 = vector.shape_cast %70 : vector<1x1x9x32xf32> to vector<9x32xf32>
      %72 = vector.extract_strided_slice %67 {offsets = [0, 0], sizes = [8, 32], strides = [1, 1]} : vector<9x32xf32> to vector<8x32xf32>
      %73 = vector.extract_strided_slice %67 {offsets = [1, 0], sizes = [8, 32], strides = [1, 1]} : vector<9x32xf32> to vector<8x32xf32>
      %74 = vector.extract_strided_slice %71 {offsets = [0, 0], sizes = [8, 32], strides = [1, 1]} : vector<9x32xf32> to vector<8x32xf32>
      %75 = vector.extract_strided_slice %71 {offsets = [1, 0], sizes = [8, 32], strides = [1, 1]} : vector<9x32xf32> to vector<8x32xf32>
      %c2_59 = arith.constant 2 : index
      %c0_60 = arith.constant 0 : index
      %c0_61 = arith.constant 0 : index
      %c0_62 = arith.constant 0 : index
      %76 = vector.load %arg3[%c2_59, %c0_60, %c0_61, %c0_62] : memref<3x3x32x64xf32, #tpu.memory_space<vmem>>, vector<1x1x32x64xf32>
      %77 = vector.shape_cast %76 : vector<1x1x32x64xf32> to vector<32x64xf32>
      %cst_63 = arith.constant dense<0.000000e+00> : vector<8x64xf32>
      %78 = tpu.matmul %72, %77, %cst_63 {dimension_numbers = #tpu.dot_dimension_numbers<[1], [0], [0], [1], [0, 0, 1, 1], [], []>} : vector<8x32xf32>, vector<32x64xf32>, vector<8x64xf32> -> vector<8x64xf32>
      %79 = arith.addf %61, %78 : vector<8x64xf32>
      %cst_64 = arith.constant dense<0.000000e+00> : vector<8x64xf32>
      %80 = tpu.matmul %74, %77, %cst_64 {dimension_numbers = #tpu.dot_dimension_numbers<[1], [0], [0], [1], [0, 0, 1, 1], [], []>} : vector<8x32xf32>, vector<32x64xf32>, vector<8x64xf32> -> vector<8x64xf32>
      %81 = arith.addf %63, %80 : vector<8x64xf32>
      %c2_65 = arith.constant 2 : index
      %c1_66 = arith.constant 1 : index
      %c0_67 = arith.constant 0 : index
      %c0_68 = arith.constant 0 : index
      %82 = vector.load %arg3[%c2_65, %c1_66, %c0_67, %c0_68] : memref<3x3x32x64xf32, #tpu.memory_space<vmem>>, vector<1x1x32x64xf32>
      %83 = vector.shape_cast %82 : vector<1x1x32x64xf32> to vector<32x64xf32>
      %cst_69 = arith.constant dense<0.000000e+00> : vector<8x64xf32>
      %84 = tpu.matmul %74, %83, %cst_69 {dimension_numbers = #tpu.dot_dimension_numbers<[1], [0], [0], [1], [0, 0, 1, 1], [], []>} : vector<8x32xf32>, vector<32x64xf32>, vector<8x64xf32> -> vector<8x64xf32>
      %85 = arith.addf %79, %84 : vector<8x64xf32>
      %cst_70 = arith.constant dense<0.000000e+00> : vector<8x64xf32>
      %86 = tpu.matmul %73, %83, %cst_70 {dimension_numbers = #tpu.dot_dimension_numbers<[1], [0], [0], [1], [0, 0, 1, 1], [], []>} : vector<8x32xf32>, vector<32x64xf32>, vector<8x64xf32> -> vector<8x64xf32>
      %87 = arith.addf %81, %86 : vector<8x64xf32>
      %c2_71 = arith.constant 2 : index
      %c2_72 = arith.constant 2 : index
      %c0_73 = arith.constant 0 : index
      %c0_74 = arith.constant 0 : index
      %88 = vector.load %arg3[%c2_71, %c2_72, %c0_73, %c0_74] : memref<3x3x32x64xf32, #tpu.memory_space<vmem>>, vector<1x1x32x64xf32>
      %89 = vector.shape_cast %88 : vector<1x1x32x64xf32> to vector<32x64xf32>
      %cst_75 = arith.constant dense<0.000000e+00> : vector<8x64xf32>
      %90 = tpu.matmul %73, %89, %cst_75 {dimension_numbers = #tpu.dot_dimension_numbers<[1], [0], [0], [1], [0, 0, 1, 1], [], []>} : vector<8x32xf32>, vector<32x64xf32>, vector<8x64xf32> -> vector<8x64xf32>
      %91 = arith.addf %85, %90 : vector<8x64xf32>
      %cst_76 = arith.constant dense<0.000000e+00> : vector<8x64xf32>
      %92 = tpu.matmul %75, %89, %cst_76 {dimension_numbers = #tpu.dot_dimension_numbers<[1], [0], [0], [1], [0, 0, 1, 1], [], []>} : vector<8x32xf32>, vector<32x64xf32>, vector<8x64xf32> -> vector<8x64xf32>
      %93 = arith.addf %87, %92 : vector<8x64xf32>
      %94 = arith.maximumf %91, %93 : vector<8x64xf32>
      %c2_i32_77 = arith.constant 2 : i32
      %95 = arith.muli %c2_i32_77, %arg6 : i32
      %c1_i32_78 = arith.constant 1 : i32
      %96 = arith.addi %95, %c1_i32_78 : i32
      %cst_79 = arith.constant 0.000000e+00 : f32
      %97 = vector.broadcast %cst_79 : f32 to vector<8x64xf32>
      %cst_80 = arith.constant 0.000000e+00 : f32
      %98 = vector.broadcast %cst_80 : f32 to vector<8x64xf32>
      %c0_i32_81 = arith.constant 0 : i32
      %99 = arith.addi %96, %c0_i32_81 : i32
      %c0_82 = arith.constant 0 : index
      %100 = arith.index_cast %99 : i32 to index
      %c0_83 = arith.constant 0 : index
      %c0_84 = arith.constant 0 : index
      %101 = vector.load %arg1[%c0_82, %100, %c0_83, %c0_84] : memref<1x10x9x32xf32, #tpu.memory_space<vmem>>, vector<1x1x9x32xf32>
      %102 = vector.shape_cast %101 : vector<1x1x9x32xf32> to vector<9x32xf32>
      %c0_i32_85 = arith.constant 0 : i32
      %103 = arith.addi %96, %c0_i32_85 : i32
      %c0_86 = arith.constant 0 : index
      %104 = arith.index_cast %103 : i32 to index
      %c0_87 = arith.constant 0 : index
      %c0_88 = arith.constant 0 : index
      %105 = vector.load %arg2[%c0_86, %104, %c0_87, %c0_88] : memref<1x10x9x32xf32, #tpu.memory_space<vmem>>, vector<1x1x9x32xf32>
      %106 = vector.shape_cast %105 : vector<1x1x9x32xf32> to vector<9x32xf32>
      %107 = vector.extract_strided_slice %102 {offsets = [0, 0], sizes = [8, 32], strides = [1, 1]} : vector<9x32xf32> to vector<8x32xf32>
      %108 = vector.extract_strided_slice %102 {offsets = [1, 0], sizes = [8, 32], strides = [1, 1]} : vector<9x32xf32> to vector<8x32xf32>
      %109 = vector.extract_strided_slice %106 {offsets = [0, 0], sizes = [8, 32], strides = [1, 1]} : vector<9x32xf32> to vector<8x32xf32>
      %110 = vector.extract_strided_slice %106 {offsets = [1, 0], sizes = [8, 32], strides = [1, 1]} : vector<9x32xf32> to vector<8x32xf32>
      %c0_89 = arith.constant 0 : index
      %c0_90 = arith.constant 0 : index
      %c0_91 = arith.constant 0 : index
      %c0_92 = arith.constant 0 : index
      %111 = vector.load %arg3[%c0_89, %c0_90, %c0_91, %c0_92] : memref<3x3x32x64xf32, #tpu.memory_space<vmem>>, vector<1x1x32x64xf32>
      %112 = vector.shape_cast %111 : vector<1x1x32x64xf32> to vector<32x64xf32>
      %cst_93 = arith.constant dense<0.000000e+00> : vector<8x64xf32>
      %113 = tpu.matmul %107, %112, %cst_93 {dimension_numbers = #tpu.dot_dimension_numbers<[1], [0], [0], [1], [0, 0, 1, 1], [], []>} : vector<8x32xf32>, vector<32x64xf32>, vector<8x64xf32> -> vector<8x64xf32>
      %114 = arith.addf %97, %113 : vector<8x64xf32>
      %cst_94 = arith.constant dense<0.000000e+00> : vector<8x64xf32>
      %115 = tpu.matmul %109, %112, %cst_94 {dimension_numbers = #tpu.dot_dimension_numbers<[1], [0], [0], [1], [0, 0, 1, 1], [], []>} : vector<8x32xf32>, vector<32x64xf32>, vector<8x64xf32> -> vector<8x64xf32>
      %116 = arith.addf %98, %115 : vector<8x64xf32>
      %c0_95 = arith.constant 0 : index
      %c1_96 = arith.constant 1 : index
      %c0_97 = arith.constant 0 : index
      %c0_98 = arith.constant 0 : index
      %117 = vector.load %arg3[%c0_95, %c1_96, %c0_97, %c0_98] : memref<3x3x32x64xf32, #tpu.memory_space<vmem>>, vector<1x1x32x64xf32>
      %118 = vector.shape_cast %117 : vector<1x1x32x64xf32> to vector<32x64xf32>
      %cst_99 = arith.constant dense<0.000000e+00> : vector<8x64xf32>
      %119 = tpu.matmul %109, %118, %cst_99 {dimension_numbers = #tpu.dot_dimension_numbers<[1], [0], [0], [1], [0, 0, 1, 1], [], []>} : vector<8x32xf32>, vector<32x64xf32>, vector<8x64xf32> -> vector<8x64xf32>
      %120 = arith.addf %114, %119 : vector<8x64xf32>
      %cst_100 = arith.constant dense<0.000000e+00> : vector<8x64xf32>
      %121 = tpu.matmul %108, %118, %cst_100 {dimension_numbers = #tpu.dot_dimension_numbers<[1], [0], [0], [1], [0, 0, 1, 1], [], []>} : vector<8x32xf32>, vector<32x64xf32>, vector<8x64xf32> -> vector<8x64xf32>
      %122 = arith.addf %116, %121 : vector<8x64xf32>
      %c0_101 = arith.constant 0 : index
      %c2_102 = arith.constant 2 : index
      %c0_103 = arith.constant 0 : index
      %c0_104 = arith.constant 0 : index
      %123 = vector.load %arg3[%c0_101, %c2_102, %c0_103, %c0_104] : memref<3x3x32x64xf32, #tpu.memory_space<vmem>>, vector<1x1x32x64xf32>
      %124 = vector.shape_cast %123 : vector<1x1x32x64xf32> to vector<32x64xf32>
      %cst_105 = arith.constant dense<0.000000e+00> : vector<8x64xf32>
      %125 = tpu.matmul %108, %124, %cst_105 {dimension_numbers = #tpu.dot_dimension_numbers<[1], [0], [0], [1], [0, 0, 1, 1], [], []>} : vector<8x32xf32>, vector<32x64xf32>, vector<8x64xf32> -> vector<8x64xf32>
      %126 = arith.addf %120, %125 : vector<8x64xf32>
      %cst_106 = arith.constant dense<0.000000e+00> : vector<8x64xf32>
      %127 = tpu.matmul %110, %124, %cst_106 {dimension_numbers = #tpu.dot_dimension_numbers<[1], [0], [0], [1], [0, 0, 1, 1], [], []>} : vector<8x32xf32>, vector<32x64xf32>, vector<8x64xf32> -> vector<8x64xf32>
      %128 = arith.addf %122, %127 : vector<8x64xf32>
      %c1_i32_107 = arith.constant 1 : i32
      %129 = arith.addi %96, %c1_i32_107 : i32
      %c0_108 = arith.constant 0 : index
      %130 = arith.index_cast %129 : i32 to index
      %c0_109 = arith.constant 0 : index
      %c0_110 = arith.constant 0 : index
      %131 = vector.load %arg1[%c0_108, %130, %c0_109, %c0_110] : memref<1x10x9x32xf32, #tpu.memory_space<vmem>>, vector<1x1x9x32xf32>
      %132 = vector.shape_cast %131 : vector<1x1x9x32xf32> to vector<9x32xf32>
      %c1_i32_111 = arith.constant 1 : i32
      %133 = arith.addi %96, %c1_i32_111 : i32
      %c0_112 = arith.constant 0 : index
      %134 = arith.index_cast %133 : i32 to index
      %c0_113 = arith.constant 0 : index
      %c0_114 = arith.constant 0 : index
      %135 = vector.load %arg2[%c0_112, %134, %c0_113, %c0_114] : memref<1x10x9x32xf32, #tpu.memory_space<vmem>>, vector<1x1x9x32xf32>
      %136 = vector.shape_cast %135 : vector<1x1x9x32xf32> to vector<9x32xf32>
      %137 = vector.extract_strided_slice %132 {offsets = [0, 0], sizes = [8, 32], strides = [1, 1]} : vector<9x32xf32> to vector<8x32xf32>
      %138 = vector.extract_strided_slice %132 {offsets = [1, 0], sizes = [8, 32], strides = [1, 1]} : vector<9x32xf32> to vector<8x32xf32>
      %139 = vector.extract_strided_slice %136 {offsets = [0, 0], sizes = [8, 32], strides = [1, 1]} : vector<9x32xf32> to vector<8x32xf32>
      %140 = vector.extract_strided_slice %136 {offsets = [1, 0], sizes = [8, 32], strides = [1, 1]} : vector<9x32xf32> to vector<8x32xf32>
      %c1_115 = arith.constant 1 : index
      %c0_116 = arith.constant 0 : index
      %c0_117 = arith.constant 0 : index
      %c0_118 = arith.constant 0 : index
      %141 = vector.load %arg3[%c1_115, %c0_116, %c0_117, %c0_118] : memref<3x3x32x64xf32, #tpu.memory_space<vmem>>, vector<1x1x32x64xf32>
      %142 = vector.shape_cast %141 : vector<1x1x32x64xf32> to vector<32x64xf32>
      %cst_119 = arith.constant dense<0.000000e+00> : vector<8x64xf32>
      %143 = tpu.matmul %137, %142, %cst_119 {dimension_numbers = #tpu.dot_dimension_numbers<[1], [0], [0], [1], [0, 0, 1, 1], [], []>} : vector<8x32xf32>, vector<32x64xf32>, vector<8x64xf32> -> vector<8x64xf32>
      %144 = arith.addf %126, %143 : vector<8x64xf32>
      %cst_120 = arith.constant dense<0.000000e+00> : vector<8x64xf32>
      %145 = tpu.matmul %139, %142, %cst_120 {dimension_numbers = #tpu.dot_dimension_numbers<[1], [0], [0], [1], [0, 0, 1, 1], [], []>} : vector<8x32xf32>, vector<32x64xf32>, vector<8x64xf32> -> vector<8x64xf32>
      %146 = arith.addf %128, %145 : vector<8x64xf32>
      %c1_121 = arith.constant 1 : index
      %c1_122 = arith.constant 1 : index
      %c0_123 = arith.constant 0 : index
      %c0_124 = arith.constant 0 : index
      %147 = vector.load %arg3[%c1_121, %c1_122, %c0_123, %c0_124] : memref<3x3x32x64xf32, #tpu.memory_space<vmem>>, vector<1x1x32x64xf32>
      %148 = vector.shape_cast %147 : vector<1x1x32x64xf32> to vector<32x64xf32>
      %cst_125 = arith.constant dense<0.000000e+00> : vector<8x64xf32>
      %149 = tpu.matmul %139, %148, %cst_125 {dimension_numbers = #tpu.dot_dimension_numbers<[1], [0], [0], [1], [0, 0, 1, 1], [], []>} : vector<8x32xf32>, vector<32x64xf32>, vector<8x64xf32> -> vector<8x64xf32>
      %150 = arith.addf %144, %149 : vector<8x64xf32>
      %cst_126 = arith.constant dense<0.000000e+00> : vector<8x64xf32>
      %151 = tpu.matmul %138, %148, %cst_126 {dimension_numbers = #tpu.dot_dimension_numbers<[1], [0], [0], [1], [0, 0, 1, 1], [], []>} : vector<8x32xf32>, vector<32x64xf32>, vector<8x64xf32> -> vector<8x64xf32>
      %152 = arith.addf %146, %151 : vector<8x64xf32>
      %c1_127 = arith.constant 1 : index
      %c2_128 = arith.constant 2 : index
      %c0_129 = arith.constant 0 : index
      %c0_130 = arith.constant 0 : index
      %153 = vector.load %arg3[%c1_127, %c2_128, %c0_129, %c0_130] : memref<3x3x32x64xf32, #tpu.memory_space<vmem>>, vector<1x1x32x64xf32>
      %154 = vector.shape_cast %153 : vector<1x1x32x64xf32> to vector<32x64xf32>
      %cst_131 = arith.constant dense<0.000000e+00> : vector<8x64xf32>
      %155 = tpu.matmul %138, %154, %cst_131 {dimension_numbers = #tpu.dot_dimension_numbers<[1], [0], [0], [1], [0, 0, 1, 1], [], []>} : vector<8x32xf32>, vector<32x64xf32>, vector<8x64xf32> -> vector<8x64xf32>
      %156 = arith.addf %150, %155 : vector<8x64xf32>
      %cst_132 = arith.constant dense<0.000000e+00> : vector<8x64xf32>
      %157 = tpu.matmul %140, %154, %cst_132 {dimension_numbers = #tpu.dot_dimension_numbers<[1], [0], [0], [1], [0, 0, 1, 1], [], []>} : vector<8x32xf32>, vector<32x64xf32>, vector<8x64xf32> -> vector<8x64xf32>
      %158 = arith.addf %152, %157 : vector<8x64xf32>
      %c2_i32_133 = arith.constant 2 : i32
      %159 = arith.addi %96, %c2_i32_133 : i32
      %c0_134 = arith.constant 0 : index
      %160 = arith.index_cast %159 : i32 to index
      %c0_135 = arith.constant 0 : index
      %c0_136 = arith.constant 0 : index
      %161 = vector.load %arg1[%c0_134, %160, %c0_135, %c0_136] : memref<1x10x9x32xf32, #tpu.memory_space<vmem>>, vector<1x1x9x32xf32>
      %162 = vector.shape_cast %161 : vector<1x1x9x32xf32> to vector<9x32xf32>
      %c2_i32_137 = arith.constant 2 : i32
      %163 = arith.addi %96, %c2_i32_137 : i32
      %c0_138 = arith.constant 0 : index
      %164 = arith.index_cast %163 : i32 to index
      %c0_139 = arith.constant 0 : index
      %c0_140 = arith.constant 0 : index
      %165 = vector.load %arg2[%c0_138, %164, %c0_139, %c0_140] : memref<1x10x9x32xf32, #tpu.memory_space<vmem>>, vector<1x1x9x32xf32>
      %166 = vector.shape_cast %165 : vector<1x1x9x32xf32> to vector<9x32xf32>
      %167 = vector.extract_strided_slice %162 {offsets = [0, 0], sizes = [8, 32], strides = [1, 1]} : vector<9x32xf32> to vector<8x32xf32>
      %168 = vector.extract_strided_slice %162 {offsets = [1, 0], sizes = [8, 32], strides = [1, 1]} : vector<9x32xf32> to vector<8x32xf32>
      %169 = vector.extract_strided_slice %166 {offsets = [0, 0], sizes = [8, 32], strides = [1, 1]} : vector<9x32xf32> to vector<8x32xf32>
      %170 = vector.extract_strided_slice %166 {offsets = [1, 0], sizes = [8, 32], strides = [1, 1]} : vector<9x32xf32> to vector<8x32xf32>
      %c2_141 = arith.constant 2 : index
      %c0_142 = arith.constant 0 : index
      %c0_143 = arith.constant 0 : index
      %c0_144 = arith.constant 0 : index
      %171 = vector.load %arg3[%c2_141, %c0_142, %c0_143, %c0_144] : memref<3x3x32x64xf32, #tpu.memory_space<vmem>>, vector<1x1x32x64xf32>
      %172 = vector.shape_cast %171 : vector<1x1x32x64xf32> to vector<32x64xf32>
      %cst_145 = arith.constant dense<0.000000e+00> : vector<8x64xf32>
      %173 = tpu.matmul %167, %172, %cst_145 {dimension_numbers = #tpu.dot_dimension_numbers<[1], [0], [0], [1], [0, 0, 1, 1], [], []>} : vector<8x32xf32>, vector<32x64xf32>, vector<8x64xf32> -> vector<8x64xf32>
      %174 = arith.addf %156, %173 : vector<8x64xf32>
      %cst_146 = arith.constant dense<0.000000e+00> : vector<8x64xf32>
      %175 = tpu.matmul %169, %172, %cst_146 {dimension_numbers = #tpu.dot_dimension_numbers<[1], [0], [0], [1], [0, 0, 1, 1], [], []>} : vector<8x32xf32>, vector<32x64xf32>, vector<8x64xf32> -> vector<8x64xf32>
      %176 = arith.addf %158, %175 : vector<8x64xf32>
      %c2_147 = arith.constant 2 : index
      %c1_148 = arith.constant 1 : index
      %c0_149 = arith.constant 0 : index
      %c0_150 = arith.constant 0 : index
      %177 = vector.load %arg3[%c2_147, %c1_148, %c0_149, %c0_150] : memref<3x3x32x64xf32, #tpu.memory_space<vmem>>, vector<1x1x32x64xf32>
      %178 = vector.shape_cast %177 : vector<1x1x32x64xf32> to vector<32x64xf32>
      %cst_151 = arith.constant dense<0.000000e+00> : vector<8x64xf32>
      %179 = tpu.matmul %169, %178, %cst_151 {dimension_numbers = #tpu.dot_dimension_numbers<[1], [0], [0], [1], [0, 0, 1, 1], [], []>} : vector<8x32xf32>, vector<32x64xf32>, vector<8x64xf32> -> vector<8x64xf32>
      %180 = arith.addf %174, %179 : vector<8x64xf32>
      %cst_152 = arith.constant dense<0.000000e+00> : vector<8x64xf32>
      %181 = tpu.matmul %168, %178, %cst_152 {dimension_numbers = #tpu.dot_dimension_numbers<[1], [0], [0], [1], [0, 0, 1, 1], [], []>} : vector<8x32xf32>, vector<32x64xf32>, vector<8x64xf32> -> vector<8x64xf32>
      %182 = arith.addf %176, %181 : vector<8x64xf32>
      %c2_153 = arith.constant 2 : index
      %c2_154 = arith.constant 2 : index
      %c0_155 = arith.constant 0 : index
      %c0_156 = arith.constant 0 : index
      %183 = vector.load %arg3[%c2_153, %c2_154, %c0_155, %c0_156] : memref<3x3x32x64xf32, #tpu.memory_space<vmem>>, vector<1x1x32x64xf32>
      %184 = vector.shape_cast %183 : vector<1x1x32x64xf32> to vector<32x64xf32>
      %cst_157 = arith.constant dense<0.000000e+00> : vector<8x64xf32>
      %185 = tpu.matmul %168, %184, %cst_157 {dimension_numbers = #tpu.dot_dimension_numbers<[1], [0], [0], [1], [0, 0, 1, 1], [], []>} : vector<8x32xf32>, vector<32x64xf32>, vector<8x64xf32> -> vector<8x64xf32>
      %186 = arith.addf %180, %185 : vector<8x64xf32>
      %cst_158 = arith.constant dense<0.000000e+00> : vector<8x64xf32>
      %187 = tpu.matmul %170, %184, %cst_158 {dimension_numbers = #tpu.dot_dimension_numbers<[1], [0], [0], [1], [0, 0, 1, 1], [], []>} : vector<8x32xf32>, vector<32x64xf32>, vector<8x64xf32> -> vector<8x64xf32>
      %188 = arith.addf %182, %187 : vector<8x64xf32>
      %189 = arith.maximumf %186, %188 : vector<8x64xf32>
      %190 = arith.maximumf %94, %189 : vector<8x64xf32>
      %c0_159 = arith.constant 0 : index
      %c0_160 = arith.constant 0 : index
      %191 = vector.load %arg4[%c0_159, %c0_160] : memref<1x64xf32, #tpu.memory_space<vmem>>, vector<1x64xf32>
      %192 = vector.broadcast %191 : vector<1x64xf32> to vector<8x64xf32>
      %193 = arith.addf %190, %192 : vector<8x64xf32>
      %cst_161 = arith.constant 0.000000e+00 : f32
      %194 = vector.broadcast %cst_161 : f32 to vector<8x64xf32>
      %195 = arith.maximumf %193, %194 : vector<8x64xf32>
      %c0_162 = arith.constant 0 : index
      %196 = arith.index_cast %arg6 : i32 to index
      %c0_163 = arith.constant 0 : index
      %c0_164 = arith.constant 0 : index
      %197 = vector.load %arg5[%c0_162, %196, %c0_163, %c0_164] : memref<1x4x8x64xf32, #tpu.memory_space<vmem>>, vector<1x1x8x64xf32>
      %198 = vector.shape_cast %197 : vector<1x1x8x64xf32> to vector<8x64xf32>
      %199 = vector.shape_cast %195 : vector<8x64xf32> to vector<1x1x8x64xf32>
      tpu.vector_store %arg5[%c0_162, %196, %c0_163, %c0_164], %199 {strides = array<i32>} : memref<1x4x8x64xf32, #tpu.memory_space<vmem>>, vector<1x1x8x64xf32>,
    }
    %c4_i32_0 = arith.constant 4 : i32
    return
  }
  func.func @transform_0(%arg0: i32) -> (i32, i32, i32, i32) {
    %c0_i32 = arith.constant 0 : i32
    %c0_i32_0 = arith.constant 0 : i32
    %c0_i32_1 = arith.constant 0 : i32
    %c0_i32_2 = arith.constant 0 : i32
    return %arg0, %c0_i32, %c0_i32_0, %c0_i32_1 : i32, i32, i32, i32
  }
  func.func @transform_1(%arg0: i32) -> (i32, i32, i32, i32) {
    %c0_i32 = arith.constant 0 : i32
    %c0_i32_0 = arith.constant 0 : i32
    %c0_i32_1 = arith.constant 0 : i32
    %c0_i32_2 = arith.constant 0 : i32
    return %arg0, %c0_i32, %c0_i32_0, %c0_i32_1 : i32, i32, i32, i32
  }
  func.func @transform_2(%arg0: i32) -> (i32, i32, i32, i32) {
    %c0_i32 = arith.constant 0 : i32
    %c0_i32_0 = arith.constant 0 : i32
    %c0_i32_1 = arith.constant 0 : i32
    %c0_i32_2 = arith.constant 0 : i32
    %c0_i32_3 = arith.constant 0 : i32
    return %c0_i32, %c0_i32_0, %c0_i32_1, %c0_i32_2 : i32, i32, i32, i32
  }
  func.func @transform_3(%arg0: i32) -> (i32, i32) {
    %c0_i32 = arith.constant 0 : i32
    %c0_i32_0 = arith.constant 0 : i32
    %c0_i32_1 = arith.constant 0 : i32
    return %c0_i32, %c0_i32_0 : i32, i32
  }
  func.func @transform_4(%arg0: i32) -> (i32, i32, i32, i32) {
    %c0_i32 = arith.constant 0 : i32
    %c0_i32_0 = arith.constant 0 : i32
    %c0_i32_1 = arith.constant 0 : i32
    %c0_i32_2 = arith.constant 0 : i32
    return %arg0, %c0_i32, %c0_i32_0, %c0_i32_1 : i32, i32, i32, i32
  }
}

module attributes {stable_mosaic.version = 11 : i64} {
  func.func @_conv_bn_relu_pool_kernel(%arg0: i32, %arg1: memref<1x6x5x64xf32, #tpu.memory_space<vmem>>, %arg2: memref<1x6x5x64xf32, #tpu.memory_space<vmem>>, %arg3: memref<3x3x64x128xf32, #tpu.memory_space<vmem>>, %arg4: memref<1x128xf32, #tpu.memory_space<vmem>>, %arg5: memref<1x4x4x128xf32, #tpu.memory_space<vmem>>) attributes {dimension_semantics = [#tpu.dimension_semantics<parallel>], iteration_bounds = array<i64: 2>, scalar_prefetch = 0 : i64, scratch_operands = 0 : i64, tpu.core_type = #tpu.core_type<tc>, window_params = [{transform_indices = @transform_0, window_bounds = array<i64: 1, 6, 5, 64>}, {transform_indices = @transform_1, window_bounds = array<i64: 1, 6, 5, 64>}, {pipeline_mode = #tpu.pipeline_mode<synchronous>, transform_indices = @transform_2, window_bounds = array<i64: 3, 3, 64, 128>}, {pipeline_mode = #tpu.pipeline_mode<synchronous>, transform_indices = @transform_3, window_bounds = array<i64: 1, 128>}, {transform_indices = @transform_4, window_bounds = array<i64: 1, 4, 4, 128>}]} {
    %c0_i32 = arith.constant 0 : i32
    %c4_i32 = arith.constant 4 : i32
    %0 = arith.addi %c0_i32, %c4_i32 : i32
    %c1_i32 = arith.constant 1 : i32
    scf.for %arg6 = %c0_i32 to %0 step %c1_i32  : i32 {
      %cst = arith.constant 0.000000e+00 : f32
      %1 = vector.broadcast %cst : f32 to vector<4x128xf32>
      %cst_1 = arith.constant 0.000000e+00 : f32
      %2 = vector.broadcast %cst_1 : f32 to vector<4x128xf32>
      %c0_i32_2 = arith.constant 0 : i32
      %3 = arith.addi %arg6, %c0_i32_2 : i32
      %c0 = arith.constant 0 : index
      %4 = arith.index_cast %3 : i32 to index
      %c0_3 = arith.constant 0 : index
      %c0_4 = arith.constant 0 : index
      %5 = vector.load %arg1[%c0, %4, %c0_3, %c0_4] : memref<1x6x5x64xf32, #tpu.memory_space<vmem>>, vector<1x1x5x64xf32>
      %6 = vector.shape_cast %5 : vector<1x1x5x64xf32> to vector<5x64xf32>
      %c0_i32_5 = arith.constant 0 : i32
      %7 = arith.addi %arg6, %c0_i32_5 : i32
      %c0_6 = arith.constant 0 : index
      %8 = arith.index_cast %7 : i32 to index
      %c0_7 = arith.constant 0 : index
      %c0_8 = arith.constant 0 : index
      %9 = vector.load %arg2[%c0_6, %8, %c0_7, %c0_8] : memref<1x6x5x64xf32, #tpu.memory_space<vmem>>, vector<1x1x5x64xf32>
      %10 = vector.shape_cast %9 : vector<1x1x5x64xf32> to vector<5x64xf32>
      %11 = vector.extract_strided_slice %6 {offsets = [0, 0], sizes = [4, 64], strides = [1, 1]} : vector<5x64xf32> to vector<4x64xf32>
      %12 = vector.extract_strided_slice %6 {offsets = [1, 0], sizes = [4, 64], strides = [1, 1]} : vector<5x64xf32> to vector<4x64xf32>
      %13 = vector.extract_strided_slice %10 {offsets = [0, 0], sizes = [4, 64], strides = [1, 1]} : vector<5x64xf32> to vector<4x64xf32>
      %14 = vector.extract_strided_slice %10 {offsets = [1, 0], sizes = [4, 64], strides = [1, 1]} : vector<5x64xf32> to vector<4x64xf32>
      %c0_9 = arith.constant 0 : index
      %c0_10 = arith.constant 0 : index
      %c0_11 = arith.constant 0 : index
      %c0_12 = arith.constant 0 : index
      %15 = vector.load %arg3[%c0_9, %c0_10, %c0_11, %c0_12] : memref<3x3x64x128xf32, #tpu.memory_space<vmem>>, vector<1x1x64x128xf32>
      %16 = vector.shape_cast %15 : vector<1x1x64x128xf32> to vector<64x128xf32>
      %cst_13 = arith.constant dense<0.000000e+00> : vector<4x128xf32>
      %17 = tpu.matmul %11, %16, %cst_13 {dimension_numbers = #tpu.dot_dimension_numbers<[1], [0], [0], [1], [0, 0, 1, 1], [], []>} : vector<4x64xf32>, vector<64x128xf32>, vector<4x128xf32> -> vector<4x128xf32>
      %18 = arith.addf %1, %17 : vector<4x128xf32>
      %cst_14 = arith.constant dense<0.000000e+00> : vector<4x128xf32>
      %19 = tpu.matmul %13, %16, %cst_14 {dimension_numbers = #tpu.dot_dimension_numbers<[1], [0], [0], [1], [0, 0, 1, 1], [], []>} : vector<4x64xf32>, vector<64x128xf32>, vector<4x128xf32> -> vector<4x128xf32>
      %20 = arith.addf %2, %19 : vector<4x128xf32>
      %c0_15 = arith.constant 0 : index
      %c1 = arith.constant 1 : index
      %c0_16 = arith.constant 0 : index
      %c0_17 = arith.constant 0 : index
      %21 = vector.load %arg3[%c0_15, %c1, %c0_16, %c0_17] : memref<3x3x64x128xf32, #tpu.memory_space<vmem>>, vector<1x1x64x128xf32>
      %22 = vector.shape_cast %21 : vector<1x1x64x128xf32> to vector<64x128xf32>
      %cst_18 = arith.constant dense<0.000000e+00> : vector<4x128xf32>
      %23 = tpu.matmul %13, %22, %cst_18 {dimension_numbers = #tpu.dot_dimension_numbers<[1], [0], [0], [1], [0, 0, 1, 1], [], []>} : vector<4x64xf32>, vector<64x128xf32>, vector<4x128xf32> -> vector<4x128xf32>
      %24 = arith.addf %18, %23 : vector<4x128xf32>
      %cst_19 = arith.constant dense<0.000000e+00> : vector<4x128xf32>
      %25 = tpu.matmul %12, %22, %cst_19 {dimension_numbers = #tpu.dot_dimension_numbers<[1], [0], [0], [1], [0, 0, 1, 1], [], []>} : vector<4x64xf32>, vector<64x128xf32>, vector<4x128xf32> -> vector<4x128xf32>
      %26 = arith.addf %20, %25 : vector<4x128xf32>
      %c0_20 = arith.constant 0 : index
      %c2 = arith.constant 2 : index
      %c0_21 = arith.constant 0 : index
      %c0_22 = arith.constant 0 : index
      %27 = vector.load %arg3[%c0_20, %c2, %c0_21, %c0_22] : memref<3x3x64x128xf32, #tpu.memory_space<vmem>>, vector<1x1x64x128xf32>
      %28 = vector.shape_cast %27 : vector<1x1x64x128xf32> to vector<64x128xf32>
      %cst_23 = arith.constant dense<0.000000e+00> : vector<4x128xf32>
      %29 = tpu.matmul %12, %28, %cst_23 {dimension_numbers = #tpu.dot_dimension_numbers<[1], [0], [0], [1], [0, 0, 1, 1], [], []>} : vector<4x64xf32>, vector<64x128xf32>, vector<4x128xf32> -> vector<4x128xf32>
      %30 = arith.addf %24, %29 : vector<4x128xf32>
      %cst_24 = arith.constant dense<0.000000e+00> : vector<4x128xf32>
      %31 = tpu.matmul %14, %28, %cst_24 {dimension_numbers = #tpu.dot_dimension_numbers<[1], [0], [0], [1], [0, 0, 1, 1], [], []>} : vector<4x64xf32>, vector<64x128xf32>, vector<4x128xf32> -> vector<4x128xf32>
      %32 = arith.addf %26, %31 : vector<4x128xf32>
      %c1_i32_25 = arith.constant 1 : i32
      %33 = arith.addi %arg6, %c1_i32_25 : i32
      %c0_26 = arith.constant 0 : index
      %34 = arith.index_cast %33 : i32 to index
      %c0_27 = arith.constant 0 : index
      %c0_28 = arith.constant 0 : index
      %35 = vector.load %arg1[%c0_26, %34, %c0_27, %c0_28] : memref<1x6x5x64xf32, #tpu.memory_space<vmem>>, vector<1x1x5x64xf32>
      %36 = vector.shape_cast %35 : vector<1x1x5x64xf32> to vector<5x64xf32>
      %c1_i32_29 = arith.constant 1 : i32
      %37 = arith.addi %arg6, %c1_i32_29 : i32
      %c0_30 = arith.constant 0 : index
      %38 = arith.index_cast %37 : i32 to index
      %c0_31 = arith.constant 0 : index
      %c0_32 = arith.constant 0 : index
      %39 = vector.load %arg2[%c0_30, %38, %c0_31, %c0_32] : memref<1x6x5x64xf32, #tpu.memory_space<vmem>>, vector<1x1x5x64xf32>
      %40 = vector.shape_cast %39 : vector<1x1x5x64xf32> to vector<5x64xf32>
      %41 = vector.extract_strided_slice %36 {offsets = [0, 0], sizes = [4, 64], strides = [1, 1]} : vector<5x64xf32> to vector<4x64xf32>
      %42 = vector.extract_strided_slice %36 {offsets = [1, 0], sizes = [4, 64], strides = [1, 1]} : vector<5x64xf32> to vector<4x64xf32>
      %43 = vector.extract_strided_slice %40 {offsets = [0, 0], sizes = [4, 64], strides = [1, 1]} : vector<5x64xf32> to vector<4x64xf32>
      %44 = vector.extract_strided_slice %40 {offsets = [1, 0], sizes = [4, 64], strides = [1, 1]} : vector<5x64xf32> to vector<4x64xf32>
      %c1_33 = arith.constant 1 : index
      %c0_34 = arith.constant 0 : index
      %c0_35 = arith.constant 0 : index
      %c0_36 = arith.constant 0 : index
      %45 = vector.load %arg3[%c1_33, %c0_34, %c0_35, %c0_36] : memref<3x3x64x128xf32, #tpu.memory_space<vmem>>, vector<1x1x64x128xf32>
      %46 = vector.shape_cast %45 : vector<1x1x64x128xf32> to vector<64x128xf32>
      %cst_37 = arith.constant dense<0.000000e+00> : vector<4x128xf32>
      %47 = tpu.matmul %41, %46, %cst_37 {dimension_numbers = #tpu.dot_dimension_numbers<[1], [0], [0], [1], [0, 0, 1, 1], [], []>} : vector<4x64xf32>, vector<64x128xf32>, vector<4x128xf32> -> vector<4x128xf32>
      %48 = arith.addf %30, %47 : vector<4x128xf32>
      %cst_38 = arith.constant dense<0.000000e+00> : vector<4x128xf32>
      %49 = tpu.matmul %43, %46, %cst_38 {dimension_numbers = #tpu.dot_dimension_numbers<[1], [0], [0], [1], [0, 0, 1, 1], [], []>} : vector<4x64xf32>, vector<64x128xf32>, vector<4x128xf32> -> vector<4x128xf32>
      %50 = arith.addf %32, %49 : vector<4x128xf32>
      %c1_39 = arith.constant 1 : index
      %c1_40 = arith.constant 1 : index
      %c0_41 = arith.constant 0 : index
      %c0_42 = arith.constant 0 : index
      %51 = vector.load %arg3[%c1_39, %c1_40, %c0_41, %c0_42] : memref<3x3x64x128xf32, #tpu.memory_space<vmem>>, vector<1x1x64x128xf32>
      %52 = vector.shape_cast %51 : vector<1x1x64x128xf32> to vector<64x128xf32>
      %cst_43 = arith.constant dense<0.000000e+00> : vector<4x128xf32>
      %53 = tpu.matmul %43, %52, %cst_43 {dimension_numbers = #tpu.dot_dimension_numbers<[1], [0], [0], [1], [0, 0, 1, 1], [], []>} : vector<4x64xf32>, vector<64x128xf32>, vector<4x128xf32> -> vector<4x128xf32>
      %54 = arith.addf %48, %53 : vector<4x128xf32>
      %cst_44 = arith.constant dense<0.000000e+00> : vector<4x128xf32>
      %55 = tpu.matmul %42, %52, %cst_44 {dimension_numbers = #tpu.dot_dimension_numbers<[1], [0], [0], [1], [0, 0, 1, 1], [], []>} : vector<4x64xf32>, vector<64x128xf32>, vector<4x128xf32> -> vector<4x128xf32>
      %56 = arith.addf %50, %55 : vector<4x128xf32>
      %c1_45 = arith.constant 1 : index
      %c2_46 = arith.constant 2 : index
      %c0_47 = arith.constant 0 : index
      %c0_48 = arith.constant 0 : index
      %57 = vector.load %arg3[%c1_45, %c2_46, %c0_47, %c0_48] : memref<3x3x64x128xf32, #tpu.memory_space<vmem>>, vector<1x1x64x128xf32>
      %58 = vector.shape_cast %57 : vector<1x1x64x128xf32> to vector<64x128xf32>
      %cst_49 = arith.constant dense<0.000000e+00> : vector<4x128xf32>
      %59 = tpu.matmul %42, %58, %cst_49 {dimension_numbers = #tpu.dot_dimension_numbers<[1], [0], [0], [1], [0, 0, 1, 1], [], []>} : vector<4x64xf32>, vector<64x128xf32>, vector<4x128xf32> -> vector<4x128xf32>
      %60 = arith.addf %54, %59 : vector<4x128xf32>
      %cst_50 = arith.constant dense<0.000000e+00> : vector<4x128xf32>
      %61 = tpu.matmul %44, %58, %cst_50 {dimension_numbers = #tpu.dot_dimension_numbers<[1], [0], [0], [1], [0, 0, 1, 1], [], []>} : vector<4x64xf32>, vector<64x128xf32>, vector<4x128xf32> -> vector<4x128xf32>
      %62 = arith.addf %56, %61 : vector<4x128xf32>
      %c2_i32 = arith.constant 2 : i32
      %63 = arith.addi %arg6, %c2_i32 : i32
      %c0_51 = arith.constant 0 : index
      %64 = arith.index_cast %63 : i32 to index
      %c0_52 = arith.constant 0 : index
      %c0_53 = arith.constant 0 : index
      %65 = vector.load %arg1[%c0_51, %64, %c0_52, %c0_53] : memref<1x6x5x64xf32, #tpu.memory_space<vmem>>, vector<1x1x5x64xf32>
      %66 = vector.shape_cast %65 : vector<1x1x5x64xf32> to vector<5x64xf32>
      %c2_i32_54 = arith.constant 2 : i32
      %67 = arith.addi %arg6, %c2_i32_54 : i32
      %c0_55 = arith.constant 0 : index
      %68 = arith.index_cast %67 : i32 to index
      %c0_56 = arith.constant 0 : index
      %c0_57 = arith.constant 0 : index
      %69 = vector.load %arg2[%c0_55, %68, %c0_56, %c0_57] : memref<1x6x5x64xf32, #tpu.memory_space<vmem>>, vector<1x1x5x64xf32>
      %70 = vector.shape_cast %69 : vector<1x1x5x64xf32> to vector<5x64xf32>
      %71 = vector.extract_strided_slice %66 {offsets = [0, 0], sizes = [4, 64], strides = [1, 1]} : vector<5x64xf32> to vector<4x64xf32>
      %72 = vector.extract_strided_slice %66 {offsets = [1, 0], sizes = [4, 64], strides = [1, 1]} : vector<5x64xf32> to vector<4x64xf32>
      %73 = vector.extract_strided_slice %70 {offsets = [0, 0], sizes = [4, 64], strides = [1, 1]} : vector<5x64xf32> to vector<4x64xf32>
      %74 = vector.extract_strided_slice %70 {offsets = [1, 0], sizes = [4, 64], strides = [1, 1]} : vector<5x64xf32> to vector<4x64xf32>
      %c2_58 = arith.constant 2 : index
      %c0_59 = arith.constant 0 : index
      %c0_60 = arith.constant 0 : index
      %c0_61 = arith.constant 0 : index
      %75 = vector.load %arg3[%c2_58, %c0_59, %c0_60, %c0_61] : memref<3x3x64x128xf32, #tpu.memory_space<vmem>>, vector<1x1x64x128xf32>
      %76 = vector.shape_cast %75 : vector<1x1x64x128xf32> to vector<64x128xf32>
      %cst_62 = arith.constant dense<0.000000e+00> : vector<4x128xf32>
      %77 = tpu.matmul %71, %76, %cst_62 {dimension_numbers = #tpu.dot_dimension_numbers<[1], [0], [0], [1], [0, 0, 1, 1], [], []>} : vector<4x64xf32>, vector<64x128xf32>, vector<4x128xf32> -> vector<4x128xf32>
      %78 = arith.addf %60, %77 : vector<4x128xf32>
      %cst_63 = arith.constant dense<0.000000e+00> : vector<4x128xf32>
      %79 = tpu.matmul %73, %76, %cst_63 {dimension_numbers = #tpu.dot_dimension_numbers<[1], [0], [0], [1], [0, 0, 1, 1], [], []>} : vector<4x64xf32>, vector<64x128xf32>, vector<4x128xf32> -> vector<4x128xf32>
      %80 = arith.addf %62, %79 : vector<4x128xf32>
      %c2_64 = arith.constant 2 : index
      %c1_65 = arith.constant 1 : index
      %c0_66 = arith.constant 0 : index
      %c0_67 = arith.constant 0 : index
      %81 = vector.load %arg3[%c2_64, %c1_65, %c0_66, %c0_67] : memref<3x3x64x128xf32, #tpu.memory_space<vmem>>, vector<1x1x64x128xf32>
      %82 = vector.shape_cast %81 : vector<1x1x64x128xf32> to vector<64x128xf32>
      %cst_68 = arith.constant dense<0.000000e+00> : vector<4x128xf32>
      %83 = tpu.matmul %73, %82, %cst_68 {dimension_numbers = #tpu.dot_dimension_numbers<[1], [0], [0], [1], [0, 0, 1, 1], [], []>} : vector<4x64xf32>, vector<64x128xf32>, vector<4x128xf32> -> vector<4x128xf32>
      %84 = arith.addf %78, %83 : vector<4x128xf32>
      %cst_69 = arith.constant dense<0.000000e+00> : vector<4x128xf32>
      %85 = tpu.matmul %72, %82, %cst_69 {dimension_numbers = #tpu.dot_dimension_numbers<[1], [0], [0], [1], [0, 0, 1, 1], [], []>} : vector<4x64xf32>, vector<64x128xf32>, vector<4x128xf32> -> vector<4x128xf32>
      %86 = arith.addf %80, %85 : vector<4x128xf32>
      %c2_70 = arith.constant 2 : index
      %c2_71 = arith.constant 2 : index
      %c0_72 = arith.constant 0 : index
      %c0_73 = arith.constant 0 : index
      %87 = vector.load %arg3[%c2_70, %c2_71, %c0_72, %c0_73] : memref<3x3x64x128xf32, #tpu.memory_space<vmem>>, vector<1x1x64x128xf32>
      %88 = vector.shape_cast %87 : vector<1x1x64x128xf32> to vector<64x128xf32>
      %cst_74 = arith.constant dense<0.000000e+00> : vector<4x128xf32>
      %89 = tpu.matmul %72, %88, %cst_74 {dimension_numbers = #tpu.dot_dimension_numbers<[1], [0], [0], [1], [0, 0, 1, 1], [], []>} : vector<4x64xf32>, vector<64x128xf32>, vector<4x128xf32> -> vector<4x128xf32>
      %90 = arith.addf %84, %89 : vector<4x128xf32>
      %cst_75 = arith.constant dense<0.000000e+00> : vector<4x128xf32>
      %91 = tpu.matmul %74, %88, %cst_75 {dimension_numbers = #tpu.dot_dimension_numbers<[1], [0], [0], [1], [0, 0, 1, 1], [], []>} : vector<4x64xf32>, vector<64x128xf32>, vector<4x128xf32> -> vector<4x128xf32>
      %92 = arith.addf %86, %91 : vector<4x128xf32>
      %93 = arith.maximumf %90, %92 : vector<4x128xf32>
      %c0_76 = arith.constant 0 : index
      %c0_77 = arith.constant 0 : index
      %94 = vector.load %arg4[%c0_76, %c0_77] : memref<1x128xf32, #tpu.memory_space<vmem>>, vector<1x128xf32>
      %95 = vector.broadcast %94 : vector<1x128xf32> to vector<4x128xf32>
      %96 = arith.addf %93, %95 : vector<4x128xf32>
      %cst_78 = arith.constant 0.000000e+00 : f32
      %97 = vector.broadcast %cst_78 : f32 to vector<4x128xf32>
      %98 = arith.maximumf %96, %97 : vector<4x128xf32>
      %c0_79 = arith.constant 0 : index
      %99 = arith.index_cast %arg6 : i32 to index
      %c0_80 = arith.constant 0 : index
      %c0_81 = arith.constant 0 : index
      %100 = vector.load %arg5[%c0_79, %99, %c0_80, %c0_81] : memref<1x4x4x128xf32, #tpu.memory_space<vmem>>, vector<1x1x4x128xf32>
      %101 = vector.shape_cast %100 : vector<1x1x4x128xf32> to vector<4x128xf32>
      %102 = vector.shape_cast %98 : vector<4x128xf32> to vector<1x1x4x128xf32>
      tpu.vector_store %arg5[%c0_79, %99, %c0_80, %c0_81], %102 {strides = array<i32>} : memref<1x4x4x128xf32, #tpu.memory_space<vmem>>, vector<1x1x4x128xf32>,
    }
    %c4_i32_0 = arith.constant 4 : i32
    return
  }
  func.func @transform_0(%arg0: i32) -> (i32, i32, i32, i32) {
    %c0_i32 = arith.constant 0 : i32
    %c0_i32_0 = arith.constant 0 : i32
    %c0_i32_1 = arith.constant 0 : i32
    %c0_i32_2 = arith.constant 0 : i32
    return %arg0, %c0_i32, %c0_i32_0, %c0_i32_1 : i32, i32, i32, i32
  }
  func.func @transform_1(%arg0: i32) -> (i32, i32, i32, i32) {
    %c0_i32 = arith.constant 0 : i32
    %c0_i32_0 = arith.constant 0 : i32
    %c0_i32_1 = arith.constant 0 : i32
    %c0_i32_2 = arith.constant 0 : i32
    return %arg0, %c0_i32, %c0_i32_0, %c0_i32_1 : i32, i32, i32, i32
  }
  func.func @transform_2(%arg0: i32) -> (i32, i32, i32, i32) {
    %c0_i32 = arith.constant 0 : i32
    %c0_i32_0 = arith.constant 0 : i32
    %c0_i32_1 = arith.constant 0 : i32
    %c0_i32_2 = arith.constant 0 : i32
    %c0_i32_3 = arith.constant 0 : i32
    return %c0_i32, %c0_i32_0, %c0_i32_1, %c0_i32_2 : i32, i32, i32, i32
  }
  func.func @transform_3(%arg0: i32) -> (i32, i32) {
    %c0_i32 = arith.constant 0 : i32
    %c0_i32_0 = arith.constant 0 : i32
    %c0_i32_1 = arith.constant 0 : i32
    return %c0_i32, %c0_i32_0 : i32, i32
  }
  func.func @transform_4(%arg0: i32) -> (i32, i32, i32, i32) {
    %c0_i32 = arith.constant 0 : i32
    %c0_i32_0 = arith.constant 0 : i32
    %c0_i32_1 = arith.constant 0 : i32
    %c0_i32_2 = arith.constant 0 : i32
    return %arg0, %c0_i32, %c0_i32_0, %c0_i32_1 : i32, i32, i32, i32
  }
}

module attributes {stable_mosaic.version = 11 : i64} {
  func.func @_conv_bn_relu_pool_kernel(%arg0: i32, %arg1: memref<1x6x3x128xf32, #tpu.memory_space<vmem>>, %arg2: memref<1x6x3x128xf32, #tpu.memory_space<vmem>>, %arg3: memref<3x3x128x128xf32, #tpu.memory_space<vmem>>, %arg4: memref<1x128xf32, #tpu.memory_space<vmem>>, %arg5: memref<1x4x2x128xf32, #tpu.memory_space<vmem>>) attributes {dimension_semantics = [#tpu.dimension_semantics<parallel>], iteration_bounds = array<i64: 2>, scalar_prefetch = 0 : i64, scratch_operands = 0 : i64, tpu.core_type = #tpu.core_type<tc>, window_params = [{transform_indices = @transform_0, window_bounds = array<i64: 1, 6, 3, 128>}, {transform_indices = @transform_1, window_bounds = array<i64: 1, 6, 3, 128>}, {pipeline_mode = #tpu.pipeline_mode<synchronous>, transform_indices = @transform_2, window_bounds = array<i64: 3, 3, 128, 128>}, {pipeline_mode = #tpu.pipeline_mode<synchronous>, transform_indices = @transform_3, window_bounds = array<i64: 1, 128>}, {transform_indices = @transform_4, window_bounds = array<i64: 1, 4, 2, 128>}]} {
    %c0_i32 = arith.constant 0 : i32
    %c4_i32 = arith.constant 4 : i32
    %0 = arith.addi %c0_i32, %c4_i32 : i32
    %c1_i32 = arith.constant 1 : i32
    scf.for %arg6 = %c0_i32 to %0 step %c1_i32  : i32 {
      %cst = arith.constant 0.000000e+00 : f32
      %1 = vector.broadcast %cst : f32 to vector<2x128xf32>
      %cst_1 = arith.constant 0.000000e+00 : f32
      %2 = vector.broadcast %cst_1 : f32 to vector<2x128xf32>
      %c0_i32_2 = arith.constant 0 : i32
      %3 = arith.addi %arg6, %c0_i32_2 : i32
      %c0 = arith.constant 0 : index
      %4 = arith.index_cast %3 : i32 to index
      %c0_3 = arith.constant 0 : index
      %c0_4 = arith.constant 0 : index
      %5 = vector.load %arg1[%c0, %4, %c0_3, %c0_4] : memref<1x6x3x128xf32, #tpu.memory_space<vmem>>, vector<1x1x3x128xf32>
      %6 = vector.shape_cast %5 : vector<1x1x3x128xf32> to vector<3x128xf32>
      %c0_i32_5 = arith.constant 0 : i32
      %7 = arith.addi %arg6, %c0_i32_5 : i32
      %c0_6 = arith.constant 0 : index
      %8 = arith.index_cast %7 : i32 to index
      %c0_7 = arith.constant 0 : index
      %c0_8 = arith.constant 0 : index
      %9 = vector.load %arg2[%c0_6, %8, %c0_7, %c0_8] : memref<1x6x3x128xf32, #tpu.memory_space<vmem>>, vector<1x1x3x128xf32>
      %10 = vector.shape_cast %9 : vector<1x1x3x128xf32> to vector<3x128xf32>
      %11 = vector.extract_strided_slice %6 {offsets = [0, 0], sizes = [2, 128], strides = [1, 1]} : vector<3x128xf32> to vector<2x128xf32>
      %12 = vector.extract_strided_slice %6 {offsets = [1, 0], sizes = [2, 128], strides = [1, 1]} : vector<3x128xf32> to vector<2x128xf32>
      %13 = vector.extract_strided_slice %10 {offsets = [0, 0], sizes = [2, 128], strides = [1, 1]} : vector<3x128xf32> to vector<2x128xf32>
      %14 = vector.extract_strided_slice %10 {offsets = [1, 0], sizes = [2, 128], strides = [1, 1]} : vector<3x128xf32> to vector<2x128xf32>
      %c0_9 = arith.constant 0 : index
      %c0_10 = arith.constant 0 : index
      %c0_11 = arith.constant 0 : index
      %c0_12 = arith.constant 0 : index
      %15 = vector.load %arg3[%c0_9, %c0_10, %c0_11, %c0_12] : memref<3x3x128x128xf32, #tpu.memory_space<vmem>>, vector<1x1x128x128xf32>
      %16 = vector.shape_cast %15 : vector<1x1x128x128xf32> to vector<128x128xf32>
      %cst_13 = arith.constant dense<0.000000e+00> : vector<2x128xf32>
      %17 = tpu.matmul %11, %16, %cst_13 {dimension_numbers = #tpu.dot_dimension_numbers<[1], [0], [0], [1], [0, 0, 1, 1], [], []>} : vector<2x128xf32>, vector<128x128xf32>, vector<2x128xf32> -> vector<2x128xf32>
      %18 = arith.addf %1, %17 : vector<2x128xf32>
      %cst_14 = arith.constant dense<0.000000e+00> : vector<2x128xf32>
      %19 = tpu.matmul %13, %16, %cst_14 {dimension_numbers = #tpu.dot_dimension_numbers<[1], [0], [0], [1], [0, 0, 1, 1], [], []>} : vector<2x128xf32>, vector<128x128xf32>, vector<2x128xf32> -> vector<2x128xf32>
      %20 = arith.addf %2, %19 : vector<2x128xf32>
      %c0_15 = arith.constant 0 : index
      %c1 = arith.constant 1 : index
      %c0_16 = arith.constant 0 : index
      %c0_17 = arith.constant 0 : index
      %21 = vector.load %arg3[%c0_15, %c1, %c0_16, %c0_17] : memref<3x3x128x128xf32, #tpu.memory_space<vmem>>, vector<1x1x128x128xf32>
      %22 = vector.shape_cast %21 : vector<1x1x128x128xf32> to vector<128x128xf32>
      %cst_18 = arith.constant dense<0.000000e+00> : vector<2x128xf32>
      %23 = tpu.matmul %13, %22, %cst_18 {dimension_numbers = #tpu.dot_dimension_numbers<[1], [0], [0], [1], [0, 0, 1, 1], [], []>} : vector<2x128xf32>, vector<128x128xf32>, vector<2x128xf32> -> vector<2x128xf32>
      %24 = arith.addf %18, %23 : vector<2x128xf32>
      %cst_19 = arith.constant dense<0.000000e+00> : vector<2x128xf32>
      %25 = tpu.matmul %12, %22, %cst_19 {dimension_numbers = #tpu.dot_dimension_numbers<[1], [0], [0], [1], [0, 0, 1, 1], [], []>} : vector<2x128xf32>, vector<128x128xf32>, vector<2x128xf32> -> vector<2x128xf32>
      %26 = arith.addf %20, %25 : vector<2x128xf32>
      %c0_20 = arith.constant 0 : index
      %c2 = arith.constant 2 : index
      %c0_21 = arith.constant 0 : index
      %c0_22 = arith.constant 0 : index
      %27 = vector.load %arg3[%c0_20, %c2, %c0_21, %c0_22] : memref<3x3x128x128xf32, #tpu.memory_space<vmem>>, vector<1x1x128x128xf32>
      %28 = vector.shape_cast %27 : vector<1x1x128x128xf32> to vector<128x128xf32>
      %cst_23 = arith.constant dense<0.000000e+00> : vector<2x128xf32>
      %29 = tpu.matmul %12, %28, %cst_23 {dimension_numbers = #tpu.dot_dimension_numbers<[1], [0], [0], [1], [0, 0, 1, 1], [], []>} : vector<2x128xf32>, vector<128x128xf32>, vector<2x128xf32> -> vector<2x128xf32>
      %30 = arith.addf %24, %29 : vector<2x128xf32>
      %cst_24 = arith.constant dense<0.000000e+00> : vector<2x128xf32>
      %31 = tpu.matmul %14, %28, %cst_24 {dimension_numbers = #tpu.dot_dimension_numbers<[1], [0], [0], [1], [0, 0, 1, 1], [], []>} : vector<2x128xf32>, vector<128x128xf32>, vector<2x128xf32> -> vector<2x128xf32>
      %32 = arith.addf %26, %31 : vector<2x128xf32>
      %c1_i32_25 = arith.constant 1 : i32
      %33 = arith.addi %arg6, %c1_i32_25 : i32
      %c0_26 = arith.constant 0 : index
      %34 = arith.index_cast %33 : i32 to index
      %c0_27 = arith.constant 0 : index
      %c0_28 = arith.constant 0 : index
      %35 = vector.load %arg1[%c0_26, %34, %c0_27, %c0_28] : memref<1x6x3x128xf32, #tpu.memory_space<vmem>>, vector<1x1x3x128xf32>
      %36 = vector.shape_cast %35 : vector<1x1x3x128xf32> to vector<3x128xf32>
      %c1_i32_29 = arith.constant 1 : i32
      %37 = arith.addi %arg6, %c1_i32_29 : i32
      %c0_30 = arith.constant 0 : index
      %38 = arith.index_cast %37 : i32 to index
      %c0_31 = arith.constant 0 : index
      %c0_32 = arith.constant 0 : index
      %39 = vector.load %arg2[%c0_30, %38, %c0_31, %c0_32] : memref<1x6x3x128xf32, #tpu.memory_space<vmem>>, vector<1x1x3x128xf32>
      %40 = vector.shape_cast %39 : vector<1x1x3x128xf32> to vector<3x128xf32>
      %41 = vector.extract_strided_slice %36 {offsets = [0, 0], sizes = [2, 128], strides = [1, 1]} : vector<3x128xf32> to vector<2x128xf32>
      %42 = vector.extract_strided_slice %36 {offsets = [1, 0], sizes = [2, 128], strides = [1, 1]} : vector<3x128xf32> to vector<2x128xf32>
      %43 = vector.extract_strided_slice %40 {offsets = [0, 0], sizes = [2, 128], strides = [1, 1]} : vector<3x128xf32> to vector<2x128xf32>
      %44 = vector.extract_strided_slice %40 {offsets = [1, 0], sizes = [2, 128], strides = [1, 1]} : vector<3x128xf32> to vector<2x128xf32>
      %c1_33 = arith.constant 1 : index
      %c0_34 = arith.constant 0 : index
      %c0_35 = arith.constant 0 : index
      %c0_36 = arith.constant 0 : index
      %45 = vector.load %arg3[%c1_33, %c0_34, %c0_35, %c0_36] : memref<3x3x128x128xf32, #tpu.memory_space<vmem>>, vector<1x1x128x128xf32>
      %46 = vector.shape_cast %45 : vector<1x1x128x128xf32> to vector<128x128xf32>
      %cst_37 = arith.constant dense<0.000000e+00> : vector<2x128xf32>
      %47 = tpu.matmul %41, %46, %cst_37 {dimension_numbers = #tpu.dot_dimension_numbers<[1], [0], [0], [1], [0, 0, 1, 1], [], []>} : vector<2x128xf32>, vector<128x128xf32>, vector<2x128xf32> -> vector<2x128xf32>
      %48 = arith.addf %30, %47 : vector<2x128xf32>
      %cst_38 = arith.constant dense<0.000000e+00> : vector<2x128xf32>
      %49 = tpu.matmul %43, %46, %cst_38 {dimension_numbers = #tpu.dot_dimension_numbers<[1], [0], [0], [1], [0, 0, 1, 1], [], []>} : vector<2x128xf32>, vector<128x128xf32>, vector<2x128xf32> -> vector<2x128xf32>
      %50 = arith.addf %32, %49 : vector<2x128xf32>
      %c1_39 = arith.constant 1 : index
      %c1_40 = arith.constant 1 : index
      %c0_41 = arith.constant 0 : index
      %c0_42 = arith.constant 0 : index
      %51 = vector.load %arg3[%c1_39, %c1_40, %c0_41, %c0_42] : memref<3x3x128x128xf32, #tpu.memory_space<vmem>>, vector<1x1x128x128xf32>
      %52 = vector.shape_cast %51 : vector<1x1x128x128xf32> to vector<128x128xf32>
      %cst_43 = arith.constant dense<0.000000e+00> : vector<2x128xf32>
      %53 = tpu.matmul %43, %52, %cst_43 {dimension_numbers = #tpu.dot_dimension_numbers<[1], [0], [0], [1], [0, 0, 1, 1], [], []>} : vector<2x128xf32>, vector<128x128xf32>, vector<2x128xf32> -> vector<2x128xf32>
      %54 = arith.addf %48, %53 : vector<2x128xf32>
      %cst_44 = arith.constant dense<0.000000e+00> : vector<2x128xf32>
      %55 = tpu.matmul %42, %52, %cst_44 {dimension_numbers = #tpu.dot_dimension_numbers<[1], [0], [0], [1], [0, 0, 1, 1], [], []>} : vector<2x128xf32>, vector<128x128xf32>, vector<2x128xf32> -> vector<2x128xf32>
      %56 = arith.addf %50, %55 : vector<2x128xf32>
      %c1_45 = arith.constant 1 : index
      %c2_46 = arith.constant 2 : index
      %c0_47 = arith.constant 0 : index
      %c0_48 = arith.constant 0 : index
      %57 = vector.load %arg3[%c1_45, %c2_46, %c0_47, %c0_48] : memref<3x3x128x128xf32, #tpu.memory_space<vmem>>, vector<1x1x128x128xf32>
      %58 = vector.shape_cast %57 : vector<1x1x128x128xf32> to vector<128x128xf32>
      %cst_49 = arith.constant dense<0.000000e+00> : vector<2x128xf32>
      %59 = tpu.matmul %42, %58, %cst_49 {dimension_numbers = #tpu.dot_dimension_numbers<[1], [0], [0], [1], [0, 0, 1, 1], [], []>} : vector<2x128xf32>, vector<128x128xf32>, vector<2x128xf32> -> vector<2x128xf32>
      %60 = arith.addf %54, %59 : vector<2x128xf32>
      %cst_50 = arith.constant dense<0.000000e+00> : vector<2x128xf32>
      %61 = tpu.matmul %44, %58, %cst_50 {dimension_numbers = #tpu.dot_dimension_numbers<[1], [0], [0], [1], [0, 0, 1, 1], [], []>} : vector<2x128xf32>, vector<128x128xf32>, vector<2x128xf32> -> vector<2x128xf32>
      %62 = arith.addf %56, %61 : vector<2x128xf32>
      %c2_i32 = arith.constant 2 : i32
      %63 = arith.addi %arg6, %c2_i32 : i32
      %c0_51 = arith.constant 0 : index
      %64 = arith.index_cast %63 : i32 to index
      %c0_52 = arith.constant 0 : index
      %c0_53 = arith.constant 0 : index
      %65 = vector.load %arg1[%c0_51, %64, %c0_52, %c0_53] : memref<1x6x3x128xf32, #tpu.memory_space<vmem>>, vector<1x1x3x128xf32>
      %66 = vector.shape_cast %65 : vector<1x1x3x128xf32> to vector<3x128xf32>
      %c2_i32_54 = arith.constant 2 : i32
      %67 = arith.addi %arg6, %c2_i32_54 : i32
      %c0_55 = arith.constant 0 : index
      %68 = arith.index_cast %67 : i32 to index
      %c0_56 = arith.constant 0 : index
      %c0_57 = arith.constant 0 : index
      %69 = vector.load %arg2[%c0_55, %68, %c0_56, %c0_57] : memref<1x6x3x128xf32, #tpu.memory_space<vmem>>, vector<1x1x3x128xf32>
      %70 = vector.shape_cast %69 : vector<1x1x3x128xf32> to vector<3x128xf32>
      %71 = vector.extract_strided_slice %66 {offsets = [0, 0], sizes = [2, 128], strides = [1, 1]} : vector<3x128xf32> to vector<2x128xf32>
      %72 = vector.extract_strided_slice %66 {offsets = [1, 0], sizes = [2, 128], strides = [1, 1]} : vector<3x128xf32> to vector<2x128xf32>
      %73 = vector.extract_strided_slice %70 {offsets = [0, 0], sizes = [2, 128], strides = [1, 1]} : vector<3x128xf32> to vector<2x128xf32>
      %74 = vector.extract_strided_slice %70 {offsets = [1, 0], sizes = [2, 128], strides = [1, 1]} : vector<3x128xf32> to vector<2x128xf32>
      %c2_58 = arith.constant 2 : index
      %c0_59 = arith.constant 0 : index
      %c0_60 = arith.constant 0 : index
      %c0_61 = arith.constant 0 : index
      %75 = vector.load %arg3[%c2_58, %c0_59, %c0_60, %c0_61] : memref<3x3x128x128xf32, #tpu.memory_space<vmem>>, vector<1x1x128x128xf32>
      %76 = vector.shape_cast %75 : vector<1x1x128x128xf32> to vector<128x128xf32>
      %cst_62 = arith.constant dense<0.000000e+00> : vector<2x128xf32>
      %77 = tpu.matmul %71, %76, %cst_62 {dimension_numbers = #tpu.dot_dimension_numbers<[1], [0], [0], [1], [0, 0, 1, 1], [], []>} : vector<2x128xf32>, vector<128x128xf32>, vector<2x128xf32> -> vector<2x128xf32>
      %78 = arith.addf %60, %77 : vector<2x128xf32>
      %cst_63 = arith.constant dense<0.000000e+00> : vector<2x128xf32>
      %79 = tpu.matmul %73, %76, %cst_63 {dimension_numbers = #tpu.dot_dimension_numbers<[1], [0], [0], [1], [0, 0, 1, 1], [], []>} : vector<2x128xf32>, vector<128x128xf32>, vector<2x128xf32> -> vector<2x128xf32>
      %80 = arith.addf %62, %79 : vector<2x128xf32>
      %c2_64 = arith.constant 2 : index
      %c1_65 = arith.constant 1 : index
      %c0_66 = arith.constant 0 : index
      %c0_67 = arith.constant 0 : index
      %81 = vector.load %arg3[%c2_64, %c1_65, %c0_66, %c0_67] : memref<3x3x128x128xf32, #tpu.memory_space<vmem>>, vector<1x1x128x128xf32>
      %82 = vector.shape_cast %81 : vector<1x1x128x128xf32> to vector<128x128xf32>
      %cst_68 = arith.constant dense<0.000000e+00> : vector<2x128xf32>
      %83 = tpu.matmul %73, %82, %cst_68 {dimension_numbers = #tpu.dot_dimension_numbers<[1], [0], [0], [1], [0, 0, 1, 1], [], []>} : vector<2x128xf32>, vector<128x128xf32>, vector<2x128xf32> -> vector<2x128xf32>
      %84 = arith.addf %78, %83 : vector<2x128xf32>
      %cst_69 = arith.constant dense<0.000000e+00> : vector<2x128xf32>
      %85 = tpu.matmul %72, %82, %cst_69 {dimension_numbers = #tpu.dot_dimension_numbers<[1], [0], [0], [1], [0, 0, 1, 1], [], []>} : vector<2x128xf32>, vector<128x128xf32>, vector<2x128xf32> -> vector<2x128xf32>
      %86 = arith.addf %80, %85 : vector<2x128xf32>
      %c2_70 = arith.constant 2 : index
      %c2_71 = arith.constant 2 : index
      %c0_72 = arith.constant 0 : index
      %c0_73 = arith.constant 0 : index
      %87 = vector.load %arg3[%c2_70, %c2_71, %c0_72, %c0_73] : memref<3x3x128x128xf32, #tpu.memory_space<vmem>>, vector<1x1x128x128xf32>
      %88 = vector.shape_cast %87 : vector<1x1x128x128xf32> to vector<128x128xf32>
      %cst_74 = arith.constant dense<0.000000e+00> : vector<2x128xf32>
      %89 = tpu.matmul %72, %88, %cst_74 {dimension_numbers = #tpu.dot_dimension_numbers<[1], [0], [0], [1], [0, 0, 1, 1], [], []>} : vector<2x128xf32>, vector<128x128xf32>, vector<2x128xf32> -> vector<2x128xf32>
      %90 = arith.addf %84, %89 : vector<2x128xf32>
      %cst_75 = arith.constant dense<0.000000e+00> : vector<2x128xf32>
      %91 = tpu.matmul %74, %88, %cst_75 {dimension_numbers = #tpu.dot_dimension_numbers<[1], [0], [0], [1], [0, 0, 1, 1], [], []>} : vector<2x128xf32>, vector<128x128xf32>, vector<2x128xf32> -> vector<2x128xf32>
      %92 = arith.addf %86, %91 : vector<2x128xf32>
      %93 = arith.maximumf %90, %92 : vector<2x128xf32>
      %c0_76 = arith.constant 0 : index
      %c0_77 = arith.constant 0 : index
      %94 = vector.load %arg4[%c0_76, %c0_77] : memref<1x128xf32, #tpu.memory_space<vmem>>, vector<1x128xf32>
      %95 = vector.broadcast %94 : vector<1x128xf32> to vector<2x128xf32>
      %96 = arith.addf %93, %95 : vector<2x128xf32>
      %cst_78 = arith.constant 0.000000e+00 : f32
      %97 = vector.broadcast %cst_78 : f32 to vector<2x128xf32>
      %98 = arith.maximumf %96, %97 : vector<2x128xf32>
      %c0_79 = arith.constant 0 : index
      %99 = arith.index_cast %arg6 : i32 to index
      %c0_80 = arith.constant 0 : index
      %c0_81 = arith.constant 0 : index
      %100 = vector.load %arg5[%c0_79, %99, %c0_80, %c0_81] : memref<1x4x2x128xf32, #tpu.memory_space<vmem>>, vector<1x1x2x128xf32>
      %101 = vector.shape_cast %100 : vector<1x1x2x128xf32> to vector<2x128xf32>
      %102 = vector.shape_cast %98 : vector<2x128xf32> to vector<1x1x2x128xf32>
      tpu.vector_store %arg5[%c0_79, %99, %c0_80, %c0_81], %102 {strides = array<i32>} : memref<1x4x2x128xf32, #tpu.memory_space<vmem>>, vector<1x1x2x128xf32>,
    }
    %c4_i32_0 = arith.constant 4 : i32
    return
  }
  func.func @transform_0(%arg0: i32) -> (i32, i32, i32, i32) {
    %c0_i32 = arith.constant 0 : i32
    %c0_i32_0 = arith.constant 0 : i32
    %c0_i32_1 = arith.constant 0 : i32
    %c0_i32_2 = arith.constant 0 : i32
    return %arg0, %c0_i32, %c0_i32_0, %c0_i32_1 : i32, i32, i32, i32
  }
  func.func @transform_1(%arg0: i32) -> (i32, i32, i32, i32) {
    %c0_i32 = arith.constant 0 : i32
    %c0_i32_0 = arith.constant 0 : i32
    %c0_i32_1 = arith.constant 0 : i32
    %c0_i32_2 = arith.constant 0 : i32
    return %arg0, %c0_i32, %c0_i32_0, %c0_i32_1 : i32, i32, i32, i32
  }
  func.func @transform_2(%arg0: i32) -> (i32, i32, i32, i32) {
    %c0_i32 = arith.constant 0 : i32
    %c0_i32_0 = arith.constant 0 : i32
    %c0_i32_1 = arith.constant 0 : i32
    %c0_i32_2 = arith.constant 0 : i32
    %c0_i32_3 = arith.constant 0 : i32
    return %c0_i32, %c0_i32_0, %c0_i32_1, %c0_i32_2 : i32, i32, i32, i32
  }
  func.func @transform_3(%arg0: i32) -> (i32, i32) {
    %c0_i32 = arith.constant 0 : i32
    %c0_i32_0 = arith.constant 0 : i32
    %c0_i32_1 = arith.constant 0 : i32
    return %c0_i32, %c0_i32_0 : i32, i32
  }
  func.func @transform_4(%arg0: i32) -> (i32, i32, i32, i32) {
    %c0_i32 = arith.constant 0 : i32
    %c0_i32_0 = arith.constant 0 : i32
    %c0_i32_1 = arith.constant 0 : i32
    %c0_i32_2 = arith.constant 0 : i32
    return %arg0, %c0_i32, %c0_i32_0, %c0_i32_1 : i32, i32, i32, i32
  }
}

module attributes {stable_mosaic.version = 11 : i64} {
  func.func @_bilstm_kernel(%arg0: memref<4x512xf32, #tpu.memory_space<vmem>>, %arg1: memref<512x256xf32, #tpu.memory_space<vmem>>, %arg2: memref<32x128xf32, #tpu.memory_space<vmem>>, %arg3: memref<32x128xf32, #tpu.memory_space<vmem>>, %arg4: memref<1x256xf32, #tpu.memory_space<vmem>>, %arg5: memref<2x2x64xf32, #tpu.memory_space<vmem>>) attributes {dimension_semantics = [], scalar_prefetch = 0 : i64, scratch_operands = 0 : i64, tpu.core_type = #tpu.core_type<tc>} {
    %c0 = arith.constant 0 : index
    %c0_0 = arith.constant 0 : index
    %0 = vector.load %arg0[%c0, %c0_0] : memref<4x512xf32, #tpu.memory_space<vmem>>, vector<4x512xf32>
    %c0_1 = arith.constant 0 : index
    %c0_2 = arith.constant 0 : index
    %1 = vector.load %arg1[%c0_1, %c0_2] : memref<512x256xf32, #tpu.memory_space<vmem>>, vector<512x256xf32>
    %cst = arith.constant dense<0.000000e+00> : vector<4x256xf32>
    %2 = tpu.matmul %0, %1, %cst {dimension_numbers = #tpu.dot_dimension_numbers<[1], [0], [0], [1], [0, 0, 1, 1], [], []>} : vector<4x512xf32>, vector<512x256xf32>, vector<4x256xf32> -> vector<4x256xf32>
    %c0_3 = arith.constant 0 : index
    %c0_4 = arith.constant 0 : index
    %3 = vector.load %arg4[%c0_3, %c0_4] : memref<1x256xf32, #tpu.memory_space<vmem>>, vector<1x256xf32>
    %4 = vector.broadcast %3 : vector<1x256xf32> to vector<4x256xf32>
    %5 = arith.addf %2, %4 : vector<4x256xf32>
    %c0_5 = arith.constant 0 : index
    %c0_6 = arith.constant 0 : index
    %6 = vector.load %arg2[%c0_5, %c0_6] : memref<32x128xf32, #tpu.memory_space<vmem>>, vector<32x128xf32>
    %c0_7 = arith.constant 0 : index
    %c0_8 = arith.constant 0 : index
    %7 = vector.load %arg3[%c0_7, %c0_8] : memref<32x128xf32, #tpu.memory_space<vmem>>, vector<32x128xf32>
    %cst_9 = arith.constant 0.000000e+00 : f32
    %8 = vector.broadcast %cst_9 : f32 to vector<2x32xf32>
    %9 = vector.extract_strided_slice %5 {offsets = [0, 0], sizes = [2, 128], strides = [1, 1]} : vector<4x256xf32> to vector<2x128xf32>
    %cst_10 = arith.constant dense<0.000000e+00> : vector<2x128xf32>
    %10 = tpu.matmul %8, %6, %cst_10 {dimension_numbers = #tpu.dot_dimension_numbers<[1], [0], [0], [1], [0, 0, 1, 1], [], []>} : vector<2x32xf32>, vector<32x128xf32>, vector<2x128xf32> -> vector<2x128xf32>
    %11 = arith.addf %9, %10 : vector<2x128xf32>
    %12 = vector.extract_strided_slice %5 {offsets = [2, 128], sizes = [2, 128], strides = [1, 1]} : vector<4x256xf32> to vector<2x128xf32>
    %cst_11 = arith.constant dense<0.000000e+00> : vector<2x128xf32>
    %13 = tpu.matmul %8, %7, %cst_11 {dimension_numbers = #tpu.dot_dimension_numbers<[1], [0], [0], [1], [0, 0, 1, 1], [], []>} : vector<2x32xf32>, vector<32x128xf32>, vector<2x128xf32> -> vector<2x128xf32>
    %14 = arith.addf %12, %13 : vector<2x128xf32>
    %15 = vector.extract_strided_slice %11 {offsets = [0, 0], sizes = [2, 32], strides = [1, 1]} : vector<2x128xf32> to vector<2x32xf32>
    %16 = arith.negf %15 : vector<2x32xf32>
    %17 = math.exp %16 : vector<2x32xf32>
    %cst_12 = arith.constant 1.000000e+00 : f32
    %18 = vector.broadcast %cst_12 : f32 to vector<2x32xf32>
    %19 = arith.addf %18, %17 : vector<2x32xf32>
    %20 = arith.divf %18, %19 : vector<2x32xf32>
    %21 = vector.extract_strided_slice %11 {offsets = [0, 32], sizes = [2, 32], strides = [1, 1]} : vector<2x128xf32> to vector<2x32xf32>
    %22 = arith.negf %21 : vector<2x32xf32>
    %23 = math.exp %22 : vector<2x32xf32>
    %cst_13 = arith.constant 1.000000e+00 : f32
    %24 = vector.broadcast %cst_13 : f32 to vector<2x32xf32>
    %25 = arith.addf %24, %23 : vector<2x32xf32>
    %26 = arith.divf %24, %25 : vector<2x32xf32>
    %27 = vector.extract_strided_slice %11 {offsets = [0, 64], sizes = [2, 32], strides = [1, 1]} : vector<2x128xf32> to vector<2x32xf32>
    %28 = math.tanh %27 : vector<2x32xf32>
    %29 = vector.extract_strided_slice %11 {offsets = [0, 96], sizes = [2, 32], strides = [1, 1]} : vector<2x128xf32> to vector<2x32xf32>
    %30 = arith.negf %29 : vector<2x32xf32>
    %31 = math.exp %30 : vector<2x32xf32>
    %cst_14 = arith.constant 1.000000e+00 : f32
    %32 = vector.broadcast %cst_14 : f32 to vector<2x32xf32>
    %33 = arith.addf %32, %31 : vector<2x32xf32>
    %34 = arith.divf %32, %33 : vector<2x32xf32>
    %35 = arith.mulf %26, %8 : vector<2x32xf32>
    %36 = arith.mulf %20, %28 : vector<2x32xf32>
    %37 = arith.addf %35, %36 : vector<2x32xf32>
    %38 = math.tanh %37 : vector<2x32xf32>
    %39 = arith.mulf %34, %38 : vector<2x32xf32>
    %40 = vector.extract_strided_slice %14 {offsets = [0, 0], sizes = [2, 32], strides = [1, 1]} : vector<2x128xf32> to vector<2x32xf32>
    %41 = arith.negf %40 : vector<2x32xf32>
    %42 = math.exp %41 : vector<2x32xf32>
    %cst_15 = arith.constant 1.000000e+00 : f32
    %43 = vector.broadcast %cst_15 : f32 to vector<2x32xf32>
    %44 = arith.addf %43, %42 : vector<2x32xf32>
    %45 = arith.divf %43, %44 : vector<2x32xf32>
    %46 = vector.extract_strided_slice %14 {offsets = [0, 32], sizes = [2, 32], strides = [1, 1]} : vector<2x128xf32> to vector<2x32xf32>
    %47 = arith.negf %46 : vector<2x32xf32>
    %48 = math.exp %47 : vector<2x32xf32>
    %cst_16 = arith.constant 1.000000e+00 : f32
    %49 = vector.broadcast %cst_16 : f32 to vector<2x32xf32>
    %50 = arith.addf %49, %48 : vector<2x32xf32>
    %51 = arith.divf %49, %50 : vector<2x32xf32>
    %52 = vector.extract_strided_slice %14 {offsets = [0, 64], sizes = [2, 32], strides = [1, 1]} : vector<2x128xf32> to vector<2x32xf32>
    %53 = math.tanh %52 : vector<2x32xf32>
    %54 = vector.extract_strided_slice %14 {offsets = [0, 96], sizes = [2, 32], strides = [1, 1]} : vector<2x128xf32> to vector<2x32xf32>
    %55 = arith.negf %54 : vector<2x32xf32>
    %56 = math.exp %55 : vector<2x32xf32>
    %cst_17 = arith.constant 1.000000e+00 : f32
    %57 = vector.broadcast %cst_17 : f32 to vector<2x32xf32>
    %58 = arith.addf %57, %56 : vector<2x32xf32>
    %59 = arith.divf %57, %58 : vector<2x32xf32>
    %60 = arith.mulf %51, %8 : vector<2x32xf32>
    %61 = arith.mulf %45, %53 : vector<2x32xf32>
    %62 = arith.addf %60, %61 : vector<2x32xf32>
    %63 = math.tanh %62 : vector<2x32xf32>
    %64 = arith.mulf %59, %63 : vector<2x32xf32>
    %c0_18 = arith.constant 0 : index
    %c0_19 = arith.constant 0 : index
    %c0_20 = arith.constant 0 : index
    %65 = vector.load %arg5[%c0_18, %c0_19, %c0_20] : memref<2x2x64xf32, #tpu.memory_space<vmem>>, vector<1x2x32xf32>
    %66 = vector.shape_cast %65 : vector<1x2x32xf32> to vector<2x32xf32>
    %67 = vector.shape_cast %39 : vector<2x32xf32> to vector<1x2x32xf32>
    tpu.vector_store %arg5[%c0_18, %c0_19, %c0_20], %67 {strides = array<i32>} : memref<2x2x64xf32, #tpu.memory_space<vmem>>, vector<1x2x32xf32>,
    %c1 = arith.constant 1 : index
    %c0_21 = arith.constant 0 : index
    %c32 = arith.constant 32 : index
    %68 = vector.load %arg5[%c1, %c0_21, %c32] : memref<2x2x64xf32, #tpu.memory_space<vmem>>, vector<1x2x32xf32>
    %69 = vector.shape_cast %68 : vector<1x2x32xf32> to vector<2x32xf32>
    %70 = vector.shape_cast %64 : vector<2x32xf32> to vector<1x2x32xf32>
    tpu.vector_store %arg5[%c1, %c0_21, %c32], %70 {strides = array<i32>} : memref<2x2x64xf32, #tpu.memory_space<vmem>>, vector<1x2x32xf32>,
    %71 = vector.extract_strided_slice %5 {offsets = [2, 0], sizes = [2, 128], strides = [1, 1]} : vector<4x256xf32> to vector<2x128xf32>
    %cst_22 = arith.constant dense<0.000000e+00> : vector<2x128xf32>
    %72 = tpu.matmul %39, %6, %cst_22 {dimension_numbers = #tpu.dot_dimension_numbers<[1], [0], [0], [1], [0, 0, 1, 1], [], []>} : vector<2x32xf32>, vector<32x128xf32>, vector<2x128xf32> -> vector<2x128xf32>
    %73 = arith.addf %71, %72 : vector<2x128xf32>
    %74 = vector.extract_strided_slice %5 {offsets = [0, 128], sizes = [2, 128], strides = [1, 1]} : vector<4x256xf32> to vector<2x128xf32>
    %cst_23 = arith.constant dense<0.000000e+00> : vector<2x128xf32>
    %75 = tpu.matmul %64, %7, %cst_23 {dimension_numbers = #tpu.dot_dimension_numbers<[1], [0], [0], [1], [0, 0, 1, 1], [], []>} : vector<2x32xf32>, vector<32x128xf32>, vector<2x128xf32> -> vector<2x128xf32>
    %76 = arith.addf %74, %75 : vector<2x128xf32>
    %77 = vector.extract_strided_slice %73 {offsets = [0, 0], sizes = [2, 32], strides = [1, 1]} : vector<2x128xf32> to vector<2x32xf32>
    %78 = arith.negf %77 : vector<2x32xf32>
    %79 = math.exp %78 : vector<2x32xf32>
    %cst_24 = arith.constant 1.000000e+00 : f32
    %80 = vector.broadcast %cst_24 : f32 to vector<2x32xf32>
    %81 = arith.addf %80, %79 : vector<2x32xf32>
    %82 = arith.divf %80, %81 : vector<2x32xf32>
    %83 = vector.extract_strided_slice %73 {offsets = [0, 32], sizes = [2, 32], strides = [1, 1]} : vector<2x128xf32> to vector<2x32xf32>
    %84 = arith.negf %83 : vector<2x32xf32>
    %85 = math.exp %84 : vector<2x32xf32>
    %cst_25 = arith.constant 1.000000e+00 : f32
    %86 = vector.broadcast %cst_25 : f32 to vector<2x32xf32>
    %87 = arith.addf %86, %85 : vector<2x32xf32>
    %88 = arith.divf %86, %87 : vector<2x32xf32>
    %89 = vector.extract_strided_slice %73 {offsets = [0, 64], sizes = [2, 32], strides = [1, 1]} : vector<2x128xf32> to vector<2x32xf32>
    %90 = math.tanh %89 : vector<2x32xf32>
    %91 = vector.extract_strided_slice %73 {offsets = [0, 96], sizes = [2, 32], strides = [1, 1]} : vector<2x128xf32> to vector<2x32xf32>
    %92 = arith.negf %91 : vector<2x32xf32>
    %93 = math.exp %92 : vector<2x32xf32>
    %cst_26 = arith.constant 1.000000e+00 : f32
    %94 = vector.broadcast %cst_26 : f32 to vector<2x32xf32>
    %95 = arith.addf %94, %93 : vector<2x32xf32>
    %96 = arith.divf %94, %95 : vector<2x32xf32>
    %97 = arith.mulf %88, %37 : vector<2x32xf32>
    %98 = arith.mulf %82, %90 : vector<2x32xf32>
    %99 = arith.addf %97, %98 : vector<2x32xf32>
    %100 = math.tanh %99 : vector<2x32xf32>
    %101 = arith.mulf %96, %100 : vector<2x32xf32>
    %102 = vector.extract_strided_slice %76 {offsets = [0, 0], sizes = [2, 32], strides = [1, 1]} : vector<2x128xf32> to vector<2x32xf32>
    %103 = arith.negf %102 : vector<2x32xf32>
    %104 = math.exp %103 : vector<2x32xf32>
    %cst_27 = arith.constant 1.000000e+00 : f32
    %105 = vector.broadcast %cst_27 : f32 to vector<2x32xf32>
    %106 = arith.addf %105, %104 : vector<2x32xf32>
    %107 = arith.divf %105, %106 : vector<2x32xf32>
    %108 = vector.extract_strided_slice %76 {offsets = [0, 32], sizes = [2, 32], strides = [1, 1]} : vector<2x128xf32> to vector<2x32xf32>
    %109 = arith.negf %108 : vector<2x32xf32>
    %110 = math.exp %109 : vector<2x32xf32>
    %cst_28 = arith.constant 1.000000e+00 : f32
    %111 = vector.broadcast %cst_28 : f32 to vector<2x32xf32>
    %112 = arith.addf %111, %110 : vector<2x32xf32>
    %113 = arith.divf %111, %112 : vector<2x32xf32>
    %114 = vector.extract_strided_slice %76 {offsets = [0, 64], sizes = [2, 32], strides = [1, 1]} : vector<2x128xf32> to vector<2x32xf32>
    %115 = math.tanh %114 : vector<2x32xf32>
    %116 = vector.extract_strided_slice %76 {offsets = [0, 96], sizes = [2, 32], strides = [1, 1]} : vector<2x128xf32> to vector<2x32xf32>
    %117 = arith.negf %116 : vector<2x32xf32>
    %118 = math.exp %117 : vector<2x32xf32>
    %cst_29 = arith.constant 1.000000e+00 : f32
    %119 = vector.broadcast %cst_29 : f32 to vector<2x32xf32>
    %120 = arith.addf %119, %118 : vector<2x32xf32>
    %121 = arith.divf %119, %120 : vector<2x32xf32>
    %122 = arith.mulf %113, %62 : vector<2x32xf32>
    %123 = arith.mulf %107, %115 : vector<2x32xf32>
    %124 = arith.addf %122, %123 : vector<2x32xf32>
    %125 = math.tanh %124 : vector<2x32xf32>
    %126 = arith.mulf %121, %125 : vector<2x32xf32>
    %c1_30 = arith.constant 1 : index
    %c0_31 = arith.constant 0 : index
    %c0_32 = arith.constant 0 : index
    %127 = vector.load %arg5[%c1_30, %c0_31, %c0_32] : memref<2x2x64xf32, #tpu.memory_space<vmem>>, vector<1x2x32xf32>
    %128 = vector.shape_cast %127 : vector<1x2x32xf32> to vector<2x32xf32>
    %129 = vector.shape_cast %101 : vector<2x32xf32> to vector<1x2x32xf32>
    tpu.vector_store %arg5[%c1_30, %c0_31, %c0_32], %129 {strides = array<i32>} : memref<2x2x64xf32, #tpu.memory_space<vmem>>, vector<1x2x32xf32>,
    %c0_33 = arith.constant 0 : index
    %c0_34 = arith.constant 0 : index
    %c32_35 = arith.constant 32 : index
    %130 = vector.load %arg5[%c0_33, %c0_34, %c32_35] : memref<2x2x64xf32, #tpu.memory_space<vmem>>, vector<1x2x32xf32>
    %131 = vector.shape_cast %130 : vector<1x2x32xf32> to vector<2x32xf32>
    %132 = vector.shape_cast %126 : vector<2x32xf32> to vector<1x2x32xf32>
    tpu.vector_store %arg5[%c0_33, %c0_34, %c32_35], %132 {strides = array<i32>} : memref<2x2x64xf32, #tpu.memory_space<vmem>>, vector<1x2x32xf32>,
    return
  }
}

module attributes {stable_mosaic.version = 11 : i64} {
  func.func @_bilstm_kernel(%arg0: memref<4x64xf32, #tpu.memory_space<vmem>>, %arg1: memref<64x256xf32, #tpu.memory_space<vmem>>, %arg2: memref<32x128xf32, #tpu.memory_space<vmem>>, %arg3: memref<32x128xf32, #tpu.memory_space<vmem>>, %arg4: memref<1x256xf32, #tpu.memory_space<vmem>>, %arg5: memref<2x2x64xf32, #tpu.memory_space<vmem>>) attributes {dimension_semantics = [], scalar_prefetch = 0 : i64, scratch_operands = 0 : i64, tpu.core_type = #tpu.core_type<tc>} {
    %c0 = arith.constant 0 : index
    %c0_0 = arith.constant 0 : index
    %0 = vector.load %arg0[%c0, %c0_0] : memref<4x64xf32, #tpu.memory_space<vmem>>, vector<4x64xf32>
    %c0_1 = arith.constant 0 : index
    %c0_2 = arith.constant 0 : index
    %1 = vector.load %arg1[%c0_1, %c0_2] : memref<64x256xf32, #tpu.memory_space<vmem>>, vector<64x256xf32>
    %cst = arith.constant dense<0.000000e+00> : vector<4x256xf32>
    %2 = tpu.matmul %0, %1, %cst {dimension_numbers = #tpu.dot_dimension_numbers<[1], [0], [0], [1], [0, 0, 1, 1], [], []>} : vector<4x64xf32>, vector<64x256xf32>, vector<4x256xf32> -> vector<4x256xf32>
    %c0_3 = arith.constant 0 : index
    %c0_4 = arith.constant 0 : index
    %3 = vector.load %arg4[%c0_3, %c0_4] : memref<1x256xf32, #tpu.memory_space<vmem>>, vector<1x256xf32>
    %4 = vector.broadcast %3 : vector<1x256xf32> to vector<4x256xf32>
    %5 = arith.addf %2, %4 : vector<4x256xf32>
    %c0_5 = arith.constant 0 : index
    %c0_6 = arith.constant 0 : index
    %6 = vector.load %arg2[%c0_5, %c0_6] : memref<32x128xf32, #tpu.memory_space<vmem>>, vector<32x128xf32>
    %c0_7 = arith.constant 0 : index
    %c0_8 = arith.constant 0 : index
    %7 = vector.load %arg3[%c0_7, %c0_8] : memref<32x128xf32, #tpu.memory_space<vmem>>, vector<32x128xf32>
    %cst_9 = arith.constant 0.000000e+00 : f32
    %8 = vector.broadcast %cst_9 : f32 to vector<2x32xf32>
    %9 = vector.extract_strided_slice %5 {offsets = [0, 0], sizes = [2, 128], strides = [1, 1]} : vector<4x256xf32> to vector<2x128xf32>
    %cst_10 = arith.constant dense<0.000000e+00> : vector<2x128xf32>
    %10 = tpu.matmul %8, %6, %cst_10 {dimension_numbers = #tpu.dot_dimension_numbers<[1], [0], [0], [1], [0, 0, 1, 1], [], []>} : vector<2x32xf32>, vector<32x128xf32>, vector<2x128xf32> -> vector<2x128xf32>
    %11 = arith.addf %9, %10 : vector<2x128xf32>
    %12 = vector.extract_strided_slice %5 {offsets = [2, 128], sizes = [2, 128], strides = [1, 1]} : vector<4x256xf32> to vector<2x128xf32>
    %cst_11 = arith.constant dense<0.000000e+00> : vector<2x128xf32>
    %13 = tpu.matmul %8, %7, %cst_11 {dimension_numbers = #tpu.dot_dimension_numbers<[1], [0], [0], [1], [0, 0, 1, 1], [], []>} : vector<2x32xf32>, vector<32x128xf32>, vector<2x128xf32> -> vector<2x128xf32>
    %14 = arith.addf %12, %13 : vector<2x128xf32>
    %15 = vector.extract_strided_slice %11 {offsets = [0, 0], sizes = [2, 32], strides = [1, 1]} : vector<2x128xf32> to vector<2x32xf32>
    %16 = arith.negf %15 : vector<2x32xf32>
    %17 = math.exp %16 : vector<2x32xf32>
    %cst_12 = arith.constant 1.000000e+00 : f32
    %18 = vector.broadcast %cst_12 : f32 to vector<2x32xf32>
    %19 = arith.addf %18, %17 : vector<2x32xf32>
    %20 = arith.divf %18, %19 : vector<2x32xf32>
    %21 = vector.extract_strided_slice %11 {offsets = [0, 32], sizes = [2, 32], strides = [1, 1]} : vector<2x128xf32> to vector<2x32xf32>
    %22 = arith.negf %21 : vector<2x32xf32>
    %23 = math.exp %22 : vector<2x32xf32>
    %cst_13 = arith.constant 1.000000e+00 : f32
    %24 = vector.broadcast %cst_13 : f32 to vector<2x32xf32>
    %25 = arith.addf %24, %23 : vector<2x32xf32>
    %26 = arith.divf %24, %25 : vector<2x32xf32>
    %27 = vector.extract_strided_slice %11 {offsets = [0, 64], sizes = [2, 32], strides = [1, 1]} : vector<2x128xf32> to vector<2x32xf32>
    %28 = math.tanh %27 : vector<2x32xf32>
    %29 = vector.extract_strided_slice %11 {offsets = [0, 96], sizes = [2, 32], strides = [1, 1]} : vector<2x128xf32> to vector<2x32xf32>
    %30 = arith.negf %29 : vector<2x32xf32>
    %31 = math.exp %30 : vector<2x32xf32>
    %cst_14 = arith.constant 1.000000e+00 : f32
    %32 = vector.broadcast %cst_14 : f32 to vector<2x32xf32>
    %33 = arith.addf %32, %31 : vector<2x32xf32>
    %34 = arith.divf %32, %33 : vector<2x32xf32>
    %35 = arith.mulf %26, %8 : vector<2x32xf32>
    %36 = arith.mulf %20, %28 : vector<2x32xf32>
    %37 = arith.addf %35, %36 : vector<2x32xf32>
    %38 = math.tanh %37 : vector<2x32xf32>
    %39 = arith.mulf %34, %38 : vector<2x32xf32>
    %40 = vector.extract_strided_slice %14 {offsets = [0, 0], sizes = [2, 32], strides = [1, 1]} : vector<2x128xf32> to vector<2x32xf32>
    %41 = arith.negf %40 : vector<2x32xf32>
    %42 = math.exp %41 : vector<2x32xf32>
    %cst_15 = arith.constant 1.000000e+00 : f32
    %43 = vector.broadcast %cst_15 : f32 to vector<2x32xf32>
    %44 = arith.addf %43, %42 : vector<2x32xf32>
    %45 = arith.divf %43, %44 : vector<2x32xf32>
    %46 = vector.extract_strided_slice %14 {offsets = [0, 32], sizes = [2, 32], strides = [1, 1]} : vector<2x128xf32> to vector<2x32xf32>
    %47 = arith.negf %46 : vector<2x32xf32>
    %48 = math.exp %47 : vector<2x32xf32>
    %cst_16 = arith.constant 1.000000e+00 : f32
    %49 = vector.broadcast %cst_16 : f32 to vector<2x32xf32>
    %50 = arith.addf %49, %48 : vector<2x32xf32>
    %51 = arith.divf %49, %50 : vector<2x32xf32>
    %52 = vector.extract_strided_slice %14 {offsets = [0, 64], sizes = [2, 32], strides = [1, 1]} : vector<2x128xf32> to vector<2x32xf32>
    %53 = math.tanh %52 : vector<2x32xf32>
    %54 = vector.extract_strided_slice %14 {offsets = [0, 96], sizes = [2, 32], strides = [1, 1]} : vector<2x128xf32> to vector<2x32xf32>
    %55 = arith.negf %54 : vector<2x32xf32>
    %56 = math.exp %55 : vector<2x32xf32>
    %cst_17 = arith.constant 1.000000e+00 : f32
    %57 = vector.broadcast %cst_17 : f32 to vector<2x32xf32>
    %58 = arith.addf %57, %56 : vector<2x32xf32>
    %59 = arith.divf %57, %58 : vector<2x32xf32>
    %60 = arith.mulf %51, %8 : vector<2x32xf32>
    %61 = arith.mulf %45, %53 : vector<2x32xf32>
    %62 = arith.addf %60, %61 : vector<2x32xf32>
    %63 = math.tanh %62 : vector<2x32xf32>
    %64 = arith.mulf %59, %63 : vector<2x32xf32>
    %c0_18 = arith.constant 0 : index
    %c0_19 = arith.constant 0 : index
    %c0_20 = arith.constant 0 : index
    %65 = vector.load %arg5[%c0_18, %c0_19, %c0_20] : memref<2x2x64xf32, #tpu.memory_space<vmem>>, vector<1x2x32xf32>
    %66 = vector.shape_cast %65 : vector<1x2x32xf32> to vector<2x32xf32>
    %67 = vector.shape_cast %39 : vector<2x32xf32> to vector<1x2x32xf32>
    tpu.vector_store %arg5[%c0_18, %c0_19, %c0_20], %67 {strides = array<i32>} : memref<2x2x64xf32, #tpu.memory_space<vmem>>, vector<1x2x32xf32>,
    %c1 = arith.constant 1 : index
    %c0_21 = arith.constant 0 : index
    %c32 = arith.constant 32 : index
    %68 = vector.load %arg5[%c1, %c0_21, %c32] : memref<2x2x64xf32, #tpu.memory_space<vmem>>, vector<1x2x32xf32>
    %69 = vector.shape_cast %68 : vector<1x2x32xf32> to vector<2x32xf32>
    %70 = vector.shape_cast %64 : vector<2x32xf32> to vector<1x2x32xf32>
    tpu.vector_store %arg5[%c1, %c0_21, %c32], %70 {strides = array<i32>} : memref<2x2x64xf32, #tpu.memory_space<vmem>>, vector<1x2x32xf32>,
    %71 = vector.extract_strided_slice %5 {offsets = [2, 0], sizes = [2, 128], strides = [1, 1]} : vector<4x256xf32> to vector<2x128xf32>
    %cst_22 = arith.constant dense<0.000000e+00> : vector<2x128xf32>
    %72 = tpu.matmul %39, %6, %cst_22 {dimension_numbers = #tpu.dot_dimension_numbers<[1], [0], [0], [1], [0, 0, 1, 1], [], []>} : vector<2x32xf32>, vector<32x128xf32>, vector<2x128xf32> -> vector<2x128xf32>
    %73 = arith.addf %71, %72 : vector<2x128xf32>
    %74 = vector.extract_strided_slice %5 {offsets = [0, 128], sizes = [2, 128], strides = [1, 1]} : vector<4x256xf32> to vector<2x128xf32>
    %cst_23 = arith.constant dense<0.000000e+00> : vector<2x128xf32>
    %75 = tpu.matmul %64, %7, %cst_23 {dimension_numbers = #tpu.dot_dimension_numbers<[1], [0], [0], [1], [0, 0, 1, 1], [], []>} : vector<2x32xf32>, vector<32x128xf32>, vector<2x128xf32> -> vector<2x128xf32>
    %76 = arith.addf %74, %75 : vector<2x128xf32>
    %77 = vector.extract_strided_slice %73 {offsets = [0, 0], sizes = [2, 32], strides = [1, 1]} : vector<2x128xf32> to vector<2x32xf32>
    %78 = arith.negf %77 : vector<2x32xf32>
    %79 = math.exp %78 : vector<2x32xf32>
    %cst_24 = arith.constant 1.000000e+00 : f32
    %80 = vector.broadcast %cst_24 : f32 to vector<2x32xf32>
    %81 = arith.addf %80, %79 : vector<2x32xf32>
    %82 = arith.divf %80, %81 : vector<2x32xf32>
    %83 = vector.extract_strided_slice %73 {offsets = [0, 32], sizes = [2, 32], strides = [1, 1]} : vector<2x128xf32> to vector<2x32xf32>
    %84 = arith.negf %83 : vector<2x32xf32>
    %85 = math.exp %84 : vector<2x32xf32>
    %cst_25 = arith.constant 1.000000e+00 : f32
    %86 = vector.broadcast %cst_25 : f32 to vector<2x32xf32>
    %87 = arith.addf %86, %85 : vector<2x32xf32>
    %88 = arith.divf %86, %87 : vector<2x32xf32>
    %89 = vector.extract_strided_slice %73 {offsets = [0, 64], sizes = [2, 32], strides = [1, 1]} : vector<2x128xf32> to vector<2x32xf32>
    %90 = math.tanh %89 : vector<2x32xf32>
    %91 = vector.extract_strided_slice %73 {offsets = [0, 96], sizes = [2, 32], strides = [1, 1]} : vector<2x128xf32> to vector<2x32xf32>
    %92 = arith.negf %91 : vector<2x32xf32>
    %93 = math.exp %92 : vector<2x32xf32>
    %cst_26 = arith.constant 1.000000e+00 : f32
    %94 = vector.broadcast %cst_26 : f32 to vector<2x32xf32>
    %95 = arith.addf %94, %93 : vector<2x32xf32>
    %96 = arith.divf %94, %95 : vector<2x32xf32>
    %97 = arith.mulf %88, %37 : vector<2x32xf32>
    %98 = arith.mulf %82, %90 : vector<2x32xf32>
    %99 = arith.addf %97, %98 : vector<2x32xf32>
    %100 = math.tanh %99 : vector<2x32xf32>
    %101 = arith.mulf %96, %100 : vector<2x32xf32>
    %102 = vector.extract_strided_slice %76 {offsets = [0, 0], sizes = [2, 32], strides = [1, 1]} : vector<2x128xf32> to vector<2x32xf32>
    %103 = arith.negf %102 : vector<2x32xf32>
    %104 = math.exp %103 : vector<2x32xf32>
    %cst_27 = arith.constant 1.000000e+00 : f32
    %105 = vector.broadcast %cst_27 : f32 to vector<2x32xf32>
    %106 = arith.addf %105, %104 : vector<2x32xf32>
    %107 = arith.divf %105, %106 : vector<2x32xf32>
    %108 = vector.extract_strided_slice %76 {offsets = [0, 32], sizes = [2, 32], strides = [1, 1]} : vector<2x128xf32> to vector<2x32xf32>
    %109 = arith.negf %108 : vector<2x32xf32>
    %110 = math.exp %109 : vector<2x32xf32>
    %cst_28 = arith.constant 1.000000e+00 : f32
    %111 = vector.broadcast %cst_28 : f32 to vector<2x32xf32>
    %112 = arith.addf %111, %110 : vector<2x32xf32>
    %113 = arith.divf %111, %112 : vector<2x32xf32>
    %114 = vector.extract_strided_slice %76 {offsets = [0, 64], sizes = [2, 32], strides = [1, 1]} : vector<2x128xf32> to vector<2x32xf32>
    %115 = math.tanh %114 : vector<2x32xf32>
    %116 = vector.extract_strided_slice %76 {offsets = [0, 96], sizes = [2, 32], strides = [1, 1]} : vector<2x128xf32> to vector<2x32xf32>
    %117 = arith.negf %116 : vector<2x32xf32>
    %118 = math.exp %117 : vector<2x32xf32>
    %cst_29 = arith.constant 1.000000e+00 : f32
    %119 = vector.broadcast %cst_29 : f32 to vector<2x32xf32>
    %120 = arith.addf %119, %118 : vector<2x32xf32>
    %121 = arith.divf %119, %120 : vector<2x32xf32>
    %122 = arith.mulf %113, %62 : vector<2x32xf32>
    %123 = arith.mulf %107, %115 : vector<2x32xf32>
    %124 = arith.addf %122, %123 : vector<2x32xf32>
    %125 = math.tanh %124 : vector<2x32xf32>
    %126 = arith.mulf %121, %125 : vector<2x32xf32>
    %c1_30 = arith.constant 1 : index
    %c0_31 = arith.constant 0 : index
    %c0_32 = arith.constant 0 : index
    %127 = vector.load %arg5[%c1_30, %c0_31, %c0_32] : memref<2x2x64xf32, #tpu.memory_space<vmem>>, vector<1x2x32xf32>
    %128 = vector.shape_cast %127 : vector<1x2x32xf32> to vector<2x32xf32>
    %129 = vector.shape_cast %101 : vector<2x32xf32> to vector<1x2x32xf32>
    tpu.vector_store %arg5[%c1_30, %c0_31, %c0_32], %129 {strides = array<i32>} : memref<2x2x64xf32, #tpu.memory_space<vmem>>, vector<1x2x32xf32>,
    %c0_33 = arith.constant 0 : index
    %c0_34 = arith.constant 0 : index
    %c32_35 = arith.constant 32 : index
    %130 = vector.load %arg5[%c0_33, %c0_34, %c32_35] : memref<2x2x64xf32, #tpu.memory_space<vmem>>, vector<1x2x32xf32>
    %131 = vector.shape_cast %130 : vector<1x2x32xf32> to vector<2x32xf32>
    %132 = vector.shape_cast %126 : vector<2x32xf32> to vector<1x2x32xf32>
    tpu.vector_store %arg5[%c0_33, %c0_34, %c32_35], %132 {strides = array<i32>} : memref<2x2x64xf32, #tpu.memory_space<vmem>>, vector<1x2x32xf32>,
    return
  }
}

module attributes {stable_mosaic.version = 11 : i64} {
  func.func @_ln_fc_logsoftmax_kernel(%arg0: memref<4x64xf32, #tpu.memory_space<vmem>>, %arg1: memref<1x64xf32, #tpu.memory_space<vmem>>, %arg2: memref<1x64xf32, #tpu.memory_space<vmem>>, %arg3: memref<64x10xf32, #tpu.memory_space<vmem>>, %arg4: memref<1x10xf32, #tpu.memory_space<vmem>>, %arg5: memref<4x10xf32, #tpu.memory_space<vmem>>) attributes {dimension_semantics = [], scalar_prefetch = 0 : i64, scratch_operands = 0 : i64, tpu.core_type = #tpu.core_type<tc>} {
    %c0 = arith.constant 0 : index
    %c0_0 = arith.constant 0 : index
    %0 = vector.load %arg0[%c0, %c0_0] : memref<4x64xf32, #tpu.memory_space<vmem>>, vector<4x64xf32>
    %cst = arith.constant dense<0.000000e+00> : vector<4xf32>
    %1 = vector.multi_reduction <add>, %0, %cst [1] : vector<4x64xf32> to vector<4xf32>
    %2 = vector.shape_cast %1 : vector<4xf32> to vector<4x1xf32>
    %cst_1 = arith.constant 6.400000e+01 : f32
    %3 = vector.broadcast %cst_1 : f32 to vector<4x1xf32>
    %4 = arith.divf %2, %3 : vector<4x1xf32>
    %5 = vector.broadcast %4 : vector<4x1xf32> to vector<4x64xf32>
    %6 = arith.subf %0, %5 : vector<4x64xf32>
    %7 = arith.mulf %6, %6 : vector<4x64xf32>
    %cst_2 = arith.constant dense<0.000000e+00> : vector<4xf32>
    %8 = vector.multi_reduction <add>, %7, %cst_2 [1] : vector<4x64xf32> to vector<4xf32>
    %9 = vector.shape_cast %8 : vector<4xf32> to vector<4x1xf32>
    %cst_3 = arith.constant 6.400000e+01 : f32
    %10 = vector.broadcast %cst_3 : f32 to vector<4x1xf32>
    %11 = arith.divf %9, %10 : vector<4x1xf32>
    %cst_4 = arith.constant 9.99999974E-6 : f32
    %12 = vector.broadcast %cst_4 : f32 to vector<4x1xf32>
    %13 = arith.addf %11, %12 : vector<4x1xf32>
    %14 = math.rsqrt %13 : vector<4x1xf32>
    %15 = vector.broadcast %14 : vector<4x1xf32> to vector<4x64xf32>
    %16 = arith.mulf %6, %15 : vector<4x64xf32>
    %c0_5 = arith.constant 0 : index
    %c0_6 = arith.constant 0 : index
    %17 = vector.load %arg1[%c0_5, %c0_6] : memref<1x64xf32, #tpu.memory_space<vmem>>, vector<1x64xf32>
    %18 = vector.broadcast %17 : vector<1x64xf32> to vector<4x64xf32>
    %19 = arith.mulf %16, %18 : vector<4x64xf32>
    %c0_7 = arith.constant 0 : index
    %c0_8 = arith.constant 0 : index
    %20 = vector.load %arg2[%c0_7, %c0_8] : memref<1x64xf32, #tpu.memory_space<vmem>>, vector<1x64xf32>
    %21 = vector.broadcast %20 : vector<1x64xf32> to vector<4x64xf32>
    %22 = arith.addf %19, %21 : vector<4x64xf32>
    %c0_9 = arith.constant 0 : index
    %c0_10 = arith.constant 0 : index
    %23 = vector.load %arg3[%c0_9, %c0_10] : memref<64x10xf32, #tpu.memory_space<vmem>>, vector<64x10xf32>
    %cst_11 = arith.constant dense<0.000000e+00> : vector<4x10xf32>
    %24 = tpu.matmul %22, %23, %cst_11 {dimension_numbers = #tpu.dot_dimension_numbers<[1], [0], [0], [1], [0, 0, 1, 1], [], []>} : vector<4x64xf32>, vector<64x10xf32>, vector<4x10xf32> -> vector<4x10xf32>
    %c0_12 = arith.constant 0 : index
    %c0_13 = arith.constant 0 : index
    %25 = vector.load %arg4[%c0_12, %c0_13] : memref<1x10xf32, #tpu.memory_space<vmem>>, vector<1x10xf32>
    %26 = vector.broadcast %25 : vector<1x10xf32> to vector<4x10xf32>
    %27 = arith.addf %24, %26 : vector<4x10xf32>
    %cst_14 = arith.constant dense<0xFF800000> : vector<4xf32>
    %28 = vector.multi_reduction <maximumf>, %27, %cst_14 [1] : vector<4x10xf32> to vector<4xf32>
    %29 = vector.shape_cast %28 : vector<4xf32> to vector<4x1xf32>
    %30 = vector.broadcast %29 : vector<4x1xf32> to vector<4x10xf32>
    %31 = arith.subf %27, %30 : vector<4x10xf32>
    %32 = math.exp %31 : vector<4x10xf32>
    %cst_15 = arith.constant dense<0.000000e+00> : vector<4xf32>
    %33 = vector.multi_reduction <add>, %32, %cst_15 [1] : vector<4x10xf32> to vector<4xf32>
    %34 = vector.shape_cast %33 : vector<4xf32> to vector<4x1xf32>
    %35 = math.log %34 : vector<4x1xf32>
    %36 = vector.broadcast %35 : vector<4x1xf32> to vector<4x10xf32>
    %37 = arith.subf %31, %36 : vector<4x10xf32>
    %c0_16 = arith.constant 0 : index
    %c0_17 = arith.constant 0 : index
    %38 = vector.load %arg5[%c0_16, %c0_17] : memref<4x10xf32, #tpu.memory_space<vmem>>, vector<4x10xf32>
    tpu.vector_store %arg5[%c0_16, %c0_17], %37 {strides = array<i32>} : memref<4x10xf32, #tpu.memory_space<vmem>>, vector<4x10xf32>,
    return
  }
}

</mosaic_0001>

<bundles_post_ra>
// kernel: _crnn_forward.7
= control target key start
LH: loop header
LB: loop body
LE: loop exit
PB: predicated region body
PF: predicated region fallthrough
CT: control target
= control target key end

     0   :  { %s1047_s15 = smov 0   ;;  %s1514_s0 = inlined_call_operand.vmem [shape: f32[2,18,17,1], index: 0, kind: input, shape index: {}]   ;;  %s1515_s1 = inlined_call_operand.vmem [shape: f32[2,18,17,1], index: 1, kind: input, shape index: {}]   ;;  %s1516_s2 = inlined_call_operand.vmem [shape: f32[3,3,1,32], index: 2, kind: input, shape index: {}]   ;;  %s1517_s3 = inlined_call_operand.vmem [shape: f32[1,32], index: 3, kind: input, shape index: {}]   ;;  %s1518_s4 = inlined_call_operand.vmem [shape: f32[2,8,16,32], index: 4, kind: output, shape index: {}]  }
   0x1 LB: > { %s922_s16 = sadd.s32 4294967295, %s1015_s15   ;;  %p926_p0 = scmp.ge.s32.totalorder %s1015_s15, 1  ;;  %s1015_s15 = sphi %s1047_s15, %s14_s15  }
   0x2   : > { %p172_p1 = scmp.lt.s32.totalorder %s1015_s15, 3 }
   0x4   : > { %p173_p2 = pnand %p926_p0, %p172_p1 }
   0x5   : > { %p203_p3 = scmp.lt.s32.totalorder (!%p173_p2), %s922_s16, 1  ;;  %s1070_s28 = smov (!%p173_p2), 0  }
   0x6   : > { %176 = sbr.rel (%p173_p2) target bundleno = 225 (0xe1), region = 36 }
   0xd   : > { %s1529_s16 = smov (!%p203_p3, %s922_s16), 1 }
   0xe   : > { %s985_s17 = smul.u32 432, %s1529_s16  ;;  %s984_s18 = sshll.u32 %s1529_s16, 7 }
   0xf   : > { %s1058_s21 = scalar_lea.vmem %s1518_s4, %s984_s18 }
  0x10   : > { %s1063_s24 = scalar_lea.vmem %s1514_s0, %s985_s17  ;;  %s1068_s27 = scalar_lea.vmem %s1515_s1, %s985_s17 }
  0x11 LB: >> { %v1021_v0 = vmov 0   ;;  %s932_s29 = smul.u32 48, %s1019_s28  ;;  %v1109_v27 = vld [vmem:[%s1516_s2 + $0x1] ss:$0 sm:$0xff]  ;;  %v1114_v28 = vld [vmem:[%s1516_s2 + $0x2] ss:$0 sm:$0xff]  ;;  %s1019_s28 = sphi %s1070_s28, %s223_s28  }
  0x12   : >> { %1004 = vset.pattern.permute.xlu1 %v1021_v0  ;;  %1003 = vset.pattern.permute.xlu0 %v1021_v0  ;;  %v1119_v31 = vld [vmem:[%s1516_s2 + $0x4] ss:$0 sm:$0xff]  ;;  %v1124_v32 = vld [vmem:[%s1516_s2 + $0x5] ss:$0 sm:$0xff]  ;;  %v1136_v36 = vld [vmem:[%s1516_s2] ss:$0 sm:$0xff] }
  0x13   : >> { %s1077_s30 = scalar_lea.vmem %s1063_s24, %s932_s29  ;;  %s1086_s5 = scalar_lea.vmem %s1068_s27, %s932_s29  ;;  %vm292_vm0 = vcmask 1046528   ;;  %v1161_v48 = vld [vmem:[%s1516_s2 + $0x3] ss:$0 sm:$0xff]  ;;  %vm817_vm1 = vcmask 261120  }
  0x14   : >> { %v229_v1 = vld [vmem:[%s1077_s30 + $0x10] sm:$0x1]  ;;  %v227_v2 = vld [vmem:[%s1077_s30] sm:$0xff]  ;;  %v940_v3 = vld [vmem:[%s1077_s30 + $0x18] sm:$0xff] }
  0x15   : >> { %283 = vperm.xlu1 %1004, %v229_v1   ;;  %237 = vperm.xlu0 %1003, %v227_v2   ;;  %v228_v4 = vld [vmem:[%s1077_s30 + $0x8] sm:$0xff]  ;;  %v941_v6 = vld [vmem:[%s1077_s30 + $0x20] sm:$0xff]  ;;  %v945_v9 = vld [vmem:[%s1086_s5 + $0x18] sm:$0xff] }
  0x16   : >> { %v942_v5 = vld [vmem:[%s1077_s30 + $0x28] sm:$0x1]  ;;  %v231_v8 = vld [vmem:[%s1086_s5] sm:$0xff]  ;;  %v233_v10 = vld [vmem:[%s1086_s5 + $0x10] sm:$0x1] }
  0x17   : >> { %v232_v7 = vld [vmem:[%s1086_s5 + $0x8] sm:$0xff]  ;;  %v946_v12 = vld [vmem:[%s1086_s5 + $0x20] sm:$0xff]  ;;  %v957_v13 = vld [vmem:[%s1077_s30 + $0x38] sm:$0xff] }
  0x18   : >> { %v947_v11 = vld [vmem:[%s1086_s5 + $0x28] sm:$0x1]  ;;  %v956_v14 = vld [vmem:[%s1077_s30 + $0x30] sm:$0xff]  ;;  %v958_v16 = vld [vmem:[%s1077_s30 + $0x40] sm:$0x1] }
  0x19   : >> { %359 = vperm.xlu1 %1004, %v940_v3   ;;  %242 = vperm.xlu0 %1003, %v228_v4   ;;  %v961_v15 = vld [vmem:[%s1086_s5 + $0x30] sm:$0xff]  ;;  %v963_v17 = vld [vmem:[%s1086_s5 + $0x40] sm:$0x1]  ;;  %v962_v18 = vld [vmem:[%s1086_s5 + $0x38] sm:$0xff] }
  0x1a   : >> { %v973_v19 = vld [vmem:[%s1077_s30 + $0x50] sm:$0xff]  ;;  %v972_v20 = vld [vmem:[%s1077_s30 + $0x48] sm:$0xff]  ;;  %v974_v22 = vld [vmem:[%s1077_s30 + $0x58] sm:$0x1] }
  0x1b   : >> { %v977_v21 = vld [vmem:[%s1086_s5 + $0x48] sm:$0xff]  ;;  %v979_v23 = vld [vmem:[%s1086_s5 + $0x58] sm:$0x1]  ;;  %v978_v24 = vld [vmem:[%s1086_s5 + $0x50] sm:$0xff]  ;;  %s981_s5 = sshll.u32 %s1019_s28, 4  ;;  %s223_s28 = sadd.s32 1, %s1019_s28  }
  0x1c   : >> { %s816_s6 = scalar_lea.vmem %s1058_s21, %s981_s5  ;;  %p220_p4 = scmp.ge.s32.totalorder %s223_s28, 8  }
  0x1d   : >> { %405 = vperm.xlu1 %1004, %v942_v5   ;;  %364 = vperm.xlu0 %1003, %v941_v6  }
  0x21   : >> { %262 = vperm.xlu1 %1004, %v232_v7   ;;  %257 = vperm.xlu0 %1003, %v231_v8  }
  0x25   : >> { %379 = vperm.xlu1 %1004, %v945_v9   ;;  %327 = vperm.xlu0 %1003, %v233_v10  }
  0x29   : >> { %448 = vperm.xlu1 %1004, %v947_v11   ;;  %384 = vperm.xlu0 %1003, %v946_v12  }
  0x2d   : >> { %485 = vperm.xlu1 %1004, %v957_v13   ;;  %480 = vperm.xlu0 %1003, %v956_v14  }
  0x31   : >> { %500 = vperm.xlu1 %1004, %v961_v15   ;;  %526 = vperm.xlu0 %1003, %v958_v16  }
  0x35   : >> { %569 = vperm.xlu1 %1004, %v963_v17   ;;  %505 = vperm.xlu0 %1003, %v962_v18  }
  0x39   : >> { %720 = vperm.xlu1 %1004, %v973_v19   ;;  %715 = vperm.xlu0 %1003, %v972_v20  }
  0x3d   : >> { %729 = vperm.xlu1 %1004, %v977_v21   ;;  %747 = vperm.xlu0 %1003, %v974_v22  }
  0x41   : >> { %782 = vperm.xlu1 %1004, %v979_v23   ;;  %734 = vperm.xlu0 %1003, %v978_v24  }
  0x94   : >> { %v284_v25 = vpop.permute.xlu1 %283  ;;  %v238_v26 = vpop.permute.xlu0 %237 }
  0x95   : >> { %v1127_v33 = vmul.f32 %v1109_v27, %v284_v25  ;;  %v1130_v34 = vmul.f32 %v1114_v28, %v284_v25  ;;  %v286_v35 = vmul.f32 %v1109_v27, %v238_v26  ;;  %v1139_v37 = vmul.f32 %v1114_v28, %v238_v26 }
  0x96   : >> { %v251_v46 = vmul.f32 %v1136_v36, %v238_v26 }
  0x97   : >> { %v296_v44 = vrot.slane %v1127_v33, 1  ;;  %v319_v45 = vrot.slane %v1130_v34, 1  ;;  %v293_v47 = vrot.slane %v286_v35, 1  ;;  %v316_v49 = vrot.slane %v1139_v37, 1 }
  0x98   : >> { %v360_v29 = vpop.permute.xlu1 %359  ;;  %v243_v30 = vpop.permute.xlu0 %242 }
  0x99   : >> { %v1144_v40 = vmul.f32 %v1119_v31, %v360_v29  ;;  %v1147_v41 = vmul.f32 %v1124_v32, %v360_v29  ;;  %v1150_v42 = vmul.f32 %v1109_v27, %v360_v29  ;;  %v1153_v43 = vmul.f32 %v1114_v28, %v360_v29 }
  0x9a   : >> { %v1165_v50 = vmul.f32 %v1136_v36, %v360_v29  ;;  %v287_v51 = vmul.f32 %v1109_v27, %v243_v30  ;;  %v311_v52 = vmul.f32 %v1114_v28, %v243_v30  ;;  %v252_v58 = vmul.f32 %v1136_v36, %v243_v30 }
  0x9b   : >> { %v414_v55 = vrot.slane %v1144_v40, 1  ;;  %v437_v56 = vrot.slane %v1147_v41, 1  ;;  %v607_v57 = vrot.slane %v1150_v42, 1  ;;  %v622_v59 = vrot.slane %v1153_v43, 1 }
  0x9c   : >> { %v406_v38 = vpop.permute.xlu1 %405  ;;  %v1141_v39 = vpop.permute.xlu0 %364  ;;  %v373_v62 = vmul.f32 %v1161_v48, %v360_v29  ;;  %v294_v3 = vrot.slane %v287_v51, 1  ;;  %v317_v4 = vrot.slane %v311_v52, 1 }
  0x9d   : >> { %v1175_v60 = vmul.f32 %v1119_v31, %v406_v38  ;;  %v1180_v63 = vmul.f32 %v1124_v32, %v406_v38  ;;  %v1183_v0 = vmul.f32 %v1109_v27, %v406_v38  ;;  %v1186_v1 = vmul.f32 %v1114_v28, %v406_v38 }
  0x9e   : >> { %v1193_v9 = vmul.f32 %v1119_v31, %v1141_v39  ;;  %v1197_v10 = vmul.f32 %v1124_v32, %v1141_v39  ;;  %v1201_v11 = vmul.f32 %v1136_v36, %v1141_v39  ;;  %v1207_v14 = vmul.f32 %v1109_v27, %v1141_v39 }
  0x9f   : >> { %v417_v13 = vrot.slane %v1175_v60, 1  ;;  %v440_v17 = vrot.slane %v1180_v63, 1  ;;  %v625_v19 = vrot.slane %v1186_v1, 1  ;;  %v1214_v21 = vmul.f32 %v1114_v28, %v1141_v39 }
  0xa0   : >> { %v263_v53 = vpop.permute.xlu1 %262  ;;  %v258_v54 = vpop.permute.xlu0 %257  ;;  %v295_v23 = vsel %vm292_vm0, %v293_v47, %v294_v3  ;;  %v415_v25 = vrot.slane %v1193_v9, 1  ;;  %v438_v26 = vrot.slane %v1197_v10, 1  ;;  %v1519_v34 = vrot.slane %v1207_v14, 1 }
  0xa1   : >> { %v331_v61 = vmul.f32 %v1114_v28, %v263_v53  ;;  %v278_v2 = vmul.f32 %v1109_v27, %v263_v53  ;;  %v277_v5 = vmul.f32 %v1109_v27, %v258_v54  ;;  %v330_v6 = vmul.f32 %v1114_v28, %v258_v54 }
  0xa2   : >> { %v265_v12 = vmul.f32 %v1136_v36, %v258_v54  ;;  %v266_v22 = vmul.f32 %v1136_v36, %v263_v53  ;;  %v297_v35 = vsel %vm292_vm0, %v294_v3, %v296_v44  ;;  %v320_v37 = vsel %vm292_vm0, %v317_v4, %v319_v45 }
  0xa3   : >> { %v337_v15 = vrot.slane %v331_v61, 1  ;;  %v336_v16 = vrot.slane %v330_v6, 1  ;;  %v280_v20 = vadd.f32 %v278_v2, %v252_v58  ;;  %v279_v24 = vadd.f32 %v277_v5, %v251_v46 }
  0xa4   : >> { %v380_v7 = vpop.permute.xlu1 %379  ;;  %v328_v8 = vpop.permute.xlu0 %327  ;;  %v300_v29 = vadd.f32 %v295_v23, %v265_v12  ;;  %v318_v46 = vsel %vm292_vm0, %v316_v49, %v317_v4  ;;  %v623_v52 = vrot.slane %v1214_v21, 1  ;;  %v301_v53 = vadd.f32 %v297_v35, %v266_v22 }
  0xa5   : >> { %v332_v30 = vmul.f32 %v1114_v28, %v328_v8  ;;  %v338_v38 = vsel %vm292_vm0, %v336_v16, %v337_v15  ;;  %v324_v42 = vadd.f32 %v320_v37, %v280_v20  ;;  %v451_v47 = vmul.f32 %v1124_v32, %v380_v7 }
  0xa6   : >> { %v374_v54 = vmul.f32 %v1161_v48, %v1141_v39  ;;  %v323_v58 = vadd.f32 %v318_v46, %v279_v24  ;;  %v343_v60 = vadd.f32 %v338_v38, %v300_v29  ;;  %v387_v44 = vmul.f32 %v1161_v48, %v380_v7 }
  0xa7   : >> { %v339_v51 = vrot.slane %v332_v30, 1  ;;  %v416_v45 = vsel %vm292_vm0, %v414_v55, %v415_v25  ;;  %v593_v61 = vmul.f32 %v1136_v36, %v380_v7  ;;  %v597_v2 = vmul.f32 %v1109_v27, %v380_v7 }
  0xa8   : >> { %v449_v33 = vpop.permute.xlu1 %448  ;;  %v385_v40 = vpop.permute.xlu0 %384  ;;  %v1235_v49 = vmul.f32 %v1114_v28, %v380_v7  ;;  %v376_v5 = vadd.f32 %v374_v54, %v324_v42  ;;  %v399_v39 = vmul.f32 %v1119_v31, %v380_v7  ;;  %v457_v6 = vrot.slane %v451_v47, 1  ;;  %v1255_v7 = vld [vmem:[%s1516_s2 + $0x7] ss:$0 sm:$0xff]  ;;  %v1277_v42 = vld [vmem:[%s1516_s2 + $0x6] ss:$0 sm:$0xff] }
  0xa9   : >> { %v340_v3 = vsel %vm292_vm0, %v337_v15, %v339_v51  ;;  %v400_v4 = vmul.f32 %v1119_v31, %v385_v40  ;;  %v609_v8 = vsel %vm292_vm0, %v607_v57, %v1519_v34  ;;  %v375_v9 = vadd.f32 %v373_v62, %v323_v58  ;;  %v1260_v57 = vld [vmem:[%s1516_s2 + $0x8] ss:$0 sm:$0xff] }
  0xaa   : >> { %v1244_v12 = vmul.f32 %v1124_v32, %v449_v33  ;;  %v1247_v16 = vmul.f32 %v1114_v28, %v449_v33  ;;  %v1250_v15 = vmul.f32 %v1124_v32, %v385_v40  ;;  %v389_v20 = vadd.f32 %v387_v44, %v343_v60 }
  0xab   : >> { %v1262_v22 = vadd.f32 %v609_v8, %v593_v61  ;;  %v344_v23 = vadd.f32 %v340_v3, %v301_v53  ;;  %v388_v24 = vmul.f32 %v1161_v48, %v385_v40  ;;  %v1266_v29 = vadd.f32 %v597_v2, %v1165_v50 }
  0xac   : >> { %v486_v55 = vpop.permute.xlu1 %485  ;;  %v481_v62 = vpop.permute.xlu0 %480  ;;  %v637_v30 = vrot.slane %v1235_v49, 1  ;;  %v402_v33 = vadd.f32 %v400_v4, %v376_v5  ;;  %v598_v35 = vmul.f32 %v1109_v27, %v385_v40  ;;  %v418_v37 = vsel %vm292_vm0, %v415_v25, %v417_v13 }
  0xad   : >> { %v1272_v38 = vmul.f32 %v1114_v28, %v385_v40  ;;  %v1280_v46 = vmul.f32 %v1255_v7, %v486_v55  ;;  %v1283_v50 = vmul.f32 %v1260_v57, %v486_v55  ;;  %v401_v47 = vadd.f32 %v399_v39, %v375_v9 }
  0xae   : >> { %v460_v51 = vrot.slane %v1244_v12, 1  ;;  %v458_v13 = vrot.slane %v1250_v15, 1  ;;  %v421_v28 = vadd.f32 %v416_v45, %v389_v20  ;;  %v390_v25 = vadd.f32 %v388_v24, %v344_v23 }
  0xaf   : >> { %v1289_v53 = vmul.f32 %v1136_v36, %v385_v40  ;;  %v441_v54 = vsel %vm292_vm0, %v438_v26, %v440_v17  ;;  %v600_v60 = vadd.f32 %v598_v35, %v1201_v11  ;;  %v495_v61 = vmul.f32 %v1277_v42, %v486_v55 }
  0xb0   : >> { %v1296_v58 = vpop.permute.xlu1 %500  ;;  %v445_v44 = vadd.f32 %v441_v54, %v402_v33  ;;  %v1301_v2 = vmul.f32 %v1119_v31, %v486_v55  ;;  %v527_v45 = vpop.permute.xlu0 %526  ;;  %v638_v36 = vrot.slane %v1272_v38, 1  ;;  %v536_v40 = vrot.slane %v1280_v46, 1 }
  0xb1   : >> { %v1307_v3 = vmul.f32 %v1124_v32, %v486_v55  ;;  %v494_v17 = vmul.f32 %v1277_v42, %v481_v62  ;;  %v529_v11 = vmul.f32 %v1255_v7, %v481_v62  ;;  %v1312_v4 = vmul.f32 %v1260_v57, %v481_v62 }
  0xb2   : >> { %v459_v5 = vsel %vm292_vm0, %v457_v6, %v458_v13  ;;  %v422_v39 = vadd.f32 %v418_v37, %v390_v25  ;;  %v647_v8 = vmul.f32 %v1161_v48, %v486_v55  ;;  %v439_v9 = vsel %vm292_vm0, %v437_v56, %v438_v26 }
  0xb3   : >> { %v508_v20 = vmul.f32 %v1277_v42, %v1296_v58  ;;  %v1325_v23 = vadd.f32 %v495_v61, %v445_v44  ;;  %v665_v24 = vrot.slane %v1301_v2, 1  ;;  %v444_v33 = vadd.f32 %v439_v9, %v401_v47 }
  0xb4   : >> { %v531_v35 = vmul.f32 %v1255_v7, %v527_v45  ;;  %v680_v6 = vrot.slane %v1307_v3, 1  ;;  %v1331_v55 = vmul.f32 %v1119_v31, %v481_v62  ;;  %v1334_v10 = vmul.f32 %v1124_v32, %v481_v62  ;;  %v570_v56 = vpop.permute.xlu1 %569  ;;  %v1338_v54 = vpop.permute.xlu0 %505 }
  0xb5   : >> { %v464_v41 = vadd.f32 %v459_v5, %v421_v28  ;;  %v496_v26 = vadd.f32 %v494_v17, %v444_v33  ;;  %v535_v37 = vrot.slane %v529_v11, 1  ;;  %v646_v25 = vmul.f32 %v1161_v48, %v481_v62 }
  0xb6   : >> { %v520_v44 = vmul.f32 %v1255_v7, %v1296_v58  ;;  %v1344_v61 = vmul.f32 %v1260_v57, %v1296_v58  ;;  %v688_v28 = vmul.f32 %v1124_v32, %v1296_v58  ;;  %v538_v5 = vrot.slane %v531_v35, 1 }
  0xb7   : >> { %v510_v47 = vadd.f32 %v508_v20, %v464_v41  ;;  %v1349_v17 = vmul.f32 %v1260_v57, %v527_v45  ;;  %v1352_v11 = vmul.f32 %v1119_v31, %v527_v45  ;;  %v626_v62 = vsel %vm292_vm0, %v623_v52, %v625_v19 }
  0xb8   : >> { %v664_v9 = vrot.slane %v1331_v55, 1  ;;  %v679_v20 = vrot.slane %v1334_v10, 1  ;;  %v675_v33 = vmul.f32 %v1124_v32, %v527_v45  ;;  %v630_v41 = vadd.f32 %v626_v62, %v600_v60  ;;  %v721_v10 = vpop.permute.xlu1 %720 }
  0xb9   : >> { %v537_v35 = vsel %vm292_vm0, %v535_v37, %v536_v40  ;;  %v650_v46 = vmul.f32 %v1161_v48, %v1296_v58  ;;  %v1366_v63 = vmul.f32 %v1260_v57, %v570_v56  ;;  %v1369_v1 = vmul.f32 %v1124_v32, %v570_v56  ;;  %v716_v56 = vpop.permute.xlu0 %715 }
  0xba   : >> { %v1371_v27 = vadd.f32 %v520_v44, %v496_v26  ;;  %v1373_v19 = vadd.f32 %v537_v35, %v510_v47  ;;  %v578_v55 = vrot.slane %v1344_v61, 1  ;;  %v655_v60 = vmul.f32 %v1119_v31, %v1338_v54 }
  0xbb   : >> { %v694_v45 = vrot.slane %v688_v28, 1  ;;  %v1379_v37 = vsel %vm292_vm0, %v536_v40, %v538_v5  ;;  %v667_v34 = vrot.slane %v1352_v11, 1  ;;  %v682_v18 = vrot.slane %v675_v33, 1 }
  0xbc   : >> { %v461_v26 = vsel %vm292_vm0, %v458_v13, %v460_v51  ;;  %v1390_v47 = vmul.f32 %v1124_v32, %v1338_v54  ;;  %v649_v44 = vadd.f32 %v647_v8, %v630_v41  ;;  %v697_v28 = vrot.slane %v1369_v1, 1  ;;  %v730_v43 = vpop.permute.xlu1 %729 }
  0xbd   : >> { %v509_v5 = vmul.f32 %v1277_v42, %v1338_v54  ;;  %v639_v12 = vsel %vm292_vm0, %v637_v30, %v638_v36  ;;  %v1403_v15 = vmul.f32 %v1260_v57, %v1338_v54  ;;  %v1406_v51 = vmul.f32 %v1255_v7, %v721_v10 }
  0xbe   : >> { %v657_v32 = vadd.f32 %v655_v60, %v649_v44  ;;  %v624_v13 = vsel %vm292_vm0, %v622_v59, %v623_v52  ;;  %v1414_v8 = vmul.f32 %v1260_v57, %v721_v10  ;;  %v654_v30 = vmul.f32 %v1119_v31, %v1296_v58  ;;  %v748_v58 = vpop.permute.xlu0 %747 }
  0xbf   : >> { %v629_v49 = vadd.f32 %v624_v13, %v1266_v29  ;;  %v644_v33 = vadd.f32 %v639_v12, %v1262_v22  ;;  %v465_v41 = vadd.f32 %v461_v26, %v422_v39  ;;  %v695_v35 = vrot.slane %v1390_v47, 1 }
  0xc0   : >> { %v750_v60 = vmul.f32 %v1255_v7, %v716_v56  ;;  %v765_v21 = vmul.f32 %v1260_v57, %v716_v56  ;;  %v1425_v59 = vmul.f32 %v1255_v7, %v1338_v54  ;;  %v683_v52 = vsel %vm292_vm0, %v680_v6, %v682_v18 }
  0xc1   : >> { %v648_v29 = vadd.f32 %v646_v25, %v629_v49  ;;  %v652_v31 = vadd.f32 %v650_v46, %v644_v33  ;;  %v511_v22 = vadd.f32 %v509_v5, %v465_v41  ;;  %v579_v39 = vrot.slane %v1403_v15, 1 }
  0xc2   : >> { %v687_v26 = vadd.f32 %v683_v52, %v657_v32  ;;  %v724_v47 = vmul.f32 %v1277_v42, %v721_v10  ;;  %v757_v44 = vrot.slane %v1406_v51, 1  ;;  %v772_v12 = vrot.slane %v1414_v8, 1  ;;  %v735_v41 = vpop.permute.xlu0 %734 }
  0xc3   : >> { %v656_v13 = vadd.f32 %v654_v30, %v648_v29  ;;  %v681_v62 = vsel %vm292_vm0, %v679_v20, %v680_v6  ;;  %v756_v40 = vrot.slane %v750_v60, 1  ;;  %v771_v18 = vrot.slane %v765_v21, 1  ;;  %v783_v30 = vpop.permute.xlu1 %782 }
  0xc4   : >> { %v666_v46 = vsel %vm292_vm0, %v664_v9, %v665_v24  ;;  %v696_v25 = vsel %vm292_vm0, %v694_v45, %v695_v35  ;;  %v723_v5 = vmul.f32 %v1277_v42, %v716_v56  ;;  %v737_v15 = vmul.f32 %v1277_v42, %v730_v43 }
  0xc5   : >> { %v671_v10 = vadd.f32 %v666_v46, %v652_v31  ;;  %v1520_v32 = vrot.slane %v1183_v0, 1  ;;  %v1521_v51 = vrot.slane %v1207_v14, 1  ;;  %v726_v6 = vadd.f32 %v724_v47, %v687_v26 }
  0xc6   : >> { %v741_v20 = vmul.f32 %v1255_v7, %v730_v43  ;;  %v785_v49 = vmul.f32 %v1260_v57, %v730_v43  ;;  %v686_v45 = vadd.f32 %v681_v62, %v656_v13  ;;  %v1522_v56 = vrot.slane %v1247_v16, 1 }
  0xc7   : >> { %v611_v3 = vsel %vm292_vm0, %v1521_v51, %v1520_v32  ;;  %v701_v33 = vadd.f32 %v696_v25, %v671_v10  ;;  %v651_v14 = vmul.f32 %v1161_v48, %v1338_v54  ;;  %v758_v60 = vsel %vm292_vm0, %v756_v40, %v757_v44 }
  0xc8   : >> { %v615_v9 = vadd.f32 %v611_v3, %v1289_v53  ;;  %v641_v0 = vsel %vm292_vm0, %v638_v36, %v1522_v56  ;;  %v773_v21 = vsel %vm292_vm0, %v771_v18, %v772_v12  ;;  %v752_v53 = vmul.f32 %v1255_v7, %v748_v58 }
  0xc9   : >> { %v725_v43 = vadd.f32 %v723_v5, %v686_v45  ;;  %v739_v52 = vadd.f32 %v737_v15, %v701_v33  ;;  %v767_v16 = vmul.f32 %v1260_v57, %v748_v58  ;;  %v787_v38 = vmul.f32 %v1260_v57, %v783_v30 }
  0xca   : >> { %v645_v62 = vadd.f32 %v641_v0, %v615_v9  ;;  %v791_v36 = vrot.slane %v785_v49, 1  ;;  %v580_v48 = vsel %vm292_vm0, %v578_v55, %v579_v39  ;;  %v786_v40 = vmul.f32 %v1260_v57, %v735_v41 }
  0xcb   : >> { %v743_v29 = vadd.f32 %v741_v20, %v725_v43  ;;  %v543_v31 = vadd.f32 %v1379_v37, %v511_v22  ;;  %v668_v26 = vsel %vm292_vm0, %v665_v24, %v667_v34  ;;  %v698_v58 = vsel %vm292_vm0, %v695_v35, %v697_v28 }
  0xcc   : >> { %v653_v54 = vadd.f32 %v651_v14, %v645_v62  ;;  %v738_v61 = vmul.f32 %v1277_v42, %v735_v41  ;;  %v742_v55 = vmul.f32 %v1255_v7, %v735_v41  ;;  %v792_v13 = vrot.slane %v786_v40, 1 }
  0xcd   : >> { %v763_v57 = vadd.f32 %v758_v60, %v739_v52  ;;  %v759_v18 = vrot.slane %v752_v53, 1  ;;  %v794_v46 = vrot.slane %v787_v38, 1  ;;  %v585_v37 = vadd.f32 %v580_v48, %v1373_v19 }
  0xce   : >> { %v672_v47 = vadd.f32 %v668_v26, %v653_v54  ;;  %v774_v11 = vrot.slane %v767_v16, 1  ;;  %v1523_v2 = vrot.slane %v1283_v50, 1  ;;  %v1524_v34 = vrot.slane %v1312_v4, 1 }
  0xcf   : >> { %v793_v28 = vsel %vm292_vm0, %v791_v36, %v792_v13  ;;  %v778_v35 = vadd.f32 %v773_v21, %v743_v29  ;;  %v1525_v42 = vrot.slane %v1366_v63, 1  ;;  %v523_v19 = vadd.f32 %v1425_v59, %v1325_v23 }
  0xd0   : >> { %v560_v24 = vsel %vm292_vm0, %v1524_v34, %v1523_v2  ;;  %v702_v1 = vadd.f32 %v698_v58, %v672_v47  ;;  %v798_v25 = vadd.f32 %v793_v28, %v763_v57  ;;  %v744_v10 = vadd.f32 %v742_v55, %v726_v6 }
  0xd1   : >> { %v565_v7 = vadd.f32 %v560_v24, %v1371_v27  ;;  %v582_v22 = vsel %vm292_vm0, %v579_v39, %v1525_v42  ;;  %v760_v15 = vsel %vm292_vm0, %v757_v44, %v759_v18  ;;  %v795_v32 = vsel %vm292_vm0, %v792_v13, %v794_v46  ;;  %v980_v27 = vld [vmem:[%s1517_s3] ss:$0 sm:$0xff] }
  0xd2   : >> { %v740_v5 = vadd.f32 %v738_v61, %v702_v1  ;;  %v800_v51 = vmax.f32 %v778_v35, %v798_v25  ;;  %v586_v3 = vadd.f32 %v582_v22, %v543_v31  ;;  %v1526_v39 = vrot.slane %v1349_v17, 1 }
  0xd3   : >> { %v587_v4 = vmax.f32 %v565_v7, %v585_v37  ;;  %v1527_v20 = vmov %v1523_v2  ;;  %v775_v59 = vsel %vm292_vm0, %v772_v12, %v774_v11 }
  0xd4   : >> { %v764_v63 = vadd.f32 %v760_v15, %v740_v5  ;;  %v562_v23 = vsel %vm292_vm0, %v1527_v20, %v1526_v39  ;;  %v779_v49 = vadd.f32 %v775_v59, %v744_v10 }
  0xd5   : >> { %v802_v44 = vmax.f32 %v587_v4, %v800_v51  ;;  %v566_v6 = vadd.f32 %v562_v23, %v523_v19 }
  0xd6   : >> { %v799_v30 = vadd.f32 %v795_v32, %v764_v63 }
  0xd7   : >> { %v811_v9 = vadd.f32 %v980_v27, %v802_v44  ;;  %v588_v45 = vmax.f32 %v566_v6, %v586_v3 }
  0xd8   : >> { %v801_v33 = vmax.f32 %v779_v49, %v799_v30 }
  0xd9   : >> { %v813_v56 = vmax.f32 %v811_v9, 0.0 }
  0xda   : >> { %v803_v17 = vmax.f32 %v588_v45, %v801_v33  ;;  %222 = sbr.rel (!%p220_p4) target bundleno = 17 (0x11), region = 93 }
  0xdb   : >> { %818 = vst.msk [vmem:[%s816_s6] sm:$0xff] %vm817_vm1, %v813_v56 }
  0xdc   : >> { %v812_v50 = vadd.f32 %v980_v27, %v803_v17 }
  0xde   : >> { %v814_v0 = vmax.f32 %v812_v50, 0.0 }
  0xe0   : >> { %819 = vst.msk [vmem:[%s816_s6 + $0x8] sm:$0xff] %vm817_vm1, %v814_v0 }
  0xe1 PF: > { %s14_s15 = sadd.s32 1, %s1015_s15  }
  0xe2   : > { %p11_p5 = scmp.ge.s32.totalorder %s14_s15, 4  }
  0xe4   :  { %13 = sbr.rel (!%p11_p5) target bundleno = 1 (0x1), region = 104 }

// kernel: _crnn_forward.9
= control target key start
LH: loop header
LB: loop body
LE: loop exit
PB: predicated region body
PF: predicated region fallthrough
CT: control target
= control target key end

     0   :  { %s2656_s15 = smov 0   ;;  %s3081_s0 = inlined_call_operand.vmem [shape: f32[2,6,5,64], index: 0, kind: input, shape index: {}]   ;;  %s3082_s1 = inlined_call_operand.vmem [shape: f32[2,6,5,64], index: 1, kind: input, shape index: {}]   ;;  %s3083_s2 = inlined_call_operand.vmem [shape: f32[3,3,64,128], index: 2, kind: input, shape index: {}]   ;;  %s3084_s3 = inlined_call_operand.vmem [shape: f32[1,128], index: 3, kind: input, shape index: {}]   ;;  %s3085_s4 = inlined_call_operand.vmem [shape: f32[2,4,4,128], index: 4, kind: output, shape index: {}]  }
   0x1 LB: > { %s1735_s16 = sadd.s32 4294967295, %s2622_s15   ;;  %p1739_p0 = scmp.ge.s32.totalorder %s2622_s15, 1  ;;  %s2622_s15 = sphi %s2656_s15, %s14_s15  }
   0x2   : > { %p172_p1 = scmp.lt.s32.totalorder %s2622_s15, 3 }
   0x4   : > { %p173_p2 = pnand %p1739_p0, %p172_p1 }
   0x5   : > { %p203_p3 = scmp.lt.s32.totalorder (!%p173_p2), %s1735_s16, 1  ;;  %s2679_s28 = smov (!%p173_p2), 0  }
   0x6   : > { %176 = sbr.rel (%p173_p2) target bundleno = 382 (0x17e), region = 36 }
   0xd   : > { %s3087_s16 = smov (!%p203_p3, %s1735_s16), 1 }
   0xe   : > { %s2592_s17 = smul.u32 48, %s3087_s16  ;;  %s1839_s18 = sshll.u32 %s3087_s16, 4 }
   0xf   : > { %s2667_s21 = scalar_lea.vmem %s3085_s4, %s1839_s18 }
  0x10   : > { %s2672_s24 = scalar_lea.vmem %s3081_s0, %s2592_s17  ;;  %s2677_s27 = scalar_lea.vmem %s3082_s1, %s2592_s17 }
  0x11 LB: >> { %v1745_v0 = vld [vmem:[%s3083_s2 + $0x40] sm:$0xff]  ;;  %v1746_v1 = vld [vmem:[%s3083_s2 + $0x48] sm:$0xff]  ;;  %v1747_v2 = vld [vmem:[%s3083_s2 + $0x50] sm:$0xff]  ;;  %v2628_v3 = vmov 0.0|0.0   ;;  %vm2629_vm0 = vmmov 0   ;;  %v2630_v6 = vmov 0.0   ;;  %s2626_s28 = sphi %s2679_s28, %s223_s28  }
  0x12   : >> { %2344 = vmatprep.subr.bf16.mxu0 %v2628_v3  ;;  %2368 = vmatprep.subr.bf16.mxu1 %v2628_v3  ;;  %v2345_v4 = vpack.c.bf16 %v1746_v1, %v1745_v0  ;;  %v1748_v5 = vld [vmem:[%s3083_s2 + $0x58] sm:$0xff]  ;;  %v1749_v8 = vld [vmem:[%s3083_s2 + $0x60] sm:$0xff]  ;;  %v1750_v9 = vld [vmem:[%s3083_s2 + $0x68] sm:$0xff]  ;;  %s1744_s16 = sshll.u32 %s2626_s28, 3  ;;  %vm246_vm1 = vcmask 523264   ;;  %s1836_s13 = sshll.u32 %s2626_s28, 2 }
  0x13   : >> { %2018 = vmatprep.mubr.msk.f32.mxu0 %vm2629_vm0, %v2630_v6  ;;  %2056 = vmatprep.mubr.msk.f32.mxu1 %vm2629_vm0, %v2630_v6  ;;  %v2348_v7 = vpack.c.bf16 %v1748_v5, %v1747_v2  ;;  %v2351_v10 = vpack.c.bf16 %v1750_v9, %v1749_v8  ;;  %v1751_v11 = vld [vmem:[%s3083_s2 + $0x70] sm:$0xff]  ;;  %v1752_v12 = vld [vmem:[%s3083_s2 + $0x78] sm:$0xff]  ;;  %s2720_s22 = scalar_lea.vmem %s2672_s24, %s1744_s16  ;;  %s2728_s23 = scalar_lea.vmem %s2677_s27, %s1744_s16  ;;  %v229_v15 = vld [vmem:[%s3083_s2] sm:$0xff] }
  0x14   : >> { %2346 = vmatpush3.bf16.msra.mxu0 %v2345_v4  ;;  %2370 = vmatpush3.bf16.msra.mxu1 %v2345_v4  ;;  %v2354_v13 = vpack.c.bf16 %v1752_v12, %v1751_v11  ;;  %v2723_v14 = vld [vmem:[%s2720_s22] sm:$0x1f]  ;;  %v230_v16 = vld [vmem:[%s3083_s2 + $0x8] sm:$0xff]  ;;  %v231_v20 = vld [vmem:[%s3083_s2 + $0x10] sm:$0xff]  ;;  %s1643_s14 = scalar_lea.vmem %s2667_s21, %s1836_s13  ;;  %s223_s28 = sadd.s32 1, %s2626_s28  }
  0x15   : >> { %2347 = vmatprep.subr.bf16.mxu0 %v2628_v3  ;;  %2371 = vmatprep.subr.bf16.mxu1 %v2628_v3  ;;  %v393_v17 = vrot.slane %v2723_v14, 1  ;;  %v2738_v18 = vld [vmem:[%s2728_s23] sm:$0x1f]  ;;  %v2357_v19 = vpack.c.bf16 %v230_v16, %v229_v15  ;;  %v232_v21 = vld [vmem:[%s3083_s2 + $0x18] sm:$0xff]  ;;  %v234_v24 = vld [vmem:[%s3083_s2 + $0x28] sm:$0xff]  ;;  %p220_p4 = scmp.ge.s32.totalorder %s223_s28, 4  }
  0x16   : >> { %v2360_v22 = vpack.c.bf16 %v232_v21, %v231_v20  ;;  %v233_v23 = vld [vmem:[%s3083_s2 + $0x20] sm:$0xff]  ;;  %v235_v26 = vld [vmem:[%s3083_s2 + $0x30] sm:$0xff]  ;;  %v236_v27 = vld [vmem:[%s3083_s2 + $0x38] sm:$0xff]  ;;  %v616_v43 = vrot.slane %v2738_v18, 1 }
  0x17   : >> { %v2363_v25 = vpack.c.bf16 %v234_v24, %v233_v23  ;;  %v2366_v28 = vpack.c.bf16 %v236_v27, %v235_v26  ;;  %v1757_v29 = vld [vmem:[%s3083_s2 + $0x80] sm:$0xff]  ;;  %v1758_v30 = vld [vmem:[%s3083_s2 + $0x88] sm:$0xff]  ;;  %v1759_v32 = vld [vmem:[%s3083_s2 + $0x90] sm:$0xff] }
  0x18   : >> { %2349 = vmatpush3.bf16.msra.mxu0 %v2348_v7  ;;  %2373 = vmatpush3.bf16.msra.mxu1 %v2348_v7  ;;  %v2393_v31 = vpack.c.bf16 %v1758_v30, %v1757_v29  ;;  %v1760_v33 = vld [vmem:[%s3083_s2 + $0x98] sm:$0xff]  ;;  %v1761_v35 = vld [vmem:[%s3083_s2 + $0xa0] sm:$0xff]  ;;  %v1762_v36 = vld [vmem:[%s3083_s2 + $0xa8] sm:$0xff] }
  0x19   : >> { %2350 = vmatprep.subr.bf16.mxu0 %v2628_v3  ;;  %2374 = vmatprep.subr.bf16.mxu1 %v2628_v3  ;;  %v2396_v34 = vpack.c.bf16 %v1760_v33, %v1759_v32  ;;  %v2399_v37 = vpack.c.bf16 %v1762_v36, %v1761_v35  ;;  %v1763_v38 = vld [vmem:[%s3083_s2 + $0xb0] sm:$0xff]  ;;  %v1764_v39 = vld [vmem:[%s3083_s2 + $0xb8] sm:$0xff]  ;;  %v1771_v41 = vld [vmem:[%s3083_s2 + $0xc0] sm:$0xff] }
  0x1a   : >> { %v2402_v40 = vpack.c.bf16 %v1764_v39, %v1763_v38  ;;  %v1772_v42 = vld [vmem:[%s3083_s2 + $0xc8] sm:$0xff]  ;;  %v1773_v45 = vld [vmem:[%s3083_s2 + $0xd0] sm:$0xff]  ;;  %v1774_v46 = vld [vmem:[%s3083_s2 + $0xd8] sm:$0xff] }
  0x1b   : >> { %v2417_v44 = vpack.c.bf16 %v1772_v42, %v1771_v41  ;;  %v2420_v47 = vpack.c.bf16 %v1774_v46, %v1773_v45  ;;  %v1775_v48 = vld [vmem:[%s3083_s2 + $0xe0] sm:$0xff]  ;;  %v1776_v49 = vld [vmem:[%s3083_s2 + $0xe8] sm:$0xff]  ;;  %v1777_v51 = vld [vmem:[%s3083_s2 + $0xf0] sm:$0xff] }
  0x1c   : >> { %2352 = vmatpush3.bf16.msra.mxu0 %v2351_v10  ;;  %2376 = vmatpush3.bf16.msra.mxu1 %v2351_v10  ;;  %v2423_v50 = vpack.c.bf16 %v1776_v49, %v1775_v48  ;;  %v1778_v52 = vld [vmem:[%s3083_s2 + $0xf8] sm:$0xff]  ;;  %v1781_v54 = vld [vmem:[%s3083_s2 + $0x100] sm:$0xff]  ;;  %v1782_v55 = vld [vmem:[%s3083_s2 + $0x108] sm:$0xff] }
  0x1d   : >> { %2353 = vmatprep.subr.bf16.mxu0 %v2628_v3  ;;  %2377 = vmatprep.subr.bf16.mxu1 %v2628_v3  ;;  %v2426_v53 = vpack.c.bf16 %v1778_v52, %v1777_v51  ;;  %v2863_v56 = vld [vmem:[%s2720_s22 + $0x8] sm:$0x1f]  ;;  %v2441_v58 = vpack.c.bf16 %v1782_v55, %v1781_v54  ;;  %v1783_v59 = vld [vmem:[%s3083_s2 + $0x110] sm:$0xff]  ;;  %v1784_v60 = vld [vmem:[%s3083_s2 + $0x118] sm:$0xff] }
  0x1e   : >> { %v2866_v57 = vld [vmem:[%s2728_s23 + $0x8] sm:$0x1f]  ;;  %v2444_v61 = vpack.c.bf16 %v1784_v60, %v1783_v59  ;;  %v1785_v62 = vld [vmem:[%s3083_s2 + $0x120] sm:$0xff]  ;;  %v1787_v1 = vld [vmem:[%s3083_s2 + $0x130] sm:$0xff]  ;;  %v933_v8 = vrot.slane %v2863_v56, 1 }
  0x1f   : >> { %v1786_v63 = vld [vmem:[%s3083_s2 + $0x128] sm:$0xff]  ;;  %v1788_v2 = vld [vmem:[%s3083_s2 + $0x138] sm:$0xff]  ;;  %v1791_v5 = vld [vmem:[%s3083_s2 + $0x140] sm:$0xff]  ;;  %v1087_v21 = vrot.slane %v2866_v57, 1 }
  0x20   : >> { %2355 = vmatpush3.bf16.msra.mxu0 %v2354_v13  ;;  %2379 = vmatpush3.bf16.msra.mxu1 %v2354_v13  ;;  %v2447_v0 = vpack.c.bf16 %v1786_v63, %v1785_v62  ;;  %v2450_v4 = vpack.c.bf16 %v1788_v2, %v1787_v1  ;;  %v1792_v7 = vld [vmem:[%s3083_s2 + $0x148] sm:$0xff]  ;;  %v1793_v10 = vld [vmem:[%s3083_s2 + $0x150] sm:$0xff]  ;;  %v1794_v11 = vld [vmem:[%s3083_s2 + $0x158] sm:$0xff] }
  0x21   : >> { %2356 = vmatprep.subr.bf16.mxu0 %v2628_v3  ;;  %2380 = vmatprep.subr.bf16.mxu1 %v2628_v3  ;;  %v2465_v9 = vpack.c.bf16 %v1792_v7, %v1791_v5  ;;  %v2468_v12 = vpack.c.bf16 %v1794_v11, %v1793_v10  ;;  %v1795_v13 = vld [vmem:[%s3083_s2 + $0x160] sm:$0xff]  ;;  %v1797_v16 = vld [vmem:[%s3083_s2 + $0x170] sm:$0xff]  ;;  %v1806_v20 = vld [vmem:[%s3083_s2 + $0x188] sm:$0xff] }
  0x22   : >> { %v1807_v23 = vld [vmem:[%s3083_s2 + $0x190] sm:$0xff]  ;;  %v1808_v24 = vld [vmem:[%s3083_s2 + $0x198] sm:$0xff]  ;;  %v1809_v26 = vld [vmem:[%s3083_s2 + $0x1a0] sm:$0xff] }
  0x23   : >> { %2019 = vmatmul.mubr.msk.f32.vlgmr.msra.gmra.mrb[0].mxu0 %vm246_vm1, %v2738_v18  ;;  %2057 = vmatmul.mubr.msk.f32.vlgmr.msra.gmra.mrb[0].mxu1 %vm246_vm1, %v393_v17  ;;  %v1810_v27 = vld [vmem:[%s3083_s2 + $0x1a8] sm:$0xff]  ;;  %v1811_v29 = vld [vmem:[%s3083_s2 + $0x1b0] sm:$0xff]  ;;  %v1812_v30 = vld [vmem:[%s3083_s2 + $0x1b8] sm:$0xff] }
  0x24   : >> { %2358 = vmatpush3.bf16.msra.mxu0 %v2357_v19  ;;  %2382 = vmatpush3.bf16.msra.mxu1 %v2357_v19  ;;  %v1805_v19 = vld [vmem:[%s3083_s2 + $0x180] sm:$0xff]  ;;  %v1816_v33 = vld [vmem:[%s3083_s2 + $0x1c8] sm:$0xff]  ;;  %v2991_v35 = vld [vmem:[%s2728_s23 + $0x10] sm:$0x1f] }
  0x25   : >> { %2359 = vmatprep.subr.bf16.mxu0 %v2628_v3  ;;  %2383 = vmatprep.subr.bf16.mxu1 %v2628_v3  ;;  %v1815_v32 = vld [vmem:[%s3083_s2 + $0x1c0] sm:$0xff]  ;;  %v1818_v38 = vld [vmem:[%s3083_s2 + $0x1d8] sm:$0xff]  ;;  %v1820_v41 = vld [vmem:[%s3083_s2 + $0x1e8] sm:$0xff] }
  0x26   : >> { %2037 = vmatprep.mubr.msk.f32.mxu0 %vm2629_vm0, %v2630_v6  ;;  %2075 = vmatprep.mubr.msk.f32.mxu1 %vm2629_vm0, %v2630_v6  ;;  %v2513_v36 = vpack.c.bf16 %v1816_v33, %v1815_v32  ;;  %v1825_v46 = vld [vmem:[%s3083_s2 + $0x200] sm:$0xff]  ;;  %v1828_v51 = vld [vmem:[%s3083_s2 + $0x218] sm:$0xff]  ;;  %v1830_v54 = vld [vmem:[%s3083_s2 + $0x228] sm:$0xff] }
  0x28   : >> { %2361 = vmatpush3.bf16.msra.mxu0 %v2360_v22  ;;  %2385 = vmatpush3.bf16.msra.mxu1 %v2360_v22  ;;  %v2489_v22 = vpack.c.bf16 %v1806_v20, %v1805_v19 }
  0x29   : >> { %2362 = vmatprep.subr.bf16.mxu0 %v2628_v3  ;;  %2386 = vmatprep.subr.bf16.mxu1 %v2628_v3 }
  0x2c   : >> { %2364 = vmatpush3.bf16.msra.mxu0 %v2363_v25  ;;  %2388 = vmatpush3.bf16.msra.mxu1 %v2363_v25  ;;  %v2492_v25 = vpack.c.bf16 %v1808_v24, %v1807_v23 }
  0x2d   : >> { %2365 = vmatprep.subr.bf16.mxu0 %v2628_v3  ;;  %2389 = vmatprep.subr.bf16.mxu1 %v2628_v3 }
  0x30   : >> { %2367 = vmatpush3.bf16.msra.mxu0 %v2366_v28  ;;  %2391 = vmatpush3.bf16.msra.mxu1 %v2366_v28  ;;  %v2495_v28 = vpack.c.bf16 %v1810_v27, %v1809_v26 }
  0x31   : >> { %2392 = vmatprep.subr.bf16.mxu0 %v2628_v3  ;;  %2404 = vmatprep.subr.bf16.mxu1 %v2628_v3 }
  0x33   : >> { %2038 = vmatmul.mubr.msk.f32.vlgmr.msra.gmra.mrb[0].mxu0 %vm246_vm1, %v2723_v14  ;;  %2076 = vmatmul.mubr.msk.f32.vlgmr.msra.gmra.mrb[0].mxu1 %vm246_vm1, %v2738_v18  ;;  %v1796_v14 = vld [vmem:[%s3083_s2 + $0x168] sm:$0xff] }
  0x34   : >> { %2394 = vmatpush3.bf16.msra.mxu0 %v2393_v31  ;;  %2406 = vmatpush3.bf16.msra.mxu1 %v2393_v31  ;;  %v2471_v15 = vpack.c.bf16 %v1796_v14, %v1795_v13  ;;  %v2498_v31 = vpack.c.bf16 %v1812_v30, %v1811_v29 }
  0x35   : >> { %2395 = vmatprep.subr.bf16.mxu0 %v2628_v3  ;;  %2407 = vmatprep.subr.bf16.mxu1 %v2628_v3 }
  0x36   : >> { %2094 = vmatprep.mubr.msk.f32.mxu0 %vm2629_vm0, %v2630_v6  ;;  %2113 = vmatprep.mubr.msk.f32.mxu1 %vm2629_vm0, %v2630_v6 }
  0x38   : >> { %2397 = vmatpush3.bf16.msra.mxu0 %v2396_v34  ;;  %2409 = vmatpush3.bf16.msra.mxu1 %v2396_v34  ;;  %v2988_v34 = vld [vmem:[%s2720_s22 + $0x10] sm:$0x1f] }
  0x39   : >> { %2398 = vmatprep.subr.bf16.mxu0 %v2628_v3  ;;  %2410 = vmatprep.subr.bf16.mxu1 %v2628_v3  ;;  %v1404_v48 = vrot.slane %v2988_v34, 1 }
  0x3c   : >> { %2400 = vmatpush3.bf16.msra.mxu0 %v2399_v37  ;;  %2412 = vmatpush3.bf16.msra.mxu1 %v2399_v37  ;;  %v1817_v37 = vld [vmem:[%s3083_s2 + $0x1d0] sm:$0xff] }
  0x3d   : >> { %2401 = vmatprep.subr.bf16.mxu0 %v2628_v3  ;;  %2413 = vmatprep.subr.bf16.mxu1 %v2628_v3  ;;  %v2516_v39 = vpack.c.bf16 %v1818_v38, %v1817_v37 }
  0x40   : >> { %2403 = vmatpush3.bf16.msra.mxu0 %v2402_v40  ;;  %2415 = vmatpush3.bf16.msra.mxu1 %v2402_v40  ;;  %v1819_v40 = vld [vmem:[%s3083_s2 + $0x1e0] sm:$0xff] }
  0x41   : >> { %2416 = vmatprep.subr.bf16.mxu0 %v2628_v3  ;;  %2428 = vmatprep.subr.bf16.mxu1 %v2628_v3  ;;  %v2519_v42 = vpack.c.bf16 %v1820_v41, %v1819_v40 }
  0x43   : >> { %2095 = vmatmul.mubr.msk.f32.vlgmr.msra.gmra.mrb[0].mxu0 %vm246_vm1, %v393_v17  ;;  %2114 = vmatmul.mubr.msk.f32.vlgmr.msra.gmra.mrb[0].mxu1 %vm246_vm1, %v616_v43  ;;  %v1798_v17 = vld [vmem:[%s3083_s2 + $0x178] sm:$0xff]  ;;  %v1821_v43 = vld [vmem:[%s3083_s2 + $0x1f0] sm:$0xff] }
  0x44   : >> { %2418 = vmatpush3.bf16.msra.mxu0 %v2417_v44  ;;  %2430 = vmatpush3.bf16.msra.mxu1 %v2417_v44  ;;  %v2474_v18 = vpack.c.bf16 %v1798_v17, %v1797_v16  ;;  %v1822_v44 = vld [vmem:[%s3083_s2 + $0x1f8] sm:$0xff] }
  0x45   : >> { %2419 = vmatprep.subr.bf16.mxu0 %v2628_v3  ;;  %2431 = vmatprep.subr.bf16.mxu1 %v2628_v3  ;;  %v2522_v45 = vpack.c.bf16 %v1822_v44, %v1821_v43 }
  0x46   : >> { %2132 = vmatprep.mubr.msk.f32.mxu0 %vm2629_vm0, %v2630_v6  ;;  %2151 = vmatprep.mubr.msk.f32.mxu1 %vm2629_vm0, %v2630_v6 }
  0x48   : >> { %2421 = vmatpush3.bf16.msra.mxu0 %v2420_v47  ;;  %2433 = vmatpush3.bf16.msra.mxu1 %v2420_v47  ;;  %v1826_v47 = vld [vmem:[%s3083_s2 + $0x208] sm:$0xff] }
  0x49   : >> { %2422 = vmatprep.subr.bf16.mxu0 %v2628_v3  ;;  %2434 = vmatprep.subr.bf16.mxu1 %v2628_v3  ;;  %v2537_v49 = vpack.c.bf16 %v1826_v47, %v1825_v46 }
  0x4c   : >> { %2424 = vmatpush3.bf16.msra.mxu0 %v2423_v50  ;;  %2436 = vmatpush3.bf16.msra.mxu1 %v2423_v50  ;;  %v1827_v50 = vld [vmem:[%s3083_s2 + $0x210] sm:$0xff] }
  0x4d   : >> { %2425 = vmatprep.subr.bf16.mxu0 %v2628_v3  ;;  %2437 = vmatprep.subr.bf16.mxu1 %v2628_v3  ;;  %v2540_v52 = vpack.c.bf16 %v1828_v51, %v1827_v50 }
  0x50   : >> { %2427 = vmatpush3.bf16.msra.mxu0 %v2426_v53  ;;  %2439 = vmatpush3.bf16.msra.mxu1 %v2426_v53  ;;  %v1829_v53 = vld [vmem:[%s3083_s2 + $0x220] sm:$0xff] }
  0x51   : >> { %2440 = vmatprep.subr.bf16.mxu0 %v2628_v3  ;;  %2452 = vmatprep.subr.bf16.mxu1 %v2628_v3  ;;  %v2543_v55 = vpack.c.bf16 %v1830_v54, %v1829_v53 }
  0x53   : >> { %2133 = vmatmul.mubr.msk.f32.vlgmr.msra.gmra.mrb[0].mxu0 %vm246_vm1, %v2863_v56  ;;  %2152 = vmatmul.mubr.msk.f32.vlgmr.msra.gmra.mrb[0].mxu1 %vm246_vm1, %v2866_v57  ;;  %v1831_v56 = vld [vmem:[%s3083_s2 + $0x230] sm:$0xff] }
  0x54   : >> { %2442 = vmatpush3.bf16.msra.mxu0 %v2441_v58  ;;  %2454 = vmatpush3.bf16.msra.mxu1 %v2441_v58 }
  0x55   : >> { %2443 = vmatprep.subr.bf16.mxu0 %v2628_v3  ;;  %2455 = vmatprep.subr.bf16.mxu1 %v2628_v3 }
  0x56   : >> { %2170 = vmatprep.mubr.msk.f32.mxu0 %vm2629_vm0, %v2630_v6  ;;  %2189 = vmatprep.mubr.msk.f32.mxu1 %vm2629_vm0, %v2630_v6 }
  0x58   : >> { %2445 = vmatpush3.bf16.msra.mxu0 %v2444_v61  ;;  %2457 = vmatpush3.bf16.msra.mxu1 %v2444_v61  ;;  %v1835_v61 = vld [vmem:[%s3084_s3] ss:$0 sm:$0xff] }
  0x59   : >> { %2446 = vmatprep.subr.bf16.mxu0 %v2628_v3  ;;  %2458 = vmatprep.subr.bf16.mxu1 %v2628_v3 }
  0x5c   : >> { %2448 = vmatpush3.bf16.msra.mxu0 %v2447_v0  ;;  %2460 = vmatpush3.bf16.msra.mxu1 %v2447_v0 }
  0x5d   : >> { %2449 = vmatprep.subr.bf16.mxu0 %v2628_v3  ;;  %2461 = vmatprep.subr.bf16.mxu1 %v2628_v3 }
  0x60   : >> { %2451 = vmatpush3.bf16.msra.mxu0 %v2450_v4  ;;  %2463 = vmatpush3.bf16.msra.mxu1 %v2450_v4 }
  0x61   : >> { %2464 = vmatprep.subr.bf16.mxu0 %v2628_v3  ;;  %2476 = vmatprep.subr.bf16.mxu1 %v2628_v3 }
  0x63   : >> { %2171 = vmatmul.mubr.msk.f32.vlgmr.msra.gmra.mrb[0].mxu0 %vm246_vm1, %v2866_v57  ;;  %2190 = vmatmul.mubr.msk.f32.vlgmr.msra.gmra.mrb[0].mxu1 %vm246_vm1, %v933_v8  ;;  %v1832_v57 = vld [vmem:[%s3083_s2 + $0x238] sm:$0xff] }
  0x64   : >> { %2466 = vmatpush3.bf16.msra.mxu0 %v2465_v9  ;;  %2478 = vmatpush3.bf16.msra.mxu1 %v2465_v9  ;;  %v2546_v58 = vpack.c.bf16 %v1832_v57, %v1831_v56 }
  0x65   : >> { %2467 = vmatprep.subr.bf16.mxu0 %v2628_v3  ;;  %2479 = vmatprep.subr.bf16.mxu1 %v2628_v3 }
  0x66   : >> { %2208 = vmatprep.mubr.msk.f32.mxu0 %vm2629_vm0, %v2630_v6  ;;  %2227 = vmatprep.mubr.msk.f32.mxu1 %vm2629_vm0, %v2630_v6 }
  0x68   : >> { %2469 = vmatpush3.bf16.msra.mxu0 %v2468_v12  ;;  %2481 = vmatpush3.bf16.msra.mxu1 %v2468_v12 }
  0x69   : >> { %2470 = vmatprep.subr.bf16.mxu0 %v2628_v3  ;;  %2482 = vmatprep.subr.bf16.mxu1 %v2628_v3 }
  0x6c   : >> { %2472 = vmatpush3.bf16.msra.mxu0 %v2471_v15  ;;  %2484 = vmatpush3.bf16.msra.mxu1 %v2471_v15 }
  0x6d   : >> { %2473 = vmatprep.subr.bf16.mxu0 %v2628_v3  ;;  %2485 = vmatprep.subr.bf16.mxu1 %v2628_v3 }
  0x70   : >> { %2475 = vmatpush3.bf16.msra.mxu0 %v2474_v18  ;;  %2487 = vmatpush3.bf16.msra.mxu1 %v2474_v18 }
  0x71   : >> { %2488 = vmatprep.subr.bf16.mxu0 %v2628_v3  ;;  %2500 = vmatprep.subr.bf16.mxu1 %v2628_v3 }
  0x73   : >> { %2209 = vmatmul.mubr.msk.f32.vlgmr.msra.gmra.mrb[0].mxu0 %vm246_vm1, %v933_v8  ;;  %2228 = vmatmul.mubr.msk.f32.vlgmr.msra.gmra.mrb[0].mxu1 %vm246_vm1, %v1087_v21 }
  0x74   : >> { %2490 = vmatpush3.bf16.msra.mxu0 %v2489_v22  ;;  %2502 = vmatpush3.bf16.msra.mxu1 %v2489_v22 }
  0x75   : >> { %2491 = vmatprep.subr.bf16.mxu0 %v2628_v3  ;;  %2503 = vmatprep.subr.bf16.mxu1 %v2628_v3 }
  0x76   : >> { %2246 = vmatprep.mubr.msk.f32.mxu0 %vm2629_vm0, %v2630_v6  ;;  %2265 = vmatprep.mubr.msk.f32.mxu1 %vm2629_vm0, %v2630_v6 }
  0x78   : >> { %2493 = vmatpush3.bf16.msra.mxu0 %v2492_v25  ;;  %2505 = vmatpush3.bf16.msra.mxu1 %v2492_v25 }
  0x79   : >> { %2494 = vmatprep.subr.bf16.mxu0 %v2628_v3  ;;  %2506 = vmatprep.subr.bf16.mxu1 %v2628_v3 }
  0x7c   : >> { %2496 = vmatpush3.bf16.msra.mxu0 %v2495_v28  ;;  %2508 = vmatpush3.bf16.msra.mxu1 %v2495_v28 }
  0x7d   : >> { %2497 = vmatprep.subr.bf16.mxu0 %v2628_v3  ;;  %2509 = vmatprep.subr.bf16.mxu1 %v2628_v3 }
  0x80   : >> { %2499 = vmatpush3.bf16.msra.mxu0 %v2498_v31  ;;  %2511 = vmatpush3.bf16.msra.mxu1 %v2498_v31 }
  0x81   : >> { %2512 = vmatprep.subr.bf16.mxu0 %v2628_v3  ;;  %2524 = vmatprep.subr.bf16.mxu1 %v2628_v3 }
  0x83   : >> { %2247 = vmatmul.mubr.msk.f32.vlgmr.msra.gmra.mrb[0].mxu0 %vm246_vm1, %v2988_v34  ;;  %2266 = vmatmul.mubr.msk.f32.vlgmr.msra.gmra.mrb[0].mxu1 %vm246_vm1, %v2991_v35 }
  0x84   : >> { %2514 = vmatpush3.bf16.msra.mxu0 %v2513_v36  ;;  %2526 = vmatpush3.bf16.msra.mxu1 %v2513_v36 }
  0x85   : >> { %2515 = vmatprep.subr.bf16.mxu0 %v2628_v3  ;;  %2527 = vmatprep.subr.bf16.mxu1 %v2628_v3 }
  0x86   : >> { %2284 = vmatprep.mubr.msk.f32.mxu0 %vm2629_vm0, %v2630_v6  ;;  %2303 = vmatprep.mubr.msk.f32.mxu1 %vm2629_vm0, %v2630_v6 }
  0x88   : >> { %2517 = vmatpush3.bf16.msra.mxu0 %v2516_v39  ;;  %2529 = vmatpush3.bf16.msra.mxu1 %v2516_v39 }
  0x89   : >> { %2518 = vmatprep.subr.bf16.mxu0 %v2628_v3  ;;  %2530 = vmatprep.subr.bf16.mxu1 %v2628_v3 }
  0x8c   : >> { %2520 = vmatpush3.bf16.msra.mxu0 %v2519_v42  ;;  %2532 = vmatpush3.bf16.msra.mxu1 %v2519_v42 }
  0x8d   : >> { %2521 = vmatprep.subr.bf16.mxu0 %v2628_v3  ;;  %2533 = vmatprep.subr.bf16.mxu1 %v2628_v3 }
  0x90   : >> { %2523 = vmatpush3.bf16.msra.mxu0 %v2522_v45  ;;  %2535 = vmatpush3.bf16.msra.mxu1 %v2522_v45 }
  0x91   : >> { %2536 = vmatprep.subr.bf16.mxu0 %v2628_v3  ;;  %2548 = vmatprep.subr.bf16.mxu1 %v2628_v3 }
  0x93   : >> { %2285 = vmatmul.mubr.msk.f32.vlgmr.msra.gmra.mrb[0].mxu0 %vm246_vm1, %v2991_v35  ;;  %2304 = vmatmul.mubr.msk.f32.vlgmr.msra.gmra.mrb[0].mxu1 %vm246_vm1, %v1404_v48 }
  0x94   : >> { %2538 = vmatpush3.bf16.msra.mxu0 %v2537_v49  ;;  %2550 = vmatpush3.bf16.msra.mxu1 %v2537_v49 }
  0x95   : >> { %2539 = vmatprep.subr.bf16.mxu0 %v2628_v3  ;;  %2551 = vmatprep.subr.bf16.mxu1 %v2628_v3 }
  0x96   : >> { %2322 = vmatprep.mubr.msk.f32.mxu0 %vm2629_vm0, %v2630_v6  ;;  %2341 = vmatprep.mubr.msk.f32.mxu1 %vm2629_vm0, %v2630_v6  ;;  %v1558_v6 = vrot.slane %v2991_v35, 1 }
  0x98   : >> { %2541 = vmatpush3.bf16.msra.mxu0 %v2540_v52  ;;  %2553 = vmatpush3.bf16.msra.mxu1 %v2540_v52 }
  0x99   : >> { %2542 = vmatprep.subr.bf16.mxu0 %v2628_v3  ;;  %2554 = vmatprep.subr.bf16.mxu1 %v2628_v3 }
  0x9c   : >> { %2544 = vmatpush3.bf16.msra.mxu0 %v2543_v55  ;;  %2556 = vmatpush3.bf16.msra.mxu1 %v2543_v55 }
  0x9d   : >> { %2545 = vmatprep.subr.bf16.mxu0 %v2628_v3  ;;  %2557 = vmatprep.subr.bf16.mxu1 %v2628_v3 }
  0xa0   : >> { %2547 = vmatpush3.bf16.msra.mxu0 %v2546_v58  ;;  %2559 = vmatpush3.bf16.msra.mxu1 %v2546_v58 }
  0xa3   : >> { %2323 = vmatmul.mubr.msk.f32.vlgmr.msra.gmra.mrb[0].mxu0 %vm246_vm1, %v1404_v48  ;;  %2342 = vmatmul.mubr.msk.f32.vlgmr.msra.gmra.mrb[0].mxu1 %vm246_vm1, %v1558_v6 }
 0x176   : >> { %v1553_v59 = vpop.f32.mrb[0].mxu0  ;;  %v1627_v60 = vpop.f32.mrb[0].mxu1 }
 0x177   : >> { %v1632_v62 = vmax.f32 %v1553_v59, %v1627_v60  ;;  %v2324_v63 = vpop.f32.mrb[1].mxu0  ;;  %v2343_v0 = vpop.f32.mrb[1].mxu1  ;;  %222 = sbr.rel (!%p220_p4) target bundleno = 17 (0x11), region = 91 }
 0x179   : >> { %v1640_v1 = vadd.f32 %v1835_v61, %v1632_v62 }
 0x17b   : >> { %v1641_v3 = vmax.f32 %v1640_v1, 0.0 }
 0x17d   : >> { %1644 = vst [vmem:[%s1643_s14] sm:$0xf] %v1641_v3 }
 0x17e PF: > { %s14_s15 = sadd.s32 1, %s2622_s15  }
 0x17f   : > { %p11_p5 = scmp.ge.s32.totalorder %s14_s15, 4  }
 0x181   :  { %13 = sbr.rel (!%p11_p5) target bundleno = 1 (0x1), region = 102 }

// kernel: _crnn_forward.8
= control target key start
LH: loop header
LB: loop body
LE: loop exit
PB: predicated region body
PF: predicated region fallthrough
CT: control target
= control target key end

     0   :  { %s4075_s15 = smov 0   ;;  %s4601_s0 = inlined_call_operand.vmem [shape: f32[2,10,9,32], index: 0, kind: input, shape index: {}]   ;;  %s4602_s1 = inlined_call_operand.vmem [shape: f32[2,10,9,32], index: 1, kind: input, shape index: {}]   ;;  %s4603_s2 = inlined_call_operand.vmem [shape: f32[3,3,32,64], index: 2, kind: input, shape index: {}]   ;;  %s4604_s3 = inlined_call_operand.vmem [shape: f32[1,64], index: 3, kind: input, shape index: {}]   ;;  %s4605_s4 = inlined_call_operand.vmem [shape: f32[2,4,8,64], index: 4, kind: output, shape index: {}]  }
   0x1 LB: > { %s3040_s16 = sadd.s32 4294967295, %s4041_s15   ;;  %p3044_p0 = scmp.ge.s32.totalorder %s4041_s15, 1  ;;  %s4041_s15 = sphi %s4075_s15, %s14_s15  }
   0x2   : > { %p172_p1 = scmp.lt.s32.totalorder %s4041_s15, 3 }
   0x4   : > { %p173_p2 = pnand %p3044_p0, %p172_p1 }
   0x5   : > { %p203_p3 = scmp.lt.s32.totalorder (!%p173_p2), %s3040_s16, 1  ;;  %s4098_s28 = smov (!%p173_p2), 0  }
   0x6   : > { %176 = sbr.rel (%p173_p2) target bundleno = 384 (0x180), region = 36 }
   0xd   : > { %s4607_s16 = smov (!%p203_p3, %s3040_s16), 1 }
   0xe   : > { %s4011_s17 = smul.u32 160, %s4607_s16  ;;  %s3147_s18 = sshll.u32 %s4607_s16, 5 }
   0xf   : > { %s4086_s21 = scalar_lea.vmem %s4605_s4, %s3147_s18 }
  0x10   : > { %s4091_s24 = scalar_lea.vmem %s4601_s0, %s4011_s17  ;;  %s4096_s27 = scalar_lea.vmem %s4602_s1, %s4011_s17 }
  0x11 LB: >> { %v3051_v0 = vld [vmem:[%s4603_s2 + $0x20] sm:$0xff]  ;;  %v3052_v1 = vld [vmem:[%s4603_s2 + $0x28] sm:$0xff]  ;;  %v3053_v2 = vld [vmem:[%s4603_s2 + $0x30] sm:$0xff]  ;;  %v4047_v3 = vmov 0.0|0.0   ;;  %vm4048_vm0 = vmmov 0   ;;  %v4049_v6 = vmov 0.0   ;;  %s4045_s28 = sphi %s4098_s28, %s223_s28  }
  0x12   : >> { %3731 = vmatprep.subr.bf16.mxu0 %v4047_v3  ;;  %3743 = vmatprep.subr.bf16.mxu1 %v4047_v3  ;;  %v4114_v4 = vpack.c.bf16 %v3052_v1, %v3051_v0  ;;  %v3054_v5 = vld [vmem:[%s4603_s2 + $0x38] sm:$0xff]  ;;  %s3148_s11 = sshll.u32 %s4045_s28, 5  ;;  %v232_v8 = vld [vmem:[%s4603_s2] sm:$0xff]  ;;  %vm389_vm1 = vcmask 1046528   ;;  %v233_v11 = vld [vmem:[%s4603_s2 + $0x8] sm:$0xff]  ;;  %vm241_vm2 = vcmask 261120  }
  0x13   : >> { %3343 = vmatprep.mubr.msk.f32.mxu0 %vm4048_vm0, %v4049_v6  ;;  %3365 = vmatprep.mubr.msk.f32.mxu1 %vm4048_vm0, %v4049_v6  ;;  %v4126_v7 = vpack.c.bf16 %v3054_v5, %v3053_v2  ;;  %s4129_s12 = scalar_lea.vmem %s4091_s24, %s3148_s11  ;;  %s4137_s16 = scalar_lea.vmem %s4096_s27, %s3148_s11  ;;  %v4148_v16 = vpack.c.bf16 %v233_v11, %v232_v8  ;;  %v234_v17 = vld [vmem:[%s4603_s2 + $0x10] sm:$0xff]  ;;  %v235_v18 = vld [vmem:[%s4603_s2 + $0x18] sm:$0xff]  ;;  %v3059_v20 = vld [vmem:[%s4603_s2 + $0x40] sm:$0xff]  ;;  %vm2936_vm3 = vcmask 523264  }
  0x14   : >> { %3733 = vmatpush3.bf16.msra.mxu0 %v4114_v4  ;;  %3745 = vmatpush3.bf16.msra.mxu1 %v4114_v4  ;;  %v227_v9 = vld [vmem:[%s4129_s12] sm:$0xff]  ;;  %v228_v10 = vld [vmem:[%s4129_s12 + $0x8] sm:$0x1]  ;;  %v4162_v19 = vpack.c.bf16 %v235_v18, %v234_v17  ;;  %v3061_v23 = vld [vmem:[%s4603_s2 + $0x50] sm:$0xff]  ;;  %s3144_s23 = sshll.u32 %s4045_s28, 3  ;;  %s223_s28 = sadd.s32 1, %s4045_s28  }
  0x15   : >> { %3734 = vmatprep.subr.bf16.mxu0 %v4047_v3  ;;  %3746 = vmatprep.subr.bf16.mxu1 %v4047_v3  ;;  %v390_v12 = vrot.slane %v227_v9, 1  ;;  %v391_v13 = vrot.slane %v228_v10, 1  ;;  %v230_v14 = vld [vmem:[%s4137_s16] sm:$0xff]  ;;  %v3060_v21 = vld [vmem:[%s4603_s2 + $0x48] sm:$0xff]  ;;  %v3062_v24 = vld [vmem:[%s4603_s2 + $0x58] sm:$0xff]  ;;  %s2935_s25 = scalar_lea.vmem %s4086_s21, %s3144_s23  ;;  %p220_p4 = scmp.ge.s32.totalorder %s223_s28, 4  }
  0x16   : >> { %v4178_v22 = vpack.c.bf16 %v3060_v21, %v3059_v20  ;;  %v231_v25 = vld [vmem:[%s4137_s16 + $0x8] sm:$0x1]  ;;  %v4190_v26 = vld [vmem:[%s4129_s12 + $0x30] sm:$0xff]  ;;  %v3132_v30 = vld [vmem:[%s4129_s12 + $0x38] sm:$0x1]  ;;  %v612_v33 = vrot.slane %v230_v14, 1  ;;  %v4203_v34 = vpack.c.bf16 %v3062_v24, %v3061_v23 }
  0x17   : >> { %v392_v15 = vsel %vm389_vm1, %v390_v12, %v391_v13  ;;  %v4193_v27 = vld [vmem:[%s4137_s16 + $0x30] sm:$0xff]  ;;  %v2699_v28 = vrot.slane %v4190_v26, 1  ;;  %v2700_v31 = vrot.slane %v3132_v30, 1  ;;  %v3136_v32 = vld [vmem:[%s4137_s16 + $0x38] sm:$0x1]  ;;  %v613_v35 = vrot.slane %v231_v25, 1 }
  0x18   : >> { %3736 = vmatpush3.bf16.msra.mxu0 %v4126_v7  ;;  %3748 = vmatpush3.bf16.msra.mxu1 %v4126_v7  ;;  %v2847_v29 = vrot.slane %v4193_v27, 1  ;;  %v2848_v36 = vrot.slane %v3136_v32, 1  ;;  %v3073_v37 = vld [vmem:[%s4603_s2 + $0x60] sm:$0xff]  ;;  %v3074_v38 = vld [vmem:[%s4603_s2 + $0x68] sm:$0xff]  ;;  %v3075_v43 = vld [vmem:[%s4603_s2 + $0x70] sm:$0xff] }
  0x19   : >> { %3737 = vmatprep.subr.bf16.mxu0 %v4047_v3  ;;  %3749 = vmatprep.subr.bf16.mxu1 %v4047_v3  ;;  %v4214_v39 = vsel %vm389_vm1, %v2699_v28, %v2700_v31  ;;  %v614_v41 = vsel %vm389_vm1, %v612_v33, %v613_v35  ;;  %v4226_v42 = vpack.c.bf16 %v3074_v38, %v3073_v37  ;;  %v3076_v44 = vld [vmem:[%s4603_s2 + $0x78] sm:$0xff]  ;;  %v3079_v46 = vld [vmem:[%s4603_s2 + $0x80] sm:$0xff]  ;;  %v3080_v47 = vld [vmem:[%s4603_s2 + $0x88] sm:$0xff] }
  0x1a   : >> { %v4221_v40 = vsel %vm389_vm1, %v2847_v29, %v2848_v36  ;;  %v4240_v45 = vpack.c.bf16 %v3076_v44, %v3075_v43  ;;  %v4257_v48 = vld [vmem:[%s4129_s12 + $0x10] sm:$0xff]  ;;  %v4262_v50 = vpack.c.bf16 %v3080_v47, %v3079_v46  ;;  %v3082_v52 = vld [vmem:[%s4603_s2 + $0x98] sm:$0xff]  ;;  %v3085_v57 = vld [vmem:[%s4603_s2 + $0xa0] sm:$0xff] }
  0x1b   : >> { %3344 = vmatmul.mubr.msk.f32.vlgmr.msra.gmra.mrb[0].mxu0 %vm241_vm2, %v230_v14  ;;  %3366 = vmatmul.mubr.msk.f32.vlgmr.msra.gmra.mrb[0].mxu1 %vm241_vm2, %v392_v15  ;;  %v4260_v49 = vld [vmem:[%s4137_s16 + $0x10] sm:$0xff]  ;;  %v3068_v53 = vld [vmem:[%s4129_s12 + $0x18] sm:$0x1]  ;;  %v926_v54 = vrot.slane %v4257_v48, 1  ;;  %v3086_v58 = vld [vmem:[%s4603_s2 + $0xa8] sm:$0xff] }
  0x1c   : >> { %3739 = vmatpush3.bf16.msra.mxu0 %v4148_v16  ;;  %3751 = vmatpush3.bf16.msra.mxu1 %v4148_v16  ;;  %v3081_v51 = vld [vmem:[%s4603_s2 + $0x90] sm:$0xff]  ;;  %v927_v56 = vrot.slane %v3068_v53, 1  ;;  %v4299_v60 = vpack.c.bf16 %v3086_v58, %v3085_v57  ;;  %v3088_v62 = vld [vmem:[%s4603_s2 + $0xb8] sm:$0xff]  ;;  %v1079_v1 = vrot.slane %v4260_v49, 1  ;;  %v3099_v5 = vld [vmem:[%s4603_s2 + $0xc0] sm:$0xff] }
  0x1d   : >> { %3740 = vmatprep.subr.bf16.mxu0 %v4047_v3  ;;  %3752 = vmatprep.subr.bf16.mxu1 %v4047_v3  ;;  %v4280_v55 = vpack.c.bf16 %v3082_v52, %v3081_v51  ;;  %v3087_v61 = vld [vmem:[%s4603_s2 + $0xb0] sm:$0xff]  ;;  %v3072_v63 = vld [vmem:[%s4137_s16 + $0x18] sm:$0x1]  ;;  %v3100_v8 = vld [vmem:[%s4603_s2 + $0xc8] sm:$0xff] }
  0x1e   : >> { %3354 = vmatprep.mubr.msk.f32.mxu0 %vm4048_vm0, %v4049_v6  ;;  %3376 = vmatprep.mubr.msk.f32.mxu1 %vm4048_vm0, %v4049_v6  ;;  %v4297_v59 = vsel %vm389_vm1, %v926_v54, %v927_v56  ;;  %v4316_v0 = vpack.c.bf16 %v3088_v62, %v3087_v61  ;;  %v1080_v2 = vrot.slane %v3072_v63, 1  ;;  %v4336_v10 = vpack.c.bf16 %v3100_v8, %v3099_v5  ;;  %v3101_v11 = vld [vmem:[%s4603_s2 + $0xd0] sm:$0xff]  ;;  %v3102_v12 = vld [vmem:[%s4603_s2 + $0xd8] sm:$0xff]  ;;  %v4369_v17 = vld [vmem:[%s4129_s12 + $0x20] sm:$0xff] }
  0x1f   : >> { %v4352_v13 = vpack.c.bf16 %v3102_v12, %v3101_v11  ;;  %v4372_v18 = vld [vmem:[%s4137_s16 + $0x20] sm:$0xff]  ;;  %v3107_v21 = vld [vmem:[%s4603_s2 + $0xf0] sm:$0xff]  ;;  %v3108_v23 = vld [vmem:[%s4603_s2 + $0xf8] sm:$0xff]  ;;  %v1393_v25 = vrot.slane %v4369_v17, 1 }
  0x20   : >> { %3742 = vmatpush3.bf16.msra.mxu0 %v4162_v19  ;;  %3754 = vmatpush3.bf16.msra.mxu1 %v4162_v19  ;;  %v3094_v24 = vld [vmem:[%s4129_s12 + $0x28] sm:$0x1]  ;;  %v4392_v28 = vpack.c.bf16 %v3108_v23, %v3107_v21  ;;  %v3111_v30 = vld [vmem:[%s4603_s2 + $0x100] sm:$0xff]  ;;  %v3113_v35 = vld [vmem:[%s4603_s2 + $0x110] sm:$0xff] }
  0x21   : >> { %3755 = vmatprep.subr.bf16.mxu0 %v4047_v3  ;;  %3761 = vmatprep.subr.bf16.mxu1 %v4047_v3  ;;  %v1394_v29 = vrot.slane %v3094_v24, 1  ;;  %v3112_v31 = vld [vmem:[%s4603_s2 + $0x108] sm:$0xff]  ;;  %v3114_v36 = vld [vmem:[%s4603_s2 + $0x118] sm:$0xff] }
  0x22   : >> { %v4411_v33 = vpack.c.bf16 %v3112_v31, %v3111_v30  ;;  %v3098_v37 = vld [vmem:[%s4137_s16 + $0x28] sm:$0x1]  ;;  %v4428_v38 = vpack.c.bf16 %v3114_v36, %v3113_v35 }
  0x23   : >> { %3355 = vmatmul.mubr.msk.f32.vlgmr.msra.gmra.mrb[0].mxu0 %vm241_vm2, %v227_v9  ;;  %3377 = vmatmul.mubr.msk.f32.vlgmr.msra.gmra.mrb[0].mxu1 %vm241_vm2, %v230_v14  ;;  %v4334_v9 = vsel %vm389_vm1, %v1079_v1, %v1080_v2  ;;  %v3105_v14 = vld [vmem:[%s4603_s2 + $0xe0] sm:$0xff]  ;;  %v4409_v32 = vsel %vm389_vm1, %v1393_v25, %v1394_v29  ;;  %v1547_v43 = vrot.slane %v3098_v37, 1 }
  0x24   : >> { %3757 = vmatpush3.bf16.msra.mxu0 %v4178_v22  ;;  %3763 = vmatpush3.bf16.msra.mxu1 %v4178_v22 }
  0x25   : >> { %3758 = vmatprep.subr.bf16.mxu0 %v4047_v3  ;;  %3764 = vmatprep.subr.bf16.mxu1 %v4047_v3 }
  0x26   : >> { %3387 = vmatprep.mubr.msk.f32.mxu0 %vm4048_vm0, %v4049_v6  ;;  %3398 = vmatprep.mubr.msk.f32.mxu1 %vm4048_vm0, %v4049_v6 }
  0x28   : >> { %3760 = vmatpush3.bf16.msra.mxu0 %v4203_v34  ;;  %3766 = vmatpush3.bf16.msra.mxu1 %v4203_v34 }
  0x29   : >> { %3767 = vmatprep.subr.bf16.mxu0 %v4047_v3  ;;  %3773 = vmatprep.subr.bf16.mxu1 %v4047_v3 }
  0x2b   : >> { %3388 = vmatmul.mubr.msk.f32.vlgmr.msra.gmra.mrb[0].mxu0 %vm241_vm2, %v392_v15  ;;  %3399 = vmatmul.mubr.msk.f32.vlgmr.msra.gmra.mrb[0].mxu1 %vm241_vm2, %v614_v41  ;;  %v3106_v15 = vld [vmem:[%s4603_s2 + $0xe8] sm:$0xff]  ;;  %v1546_v41 = vrot.slane %v4372_v18, 1 }
  0x2c   : >> { %3769 = vmatpush3.bf16.msra.mxu0 %v4226_v42  ;;  %3775 = vmatpush3.bf16.msra.mxu1 %v4226_v42  ;;  %v4374_v20 = vpack.c.bf16 %v3106_v15, %v3105_v14 }
  0x2d   : >> { %3770 = vmatprep.subr.bf16.mxu0 %v4047_v3  ;;  %3776 = vmatprep.subr.bf16.mxu1 %v4047_v3  ;;  %v4440_v44 = vsel %vm389_vm1, %v1546_v41, %v1547_v43 }
  0x2e   : >> { %3409 = vmatprep.mubr.msk.f32.mxu0 %vm4048_vm0, %v4049_v6  ;;  %3420 = vmatprep.mubr.msk.f32.mxu1 %vm4048_vm0, %v4049_v6 }
  0x30   : >> { %3772 = vmatpush3.bf16.msra.mxu0 %v4240_v45  ;;  %3778 = vmatpush3.bf16.msra.mxu1 %v4240_v45 }
  0x31   : >> { %3779 = vmatprep.subr.bf16.mxu0 %v4047_v3  ;;  %3785 = vmatprep.subr.bf16.mxu1 %v4047_v3 }
  0x33   : >> { %3410 = vmatmul.mubr.msk.f32.vlgmr.msra.gmra.mrb[0].mxu0 %vm241_vm2, %v4257_v48  ;;  %3421 = vmatmul.mubr.msk.f32.vlgmr.msra.gmra.mrb[0].mxu1 %vm241_vm2, %v4260_v49 }
  0x34   : >> { %3781 = vmatpush3.bf16.msra.mxu0 %v4262_v50  ;;  %3787 = vmatpush3.bf16.msra.mxu1 %v4262_v50 }
  0x35   : >> { %3782 = vmatprep.subr.bf16.mxu0 %v4047_v3  ;;  %3788 = vmatprep.subr.bf16.mxu1 %v4047_v3 }
  0x36   : >> { %3431 = vmatprep.mubr.msk.f32.mxu0 %vm4048_vm0, %v4049_v6  ;;  %3442 = vmatprep.mubr.msk.f32.mxu1 %vm4048_vm0, %v4049_v6 }
  0x38   : >> { %3784 = vmatpush3.bf16.msra.mxu0 %v4280_v55  ;;  %3790 = vmatpush3.bf16.msra.mxu1 %v4280_v55 }
  0x39   : >> { %3791 = vmatprep.subr.bf16.mxu0 %v4047_v3  ;;  %3797 = vmatprep.subr.bf16.mxu1 %v4047_v3 }
  0x3b   : >> { %3432 = vmatmul.mubr.msk.f32.vlgmr.msra.gmra.mrb[0].mxu0 %vm241_vm2, %v4260_v49  ;;  %3443 = vmatmul.mubr.msk.f32.vlgmr.msra.gmra.mrb[0].mxu1 %vm241_vm2, %v4297_v59 }
  0x3c   : >> { %3793 = vmatpush3.bf16.msra.mxu0 %v4299_v60  ;;  %3799 = vmatpush3.bf16.msra.mxu1 %v4299_v60 }
  0x3d   : >> { %3794 = vmatprep.subr.bf16.mxu0 %v4047_v3  ;;  %3800 = vmatprep.subr.bf16.mxu1 %v4047_v3 }
  0x3e   : >> { %3453 = vmatprep.mubr.msk.f32.mxu0 %vm4048_vm0, %v4049_v6  ;;  %3464 = vmatprep.mubr.msk.f32.mxu1 %vm4048_vm0, %v4049_v6 }
  0x40   : >> { %3796 = vmatpush3.bf16.msra.mxu0 %v4316_v0  ;;  %3802 = vmatpush3.bf16.msra.mxu1 %v4316_v0 }
  0x41   : >> { %3803 = vmatprep.subr.bf16.mxu0 %v4047_v3  ;;  %3809 = vmatprep.subr.bf16.mxu1 %v4047_v3 }
  0x43   : >> { %3454 = vmatmul.mubr.msk.f32.vlgmr.msra.gmra.mrb[0].mxu0 %vm241_vm2, %v4297_v59  ;;  %3465 = vmatmul.mubr.msk.f32.vlgmr.msra.gmra.mrb[0].mxu1 %vm241_vm2, %v4334_v9 }
  0x44   : >> { %3805 = vmatpush3.bf16.msra.mxu0 %v4336_v10  ;;  %3811 = vmatpush3.bf16.msra.mxu1 %v4336_v10 }
  0x45   : >> { %3806 = vmatprep.subr.bf16.mxu0 %v4047_v3  ;;  %3812 = vmatprep.subr.bf16.mxu1 %v4047_v3 }
  0x46   : >> { %3475 = vmatprep.mubr.msk.f32.mxu0 %vm4048_vm0, %v4049_v6  ;;  %3486 = vmatprep.mubr.msk.f32.mxu1 %vm4048_vm0, %v4049_v6 }
  0x48   : >> { %3808 = vmatpush3.bf16.msra.mxu0 %v4352_v13  ;;  %3814 = vmatpush3.bf16.msra.mxu1 %v4352_v13 }
  0x49   : >> { %3815 = vmatprep.subr.bf16.mxu0 %v4047_v3  ;;  %3821 = vmatprep.subr.bf16.mxu1 %v4047_v3 }
  0x4b   : >> { %3476 = vmatmul.mubr.msk.f32.vlgmr.msra.gmra.mrb[0].mxu0 %vm241_vm2, %v4369_v17  ;;  %3487 = vmatmul.mubr.msk.f32.vlgmr.msra.gmra.mrb[0].mxu1 %vm241_vm2, %v4372_v18 }
  0x4c   : >> { %3817 = vmatpush3.bf16.msra.mxu0 %v4374_v20  ;;  %3823 = vmatpush3.bf16.msra.mxu1 %v4374_v20 }
  0x4d   : >> { %3818 = vmatprep.subr.bf16.mxu0 %v4047_v3  ;;  %3824 = vmatprep.subr.bf16.mxu1 %v4047_v3 }
  0x4e   : >> { %3497 = vmatprep.mubr.msk.f32.mxu0 %vm4048_vm0, %v4049_v6  ;;  %3508 = vmatprep.mubr.msk.f32.mxu1 %vm4048_vm0, %v4049_v6 }
  0x50   : >> { %3820 = vmatpush3.bf16.msra.mxu0 %v4392_v28  ;;  %3826 = vmatpush3.bf16.msra.mxu1 %v4392_v28 }
  0x51   : >> { %3827 = vmatprep.subr.bf16.mxu0 %v4047_v3  ;;  %3833 = vmatprep.subr.bf16.mxu1 %v4047_v3 }
  0x53   : >> { %3498 = vmatmul.mubr.msk.f32.vlgmr.msra.gmra.mrb[0].mxu0 %vm241_vm2, %v4372_v18  ;;  %3509 = vmatmul.mubr.msk.f32.vlgmr.msra.gmra.mrb[0].mxu1 %vm241_vm2, %v4409_v32 }
  0x54   : >> { %3829 = vmatpush3.bf16.msra.mxu0 %v4411_v33  ;;  %3835 = vmatpush3.bf16.msra.mxu1 %v4411_v33 }
  0x55   : >> { %3830 = vmatprep.subr.bf16.mxu0 %v4047_v3  ;;  %3836 = vmatprep.subr.bf16.mxu1 %v4047_v3 }
  0x56   : >> { %3519 = vmatprep.mubr.msk.f32.mxu0 %vm4048_vm0, %v4049_v6  ;;  %3530 = vmatprep.mubr.msk.f32.mxu1 %vm4048_vm0, %v4049_v6 }
  0x58   : >> { %3832 = vmatpush3.bf16.msra.mxu0 %v4428_v38  ;;  %3838 = vmatpush3.bf16.msra.mxu1 %v4428_v38 }
  0x59   : >> { %3839 = vmatprep.subr.bf16.mxu0 %v4047_v3  ;;  %3851 = vmatprep.subr.bf16.mxu1 %v4047_v3 }
  0x5b   : >> { %3520 = vmatmul.mubr.msk.f32.vlgmr.msra.gmra.mrb[0].mxu0 %vm241_vm2, %v4409_v32  ;;  %3531 = vmatmul.mubr.msk.f32.vlgmr.msra.gmra.mrb[0].mxu1 %vm241_vm2, %v4440_v44 }
  0x5c   : >> { %3841 = vmatpush3.bf16.msra.mxu0 %v4114_v4  ;;  %3853 = vmatpush3.bf16.msra.mxu1 %v4114_v4 }
  0x5d   : >> { %3842 = vmatprep.subr.bf16.mxu0 %v4047_v3  ;;  %3854 = vmatprep.subr.bf16.mxu1 %v4047_v3 }
  0x5e   : >> { %3541 = vmatprep.mubr.msk.f32.mxu0 %vm4048_vm0, %v4049_v6  ;;  %3563 = vmatprep.mubr.msk.f32.mxu1 %vm4048_vm0, %v4049_v6 }
  0x60   : >> { %3844 = vmatpush3.bf16.msra.mxu0 %v4126_v7  ;;  %3856 = vmatpush3.bf16.msra.mxu1 %v4126_v7 }
  0x61   : >> { %3845 = vmatprep.subr.bf16.mxu0 %v4047_v3  ;;  %3857 = vmatprep.subr.bf16.mxu1 %v4047_v3 }
  0x63   : >> { %3542 = vmatmul.mubr.msk.f32.vlgmr.msra.gmra.mrb[2].mxu0 %vm241_vm2, %v4260_v49  ;;  %3564 = vmatmul.mubr.msk.f32.vlgmr.msra.gmra.mrb[2].mxu1 %vm241_vm2, %v4297_v59 }
  0x64   : >> { %3847 = vmatpush3.bf16.msra.mxu0 %v4148_v16  ;;  %3859 = vmatpush3.bf16.msra.mxu1 %v4148_v16 }
  0x65   : >> { %3848 = vmatprep.subr.bf16.mxu0 %v4047_v3  ;;  %3860 = vmatprep.subr.bf16.mxu1 %v4047_v3 }
  0x66   : >> { %3552 = vmatprep.mubr.msk.f32.mxu0 %vm4048_vm0, %v4049_v6  ;;  %3574 = vmatprep.mubr.msk.f32.mxu1 %vm4048_vm0, %v4049_v6 }
  0x68   : >> { %3850 = vmatpush3.bf16.msra.mxu0 %v4162_v19  ;;  %3862 = vmatpush3.bf16.msra.mxu1 %v4162_v19 }
  0x69   : >> { %3863 = vmatprep.subr.bf16.mxu0 %v4047_v3  ;;  %3869 = vmatprep.subr.bf16.mxu1 %v4047_v3 }
  0x6b   : >> { %3553 = vmatmul.mubr.msk.f32.vlgmr.msra.gmra.mrb[2].mxu0 %vm241_vm2, %v4257_v48  ;;  %3575 = vmatmul.mubr.msk.f32.vlgmr.msra.gmra.mrb[2].mxu1 %vm241_vm2, %v4260_v49 }
  0x6c   : >> { %3865 = vmatpush3.bf16.msra.mxu0 %v4178_v22  ;;  %3871 = vmatpush3.bf16.msra.mxu1 %v4178_v22 }
  0x6d   : >> { %3866 = vmatprep.subr.bf16.mxu0 %v4047_v3  ;;  %3872 = vmatprep.subr.bf16.mxu1 %v4047_v3 }
  0x6e   : >> { %3585 = vmatprep.mubr.msk.f32.mxu0 %vm4048_vm0, %v4049_v6  ;;  %3596 = vmatprep.mubr.msk.f32.mxu1 %vm4048_vm0, %v4049_v6 }
  0x70   : >> { %3868 = vmatpush3.bf16.msra.mxu0 %v4203_v34  ;;  %3874 = vmatpush3.bf16.msra.mxu1 %v4203_v34 }
  0x71   : >> { %3875 = vmatprep.subr.bf16.mxu0 %v4047_v3  ;;  %3881 = vmatprep.subr.bf16.mxu1 %v4047_v3 }
  0x73   : >> { %3586 = vmatmul.mubr.msk.f32.vlgmr.msra.gmra.mrb[2].mxu0 %vm241_vm2, %v4297_v59  ;;  %3597 = vmatmul.mubr.msk.f32.vlgmr.msra.gmra.mrb[2].mxu1 %vm241_vm2, %v4334_v9 }
  0x74   : >> { %3877 = vmatpush3.bf16.msra.mxu0 %v4226_v42  ;;  %3883 = vmatpush3.bf16.msra.mxu1 %v4226_v42  ;;  %v3143_v42 = vld [vmem:[%s4604_s3] ss:$0 sm:$0xff] }
  0x75   : >> { %3878 = vmatprep.subr.bf16.mxu0 %v4047_v3  ;;  %3884 = vmatprep.subr.bf16.mxu1 %v4047_v3 }
  0x76   : >> { %3607 = vmatprep.mubr.msk.f32.mxu0 %vm4048_vm0, %v4049_v6  ;;  %3618 = vmatprep.mubr.msk.f32.mxu1 %vm4048_vm0, %v4049_v6 }
  0x78   : >> { %3880 = vmatpush3.bf16.msra.mxu0 %v4240_v45  ;;  %3886 = vmatpush3.bf16.msra.mxu1 %v4240_v45 }
  0x79   : >> { %3887 = vmatprep.subr.bf16.mxu0 %v4047_v3  ;;  %3893 = vmatprep.subr.bf16.mxu1 %v4047_v3 }
  0x7b   : >> { %3608 = vmatmul.mubr.msk.f32.vlgmr.msra.gmra.mrb[2].mxu0 %vm241_vm2, %v4369_v17  ;;  %3619 = vmatmul.mubr.msk.f32.vlgmr.msra.gmra.mrb[2].mxu1 %vm241_vm2, %v4372_v18 }
  0x7c   : >> { %3889 = vmatpush3.bf16.msra.mxu0 %v4262_v50  ;;  %3895 = vmatpush3.bf16.msra.mxu1 %v4262_v50 }
  0x7d   : >> { %3890 = vmatprep.subr.bf16.mxu0 %v4047_v3  ;;  %3896 = vmatprep.subr.bf16.mxu1 %v4047_v3 }
  0x7e   : >> { %3629 = vmatprep.mubr.msk.f32.mxu0 %vm4048_vm0, %v4049_v6  ;;  %3640 = vmatprep.mubr.msk.f32.mxu1 %vm4048_vm0, %v4049_v6 }
  0x80   : >> { %3892 = vmatpush3.bf16.msra.mxu0 %v4280_v55  ;;  %3898 = vmatpush3.bf16.msra.mxu1 %v4280_v55 }
  0x81   : >> { %3899 = vmatprep.subr.bf16.mxu0 %v4047_v3  ;;  %3905 = vmatprep.subr.bf16.mxu1 %v4047_v3 }
  0x83   : >> { %3630 = vmatmul.mubr.msk.f32.vlgmr.msra.gmra.mrb[2].mxu0 %vm241_vm2, %v4372_v18  ;;  %3641 = vmatmul.mubr.msk.f32.vlgmr.msra.gmra.mrb[2].mxu1 %vm241_vm2, %v4409_v32 }
  0x84   : >> { %3901 = vmatpush3.bf16.msra.mxu0 %v4299_v60  ;;  %3907 = vmatpush3.bf16.msra.mxu1 %v4299_v60 }
  0x85   : >> { %3902 = vmatprep.subr.bf16.mxu0 %v4047_v3  ;;  %3908 = vmatprep.subr.bf16.mxu1 %v4047_v3 }
  0x86   : >> { %3651 = vmatprep.mubr.msk.f32.mxu0 %vm4048_vm0, %v4049_v6  ;;  %3662 = vmatprep.mubr.msk.f32.mxu1 %vm4048_vm0, %v4049_v6 }
  0x88   : >> { %3904 = vmatpush3.bf16.msra.mxu0 %v4316_v0  ;;  %3910 = vmatpush3.bf16.msra.mxu1 %v4316_v0 }
  0x89   : >> { %3911 = vmatprep.subr.bf16.mxu0 %v4047_v3  ;;  %3917 = vmatprep.subr.bf16.mxu1 %v4047_v3 }
  0x8b   : >> { %3652 = vmatmul.mubr.msk.f32.vlgmr.msra.gmra.mrb[2].mxu0 %vm241_vm2, %v4409_v32  ;;  %3663 = vmatmul.mubr.msk.f32.vlgmr.msra.gmra.mrb[2].mxu1 %vm241_vm2, %v4440_v44 }
  0x8c   : >> { %3913 = vmatpush3.bf16.msra.mxu0 %v4336_v10  ;;  %3919 = vmatpush3.bf16.msra.mxu1 %v4336_v10 }
  0x8d   : >> { %3914 = vmatprep.subr.bf16.mxu0 %v4047_v3  ;;  %3920 = vmatprep.subr.bf16.mxu1 %v4047_v3 }
  0x8e   : >> { %3673 = vmatprep.mubr.msk.f32.mxu0 %vm4048_vm0, %v4049_v6  ;;  %3684 = vmatprep.mubr.msk.f32.mxu1 %vm4048_vm0, %v4049_v6 }
  0x90   : >> { %3916 = vmatpush3.bf16.msra.mxu0 %v4352_v13  ;;  %3922 = vmatpush3.bf16.msra.mxu1 %v4352_v13 }
  0x91   : >> { %3923 = vmatprep.subr.bf16.mxu0 %v4047_v3  ;;  %3929 = vmatprep.subr.bf16.mxu1 %v4047_v3 }
  0x93   : >> { %3674 = vmatmul.mubr.msk.f32.vlgmr.msra.gmra.mrb[2].mxu0 %vm241_vm2, %v4190_v26  ;;  %3685 = vmatmul.mubr.msk.f32.vlgmr.msra.gmra.mrb[2].mxu1 %vm241_vm2, %v4193_v27 }
  0x94   : >> { %3925 = vmatpush3.bf16.msra.mxu0 %v4374_v20  ;;  %3931 = vmatpush3.bf16.msra.mxu1 %v4374_v20 }
  0x95   : >> { %3926 = vmatprep.subr.bf16.mxu0 %v4047_v3  ;;  %3932 = vmatprep.subr.bf16.mxu1 %v4047_v3 }
  0x96   : >> { %3695 = vmatprep.mubr.msk.f32.mxu0 %vm4048_vm0, %v4049_v6  ;;  %3706 = vmatprep.mubr.msk.f32.mxu1 %vm4048_vm0, %v4049_v6 }
  0x98   : >> { %3928 = vmatpush3.bf16.msra.mxu0 %v4392_v28  ;;  %3934 = vmatpush3.bf16.msra.mxu1 %v4392_v28 }
  0x99   : >> { %3935 = vmatprep.subr.bf16.mxu0 %v4047_v3  ;;  %3941 = vmatprep.subr.bf16.mxu1 %v4047_v3 }
  0x9b   : >> { %3696 = vmatmul.mubr.msk.f32.vlgmr.msra.gmra.mrb[2].mxu0 %vm241_vm2, %v4193_v27  ;;  %3707 = vmatmul.mubr.msk.f32.vlgmr.msra.gmra.mrb[2].mxu1 %vm241_vm2, %v4214_v39 }
  0x9c   : >> { %3937 = vmatpush3.bf16.msra.mxu0 %v4411_v33  ;;  %3943 = vmatpush3.bf16.msra.mxu1 %v4411_v33 }
  0x9d   : >> { %3938 = vmatprep.subr.bf16.mxu0 %v4047_v3  ;;  %3944 = vmatprep.subr.bf16.mxu1 %v4047_v3 }
  0x9e   : >> { %3717 = vmatprep.mubr.msk.f32.mxu0 %vm4048_vm0, %v4049_v6  ;;  %3728 = vmatprep.mubr.msk.f32.mxu1 %vm4048_vm0, %v4049_v6 }
  0xa0   : >> { %3940 = vmatpush3.bf16.msra.mxu0 %v4428_v38  ;;  %3946 = vmatpush3.bf16.msra.mxu1 %v4428_v38 }
  0xa3   : >> { %3718 = vmatmul.mubr.msk.f32.vlgmr.msra.gmra.mrb[2].mxu0 %vm241_vm2, %v4214_v39  ;;  %3729 = vmatmul.mubr.msk.f32.vlgmr.msra.gmra.mrb[2].mxu1 %vm241_vm2, %v4221_v40 }
 0x12e   : >> { %v1540_v4 = vpop.f32.mrb[0].mxu0  ;;  %v1617_v3 = vpop.f32.mrb[0].mxu1 }
 0x12f   : >> { %v1622_v7 = vmax.f32 %v1540_v4, %v1617_v3  ;;  %v3521_v16 = vpop.f32.mrb[1].mxu0  ;;  %v3532_v19 = vpop.f32.mrb[1].mxu1 }
 0x176   : >> { %v2841_v22 = vpop.f32.mrb[2].mxu0  ;;  %v2918_v26 = vpop.f32.mrb[2].mxu1 }
 0x177   : >> { %v2923_v6 = vmax.f32 %v2841_v22, %v2918_v26  ;;  %v3719_v27 = vpop.f32.mrb[3].mxu0  ;;  %v3730_v34 = vpop.f32.mrb[3].mxu1 }
 0x179   : >> { %v2924_v45 = vmax.f32 %v1622_v7, %v2923_v6  ;;  %222 = sbr.rel (!%p220_p4) target bundleno = 17 (0x11), region = 93 }
 0x17b   : >> { %v2932_v39 = vadd.f32 %v3143_v42, %v2924_v45 }
 0x17d   : >> { %v2933_v40 = vmax.f32 %v2932_v39, 0.0 }
 0x17f   : >> { %2937 = vst.msk [vmem:[%s2935_s25] sm:$0xff] %vm2936_vm3, %v2933_v40 }
 0x180 PF: > { %s14_s15 = sadd.s32 1, %s4041_s15  }
 0x181   : > { %p11_p5 = scmp.ge.s32.totalorder %s14_s15, 4  }
 0x183   :  { %13 = sbr.rel (!%p11_p5) target bundleno = 1 (0x1), region = 104 }

// kernel: _crnn_forward.10
= control target key start
LH: loop header
LB: loop body
LE: loop exit
PB: predicated region body
PF: predicated region fallthrough
CT: control target
= control target key end

     0   :  { %s3403_s15 = smov 0   ;;  %s4102_s0 = inlined_call_operand.vmem [shape: f32[2,6,3,128], index: 0, kind: input, shape index: {}]   ;;  %s4103_s1 = inlined_call_operand.vmem [shape: f32[2,6,3,128], index: 1, kind: input, shape index: {}]   ;;  %s4104_s2 = inlined_call_operand.vmem [shape: f32[3,3,128,128], index: 2, kind: input, shape index: {}]   ;;  %s4105_s3 = inlined_call_operand.vmem [shape: f32[1,128], index: 3, kind: input, shape index: {}]   ;;  %s4106_s4 = inlined_call_operand.vmem [shape: f32[2,4,2,128], index: 4, kind: output, shape index: {}]  }
   0x1 LB: > { %s1788_s16 = sadd.s32 4294967295, %s3369_s15   ;;  %p1792_p0 = scmp.ge.s32.totalorder %s3369_s15, 1  ;;  %s3369_s15 = sphi %s3403_s15, %s14_s15  }
   0x2   : > { %p172_p1 = scmp.lt.s32.totalorder %s3369_s15, 3 }
   0x4   : > { %p173_p2 = pnand %p1792_p0, %p172_p1 }
   0x5   : > { %p203_p3 = scmp.lt.s32.totalorder (!%p173_p2), %s1788_s16, 1  ;;  %s3426_s28 = smov (!%p173_p2), 0  }
   0x6   : > { %176 = sbr.rel (%p173_p2) target bundleno = 526 (0x20e), region = 36 }
   0xd   : > { %s4108_s16 = smov (!%p203_p3, %s1788_s16), 1 }
   0xe   : > { %s3339_s17 = smul.u32 24, %s4108_s16  ;;  %s1938_s18 = sshll.u32 %s4108_s16, 3 }
   0xf   : > { %s3414_s21 = scalar_lea.vmem %s4106_s4, %s1938_s18 }
  0x10   : > { %s3419_s24 = scalar_lea.vmem %s4102_s0, %s3339_s17  ;;  %s3424_s27 = scalar_lea.vmem %s4103_s1, %s3339_s17 }
  0x11 LB: >> { %v1798_v0 = vld [vmem:[%s4104_s2 + $0x80] sm:$0xff]  ;;  %v1799_v1 = vld [vmem:[%s4104_s2 + $0x88] sm:$0xff]  ;;  %v1800_v2 = vld [vmem:[%s4104_s2 + $0x90] sm:$0xff]  ;;  %v3375_v3 = vmov 0.0|0.0   ;;  %vm3376_vm0 = vmmov 0   ;;  %v3377_v6 = vmov 0.0   ;;  %s3373_s28 = sphi %s3426_s28, %s223_s28  }
  0x12   : >> { %2875 = vmatprep.subr.bf16.mxu0 %v3375_v3  ;;  %2923 = vmatprep.subr.bf16.mxu1 %v3375_v3  ;;  %v2876_v4 = vpack.c.bf16 %v1799_v1, %v1798_v0  ;;  %v1801_v5 = vld [vmem:[%s4104_s2 + $0x98] sm:$0xff]  ;;  %v1802_v8 = vld [vmem:[%s4104_s2 + $0xa0] sm:$0xff]  ;;  %v1803_v9 = vld [vmem:[%s4104_s2 + $0xa8] sm:$0xff]  ;;  %s1797_s10 = sshll.u32 %s3373_s28, 2  ;;  %s1935_s25 = sshll.u32 %s3373_s28, 1 }
  0x13   : >> { %2277 = vmatprep.mubr.msk.f32.mxu0 %vm3376_vm0, %v3377_v6  ;;  %2347 = vmatprep.mubr.msk.f32.mxu1 %vm3376_vm0, %v3377_v6  ;;  %v2879_v7 = vpack.c.bf16 %v1801_v5, %v1800_v2  ;;  %v2882_v10 = vpack.c.bf16 %v1803_v9, %v1802_v8  ;;  %v1804_v11 = vld [vmem:[%s4104_s2 + $0xb0] sm:$0xff]  ;;  %v1805_v12 = vld [vmem:[%s4104_s2 + $0xb8] sm:$0xff]  ;;  %v1806_v14 = vld [vmem:[%s4104_s2 + $0xc0] sm:$0xff]  ;;  %s3499_s16 = scalar_lea.vmem %s3419_s24, %s1797_s10  ;;  %s3507_s17 = scalar_lea.vmem %s3424_s27, %s1797_s10 }
  0x14   : >> { %2877 = vmatpush3.bf16.msra.mxu0 %v2876_v4  ;;  %2925 = vmatpush3.bf16.msra.mxu1 %v2876_v4  ;;  %v2885_v13 = vpack.c.bf16 %v1805_v12, %v1804_v11  ;;  %v1807_v15 = vld [vmem:[%s4104_s2 + $0xc8] sm:$0xff]  ;;  %v1808_v17 = vld [vmem:[%s4104_s2 + $0xd0] sm:$0xff]  ;;  %v1809_v18 = vld [vmem:[%s4104_s2 + $0xd8] sm:$0xff]  ;;  %s1696_s26 = scalar_lea.vmem %s3414_s21, %s1935_s25  ;;  %s223_s28 = sadd.s32 1, %s3373_s28  }
  0x15   : >> { %2878 = vmatprep.subr.bf16.mxu0 %v3375_v3  ;;  %2926 = vmatprep.subr.bf16.mxu1 %v3375_v3  ;;  %v2888_v16 = vpack.c.bf16 %v1807_v15, %v1806_v14  ;;  %v2891_v19 = vpack.c.bf16 %v1809_v18, %v1808_v17  ;;  %v1810_v20 = vld [vmem:[%s4104_s2 + $0xe0] sm:$0xff]  ;;  %v1811_v21 = vld [vmem:[%s4104_s2 + $0xe8] sm:$0xff]  ;;  %v1812_v23 = vld [vmem:[%s4104_s2 + $0xf0] sm:$0xff]  ;;  %p220_p4 = scmp.ge.s32.totalorder %s223_s28, 4  }
  0x16   : >> { %v2894_v22 = vpack.c.bf16 %v1811_v21, %v1810_v20  ;;  %v1813_v24 = vld [vmem:[%s4104_s2 + $0xf8] sm:$0xff]  ;;  %v3502_v26 = vld [vmem:[%s3499_s16] sm:$0x7]  ;;  %v230_v28 = vld [vmem:[%s4104_s2 + $0x8] sm:$0xff] }
  0x17   : >> { %v2897_v25 = vpack.c.bf16 %v1813_v24, %v1812_v23  ;;  %v229_v27 = vld [vmem:[%s4104_s2] sm:$0xff]  ;;  %v403_v29 = vrot.slane %v3502_v26, 1  ;;  %v231_v32 = vld [vmem:[%s4104_s2 + $0x10] sm:$0xff]  ;;  %v232_v33 = vld [vmem:[%s4104_s2 + $0x18] sm:$0xff] }
  0x18   : >> { %2880 = vmatpush3.bf16.msra.mxu0 %v2879_v7  ;;  %2928 = vmatpush3.bf16.msra.mxu1 %v2879_v7  ;;  %v3517_v30 = vld [vmem:[%s3507_s17] sm:$0x7]  ;;  %v2900_v31 = vpack.c.bf16 %v230_v28, %v229_v27  ;;  %v2903_v34 = vpack.c.bf16 %v232_v33, %v231_v32  ;;  %v234_v36 = vld [vmem:[%s4104_s2 + $0x28] sm:$0xff]  ;;  %v235_v38 = vld [vmem:[%s4104_s2 + $0x30] sm:$0xff] }
  0x19   : >> { %2881 = vmatprep.subr.bf16.mxu0 %v3375_v3  ;;  %2929 = vmatprep.subr.bf16.mxu1 %v3375_v3  ;;  %v233_v35 = vld [vmem:[%s4104_s2 + $0x20] sm:$0xff]  ;;  %v236_v39 = vld [vmem:[%s4104_s2 + $0x38] sm:$0xff]  ;;  %v238_v42 = vld [vmem:[%s4104_s2 + $0x48] sm:$0xff]  ;;  %v634_v17 = vrot.slane %v3517_v30, 1 }
  0x1a   : >> { %v2906_v37 = vpack.c.bf16 %v234_v36, %v233_v35  ;;  %v2909_v40 = vpack.c.bf16 %v236_v39, %v235_v38  ;;  %v237_v41 = vld [vmem:[%s4104_s2 + $0x40] sm:$0xff]  ;;  %v239_v44 = vld [vmem:[%s4104_s2 + $0x50] sm:$0xff]  ;;  %v240_v45 = vld [vmem:[%s4104_s2 + $0x58] sm:$0xff] }
  0x1b   : >> { %v2912_v43 = vpack.c.bf16 %v238_v42, %v237_v41  ;;  %v2915_v46 = vpack.c.bf16 %v240_v45, %v239_v44  ;;  %v241_v47 = vld [vmem:[%s4104_s2 + $0x60] sm:$0xff]  ;;  %v242_v48 = vld [vmem:[%s4104_s2 + $0x68] sm:$0xff]  ;;  %v243_v50 = vld [vmem:[%s4104_s2 + $0x70] sm:$0xff] }
  0x1c   : >> { %2883 = vmatpush3.bf16.msra.mxu0 %v2882_v10  ;;  %2931 = vmatpush3.bf16.msra.mxu1 %v2882_v10  ;;  %v2918_v49 = vpack.c.bf16 %v242_v48, %v241_v47  ;;  %v244_v51 = vld [vmem:[%s4104_s2 + $0x78] sm:$0xff]  ;;  %v1814_v53 = vld [vmem:[%s4104_s2 + $0x100] sm:$0xff]  ;;  %v1815_v54 = vld [vmem:[%s4104_s2 + $0x108] sm:$0xff] }
  0x1d   : >> { %2884 = vmatprep.subr.bf16.mxu0 %v3375_v3  ;;  %2932 = vmatprep.subr.bf16.mxu1 %v3375_v3  ;;  %v2921_v52 = vpack.c.bf16 %v244_v51, %v243_v50  ;;  %v2972_v55 = vpack.c.bf16 %v1815_v54, %v1814_v53  ;;  %v1816_v56 = vld [vmem:[%s4104_s2 + $0x110] sm:$0xff]  ;;  %v1817_v57 = vld [vmem:[%s4104_s2 + $0x118] sm:$0xff]  ;;  %v1818_v59 = vld [vmem:[%s4104_s2 + $0x120] sm:$0xff] }
  0x1e   : >> { %v2975_v58 = vpack.c.bf16 %v1817_v57, %v1816_v56  ;;  %v1819_v60 = vld [vmem:[%s4104_s2 + $0x128] sm:$0xff]  ;;  %v1820_v62 = vld [vmem:[%s4104_s2 + $0x130] sm:$0xff]  ;;  %v1821_v63 = vld [vmem:[%s4104_s2 + $0x138] sm:$0xff] }
  0x1f   : >> { %v2978_v61 = vpack.c.bf16 %v1819_v60, %v1818_v59  ;;  %v2981_v0 = vpack.c.bf16 %v1821_v63, %v1820_v62  ;;  %v1822_v1 = vld [vmem:[%s4104_s2 + $0x140] sm:$0xff]  ;;  %v1823_v2 = vld [vmem:[%s4104_s2 + $0x148] sm:$0xff]  ;;  %v1824_v5 = vld [vmem:[%s4104_s2 + $0x150] sm:$0xff] }
  0x20   : >> { %2886 = vmatpush3.bf16.msra.mxu0 %v2885_v13  ;;  %2934 = vmatpush3.bf16.msra.mxu1 %v2885_v13  ;;  %v2984_v4 = vpack.c.bf16 %v1823_v2, %v1822_v1  ;;  %v1825_v7 = vld [vmem:[%s4104_s2 + $0x158] sm:$0xff]  ;;  %v1826_v9 = vld [vmem:[%s4104_s2 + $0x160] sm:$0xff]  ;;  %v1827_v10 = vld [vmem:[%s4104_s2 + $0x168] sm:$0xff] }
  0x21   : >> { %2887 = vmatprep.subr.bf16.mxu0 %v3375_v3  ;;  %2935 = vmatprep.subr.bf16.mxu1 %v3375_v3  ;;  %v2987_v8 = vpack.c.bf16 %v1825_v7, %v1824_v5  ;;  %v2990_v11 = vpack.c.bf16 %v1827_v10, %v1826_v9  ;;  %v1828_v12 = vld [vmem:[%s4104_s2 + $0x170] sm:$0xff]  ;;  %v1829_v13 = vld [vmem:[%s4104_s2 + $0x178] sm:$0xff]  ;;  %v1834_v15 = vld [vmem:[%s4104_s2 + $0x180] sm:$0xff] }
  0x22   : >> { %v2993_v14 = vpack.c.bf16 %v1829_v13, %v1828_v12  ;;  %v1837_v20 = vld [vmem:[%s4104_s2 + $0x198] sm:$0xff]  ;;  %v1839_v23 = vld [vmem:[%s4104_s2 + $0x1a8] sm:$0xff]  ;;  %v1842_v28 = vld [vmem:[%s4104_s2 + $0x1c0] sm:$0xff] }
  0x23   : >> { %v1845_v32 = vld [vmem:[%s4104_s2 + $0x1d8] sm:$0xff]  ;;  %v1847_v35 = vld [vmem:[%s4104_s2 + $0x1e8] sm:$0xff]  ;;  %v3732_v42 = vld [vmem:[%s3499_s16 + $0x4] sm:$0x7] }
  0x24   : >> { %2889 = vmatpush3.bf16.msra.mxu0 %v2888_v16  ;;  %2937 = vmatpush3.bf16.msra.mxu1 %v2888_v16  ;;  %v1835_v16 = vld [vmem:[%s4104_s2 + $0x188] sm:$0xff]  ;;  %v1849_v38 = vld [vmem:[%s4104_s2 + $0x1f8] sm:$0xff]  ;;  %v1852_v45 = vld [vmem:[%s4104_s2 + $0x210] sm:$0xff]  ;;  %v961_v5 = vrot.slane %v3732_v42, 1 }
  0x25   : >> { %2890 = vmatprep.subr.bf16.mxu0 %v3375_v3  ;;  %2938 = vmatprep.subr.bf16.mxu1 %v3375_v3  ;;  %v3020_v18 = vpack.c.bf16 %v1835_v16, %v1834_v15  ;;  %v1851_v41 = vld [vmem:[%s4104_s2 + $0x208] sm:$0xff]  ;;  %v1854_v48 = vld [vmem:[%s4104_s2 + $0x220] sm:$0xff]  ;;  %v1856_v51 = vld [vmem:[%s4104_s2 + $0x230] sm:$0xff] }
  0x26   : >> { %v1858_v54 = vld [vmem:[%s4104_s2 + $0x240] sm:$0xff]  ;;  %v1860_v57 = vld [vmem:[%s4104_s2 + $0x250] sm:$0xff]  ;;  %v1869_v9 = vld [vmem:[%s4104_s2 + $0x298] sm:$0xff] }
  0x27   : >> { %v1862_v60 = vld [vmem:[%s4104_s2 + $0x260] sm:$0xff]  ;;  %v1864_v63 = vld [vmem:[%s4104_s2 + $0x270] sm:$0xff]  ;;  %v1871_v12 = vld [vmem:[%s4104_s2 + $0x2a8] sm:$0xff] }
  0x28   : >> { %2892 = vmatpush3.bf16.msra.mxu0 %v2891_v19  ;;  %2940 = vmatpush3.bf16.msra.mxu1 %v2891_v19  ;;  %v1836_v19 = vld [vmem:[%s4104_s2 + $0x190] sm:$0xff]  ;;  %v1866_v2 = vld [vmem:[%s4104_s2 + $0x280] sm:$0xff]  ;;  %v1873_v15 = vld [vmem:[%s4104_s2 + $0x2b8] sm:$0xff] }
  0x29   : >> { %2893 = vmatprep.subr.bf16.mxu0 %v3375_v3  ;;  %2941 = vmatprep.subr.bf16.mxu1 %v3375_v3  ;;  %v3023_v21 = vpack.c.bf16 %v1837_v20, %v1836_v19  ;;  %v1876_v20 = vld [vmem:[%s4104_s2 + $0x2d0] sm:$0xff] }
  0x2c   : >> { %2895 = vmatpush3.bf16.msra.mxu0 %v2894_v22  ;;  %2943 = vmatpush3.bf16.msra.mxu1 %v2894_v22  ;;  %v1838_v22 = vld [vmem:[%s4104_s2 + $0x1a0] sm:$0xff] }
  0x2d   : >> { %2896 = vmatprep.subr.bf16.mxu0 %v3375_v3  ;;  %2944 = vmatprep.subr.bf16.mxu1 %v3375_v3  ;;  %v3026_v24 = vpack.c.bf16 %v1839_v23, %v1838_v22  ;;  %v1878_v23 = vld [vmem:[%s4104_s2 + $0x2e0] sm:$0xff] }
  0x30   : >> { %2898 = vmatpush3.bf16.msra.mxu0 %v2897_v25  ;;  %2946 = vmatpush3.bf16.msra.mxu1 %v2897_v25  ;;  %v1840_v25 = vld [vmem:[%s4104_s2 + $0x1b0] sm:$0xff] }
  0x31   : >> { %2899 = vmatprep.subr.bf16.mxu0 %v3375_v3  ;;  %2947 = vmatprep.subr.bf16.mxu1 %v3375_v3 }
  0x33   : >> { %2278 = vmatmul.mubr.f32.vlgmr.msra.gmra.mrb[0].mxu0 %v3517_v30  ;;  %2348 = vmatmul.mubr.f32.vlgmr.msra.gmra.mrb[0].mxu1 %v403_v29 }
  0x34   : >> { %2901 = vmatpush3.bf16.msra.mxu0 %v2900_v31  ;;  %2949 = vmatpush3.bf16.msra.mxu1 %v2900_v31  ;;  %v1844_v31 = vld [vmem:[%s4104_s2 + $0x1d0] sm:$0xff] }
  0x35   : >> { %2902 = vmatprep.subr.bf16.mxu0 %v3375_v3  ;;  %2950 = vmatprep.subr.bf16.mxu1 %v3375_v3  ;;  %v3035_v33 = vpack.c.bf16 %v1845_v32, %v1844_v31 }
  0x36   : >> { %2312 = vmatprep.mubr.msk.f32.mxu0 %vm3376_vm0, %v3377_v6  ;;  %2382 = vmatprep.mubr.msk.f32.mxu1 %vm3376_vm0, %v3377_v6 }
  0x38   : >> { %2904 = vmatpush3.bf16.msra.mxu0 %v2903_v34  ;;  %2952 = vmatpush3.bf16.msra.mxu1 %v2903_v34  ;;  %v1846_v34 = vld [vmem:[%s4104_s2 + $0x1e0] sm:$0xff] }
  0x39   : >> { %2905 = vmatprep.subr.bf16.mxu0 %v3375_v3  ;;  %2953 = vmatprep.subr.bf16.mxu1 %v3375_v3  ;;  %v3038_v36 = vpack.c.bf16 %v1847_v35, %v1846_v34  ;;  %v1889_v34 = vld [vmem:[%s4104_s2 + $0x318] sm:$0xff] }
  0x3c   : >> { %2907 = vmatpush3.bf16.msra.mxu0 %v2906_v37  ;;  %2955 = vmatpush3.bf16.msra.mxu1 %v2906_v37  ;;  %v1848_v37 = vld [vmem:[%s4104_s2 + $0x1f0] sm:$0xff] }
  0x3d   : >> { %2908 = vmatprep.subr.bf16.mxu0 %v3375_v3  ;;  %2956 = vmatprep.subr.bf16.mxu1 %v3375_v3  ;;  %v3041_v39 = vpack.c.bf16 %v1849_v38, %v1848_v37  ;;  %v1891_v37 = vld [vmem:[%s4104_s2 + $0x328] sm:$0xff] }
  0x40   : >> { %2910 = vmatpush3.bf16.msra.mxu0 %v2909_v40  ;;  %2958 = vmatpush3.bf16.msra.mxu1 %v2909_v40  ;;  %v1850_v40 = vld [vmem:[%s4104_s2 + $0x200] sm:$0xff] }
  0x41   : >> { %2911 = vmatprep.subr.bf16.mxu0 %v3375_v3  ;;  %2959 = vmatprep.subr.bf16.mxu1 %v3375_v3  ;;  %v3068_v44 = vpack.c.bf16 %v1851_v41, %v1850_v40  ;;  %v1893_v40 = vld [vmem:[%s4104_s2 + $0x338] sm:$0xff] }
  0x44   : >> { %2913 = vmatpush3.bf16.msra.mxu0 %v2912_v43  ;;  %2961 = vmatpush3.bf16.msra.mxu1 %v2912_v43  ;;  %v3735_v43 = vld [vmem:[%s3507_s17 + $0x4] sm:$0x7] }
  0x45   : >> { %2914 = vmatprep.subr.bf16.mxu0 %v3375_v3  ;;  %2962 = vmatprep.subr.bf16.mxu1 %v3375_v3  ;;  %v1123_v31 = vrot.slane %v3735_v43, 1 }
  0x48   : >> { %2916 = vmatpush3.bf16.msra.mxu0 %v2915_v46  ;;  %2964 = vmatpush3.bf16.msra.mxu1 %v2915_v46  ;;  %v1853_v46 = vld [vmem:[%s4104_s2 + $0x218] sm:$0xff] }
  0x49   : >> { %2917 = vmatprep.subr.bf16.mxu0 %v3375_v3  ;;  %2965 = vmatprep.subr.bf16.mxu1 %v3375_v3  ;;  %v3071_v47 = vpack.c.bf16 %v1853_v46, %v1852_v45  ;;  %v1896_v45 = vld [vmem:[%s4104_s2 + $0x350] sm:$0xff]  ;;  %v1897_v46 = vld [vmem:[%s4104_s2 + $0x358] sm:$0xff] }
  0x4c   : >> { %2919 = vmatpush3.bf16.msra.mxu0 %v2918_v49  ;;  %2967 = vmatpush3.bf16.msra.mxu1 %v2918_v49  ;;  %v1855_v49 = vld [vmem:[%s4104_s2 + $0x228] sm:$0xff] }
  0x4d   : >> { %2920 = vmatprep.subr.bf16.mxu0 %v3375_v3  ;;  %2968 = vmatprep.subr.bf16.mxu1 %v3375_v3  ;;  %v3074_v50 = vpack.c.bf16 %v1855_v49, %v1854_v48  ;;  %v1898_v48 = vld [vmem:[%s4104_s2 + $0x360] sm:$0xff]  ;;  %v1899_v49 = vld [vmem:[%s4104_s2 + $0x368] sm:$0xff] }
  0x50   : >> { %2922 = vmatpush3.bf16.msra.mxu0 %v2921_v52  ;;  %2970 = vmatpush3.bf16.msra.mxu1 %v2921_v52  ;;  %v1857_v52 = vld [vmem:[%s4104_s2 + $0x238] sm:$0xff] }
  0x51   : >> { %2971 = vmatprep.subr.bf16.mxu0 %v3375_v3  ;;  %2995 = vmatprep.subr.bf16.mxu1 %v3375_v3  ;;  %v3077_v53 = vpack.c.bf16 %v1857_v52, %v1856_v51  ;;  %v1900_v51 = vld [vmem:[%s4104_s2 + $0x370] sm:$0xff]  ;;  %v1901_v52 = vld [vmem:[%s4104_s2 + $0x378] sm:$0xff] }
  0x53   : >> { %2313 = vmatmul.mubr.f32.vlgmr.msra.gmra.mrb[0].mxu0 %v3502_v26  ;;  %2383 = vmatmul.mubr.f32.vlgmr.msra.gmra.mrb[0].mxu1 %v3517_v30  ;;  %v1841_v26 = vld [vmem:[%s4104_s2 + $0x1b8] sm:$0xff] }
  0x54   : >> { %2973 = vmatpush3.bf16.msra.mxu0 %v2972_v55  ;;  %2997 = vmatpush3.bf16.msra.mxu1 %v2972_v55  ;;  %v3029_v27 = vpack.c.bf16 %v1841_v26, %v1840_v25  ;;  %v1859_v55 = vld [vmem:[%s4104_s2 + $0x248] sm:$0xff]  ;;  %v1880_v26 = vld [vmem:[%s4104_s2 + $0x2f0] sm:$0xff] }
  0x55   : >> { %2974 = vmatprep.subr.bf16.mxu0 %v3375_v3  ;;  %2998 = vmatprep.subr.bf16.mxu1 %v3375_v3  ;;  %v3080_v56 = vpack.c.bf16 %v1859_v55, %v1858_v54  ;;  %v1902_v54 = vld [vmem:[%s4104_s2 + $0x380] sm:$0xff]  ;;  %v1903_v55 = vld [vmem:[%s4104_s2 + $0x388] sm:$0xff] }
  0x56   : >> { %2417 = vmatprep.mubr.msk.f32.mxu0 %vm3376_vm0, %v3377_v6  ;;  %2452 = vmatprep.mubr.msk.f32.mxu1 %vm3376_vm0, %v3377_v6 }
  0x58   : >> { %2976 = vmatpush3.bf16.msra.mxu0 %v2975_v58  ;;  %3000 = vmatpush3.bf16.msra.mxu1 %v2975_v58  ;;  %v1861_v58 = vld [vmem:[%s4104_s2 + $0x258] sm:$0xff] }
  0x59   : >> { %2977 = vmatprep.subr.bf16.mxu0 %v3375_v3  ;;  %3001 = vmatprep.subr.bf16.mxu1 %v3375_v3  ;;  %v3083_v59 = vpack.c.bf16 %v1861_v58, %v1860_v57  ;;  %v3954_v57 = vld [vmem:[%s3507_s17 + $0x8] sm:$0x7]  ;;  %v3212_v58 = vpack.c.bf16 %v1903_v55, %v1902_v54 }
  0x5c   : >> { %2979 = vmatpush3.bf16.msra.mxu0 %v2978_v61  ;;  %3003 = vmatpush3.bf16.msra.mxu1 %v2978_v61  ;;  %v1863_v61 = vld [vmem:[%s4104_s2 + $0x268] sm:$0xff] }
  0x5d   : >> { %2980 = vmatprep.subr.bf16.mxu0 %v3375_v3  ;;  %3004 = vmatprep.subr.bf16.mxu1 %v3375_v3  ;;  %v3086_v62 = vpack.c.bf16 %v1863_v61, %v1862_v60  ;;  %v1905_v60 = vld [vmem:[%s4104_s2 + $0x398] sm:$0xff] }
  0x60   : >> { %2982 = vmatpush3.bf16.msra.mxu0 %v2981_v0  ;;  %3006 = vmatpush3.bf16.msra.mxu1 %v2981_v0  ;;  %v1865_v0 = vld [vmem:[%s4104_s2 + $0x278] sm:$0xff] }
  0x61   : >> { %2983 = vmatprep.subr.bf16.mxu0 %v3375_v3  ;;  %3007 = vmatprep.subr.bf16.mxu1 %v3375_v3  ;;  %v3089_v1 = vpack.c.bf16 %v1865_v0, %v1864_v63  ;;  %v1907_v63 = vld [vmem:[%s4104_s2 + $0x3a8] sm:$0xff] }
  0x64   : >> { %2985 = vmatpush3.bf16.msra.mxu0 %v2984_v4  ;;  %3009 = vmatpush3.bf16.msra.mxu1 %v2984_v4  ;;  %v1867_v4 = vld [vmem:[%s4104_s2 + $0x288] sm:$0xff] }
  0x65   : >> { %2986 = vmatprep.subr.bf16.mxu0 %v3375_v3  ;;  %3010 = vmatprep.subr.bf16.mxu1 %v3375_v3  ;;  %v3116_v7 = vpack.c.bf16 %v1867_v4, %v1866_v2  ;;  %v1909_v2 = vld [vmem:[%s4104_s2 + $0x3b8] sm:$0xff] }
  0x68   : >> { %2988 = vmatpush3.bf16.msra.mxu0 %v2987_v8  ;;  %3012 = vmatpush3.bf16.msra.mxu1 %v2987_v8  ;;  %v1868_v8 = vld [vmem:[%s4104_s2 + $0x290] sm:$0xff] }
  0x69   : >> { %2989 = vmatprep.subr.bf16.mxu0 %v3375_v3  ;;  %3013 = vmatprep.subr.bf16.mxu1 %v3375_v3  ;;  %v3119_v10 = vpack.c.bf16 %v1869_v9, %v1868_v8  ;;  %v1912_v9 = vld [vmem:[%s4104_s2 + $0x3d0] sm:$0xff] }
  0x6c   : >> { %2991 = vmatpush3.bf16.msra.mxu0 %v2990_v11  ;;  %3015 = vmatpush3.bf16.msra.mxu1 %v2990_v11  ;;  %v1870_v11 = vld [vmem:[%s4104_s2 + $0x2a0] sm:$0xff] }
  0x6d   : >> { %2992 = vmatprep.subr.bf16.mxu0 %v3375_v3  ;;  %3016 = vmatprep.subr.bf16.mxu1 %v3375_v3  ;;  %v3122_v13 = vpack.c.bf16 %v1871_v12, %v1870_v11  ;;  %v1914_v12 = vld [vmem:[%s4104_s2 + $0x3e0] sm:$0xff] }
  0x70   : >> { %2994 = vmatpush3.bf16.msra.mxu0 %v2993_v14  ;;  %3018 = vmatpush3.bf16.msra.mxu1 %v2993_v14  ;;  %v1872_v14 = vld [vmem:[%s4104_s2 + $0x2b0] sm:$0xff] }
  0x71   : >> { %3019 = vmatprep.subr.bf16.mxu0 %v3375_v3  ;;  %3043 = vmatprep.subr.bf16.mxu1 %v3375_v3  ;;  %v3125_v16 = vpack.c.bf16 %v1873_v15, %v1872_v14  ;;  %v1916_v15 = vld [vmem:[%s4104_s2 + $0x3f0] sm:$0xff] }
  0x73   : >> { %2418 = vmatmul.mubr.f32.vlgmr.msra.gmra.mrb[0].mxu0 %v403_v29  ;;  %2453 = vmatmul.mubr.f32.vlgmr.msra.gmra.mrb[0].mxu1 %v634_v17  ;;  %v1843_v29 = vld [vmem:[%s4104_s2 + $0x1c8] sm:$0xff]  ;;  %v1874_v17 = vld [vmem:[%s4104_s2 + $0x2c0] sm:$0xff] }
  0x74   : >> { %3021 = vmatpush3.bf16.msra.mxu0 %v3020_v18  ;;  %3045 = vmatpush3.bf16.msra.mxu1 %v3020_v18  ;;  %v3032_v30 = vpack.c.bf16 %v1843_v29, %v1842_v28  ;;  %v1875_v18 = vld [vmem:[%s4104_s2 + $0x2c8] sm:$0xff]  ;;  %v1886_v29 = vld [vmem:[%s4104_s2 + $0x300] sm:$0xff] }
  0x75   : >> { %3022 = vmatprep.subr.bf16.mxu0 %v3375_v3  ;;  %3046 = vmatprep.subr.bf16.mxu1 %v3375_v3  ;;  %v3128_v19 = vpack.c.bf16 %v1875_v18, %v1874_v17  ;;  %v1918_v18 = vld [vmem:[%s4104_s2 + $0x400] sm:$0xff] }
  0x76   : >> { %2487 = vmatprep.mubr.msk.f32.mxu0 %vm3376_vm0, %v3377_v6  ;;  %2522 = vmatprep.mubr.msk.f32.mxu1 %vm3376_vm0, %v3377_v6 }
  0x78   : >> { %3024 = vmatpush3.bf16.msra.mxu0 %v3023_v21  ;;  %3048 = vmatpush3.bf16.msra.mxu1 %v3023_v21  ;;  %v1877_v21 = vld [vmem:[%s4104_s2 + $0x2d8] sm:$0xff] }
  0x79   : >> { %3025 = vmatprep.subr.bf16.mxu0 %v3375_v3  ;;  %3049 = vmatprep.subr.bf16.mxu1 %v3375_v3  ;;  %v3131_v22 = vpack.c.bf16 %v1877_v21, %v1876_v20 }
  0x7c   : >> { %3027 = vmatpush3.bf16.msra.mxu0 %v3026_v24  ;;  %3051 = vmatpush3.bf16.msra.mxu1 %v3026_v24  ;;  %v1879_v24 = vld [vmem:[%s4104_s2 + $0x2e8] sm:$0xff] }
  0x7d   : >> { %3028 = vmatprep.subr.bf16.mxu0 %v3375_v3  ;;  %3052 = vmatprep.subr.bf16.mxu1 %v3375_v3  ;;  %v3134_v25 = vpack.c.bf16 %v1879_v24, %v1878_v23  ;;  %v1921_v23 = vld [vmem:[%s4104_s2 + $0x418] sm:$0xff] }
  0x80   : >> { %3030 = vmatpush3.bf16.msra.mxu0 %v3029_v27  ;;  %3054 = vmatpush3.bf16.msra.mxu1 %v3029_v27  ;;  %v1881_v27 = vld [vmem:[%s4104_s2 + $0x2f8] sm:$0xff] }
  0x81   : >> { %3031 = vmatprep.subr.bf16.mxu0 %v3375_v3  ;;  %3055 = vmatprep.subr.bf16.mxu1 %v3375_v3  ;;  %v3137_v28 = vpack.c.bf16 %v1881_v27, %v1880_v26  ;;  %v1923_v26 = vld [vmem:[%s4104_s2 + $0x428] sm:$0xff] }
  0x84   : >> { %3033 = vmatpush3.bf16.msra.mxu0 %v3032_v30  ;;  %3057 = vmatpush3.bf16.msra.mxu1 %v3032_v30  ;;  %v1887_v30 = vld [vmem:[%s4104_s2 + $0x308] sm:$0xff] }
  0x85   : >> { %3034 = vmatprep.subr.bf16.mxu0 %v3375_v3  ;;  %3058 = vmatprep.subr.bf16.mxu1 %v3375_v3  ;;  %v3164_v32 = vpack.c.bf16 %v1887_v30, %v1886_v29  ;;  %v1925_v29 = vld [vmem:[%s4104_s2 + $0x438] sm:$0xff] }
  0x88   : >> { %3036 = vmatpush3.bf16.msra.mxu0 %v3035_v33  ;;  %3060 = vmatpush3.bf16.msra.mxu1 %v3035_v33  ;;  %v1888_v33 = vld [vmem:[%s4104_s2 + $0x310] sm:$0xff] }
  0x89   : >> { %3037 = vmatprep.subr.bf16.mxu0 %v3375_v3  ;;  %3061 = vmatprep.subr.bf16.mxu1 %v3375_v3  ;;  %v3167_v35 = vpack.c.bf16 %v1889_v34, %v1888_v33  ;;  %v1928_v33 = vld [vmem:[%s4104_s2 + $0x450] sm:$0xff]  ;;  %v1929_v34 = vld [vmem:[%s4104_s2 + $0x458] sm:$0xff] }
  0x8c   : >> { %3039 = vmatpush3.bf16.msra.mxu0 %v3038_v36  ;;  %3063 = vmatpush3.bf16.msra.mxu1 %v3038_v36  ;;  %v1890_v36 = vld [vmem:[%s4104_s2 + $0x320] sm:$0xff] }
  0x8d   : >> { %3040 = vmatprep.subr.bf16.mxu0 %v3375_v3  ;;  %3064 = vmatprep.subr.bf16.mxu1 %v3375_v3  ;;  %v3170_v38 = vpack.c.bf16 %v1891_v37, %v1890_v36  ;;  %v1930_v36 = vld [vmem:[%s4104_s2 + $0x460] sm:$0xff]  ;;  %v1931_v37 = vld [vmem:[%s4104_s2 + $0x468] sm:$0xff] }
  0x90   : >> { %3042 = vmatpush3.bf16.msra.mxu0 %v3041_v39  ;;  %3066 = vmatpush3.bf16.msra.mxu1 %v3041_v39  ;;  %v1892_v39 = vld [vmem:[%s4104_s2 + $0x330] sm:$0xff] }
  0x91   : >> { %3067 = vmatprep.subr.bf16.mxu0 %v3375_v3  ;;  %3091 = vmatprep.subr.bf16.mxu1 %v3375_v3  ;;  %v3173_v41 = vpack.c.bf16 %v1893_v40, %v1892_v39  ;;  %v1932_v39 = vld [vmem:[%s4104_s2 + $0x470] sm:$0xff]  ;;  %v1933_v40 = vld [vmem:[%s4104_s2 + $0x478] sm:$0xff] }
  0x93   : >> { %2488 = vmatmul.mubr.f32.vlgmr.msra.gmra.mrb[0].mxu0 %v3732_v42  ;;  %2523 = vmatmul.mubr.f32.vlgmr.msra.gmra.mrb[0].mxu1 %v3735_v43  ;;  %v1894_v42 = vld [vmem:[%s4104_s2 + $0x340] sm:$0xff] }
  0x94   : >> { %3069 = vmatpush3.bf16.msra.mxu0 %v3068_v44  ;;  %3093 = vmatpush3.bf16.msra.mxu1 %v3068_v44 }
  0x95   : >> { %3070 = vmatprep.subr.bf16.mxu0 %v3375_v3  ;;  %3094 = vmatprep.subr.bf16.mxu1 %v3375_v3 }
  0x96   : >> { %2557 = vmatprep.mubr.msk.f32.mxu0 %vm3376_vm0, %v3377_v6  ;;  %2592 = vmatprep.mubr.msk.f32.mxu1 %vm3376_vm0, %v3377_v6 }
  0x98   : >> { %3072 = vmatpush3.bf16.msra.mxu0 %v3071_v47  ;;  %3096 = vmatpush3.bf16.msra.mxu1 %v3071_v47  ;;  %v3179_v47 = vpack.c.bf16 %v1897_v46, %v1896_v45  ;;  %v1934_v45 = vld [vmem:[%s4105_s3] ss:$0 sm:$0xff] }
  0x99   : >> { %3073 = vmatprep.subr.bf16.mxu0 %v3375_v3  ;;  %3097 = vmatprep.subr.bf16.mxu1 %v3375_v3 }
  0x9c   : >> { %3075 = vmatpush3.bf16.msra.mxu0 %v3074_v50  ;;  %3099 = vmatpush3.bf16.msra.mxu1 %v3074_v50  ;;  %v3182_v50 = vpack.c.bf16 %v1899_v49, %v1898_v48 }
  0x9d   : >> { %3076 = vmatprep.subr.bf16.mxu0 %v3375_v3  ;;  %3100 = vmatprep.subr.bf16.mxu1 %v3375_v3 }
  0xa0   : >> { %3078 = vmatpush3.bf16.msra.mxu0 %v3077_v53  ;;  %3102 = vmatpush3.bf16.msra.mxu1 %v3077_v53  ;;  %v3185_v53 = vpack.c.bf16 %v1901_v52, %v1900_v51 }
  0xa1   : >> { %3079 = vmatprep.subr.bf16.mxu0 %v3375_v3  ;;  %3103 = vmatprep.subr.bf16.mxu1 %v3375_v3 }
  0xa4   : >> { %3081 = vmatpush3.bf16.msra.mxu0 %v3080_v56  ;;  %3105 = vmatpush3.bf16.msra.mxu1 %v3080_v56  ;;  %v3951_v56 = vld [vmem:[%s3499_s16 + $0x8] sm:$0x7] }
  0xa5   : >> { %3082 = vmatprep.subr.bf16.mxu0 %v3375_v3  ;;  %3106 = vmatprep.subr.bf16.mxu1 %v3375_v3  ;;  %v1450_v20 = vrot.slane %v3951_v56, 1 }
  0xa8   : >> { %3084 = vmatpush3.bf16.msra.mxu0 %v3083_v59  ;;  %3108 = vmatpush3.bf16.msra.mxu1 %v3083_v59  ;;  %v1904_v59 = vld [vmem:[%s4104_s2 + $0x390] sm:$0xff] }
  0xa9   : >> { %3085 = vmatprep.subr.bf16.mxu0 %v3375_v3  ;;  %3109 = vmatprep.subr.bf16.mxu1 %v3375_v3  ;;  %v3215_v61 = vpack.c.bf16 %v1905_v60, %v1904_v59 }
  0xac   : >> { %3087 = vmatpush3.bf16.msra.mxu0 %v3086_v62  ;;  %3111 = vmatpush3.bf16.msra.mxu1 %v3086_v62  ;;  %v1906_v62 = vld [vmem:[%s4104_s2 + $0x3a0] sm:$0xff] }
  0xad   : >> { %3088 = vmatprep.subr.bf16.mxu0 %v3375_v3  ;;  %3112 = vmatprep.subr.bf16.mxu1 %v3375_v3  ;;  %v3218_v0 = vpack.c.bf16 %v1907_v63, %v1906_v62 }
  0xb0   : >> { %3090 = vmatpush3.bf16.msra.mxu0 %v3089_v1  ;;  %3114 = vmatpush3.bf16.msra.mxu1 %v3089_v1  ;;  %v1908_v1 = vld [vmem:[%s4104_s2 + $0x3b0] sm:$0xff] }
  0xb1   : >> { %3115 = vmatprep.subr.bf16.mxu0 %v3375_v3  ;;  %3139 = vmatprep.subr.bf16.mxu1 %v3375_v3  ;;  %v3221_v4 = vpack.c.bf16 %v1909_v2, %v1908_v1 }
  0xb3   : >> { %2558 = vmatmul.mubr.f32.vlgmr.msra.gmra.mrb[0].mxu0 %v3735_v43  ;;  %2593 = vmatmul.mubr.f32.vlgmr.msra.gmra.mrb[0].mxu1 %v961_v5  ;;  %v1895_v43 = vld [vmem:[%s4104_s2 + $0x348] sm:$0xff] }
  0xb4   : >> { %3117 = vmatpush3.bf16.msra.mxu0 %v3116_v7  ;;  %3141 = vmatpush3.bf16.msra.mxu1 %v3116_v7  ;;  %v3176_v44 = vpack.c.bf16 %v1895_v43, %v1894_v42  ;;  %v1911_v7 = vld [vmem:[%s4104_s2 + $0x3c8] sm:$0xff]  ;;  %v1612_v42 = vrot.slane %v3954_v57, 1 }
  0xb5   : >> { %3118 = vmatprep.subr.bf16.mxu0 %v3375_v3  ;;  %3142 = vmatprep.subr.bf16.mxu1 %v3375_v3 }
  0xb6   : >> { %2627 = vmatprep.mubr.msk.f32.mxu0 %vm3376_vm0, %v3377_v6  ;;  %2662 = vmatprep.mubr.msk.f32.mxu1 %vm3376_vm0, %v3377_v6 }
  0xb8   : >> { %3120 = vmatpush3.bf16.msra.mxu0 %v3119_v10  ;;  %3144 = vmatpush3.bf16.msra.mxu1 %v3119_v10  ;;  %v1913_v10 = vld [vmem:[%s4104_s2 + $0x3d8] sm:$0xff] }
  0xb9   : >> { %3121 = vmatprep.subr.bf16.mxu0 %v3375_v3  ;;  %3145 = vmatprep.subr.bf16.mxu1 %v3375_v3  ;;  %v3227_v11 = vpack.c.bf16 %v1913_v10, %v1912_v9 }
  0xbc   : >> { %3123 = vmatpush3.bf16.msra.mxu0 %v3122_v13  ;;  %3147 = vmatpush3.bf16.msra.mxu1 %v3122_v13  ;;  %v1915_v13 = vld [vmem:[%s4104_s2 + $0x3e8] sm:$0xff] }
  0xbd   : >> { %3124 = vmatprep.subr.bf16.mxu0 %v3375_v3  ;;  %3148 = vmatprep.subr.bf16.mxu1 %v3375_v3  ;;  %v3230_v14 = vpack.c.bf16 %v1915_v13, %v1914_v12 }
  0xc0   : >> { %3126 = vmatpush3.bf16.msra.mxu0 %v3125_v16  ;;  %3150 = vmatpush3.bf16.msra.mxu1 %v3125_v16  ;;  %v1917_v16 = vld [vmem:[%s4104_s2 + $0x3f8] sm:$0xff] }
  0xc1   : >> { %3127 = vmatprep.subr.bf16.mxu0 %v3375_v3  ;;  %3151 = vmatprep.subr.bf16.mxu1 %v3375_v3  ;;  %v3233_v17 = vpack.c.bf16 %v1917_v16, %v1916_v15 }
  0xc4   : >> { %3129 = vmatpush3.bf16.msra.mxu0 %v3128_v19  ;;  %3153 = vmatpush3.bf16.msra.mxu1 %v3128_v19  ;;  %v1919_v19 = vld [vmem:[%s4104_s2 + $0x408] sm:$0xff] }
  0xc5   : >> { %3130 = vmatprep.subr.bf16.mxu0 %v3375_v3  ;;  %3154 = vmatprep.subr.bf16.mxu1 %v3375_v3  ;;  %v3260_v21 = vpack.c.bf16 %v1919_v19, %v1918_v18 }
  0xc8   : >> { %3132 = vmatpush3.bf16.msra.mxu0 %v3131_v22  ;;  %3156 = vmatpush3.bf16.msra.mxu1 %v3131_v22  ;;  %v1920_v22 = vld [vmem:[%s4104_s2 + $0x410] sm:$0xff] }
  0xc9   : >> { %3133 = vmatprep.subr.bf16.mxu0 %v3375_v3  ;;  %3157 = vmatprep.subr.bf16.mxu1 %v3375_v3  ;;  %v3263_v24 = vpack.c.bf16 %v1921_v23, %v1920_v22 }
  0xcc   : >> { %3135 = vmatpush3.bf16.msra.mxu0 %v3134_v25  ;;  %3159 = vmatpush3.bf16.msra.mxu1 %v3134_v25  ;;  %v1922_v25 = vld [vmem:[%s4104_s2 + $0x420] sm:$0xff] }
  0xcd   : >> { %3136 = vmatprep.subr.bf16.mxu0 %v3375_v3  ;;  %3160 = vmatprep.subr.bf16.mxu1 %v3375_v3  ;;  %v3266_v27 = vpack.c.bf16 %v1923_v26, %v1922_v25 }
  0xd0   : >> { %3138 = vmatpush3.bf16.msra.mxu0 %v3137_v28  ;;  %3162 = vmatpush3.bf16.msra.mxu1 %v3137_v28  ;;  %v1924_v28 = vld [vmem:[%s4104_s2 + $0x430] sm:$0xff] }
  0xd1   : >> { %3163 = vmatprep.subr.bf16.mxu0 %v3375_v3  ;;  %3187 = vmatprep.subr.bf16.mxu1 %v3375_v3  ;;  %v3269_v30 = vpack.c.bf16 %v1925_v29, %v1924_v28 }
  0xd3   : >> { %2628 = vmatmul.mubr.f32.vlgmr.msra.gmra.mrb[0].mxu0 %v961_v5  ;;  %2663 = vmatmul.mubr.f32.vlgmr.msra.gmra.mrb[0].mxu1 %v1123_v31  ;;  %v1910_v5 = vld [vmem:[%s4104_s2 + $0x3c0] sm:$0xff]  ;;  %v1927_v31 = vld [vmem:[%s4104_s2 + $0x448] sm:$0xff] }
  0xd4   : >> { %3165 = vmatpush3.bf16.msra.mxu0 %v3164_v32  ;;  %3189 = vmatpush3.bf16.msra.mxu1 %v3164_v32  ;;  %v3224_v8 = vpack.c.bf16 %v1911_v7, %v1910_v5 }
  0xd5   : >> { %3166 = vmatprep.subr.bf16.mxu0 %v3375_v3  ;;  %3190 = vmatprep.subr.bf16.mxu1 %v3375_v3 }
  0xd6   : >> { %2697 = vmatprep.mubr.msk.f32.mxu0 %vm3376_vm0, %v3377_v6  ;;  %2732 = vmatprep.mubr.msk.f32.mxu1 %vm3376_vm0, %v3377_v6 }
  0xd8   : >> { %3168 = vmatpush3.bf16.msra.mxu0 %v3167_v35  ;;  %3192 = vmatpush3.bf16.msra.mxu1 %v3167_v35  ;;  %v3275_v35 = vpack.c.bf16 %v1929_v34, %v1928_v33 }
  0xd9   : >> { %3169 = vmatprep.subr.bf16.mxu0 %v3375_v3  ;;  %3193 = vmatprep.subr.bf16.mxu1 %v3375_v3 }
  0xdc   : >> { %3171 = vmatpush3.bf16.msra.mxu0 %v3170_v38  ;;  %3195 = vmatpush3.bf16.msra.mxu1 %v3170_v38  ;;  %v3278_v38 = vpack.c.bf16 %v1931_v37, %v1930_v36 }
  0xdd   : >> { %3172 = vmatprep.subr.bf16.mxu0 %v3375_v3  ;;  %3196 = vmatprep.subr.bf16.mxu1 %v3375_v3 }
  0xe0   : >> { %3174 = vmatpush3.bf16.msra.mxu0 %v3173_v41  ;;  %3198 = vmatpush3.bf16.msra.mxu1 %v3173_v41  ;;  %v3281_v41 = vpack.c.bf16 %v1933_v40, %v1932_v39 }
  0xe1   : >> { %3175 = vmatprep.subr.bf16.mxu0 %v3375_v3  ;;  %3199 = vmatprep.subr.bf16.mxu1 %v3375_v3 }
  0xe4   : >> { %3177 = vmatpush3.bf16.msra.mxu0 %v3176_v44  ;;  %3201 = vmatpush3.bf16.msra.mxu1 %v3176_v44 }
  0xe5   : >> { %3178 = vmatprep.subr.bf16.mxu0 %v3375_v3  ;;  %3202 = vmatprep.subr.bf16.mxu1 %v3375_v3 }
  0xe8   : >> { %3180 = vmatpush3.bf16.msra.mxu0 %v3179_v47  ;;  %3204 = vmatpush3.bf16.msra.mxu1 %v3179_v47 }
  0xe9   : >> { %3181 = vmatprep.subr.bf16.mxu0 %v3375_v3  ;;  %3205 = vmatprep.subr.bf16.mxu1 %v3375_v3 }
  0xec   : >> { %3183 = vmatpush3.bf16.msra.mxu0 %v3182_v50  ;;  %3207 = vmatpush3.bf16.msra.mxu1 %v3182_v50 }
  0xed   : >> { %3184 = vmatprep.subr.bf16.mxu0 %v3375_v3  ;;  %3208 = vmatprep.subr.bf16.mxu1 %v3375_v3 }
  0xf0   : >> { %3186 = vmatpush3.bf16.msra.mxu0 %v3185_v53  ;;  %3210 = vmatpush3.bf16.msra.mxu1 %v3185_v53 }
  0xf1   : >> { %3211 = vmatprep.subr.bf16.mxu0 %v3375_v3  ;;  %3235 = vmatprep.subr.bf16.mxu1 %v3375_v3 }
  0xf3   : >> { %2698 = vmatmul.mubr.f32.vlgmr.msra.gmra.mrb[0].mxu0 %v3951_v56  ;;  %2733 = vmatmul.mubr.f32.vlgmr.msra.gmra.mrb[0].mxu1 %v3954_v57 }
  0xf4   : >> { %3213 = vmatpush3.bf16.msra.mxu0 %v3212_v58  ;;  %3237 = vmatpush3.bf16.msra.mxu1 %v3212_v58 }
  0xf5   : >> { %3214 = vmatprep.subr.bf16.mxu0 %v3375_v3  ;;  %3238 = vmatprep.subr.bf16.mxu1 %v3375_v3 }
  0xf6   : >> { %2767 = vmatprep.mubr.msk.f32.mxu0 %vm3376_vm0, %v3377_v6  ;;  %2802 = vmatprep.mubr.msk.f32.mxu1 %vm3376_vm0, %v3377_v6 }
  0xf8   : >> { %3216 = vmatpush3.bf16.msra.mxu0 %v3215_v61  ;;  %3240 = vmatpush3.bf16.msra.mxu1 %v3215_v61 }
  0xf9   : >> { %3217 = vmatprep.subr.bf16.mxu0 %v3375_v3  ;;  %3241 = vmatprep.subr.bf16.mxu1 %v3375_v3 }
  0xfc   : >> { %3219 = vmatpush3.bf16.msra.mxu0 %v3218_v0  ;;  %3243 = vmatpush3.bf16.msra.mxu1 %v3218_v0 }
  0xfd   : >> { %3220 = vmatprep.subr.bf16.mxu0 %v3375_v3  ;;  %3244 = vmatprep.subr.bf16.mxu1 %v3375_v3 }
 0x100   : >> { %3222 = vmatpush3.bf16.msra.mxu0 %v3221_v4  ;;  %3246 = vmatpush3.bf16.msra.mxu1 %v3221_v4 }
 0x101   : >> { %3223 = vmatprep.subr.bf16.mxu0 %v3375_v3  ;;  %3247 = vmatprep.subr.bf16.mxu1 %v3375_v3 }
 0x104   : >> { %3225 = vmatpush3.bf16.msra.mxu0 %v3224_v8  ;;  %3249 = vmatpush3.bf16.msra.mxu1 %v3224_v8 }
 0x105   : >> { %3226 = vmatprep.subr.bf16.mxu0 %v3375_v3  ;;  %3250 = vmatprep.subr.bf16.mxu1 %v3375_v3 }
 0x108   : >> { %3228 = vmatpush3.bf16.msra.mxu0 %v3227_v11  ;;  %3252 = vmatpush3.bf16.msra.mxu1 %v3227_v11 }
 0x109   : >> { %3229 = vmatprep.subr.bf16.mxu0 %v3375_v3  ;;  %3253 = vmatprep.subr.bf16.mxu1 %v3375_v3 }
 0x10c   : >> { %3231 = vmatpush3.bf16.msra.mxu0 %v3230_v14  ;;  %3255 = vmatpush3.bf16.msra.mxu1 %v3230_v14 }
 0x10d   : >> { %3232 = vmatprep.subr.bf16.mxu0 %v3375_v3  ;;  %3256 = vmatprep.subr.bf16.mxu1 %v3375_v3 }
 0x110   : >> { %3234 = vmatpush3.bf16.msra.mxu0 %v3233_v17  ;;  %3258 = vmatpush3.bf16.msra.mxu1 %v3233_v17 }
 0x111   : >> { %3259 = vmatprep.subr.bf16.mxu0 %v3375_v3  ;;  %3283 = vmatprep.subr.bf16.mxu1 %v3375_v3 }
 0x113   : >> { %2768 = vmatmul.mubr.f32.vlgmr.msra.gmra.mrb[0].mxu0 %v3954_v57  ;;  %2803 = vmatmul.mubr.f32.vlgmr.msra.gmra.mrb[0].mxu1 %v1450_v20 }
 0x114   : >> { %3261 = vmatpush3.bf16.msra.mxu0 %v3260_v21  ;;  %3285 = vmatpush3.bf16.msra.mxu1 %v3260_v21 }
 0x115   : >> { %3262 = vmatprep.subr.bf16.mxu0 %v3375_v3  ;;  %3286 = vmatprep.subr.bf16.mxu1 %v3375_v3 }
 0x116   : >> { %2837 = vmatprep.mubr.msk.f32.mxu0 %vm3376_vm0, %v3377_v6  ;;  %2872 = vmatprep.mubr.msk.f32.mxu1 %vm3376_vm0, %v3377_v6  ;;  %v1926_v6 = vld [vmem:[%s4104_s2 + $0x440] sm:$0xff] }
 0x117   : >> { %v3272_v32 = vpack.c.bf16 %v1927_v31, %v1926_v6 }
 0x118   : >> { %3264 = vmatpush3.bf16.msra.mxu0 %v3263_v24  ;;  %3288 = vmatpush3.bf16.msra.mxu1 %v3263_v24 }
 0x119   : >> { %3265 = vmatprep.subr.bf16.mxu0 %v3375_v3  ;;  %3289 = vmatprep.subr.bf16.mxu1 %v3375_v3 }
 0x11c   : >> { %3267 = vmatpush3.bf16.msra.mxu0 %v3266_v27  ;;  %3291 = vmatpush3.bf16.msra.mxu1 %v3266_v27 }
 0x11d   : >> { %3268 = vmatprep.subr.bf16.mxu0 %v3375_v3  ;;  %3292 = vmatprep.subr.bf16.mxu1 %v3375_v3 }
 0x120   : >> { %3270 = vmatpush3.bf16.msra.mxu0 %v3269_v30  ;;  %3294 = vmatpush3.bf16.msra.mxu1 %v3269_v30 }
 0x121   : >> { %3271 = vmatprep.subr.bf16.mxu0 %v3375_v3  ;;  %3295 = vmatprep.subr.bf16.mxu1 %v3375_v3 }
 0x124   : >> { %3273 = vmatpush3.bf16.msra.mxu0 %v3272_v32  ;;  %3297 = vmatpush3.bf16.msra.mxu1 %v3272_v32 }
 0x125   : >> { %3274 = vmatprep.subr.bf16.mxu0 %v3375_v3  ;;  %3298 = vmatprep.subr.bf16.mxu1 %v3375_v3 }
 0x128   : >> { %3276 = vmatpush3.bf16.msra.mxu0 %v3275_v35  ;;  %3300 = vmatpush3.bf16.msra.mxu1 %v3275_v35 }
 0x129   : >> { %3277 = vmatprep.subr.bf16.mxu0 %v3375_v3  ;;  %3301 = vmatprep.subr.bf16.mxu1 %v3375_v3 }
 0x12c   : >> { %3279 = vmatpush3.bf16.msra.mxu0 %v3278_v38  ;;  %3303 = vmatpush3.bf16.msra.mxu1 %v3278_v38 }
 0x12d   : >> { %3280 = vmatprep.subr.bf16.mxu0 %v3375_v3  ;;  %3304 = vmatprep.subr.bf16.mxu1 %v3375_v3 }
 0x130   : >> { %3282 = vmatpush3.bf16.msra.mxu0 %v3281_v41  ;;  %3306 = vmatpush3.bf16.msra.mxu1 %v3281_v41 }
 0x133   : >> { %2838 = vmatmul.mubr.f32.vlgmr.msra.gmra.mrb[0].mxu0 %v1450_v20  ;;  %2873 = vmatmul.mubr.f32.vlgmr.msra.gmra.mrb[0].mxu1 %v1612_v42 }
 0x206   : >> { %v1606_v43 = vpop.f32.mrb[0].mxu0  ;;  %v1680_v44 = vpop.f32.mrb[0].mxu1 }
 0x207   : >> { %v1685_v46 = vmax.f32 %v1606_v43, %v1680_v44  ;;  %v2839_v47 = vpop.f32.mrb[1].mxu0  ;;  %v2874_v48 = vpop.f32.mrb[1].mxu1  ;;  %222 = sbr.rel (!%p220_p4) target bundleno = 17 (0x11), region = 91 }
 0x209   : >> { %v1693_v49 = vadd.f32 %v1934_v45, %v1685_v46 }
 0x20b   : >> { %v1694_v50 = vmax.f32 %v1693_v49, 0.0 }
 0x20d   : >> { %1697 = vst [vmem:[%s1696_s26] sm:$0x3] %v1694_v50 }
 0x20e PF: > { %s14_s15 = sadd.s32 1, %s3369_s15  }
 0x20f   : > { %p11_p5 = scmp.ge.s32.totalorder %s14_s15, 4  }
 0x211   :  { %13 = sbr.rel (!%p11_p5) target bundleno = 1 (0x1), region = 102 }

// kernel: _crnn_forward.12
= control target key start
LH: loop header
LB: loop body
LE: loop exit
PB: predicated region body
PF: predicated region fallthrough
CT: control target
= control target key end

     0   :  { %v714_v3 = vmov 0.0|0.0   ;;  %vm715_vm0 = vmmov 0   ;;  %v716_v4 = vmov 0.0   ;;  %vm49_vm1 = vcmask 523264   ;;  %s717_s16 = smov 64   ;;  %s879_s1 = inlined_call_operand.vmem [shape: f32[64,256], index: 1, kind: input, shape index: {}]   ;;  %s880_s2 = inlined_call_operand.vmem [shape: f32[32,128], index: 2, kind: input, shape index: {}]   ;;  %s881_s3 = inlined_call_operand.vmem [shape: f32[32,128], index: 3, kind: input, shape index: {}]   ;;  %s882_s0 = inlined_call_operand.vmem [shape: f32[4,64], index: 0, kind: input, shape index: {}]   ;;  %s883_s4 = inlined_call_operand.vmem [shape: f32[1,256], index: 4, kind: input, shape index: {}]   ;;  %s884_s5 = inlined_call_operand.vmem [shape: f32[2,2,64], index: 5, kind: output, shape index: {}]  }
   0x1   :  { %v22_v0 = vld [vmem:[%s879_s1 + $0x8] sm:$0xff]  ;;  %v24_v1 = vld [vmem:[%s879_s1 + $0x18] sm:$0xff]  ;;  %v21_v2 = vld [vmem:[%s879_s1] sm:$0xff]  ;;  %653 = vmatprep.subr.bf16.mxu1 %v714_v3  ;;  %601 = vmatprep.mubr.msk.f32.mxu1 %vm715_vm0, %v716_v4  ;;  %v39_v39 = vlaneseq  ;;  %vm333_vm2 = vcmask 254976   ;;  %vm132_vm3 = vcmask 261120   ;;  %vm340_vm4 = vcmask 519426  }
   0x2   :  { %v637_v5 = vpack.c.bf16 %v24_v1, %v22_v0  ;;  %v23_v6 = vld [vmem:[%s879_s1 + $0x10] sm:$0xff]  ;;  %v124_v7 = vld [vmem:[%s880_s2] sm:$0xff]  ;;  %v125_v8 = vld [vmem:[%s880_s2 + $0x8] sm:$0xff]  ;;  %117 = vmatprep.mubr.f32.mxu0 %v716_v4  ;;  %vm552_vm5 = vcmask 257026   ;;  %vm558_vm6 = vcmask 517376  }
   0x3   :  { %v639_v9 = vpack.c.bf16 %v23_v6, %v21_v2  ;;  %v654_v10 = vpack.c.bf16 %v125_v8, %v124_v7  ;;  %v26_v11 = vld [vmem:[%s879_s1 + $0x28] sm:$0xff]  ;;  %v28_v12 = vld [vmem:[%s879_s1 + $0x38] sm:$0xff]  ;;  %v25_v13 = vld [vmem:[%s879_s1 + $0x20] sm:$0xff]  ;;  %v40_v40 = vshrl.u32 %v39_v39, 7 }
   0x4   :  { %638 = vmatprep.subr.bf16.mxu0 %v637_v5  ;;  %v641_v14 = vpack.c.bf16 %v28_v12, %v26_v11  ;;  %v27_v15 = vld [vmem:[%s879_s1 + $0x30] sm:$0xff]  ;;  %v127_v17 = vld [vmem:[%s880_s2 + $0x18] sm:$0xff]  ;;  %v30_v20 = vld [vmem:[%s879_s1 + $0x48] sm:$0xff] }
   0x5   :  { %v126_v16 = vld [vmem:[%s880_s2 + $0x10] sm:$0xff]  ;;  %640 = vmatpush1.bf16.msra.mxu0 %v639_v9  ;;  %655 = vmatpush3.bf16.msra.mxu1 %v654_v10  ;;  %v643_v18 = vpack.c.bf16 %v27_v15, %v25_v13  ;;  %v32_v21 = vld [vmem:[%s879_s1 + $0x58] sm:$0xff]  ;;  %v29_v22 = vld [vmem:[%s879_s1 + $0x40] sm:$0xff]  ;;  %v41_v43 = vsub.s32 0, %v40_v40  ;;  %v45_v45 = vsub.s32 1, %v40_v40 }
   0x6   :  { %v657_v19 = vpack.c.bf16 %v127_v17, %v126_v16  ;;  %642 = vmatprep.subr.bf16.mxu0 %v641_v14  ;;  %656 = vmatprep.subr.bf16.mxu1 %v714_v3  ;;  %v645_v23 = vpack.c.bf16 %v32_v21, %v30_v20  ;;  %v31_v24 = vld [vmem:[%s879_s1 + $0x50] sm:$0xff]  ;;  %v128_v25 = vld [vmem:[%s881_s3] sm:$0xff]  ;;  %v129_v26 = vld [vmem:[%s881_s3 + $0x8] sm:$0xff] }
   0x7   :  { %v34_v27 = vld [vmem:[%s879_s1 + $0x68] sm:$0xff]  ;;  %v36_v28 = vld [vmem:[%s879_s1 + $0x78] sm:$0xff]  ;;  %v647_v29 = vpack.c.bf16 %v31_v24, %v29_v22  ;;  %v660_v30 = vpack.c.bf16 %v129_v26, %v128_v25  ;;  %v33_v31 = vld [vmem:[%s879_s1 + $0x60] sm:$0xff] }
   0x8   :  { %v649_v32 = vpack.c.bf16 %v36_v28, %v34_v27  ;;  %v35_v33 = vld [vmem:[%s879_s1 + $0x70] sm:$0xff]  ;;  %v131_v35 = vld [vmem:[%s881_s3 + $0x18] sm:$0xff]  ;;  %v20_v38 = vld [vmem:[%s882_s0] sm:$0xf] }
   0x9   :  { %644 = vmatpush1.bf16.msra.mxu0 %v643_v18  ;;  %658 = vmatpush3.bf16.msra.mxu1 %v657_v19  ;;  %v130_v34 = vld [vmem:[%s881_s3 + $0x10] sm:$0xff]  ;;  %v651_v36 = vpack.c.bf16 %v35_v33, %v33_v31  ;;  %v37_v44 = vld [vmem:[%s883_s4] sm:$0x3]  ;;  %s718_s4 = smov 32  }
   0xa   :  { %646 = vmatprep.subr.bf16.mxu0 %v645_v23  ;;  %659 = vmatprep.subr.bf16.mxu1 %v714_v3  ;;  %v663_v37 = vpack.c.bf16 %v131_v35, %v130_v34  ;;  %v42_v46 = vrot.slane %v37_v44, %v41_v43  ;;  %v46_v47 = vrot.slane %v37_v44, %v45_v45 }
   0xc   :  { %602 = vmatmul.mubr.f32.vlgmr.msra.gmra.mrb[0].mxu1 %v716_v4 }
   0xd   :  { %648 = vmatpush1.bf16.msra.mxu0 %v647_v29  ;;  %661 = vmatpush3.bf16.msra.mxu1 %v660_v30 }
   0xe   :  { %650 = vmatprep.subr.bf16.mxu0 %v649_v32  ;;  %662 = vmatprep.subr.bf16.mxu1 %v714_v3 }
   0xf   :  { %612 = vmatprep.mubr.msk.f32.mxu1 %vm715_vm0, %v716_v4 }
  0x11   :  { %652 = vmatpush1.bf16.msra.mxu0 %v651_v36  ;;  %664 = vmatpush3.bf16.msra.mxu1 %v663_v37 }
  0x12   :  { %665 = vmatprep.subr.bf16.mxu0 %v714_v3  ;;  %671 = vmatprep.subr.bf16.mxu1 %v714_v3 }
  0x14   :  { %564 = vmatmul.mubr.msk.f32.vlgmr.msra.gmra.mrb[0].mxu0 %vm49_vm1, %v20_v38  ;;  %613 = vmatmul.mubr.f32.vlgmr.msra.gmra.mrb[2].mxu1 %v716_v4 }
  0x15   :  { %667 = vmatpush3.bf16.msra.mxu0 %v654_v10  ;;  %623 = vmatprep.mubr.msk.f32.mxu0 %vm715_vm0, %v716_v4 }
  0x16   :  { %668 = vmatprep.subr.bf16.mxu0 %v714_v3  ;;  %673 = vmatpush3.bf16.msra.mxu1 %v660_v30 }
  0x17   :  { %674 = vmatprep.subr.bf16.mxu1 %v714_v3  ;;  %634 = vmatprep.mubr.msk.f32.mxu1 %vm715_vm0, %v716_v4 }
  0x19   :  { %670 = vmatpush3.bf16.msra.mxu0 %v657_v19 }
  0x1a   :  { %676 = vmatpush3.bf16.msra.mxu1 %v663_v37 }
  0xdf   :  { %v202_v41 = vpop.f32.mrb[0].mxu1 }
  0xe0   :  { %v603_v42 = vpop.f32.mrb[1].mxu1 }
  0xe7   :  { %v119_v48 = vpop.f32.mrb[0].mxu0  ;;  %v273_v49 = vpop.f32.mrb[2].mxu1 }
  0xe8   :  { %v846_v50 = vadd.f32 %v119_v48, %v42_v46  ;;  %v121_v51 = vpop.f32.mrb[1].mxu0  ;;  %v278_v52 = vrot.slane %v273_v49, 6  ;;  %v614_v53 = vpop.f32.mrb[3].mxu1 }
  0xe9   :  { %v122_v54 = vadd.f32 %v121_v51, %v46_v47 }
  0xea   :  { %v206_v55 = vadd.f32 %v202_v41, %v846_v50 }
  0xeb   :  { %v280_v56 = vadd.f32 %v278_v52, %v122_v54 }
  0xec   :  { %682 = vtanh.f32 %v206_v55  ;;  %v565_v59 = vmul.f32 -1.442695, %v206_v55 }
  0xed   :  { %684 = vtanh.f32 %v280_v56  ;;  %v566_v60 = vmul.f32 -1.442695, %v280_v56 }
  0xee   :  { %686 = vpow2.f32 %v565_v59 }
  0xef   :  { %688 = vpow2.f32 %v566_v60 }
  0xf6   :  { %v683_v57 = vpop.eup %682 }
  0xf7   :  { %290 = vrot.lane.b32.xlu0 %v683_v57, %s717_s16  ;;  %v685_v58 = vpop.eup %684 }
  0xf8   :  { %v687_v61 = vpop.eup %686 }
  0xf9   :  { %v284_v62 = vadd.f32 1.0, %v687_v61  ;;  %v689_v63 = vpop.eup %688 }
  0xfa   :  { %v308_v0 = vadd.f32 1.0, %v689_v63 }
  0xfb   :  { %314 = vrot.lane.b32.xlu0 %v685_v58, %s717_s16  ;;  %690 = vrcp.f32 %v284_v62 }
  0xfc   :  { %692 = vrcp.f32 %v308_v0 }
 0x105   :  { %v691_v1 = vpop.eup %690 }
 0x106   :  { %v693_v4 = vpop.eup %692  ;;  %v288_v7 = vmul.f32 0.0, %v691_v1 }
 0x107   :  { %v312_v10 = vmul.f32 0.0, %v693_v4 }
 0x169   :  { %v291_v2 = vpop.permute.xlu0 %290 }
 0x16a   :  { %v293_v3 = vmul.f32 %v691_v1, %v291_v2 }
 0x16c   :  { %295 = vrot.lane.b32.xlu1 %v293_v3, %s718_s4 }
 0x16d   :  { %v315_v5 = vpop.permute.xlu0 %314 }
 0x16e   :  { %v317_v6 = vmul.f32 %v693_v4, %v315_v5 }
 0x170   :  { %319 = vrot.lane.b32.xlu1 %v317_v6, %s718_s4 }
 0x1de   :  { %v296_v8 = vpop.permute.xlu1 %295 }
 0x1df   :  { %v298_v9 = vadd.f32 %v296_v8, %v288_v7 }
 0x1e1   :  { %694 = vtanh.f32 %v298_v9  ;;  %v502_v43 = vrot.slane %v298_v9, 6 }
 0x1e2   :  { %v320_v11 = vpop.permute.xlu1 %319 }
 0x1e3   :  { %v322_v12 = vadd.f32 %v320_v11, %v312_v10 }
 0x1e5   :  { %696 = vtanh.f32 %v322_v12  ;;  %v529_v46 = vrot.slane %v322_v12, 2 }
 0x1eb   :  { %v695_v13 = vpop.eup %694 }
 0x1ec   :  { %301 = vrot.lane.b32.xlu0 %v695_v13, %s717_s16 }
 0x1ef   :  { %v697_v14 = vpop.eup %696 }
 0x1f0   :  { %325 = vrot.lane.b32.xlu1 %v697_v14, %s717_s16 }
 0x25e   :  { %v302_v15 = vpop.permute.xlu0 %301 }
 0x25f   :  { %v304_v16 = vmul.f32 %v691_v1, %v302_v15 }
 0x261   :  { %330 = vrot.lane.b32.xlu0 %v304_v16, %s718_s4 }
 0x262   :  { %v326_v17 = vpop.permute.xlu1 %325 }
 0x263   :  { %v328_v18 = vmul.f32 %v693_v4, %v326_v17 }
 0x265   :  { %v418_v19 = vrot.slane %v328_v18, 2 }
 0x267   :  { %419 = vrot.lane.b32.xlu1 %v418_v19, %s718_s4 }
 0x2d3   :  { %v331_v20 = vpop.permute.xlu0 %330 }
 0x2d4   :  { %334 = vst.msk [vmem:[%s884_s5] sm:$0x3] %vm333_vm2, %v331_v20  ;;  %624 = vmatmul.mubr.msk.f32.vlgmr.msra.gmra.mrb[2].mxu0 %vm132_vm3, %v331_v20 }
 0x2d9   :  { %v420_v21 = vpop.permute.xlu1 %419 }
 0x2da   :  { %635 = vmatmul.mubr.msk.f32.vlgmr.msra.gmra.mrb[4].mxu1 %vm132_vm3, %v420_v21 }
 0x3a7   :  { %v410_v22 = vpop.f32.mrb[2].mxu0 }
 0x3a8   :  { %v415_v23 = vrot.slane %v410_v22, 6  ;;  %v625_v24 = vpop.f32.mrb[3].mxu0 }
 0x3aa   :  { %v417_v25 = vadd.f32 %v415_v23, %v846_v50 }
 0x3ac   :  { %698 = vtanh.f32 %v417_v25  ;;  %v570_v31 = vmul.f32 -1.442695, %v417_v25 }
 0x3ad   :  { %v489_v26 = vpop.f32.mrb[4].mxu1 }
 0x3ae   :  { %v493_v27 = vadd.f32 %v489_v26, %v122_v54  ;;  %v636_v28 = vpop.f32.mrb[5].mxu1 }
 0x3b0   :  { %700 = vtanh.f32 %v493_v27  ;;  %v571_v32 = vmul.f32 -1.442695, %v493_v27 }
 0x3b1   :  { %702 = vpow2.f32 %v570_v31 }
 0x3b2   :  { %704 = vpow2.f32 %v571_v32 }
 0x3b6   :  { %v699_v29 = vpop.eup %698 }
 0x3b7   :  { %506 = vrot.lane.b32.xlu0 %v699_v29, %s717_s16 }
 0x3ba   :  { %v701_v30 = vpop.eup %700 }
 0x3bb   :  { %533 = vrot.lane.b32.xlu1 %v701_v30, %s717_s16  ;;  %v703_v33 = vpop.eup %702 }
 0x3bc   :  { %v497_v34 = vadd.f32 1.0, %v703_v33  ;;  %v705_v35 = vpop.eup %704 }
 0x3bd   :  { %v524_v36 = vadd.f32 1.0, %v705_v35 }
 0x3be   :  { %706 = vrcp.f32 %v497_v34 }
 0x3bf   :  { %708 = vrcp.f32 %v524_v36 }
 0x3c8   :  { %v707_v37 = vpop.eup %706 }
 0x3c9   :  { %v709_v40 = vpop.eup %708  ;;  %v504_v44 = vmul.f32 %v707_v37, %v502_v43 }
 0x3ca   :  { %v531_v48 = vmul.f32 %v709_v40, %v529_v46 }
 0x429   :  { %v507_v38 = vpop.permute.xlu0 %506 }
 0x42a   :  { %v509_v39 = vmul.f32 %v707_v37, %v507_v38 }
 0x42c   :  { %511 = vrot.lane.b32.xlu0 %v509_v39, %s718_s4 }
 0x42d   :  { %v534_v41 = vpop.permute.xlu1 %533 }
 0x42e   :  { %v536_v42 = vmul.f32 %v709_v40, %v534_v41 }
 0x430   :  { %538 = vrot.lane.b32.xlu1 %v536_v42, %s718_s4 }
 0x49e   :  { %v512_v45 = vpop.permute.xlu0 %511 }
 0x49f   :  { %v514_v47 = vadd.f32 %v512_v45, %v504_v44 }
 0x4a1   :  { %710 = vtanh.f32 %v514_v47 }
 0x4a2   :  { %v539_v49 = vpop.permute.xlu1 %538 }
 0x4a3   :  { %v541_v50 = vadd.f32 %v539_v49, %v531_v48 }
 0x4a5   :  { %712 = vtanh.f32 %v541_v50 }
 0x4ab   :  { %v711_v51 = vpop.eup %710 }
 0x4ac   :  { %517 = vrot.lane.b32.xlu0 %v711_v51, %s717_s16 }
 0x4af   :  { %v713_v52 = vpop.eup %712 }
 0x4b0   :  { %544 = vrot.lane.b32.xlu1 %v713_v52, %s717_s16  ;;  %336 = vrot.lane.b32.xlu0 %v328_v18, %s717_s16 }
 0x51e   :  { %v518_v53 = vpop.permute.xlu0 %517 }
 0x51f   :  { %v520_v54 = vmul.f32 %v707_v37, %v518_v53 }
 0x521   :  { %549 = vrot.lane.b32.xlu1 %v520_v54, %s718_s4 }
 0x522   :  { %v545_v55 = vpop.permute.xlu1 %544  ;;  %v337_v56 = vpop.permute.xlu0 %336 }
 0x523   :  { %v547_v57 = vmul.f32 %v709_v40, %v545_v55  ;;  %567 = vst.msk [vmem:[%s884_s5] sm:$0xc] %vm340_vm4, %v337_v56 }
 0x525   :  { %555 = vrot.lane.b32.xlu0 %v547_v57, %s717_s16 }
 0x593   :  { %v550_v58 = vpop.permute.xlu1 %549 }
 0x594   :  { %572 = vst.msk [vmem:[%s884_s5] sm:$0xc] %vm552_vm5, %v550_v58 }
 0x597   :  { %v556_v59 = vpop.permute.xlu0 %555 }
 0x598   :  { %559 = vst.msk [vmem:[%s884_s5] sm:$0x3] %vm558_vm6, %v556_v59 }

// kernel: _crnn_forward.13
= control target key start
LH: loop header
LB: loop body
LE: loop exit
PB: predicated region body
PF: predicated region fallthrough
CT: control target
= control target key end

     0   :  { %vm22_vm0 = vcmask 519168   ;;  %s333_s0 = inlined_call_operand.vmem [shape: f32[4,64], index: 0, kind: input, shape index: {}]   ;;  %s334_s1 = inlined_call_operand.vmem [shape: f32[1,64], index: 1, kind: input, shape index: {}]   ;;  %s335_s2 = inlined_call_operand.vmem [shape: f32[1,64], index: 2, kind: input, shape index: {}]   ;;  %s336_s3 = inlined_call_operand.vmem [shape: f32[64,10], index: 3, kind: input, shape index: {}]   ;;  %s337_s4 = inlined_call_operand.vmem [shape: f32[1,10], index: 4, kind: input, shape index: {}]   ;;  %s338_s5 = inlined_call_operand.hbm [shape: f32[4,10], index: 5, kind: output, shape index: {}]  }
   0x1   :  { %v21_v0 = vld [vmem:[%s333_s0] sm:$0xf] }
   0x2   :  { %10 = vsyncpa [#allocation3], 0  ;;  %v23_v1 = vsel %vm22_vm0, %v21_v0, 0.0  ;;  %v53_v7 = vld [vmem:[%s336_s3] sm:$0xff]  ;;  %v54_v8 = vld [vmem:[%s336_s3 + $0x8] sm:$0xff]  ;;  %v248_v12 = vmov 0.0|0.0  }
   0x3   :  { %24 = vadd.xlane.f32.xlu0 %v23_v1  ;;  %v203_v9 = vpack.c.bf16 %v54_v8, %v53_v7  ;;  %v55_v10 = vld [vmem:[%s336_s3 + $0x10] sm:$0xff]  ;;  %v56_v11 = vld [vmem:[%s336_s3 + $0x18] sm:$0xff]  ;;  %202 = vmatprep.subr.bf16.mxu0 %v248_v12  ;;  %vm249_vm1 = vmmov 0   ;;  %v250_v13 = vmov 0.0   ;;  %v57_v15 = vld [vmem:[%s336_s3 + $0x20] sm:$0xff]  ;;  %vm68_vm2 = vcmask 523264  }
   0x4   :  { %199 = vmatprep.mubr.msk.f32.mxu0 %vm249_vm1, %v250_v13  ;;  %v206_v14 = vpack.c.bf16 %v56_v11, %v55_v10  ;;  %v58_v16 = vld [vmem:[%s336_s3 + $0x28] sm:$0xff]  ;;  %v59_v18 = vld [vmem:[%s336_s3 + $0x30] sm:$0xff]  ;;  %v60_v19 = vld [vmem:[%s336_s3 + $0x38] sm:$0xff]  ;;  %vm142_vm3 = vcmask 76800  }
   0x5   :  { %204 = vmatpush3.bf16.msra.mxu0 %v203_v9  ;;  %v209_v17 = vpack.c.bf16 %v58_v16, %v57_v15  ;;  %v212_v20 = vpack.c.bf16 %v60_v19, %v59_v18  ;;  %v170_v25 = vld [vmem:[%s334_s1] ss:$0 sm:$0xff]  ;;  %s251_s1 = smov [#allocation2]  }
   0x6   :  { %205 = vmatprep.subr.bf16.mxu0 %v248_v12  ;;  %v171_v27 = vld [vmem:[%s335_s2] ss:$0 sm:$0xff]  ;;  %s162_s2 = sshll.u32 %s251_s1, 4  ;;  %s163_s2 = int_to_ptr.vmem [resolvable:$true] %s162_s2 }
   0x7   :  { %v172_v30 = vld [vmem:[%s337_s4] ss:$0 sm:$0xff]  ;;  %s224_s4 = scalar_lea.vmem %s163_s2, 64  ;;  %p229_p1 = scmp.lt.s32.totalorder %s163_s2, %s163_s2 }
   0x8   :  { %p225_p0 = scmp.ne.s32.totalorder %s163_s2, %s224_s4  ;;  %p230_p2 = scmp.lt.s32.totalorder %s224_s4, %s224_s4 }
   0x9   :  { %207 = vmatpush3.bf16.msra.mxu0 %v206_v14 }
   0xa   :  { %208 = vmatprep.subr.bf16.mxu0 %v248_v12  ;;  %p231_p3 = por %p230_p2, %p229_p1 }
   0xc   :  { %p232_p4 = pnand %p231_p3, %p225_p0 }
   0xd   :  { %210 = vmatpush3.bf16.msra.mxu0 %v209_v17 }
   0xe   :  { %211 = vmatprep.subr.bf16.mxu0 %v248_v12 }
  0x11   :  { %213 = vmatpush3.bf16.msra.mxu0 %v212_v20 }
  0x90   :  { %v25_v2 = vpop.xlane.xlu0 %24 }
  0x91   :  { %v27_v3 = vmul.f32 0.015625, %v25_v2 }
  0x93   :  { %v28_v4 = vsub.f32 %v21_v0, %v27_v3 }
  0x95   :  { %v29_v5 = vmul.f32 %v28_v4, %v28_v4 }
  0x97   :  { %v30_v6 = vsel %vm22_vm0, %v29_v5, 0.0 }
  0x98   :  { %31 = vadd.xlane.f32.xlu0 %v30_v6 }
 0x125   :  { %v32_v21 = vpop.xlane.xlu0 %31 }
 0x126   :  { %v33_v22 = vmul.f32 0.015625, %v32_v21 }
 0x128   :  { %v34_v23 = vadd.f32 1e-05, %v33_v22 }
 0x12a   :  { %218 = vrsqrt.f32 %v34_v23 }
 0x134   :  { %v219_v24 = vpop.eup %218 }
 0x135   :  { %v36_v26 = vmul.f32 %v219_v24, %v28_v4 }
 0x137   :  { %v44_v28 = vmul.f32 %v170_v25, %v36_v26 }
 0x139   :  { %v52_v29 = vadd.f32 %v171_v27, %v44_v28 }
 0x13b   :  { %200 = vmatmul.mubr.msk.f32.vlgmr.msra.gmra.mrb[0].mxu0 %vm68_vm2, %v52_v29 }
 0x20e   :  { %v138_v31 = vpop.f32.mrb[0].mxu0 }
 0x20f   :  { %v139_v32 = vadd.f32 %v172_v30, %v138_v31  ;;  %v201_v33 = vpop.f32.mrb[1].mxu0 }
 0x211   :  { %v143_v34 = vsel %vm142_vm3, %v139_v32, -inf }
 0x212   :  { %144 = vmax.xlane.f32.xlu1 %v143_v34 }
 0x29f   :  { %v145_v35 = vpop.xlane.xlu1 %144 }
 0x2a0   :  { %v146_v36 = vsub.f32 %v139_v32, %v145_v35 }
 0x2a2   :  { %v147_v37 = vmul.f32 1.442695, %v146_v36 }
 0x2a4   :  { %220 = vpow2.f32 %v147_v37 }
 0x2ae   :  { %v221_v38 = vpop.eup %220 }
 0x2af   :  { %v149_v39 = vsel %vm142_vm3, %v221_v38, 0.0 }
 0x2b0   :  { %150 = vadd.xlane.f32.xlu1 %v149_v39 }
 0x33d   :  { %v151_v40 = vpop.xlane.xlu1 %150 }
 0x33e   :  { %222 = vlog2.f32 %v151_v40 }
 0x348   :  { %v223_v41 = vpop.eup %222 }
 0x349   :  { %v153_v42 = vmul.f32 0.6931472, %v223_v41 }
 0x34b   :  { %v154_v43 = vsub.f32 %v146_v36, %v153_v42 }
 0x34d   :  { %155 = vst.msk [vmem:[#allocation2] sm:$0xf] %vm142_vm3, %v154_v43 }
 0x34e   :  { %235 = shalt.err (!%p232_p4)
}
 0x34f   :  { %s236_s17 = scalar_lea.hbm %s338_s5, 64 }
 0x350   :  { %p237_p5 = scmp.ne.s32.totalorder %s338_s5, %s236_s17  ;;  %p240_p6 = scmp.lt.u32.totalorder %s236_s17, %s338_s5 }
 0x352   :  { %p242_p7 = pnand %p240_p6, %p237_p5 }
 0x354   :  { %245 = shalt.err (!%p242_p7)
}
 0x355   :  { %165 = dma.vmem_to_hbm [thread:$0]  %s163_s2, 64, %s338_s5, [#allocation3]  }
 0x356   :  { %246 = dma.done.wait [#allocation3], 64  }
 0x357   :  { %247 = vsyncadd [#allocation3], 4294967232 }
 0x358   :  { %169 = vsyncpa [#allocation3], 1 }

// kernel: _crnn_forward.11
= control target key start
LH: loop header
LB: loop body
LE: loop exit
PB: predicated region body
PF: predicated region fallthrough
CT: control target
= control target key end

     0   :  { %vm1018_vm0 = vmmov 0   ;;  %s1021_s15 = smov 32   ;;  %vm519_vm1 = vcmask 254976   ;;  %vm318_vm2 = vcmask 261120   ;;  %vm526_vm3 = vcmask 519426   ;;  %s1546_s1 = inlined_call_operand.vmem [shape: f32[512,256], index: 1, kind: input, shape index: {}]   ;;  %s1547_s0 = inlined_call_operand.vmem [shape: f32[4,512], index: 0, kind: input, shape index: {}]   ;;  %s1548_s2 = inlined_call_operand.vmem [shape: f32[32,128], index: 2, kind: input, shape index: {}]   ;;  %s1549_s3 = inlined_call_operand.vmem [shape: f32[32,128], index: 3, kind: input, shape index: {}]   ;;  %s1550_s4 = inlined_call_operand.vmem [shape: f32[1,256], index: 4, kind: input, shape index: {}]   ;;  %s1551_s5 = inlined_call_operand.vmem [shape: f32[2,2,64], index: 5, kind: output, shape index: {}]  }
   0x1   :  { %v23_v0 = vld [vmem:[%s1546_s1 + $0x8] sm:$0xff]  ;;  %v25_v1 = vld [vmem:[%s1546_s1 + $0x18] sm:$0xff]  ;;  %v22_v5 = vld [vmem:[%s1546_s1] sm:$0xff]  ;;  %vm738_vm4 = vcmask 257026   ;;  %vm744_vm5 = vcmask 517376  }
   0x2   :  { %v87_v2 = vld [vmem:[%s1546_s1 + $0x208] sm:$0xff]  ;;  %v822_v3 = vpack.c.bf16 %v25_v1, %v23_v0  ;;  %v89_v4 = vld [vmem:[%s1546_s1 + $0x218] sm:$0xff]  ;;  %v24_v6 = vld [vmem:[%s1546_s1 + $0x10] sm:$0xff] }
   0x3   :  { %v886_v7 = vpack.c.bf16 %v89_v4, %v87_v2  ;;  %v824_v8 = vpack.c.bf16 %v24_v6, %v22_v5  ;;  %v86_v9 = vld [vmem:[%s1546_s1 + $0x200] sm:$0xff]  ;;  %v88_v10 = vld [vmem:[%s1546_s1 + $0x210] sm:$0xff]  ;;  %v27_v11 = vld [vmem:[%s1546_s1 + $0x28] sm:$0xff] }
   0x4   :  { %823 = vmatprep.subr.bf16.mxu1 %v822_v3  ;;  %v888_v12 = vpack.c.bf16 %v88_v10, %v86_v9  ;;  %v29_v13 = vld [vmem:[%s1546_s1 + $0x38] sm:$0xff]  ;;  %v91_v14 = vld [vmem:[%s1546_s1 + $0x228] sm:$0xff]  ;;  %v26_v18 = vld [vmem:[%s1546_s1 + $0x20] sm:$0xff] }
   0x5   :  { %v93_v15 = vld [vmem:[%s1546_s1 + $0x238] sm:$0xff]  ;;  %887 = vmatprep.subr.bf16.mxu0 %v886_v7  ;;  %825 = vmatpush1.bf16.msra.mxu1 %v824_v8  ;;  %v826_v16 = vpack.c.bf16 %v29_v13, %v27_v11  ;;  %v28_v19 = vld [vmem:[%s1546_s1 + $0x30] sm:$0xff]  ;;  %v90_v20 = vld [vmem:[%s1546_s1 + $0x220] sm:$0xff] }
   0x6   :  { %v890_v17 = vpack.c.bf16 %v93_v15, %v91_v14  ;;  %889 = vmatpush1.bf16.msra.mxu0 %v888_v12  ;;  %v828_v21 = vpack.c.bf16 %v28_v19, %v26_v18  ;;  %v92_v22 = vld [vmem:[%s1546_s1 + $0x230] sm:$0xff]  ;;  %v31_v23 = vld [vmem:[%s1546_s1 + $0x48] sm:$0xff]  ;;  %v33_v24 = vld [vmem:[%s1546_s1 + $0x58] sm:$0xff] }
   0x7   :  { %827 = vmatprep.subr.bf16.mxu1 %v826_v16  ;;  %v892_v25 = vpack.c.bf16 %v92_v22, %v90_v20  ;;  %v830_v26 = vpack.c.bf16 %v33_v24, %v31_v23  ;;  %v95_v27 = vld [vmem:[%s1546_s1 + $0x248] sm:$0xff]  ;;  %v97_v28 = vld [vmem:[%s1546_s1 + $0x258] sm:$0xff]  ;;  %v30_v29 = vld [vmem:[%s1546_s1 + $0x40] sm:$0xff] }
   0x8   :  { %891 = vmatprep.subr.bf16.mxu0 %v890_v17  ;;  %v894_v30 = vpack.c.bf16 %v97_v28, %v95_v27  ;;  %v32_v31 = vld [vmem:[%s1546_s1 + $0x50] sm:$0xff]  ;;  %v94_v32 = vld [vmem:[%s1546_s1 + $0x240] sm:$0xff]  ;;  %v35_v35 = vld [vmem:[%s1546_s1 + $0x68] sm:$0xff] }
   0x9   :  { %v96_v33 = vld [vmem:[%s1546_s1 + $0x250] sm:$0xff]  ;;  %829 = vmatpush1.bf16.msra.mxu1 %v828_v21  ;;  %v832_v34 = vpack.c.bf16 %v32_v31, %v30_v29  ;;  %v37_v36 = vld [vmem:[%s1546_s1 + $0x78] sm:$0xff]  ;;  %v99_v37 = vld [vmem:[%s1546_s1 + $0x268] sm:$0xff] }
   0xa   :  { %893 = vmatpush1.bf16.msra.mxu0 %v892_v25  ;;  %831 = vmatprep.subr.bf16.mxu1 %v830_v26  ;;  %v896_v38 = vpack.c.bf16 %v96_v33, %v94_v32  ;;  %v834_v39 = vpack.c.bf16 %v37_v36, %v35_v35  ;;  %v101_v40 = vld [vmem:[%s1546_s1 + $0x278] sm:$0xff]  ;;  %v34_v41 = vld [vmem:[%s1546_s1 + $0x60] sm:$0xff]  ;;  %v36_v42 = vld [vmem:[%s1546_s1 + $0x70] sm:$0xff] }
   0xb   :  { %895 = vmatprep.subr.bf16.mxu0 %v894_v30  ;;  %v898_v43 = vpack.c.bf16 %v101_v40, %v99_v37  ;;  %v98_v44 = vld [vmem:[%s1546_s1 + $0x260] sm:$0xff]  ;;  %v100_v45 = vld [vmem:[%s1546_s1 + $0x270] sm:$0xff]  ;;  %v39_v46 = vld [vmem:[%s1546_s1 + $0x88] sm:$0xff]  ;;  %v836_v50 = vpack.c.bf16 %v36_v42, %v34_v41 }
   0xc   :  { %v41_v47 = vld [vmem:[%s1546_s1 + $0x98] sm:$0xff]  ;;  %v103_v48 = vld [vmem:[%s1546_s1 + $0x288] sm:$0xff]  ;;  %v900_v51 = vpack.c.bf16 %v100_v45, %v98_v44  ;;  %v38_v53 = vld [vmem:[%s1546_s1 + $0x80] sm:$0xff] }
   0xd   :  { %v105_v49 = vld [vmem:[%s1546_s1 + $0x298] sm:$0xff]  ;;  %833 = vmatpush1.bf16.msra.mxu1 %v832_v34  ;;  %v838_v52 = vpack.c.bf16 %v41_v47, %v39_v46  ;;  %v40_v54 = vld [vmem:[%s1546_s1 + $0x90] sm:$0xff]  ;;  %v102_v55 = vld [vmem:[%s1546_s1 + $0x280] sm:$0xff] }
   0xe   :  { %897 = vmatpush1.bf16.msra.mxu0 %v896_v38  ;;  %835 = vmatprep.subr.bf16.mxu1 %v834_v39  ;;  %v902_v56 = vpack.c.bf16 %v105_v49, %v103_v48  ;;  %v104_v57 = vld [vmem:[%s1546_s1 + $0x290] sm:$0xff]  ;;  %v43_v58 = vld [vmem:[%s1546_s1 + $0xa8] sm:$0xff]  ;;  %v45_v59 = vld [vmem:[%s1546_s1 + $0xb8] sm:$0xff]  ;;  %v840_v62 = vpack.c.bf16 %v40_v54, %v38_v53 }
   0xf   :  { %899 = vmatprep.subr.bf16.mxu0 %v898_v43  ;;  %v107_v60 = vld [vmem:[%s1546_s1 + $0x2a8] sm:$0xff]  ;;  %v109_v61 = vld [vmem:[%s1546_s1 + $0x2b8] sm:$0xff]  ;;  %v904_v63 = vpack.c.bf16 %v104_v57, %v102_v55  ;;  %v842_v0 = vpack.c.bf16 %v45_v59, %v43_v58  ;;  %v42_v1 = vld [vmem:[%s1546_s1 + $0xa0] sm:$0xff] }
  0x10   :  { %v44_v2 = vld [vmem:[%s1546_s1 + $0xb0] sm:$0xff]  ;;  %v106_v3 = vld [vmem:[%s1546_s1 + $0x2a0] sm:$0xff]  ;;  %v906_v4 = vpack.c.bf16 %v109_v61, %v107_v60  ;;  %v47_v6 = vld [vmem:[%s1546_s1 + $0xc8] sm:$0xff] }
  0x11   :  { %837 = vmatpush1.bf16.msra.mxu1 %v836_v50  ;;  %v108_v5 = vld [vmem:[%s1546_s1 + $0x2b0] sm:$0xff]  ;;  %v49_v7 = vld [vmem:[%s1546_s1 + $0xd8] sm:$0xff]  ;;  %v111_v8 = vld [vmem:[%s1546_s1 + $0x2c8] sm:$0xff]  ;;  %v844_v10 = vpack.c.bf16 %v44_v2, %v42_v1 }
  0x12   :  { %901 = vmatpush1.bf16.msra.mxu0 %v900_v51  ;;  %839 = vmatprep.subr.bf16.mxu1 %v838_v52  ;;  %v113_v9 = vld [vmem:[%s1546_s1 + $0x2d8] sm:$0xff]  ;;  %v908_v11 = vpack.c.bf16 %v108_v5, %v106_v3  ;;  %v846_v12 = vpack.c.bf16 %v49_v7, %v47_v6  ;;  %v46_v13 = vld [vmem:[%s1546_s1 + $0xc0] sm:$0xff]  ;;  %v48_v14 = vld [vmem:[%s1546_s1 + $0xd0] sm:$0xff] }
  0x13   :  { %903 = vmatprep.subr.bf16.mxu0 %v902_v56  ;;  %v110_v15 = vld [vmem:[%s1546_s1 + $0x2c0] sm:$0xff]  ;;  %v910_v16 = vpack.c.bf16 %v113_v9, %v111_v8  ;;  %v112_v17 = vld [vmem:[%s1546_s1 + $0x2d0] sm:$0xff]  ;;  %v51_v18 = vld [vmem:[%s1546_s1 + $0xe8] sm:$0xff]  ;;  %v848_v22 = vpack.c.bf16 %v48_v14, %v46_v13 }
  0x14   :  { %v53_v19 = vld [vmem:[%s1546_s1 + $0xf8] sm:$0xff]  ;;  %v115_v20 = vld [vmem:[%s1546_s1 + $0x2e8] sm:$0xff]  ;;  %v912_v23 = vpack.c.bf16 %v112_v17, %v110_v15  ;;  %v50_v25 = vld [vmem:[%s1546_s1 + $0xe0] sm:$0xff] }
  0x15   :  { %841 = vmatpush1.bf16.msra.mxu1 %v840_v62  ;;  %v117_v21 = vld [vmem:[%s1546_s1 + $0x2f8] sm:$0xff]  ;;  %v850_v24 = vpack.c.bf16 %v53_v19, %v51_v18  ;;  %v52_v26 = vld [vmem:[%s1546_s1 + $0xf0] sm:$0xff]  ;;  %v114_v27 = vld [vmem:[%s1546_s1 + $0x2e0] sm:$0xff] }
  0x16   :  { %905 = vmatpush1.bf16.msra.mxu0 %v904_v63  ;;  %843 = vmatprep.subr.bf16.mxu1 %v842_v0  ;;  %v914_v28 = vpack.c.bf16 %v117_v21, %v115_v20  ;;  %v116_v29 = vld [vmem:[%s1546_s1 + $0x2f0] sm:$0xff]  ;;  %v55_v30 = vld [vmem:[%s1546_s1 + $0x108] sm:$0xff]  ;;  %v57_v31 = vld [vmem:[%s1546_s1 + $0x118] sm:$0xff]  ;;  %v852_v34 = vpack.c.bf16 %v52_v26, %v50_v25 }
  0x17   :  { %907 = vmatprep.subr.bf16.mxu0 %v906_v4  ;;  %v119_v32 = vld [vmem:[%s1546_s1 + $0x308] sm:$0xff]  ;;  %v121_v33 = vld [vmem:[%s1546_s1 + $0x318] sm:$0xff]  ;;  %v916_v35 = vpack.c.bf16 %v116_v29, %v114_v27  ;;  %v854_v36 = vpack.c.bf16 %v57_v31, %v55_v30  ;;  %v54_v37 = vld [vmem:[%s1546_s1 + $0x100] sm:$0xff] }
  0x18   :  { %v56_v38 = vld [vmem:[%s1546_s1 + $0x110] sm:$0xff]  ;;  %v118_v39 = vld [vmem:[%s1546_s1 + $0x300] sm:$0xff]  ;;  %v918_v40 = vpack.c.bf16 %v121_v33, %v119_v32  ;;  %v59_v42 = vld [vmem:[%s1546_s1 + $0x128] sm:$0xff] }
  0x19   :  { %845 = vmatpush1.bf16.msra.mxu1 %v844_v10  ;;  %v120_v41 = vld [vmem:[%s1546_s1 + $0x310] sm:$0xff]  ;;  %v61_v43 = vld [vmem:[%s1546_s1 + $0x138] sm:$0xff]  ;;  %v123_v44 = vld [vmem:[%s1546_s1 + $0x328] sm:$0xff]  ;;  %v856_v46 = vpack.c.bf16 %v56_v38, %v54_v37 }
  0x1a   :  { %909 = vmatpush1.bf16.msra.mxu0 %v908_v11  ;;  %847 = vmatprep.subr.bf16.mxu1 %v846_v12  ;;  %v125_v45 = vld [vmem:[%s1546_s1 + $0x338] sm:$0xff]  ;;  %v920_v47 = vpack.c.bf16 %v120_v41, %v118_v39  ;;  %v858_v48 = vpack.c.bf16 %v61_v43, %v59_v42  ;;  %v58_v49 = vld [vmem:[%s1546_s1 + $0x120] sm:$0xff]  ;;  %v60_v50 = vld [vmem:[%s1546_s1 + $0x130] sm:$0xff] }
  0x1b   :  { %911 = vmatprep.subr.bf16.mxu0 %v910_v16  ;;  %v122_v51 = vld [vmem:[%s1546_s1 + $0x320] sm:$0xff]  ;;  %v922_v52 = vpack.c.bf16 %v125_v45, %v123_v44  ;;  %v124_v53 = vld [vmem:[%s1546_s1 + $0x330] sm:$0xff]  ;;  %v63_v54 = vld [vmem:[%s1546_s1 + $0x148] sm:$0xff]  ;;  %v860_v58 = vpack.c.bf16 %v60_v50, %v58_v49 }
  0x1c   :  { %v65_v55 = vld [vmem:[%s1546_s1 + $0x158] sm:$0xff]  ;;  %v127_v56 = vld [vmem:[%s1546_s1 + $0x348] sm:$0xff]  ;;  %v924_v59 = vpack.c.bf16 %v124_v53, %v122_v51  ;;  %v62_v61 = vld [vmem:[%s1546_s1 + $0x140] sm:$0xff] }
  0x1d   :  { %849 = vmatpush1.bf16.msra.mxu1 %v848_v22  ;;  %v129_v57 = vld [vmem:[%s1546_s1 + $0x358] sm:$0xff]  ;;  %v862_v60 = vpack.c.bf16 %v65_v55, %v63_v54  ;;  %v64_v62 = vld [vmem:[%s1546_s1 + $0x150] sm:$0xff]  ;;  %v126_v63 = vld [vmem:[%s1546_s1 + $0x340] sm:$0xff] }
  0x1e   :  { %913 = vmatpush1.bf16.msra.mxu0 %v912_v23  ;;  %851 = vmatprep.subr.bf16.mxu1 %v850_v24  ;;  %v926_v0 = vpack.c.bf16 %v129_v57, %v127_v56  ;;  %v128_v1 = vld [vmem:[%s1546_s1 + $0x350] sm:$0xff]  ;;  %v67_v2 = vld [vmem:[%s1546_s1 + $0x168] sm:$0xff]  ;;  %v69_v3 = vld [vmem:[%s1546_s1 + $0x178] sm:$0xff]  ;;  %v864_v6 = vpack.c.bf16 %v64_v62, %v62_v61 }
  0x1f   :  { %915 = vmatprep.subr.bf16.mxu0 %v914_v28  ;;  %v131_v4 = vld [vmem:[%s1546_s1 + $0x368] sm:$0xff]  ;;  %v133_v5 = vld [vmem:[%s1546_s1 + $0x378] sm:$0xff]  ;;  %v66_v7 = vld [vmem:[%s1546_s1 + $0x160] sm:$0xff]  ;;  %v928_v8 = vpack.c.bf16 %v128_v1, %v126_v63  ;;  %v866_v9 = vpack.c.bf16 %v69_v3, %v67_v2 }
  0x20   :  { %v68_v10 = vld [vmem:[%s1546_s1 + $0x170] sm:$0xff]  ;;  %v130_v11 = vld [vmem:[%s1546_s1 + $0x360] sm:$0xff]  ;;  %v930_v13 = vpack.c.bf16 %v133_v5, %v131_v4  ;;  %v71_v14 = vld [vmem:[%s1546_s1 + $0x188] sm:$0xff] }
  0x21   :  { %853 = vmatpush1.bf16.msra.mxu1 %v852_v34  ;;  %v132_v12 = vld [vmem:[%s1546_s1 + $0x370] sm:$0xff]  ;;  %v73_v15 = vld [vmem:[%s1546_s1 + $0x198] sm:$0xff]  ;;  %v1349_v16 = vld [vmem:[%s1547_s0] sm:$0xff]  ;;  %v868_v21 = vpack.c.bf16 %v68_v10, %v66_v7  ;;  %v1017_v7 = vmov 0.0|0.0  }
  0x22   :  { %917 = vmatpush1.bf16.msra.mxu0 %v916_v35  ;;  %855 = vmatprep.subr.bf16.mxu1 %v854_v36  ;;  %v135_v17 = vld [vmem:[%s1546_s1 + $0x388] sm:$0xff]  ;;  %v137_v18 = vld [vmem:[%s1546_s1 + $0x398] sm:$0xff]  ;;  %v164_v19 = vcombine.high %v1349_v16, %v1349_v16  ;;  %v932_v23 = vpack.c.bf16 %v132_v12, %v130_v11  ;;  %v870_v24 = vpack.c.bf16 %v73_v15, %v71_v14  ;;  %v70_v25 = vld [vmem:[%s1546_s1 + $0x180] sm:$0xff]  ;;  %v1019_v11 = vmov 0.0  }
  0x23   :  { %919 = vmatprep.subr.bf16.mxu0 %v918_v40  ;;  %v1362_v20 = vld [vmem:[%s1547_s0 + $0x8] sm:$0xff]  ;;  %v72_v26 = vld [vmem:[%s1546_s1 + $0x190] sm:$0xff]  ;;  %v134_v27 = vld [vmem:[%s1546_s1 + $0x380] sm:$0xff]  ;;  %v934_v28 = vpack.c.bf16 %v137_v18, %v135_v17  ;;  %v152_v18 = vlaneseq }
  0x24   :  { %v165_v22 = vcombine.high %v1362_v20, %v1362_v20  ;;  %v136_v29 = vld [vmem:[%s1546_s1 + $0x390] sm:$0xff]  ;;  %v75_v30 = vld [vmem:[%s1546_s1 + $0x1a8] sm:$0xff]  ;;  %v77_v31 = vld [vmem:[%s1546_s1 + $0x1b8] sm:$0xff]  ;;  %232 = vmatprep.mubr.f32.mxu1 %v164_v19  ;;  %v872_v34 = vpack.c.bf16 %v72_v26, %v70_v25 }
  0x25   :  { %857 = vmatpush1.bf16.msra.mxu1 %v856_v46  ;;  %v139_v32 = vld [vmem:[%s1546_s1 + $0x3a8] sm:$0xff]  ;;  %v141_v33 = vld [vmem:[%s1546_s1 + $0x3b8] sm:$0xff]  ;;  %v936_v35 = vpack.c.bf16 %v136_v29, %v134_v27  ;;  %v874_v36 = vpack.c.bf16 %v77_v31, %v75_v30  ;;  %v74_v37 = vld [vmem:[%s1546_s1 + $0x1a0] sm:$0xff]  ;;  %v153_v19 = vshrl.u32 %v152_v18, 7 }
  0x26   :  { %921 = vmatpush1.bf16.msra.mxu0 %v920_v47  ;;  %859 = vmatprep.subr.bf16.mxu1 %v858_v48  ;;  %v76_v38 = vld [vmem:[%s1546_s1 + $0x1b0] sm:$0xff]  ;;  %v138_v39 = vld [vmem:[%s1546_s1 + $0x3a0] sm:$0xff]  ;;  %v938_v40 = vpack.c.bf16 %v141_v33, %v139_v32  ;;  %v79_v42 = vld [vmem:[%s1546_s1 + $0x1c8] sm:$0xff] }
  0x27   :  { %923 = vmatprep.subr.bf16.mxu0 %v922_v52  ;;  %303 = vmatprep.mubr.f32.mxu0 %v165_v22  ;;  %v140_v41 = vld [vmem:[%s1546_s1 + $0x3b0] sm:$0xff]  ;;  %v81_v43 = vld [vmem:[%s1546_s1 + $0x1d8] sm:$0xff]  ;;  %v143_v44 = vld [vmem:[%s1546_s1 + $0x3c8] sm:$0xff]  ;;  %v876_v46 = vpack.c.bf16 %v76_v38, %v74_v37  ;;  %v158_v22 = vsub.s32 1, %v153_v19 }
  0x28   :  { %v145_v45 = vld [vmem:[%s1546_s1 + $0x3d8] sm:$0xff]  ;;  %v940_v47 = vpack.c.bf16 %v140_v41, %v138_v39  ;;  %v878_v48 = vpack.c.bf16 %v81_v43, %v79_v42  ;;  %v78_v49 = vld [vmem:[%s1546_s1 + $0x1c0] sm:$0xff]  ;;  %v80_v50 = vld [vmem:[%s1546_s1 + $0x1d0] sm:$0xff] }
  0x29   :  { %861 = vmatpush1.bf16.msra.mxu1 %v860_v58  ;;  %v142_v51 = vld [vmem:[%s1546_s1 + $0x3c0] sm:$0xff]  ;;  %v942_v52 = vpack.c.bf16 %v145_v45, %v143_v44  ;;  %v144_v53 = vld [vmem:[%s1546_s1 + $0x3d0] sm:$0xff]  ;;  %v83_v54 = vld [vmem:[%s1546_s1 + $0x1e8] sm:$0xff]  ;;  %v880_v58 = vpack.c.bf16 %v80_v50, %v78_v49 }
  0x2a   :  { %925 = vmatpush1.bf16.msra.mxu0 %v924_v59  ;;  %863 = vmatprep.subr.bf16.mxu1 %v862_v60  ;;  %v85_v55 = vld [vmem:[%s1546_s1 + $0x1f8] sm:$0xff]  ;;  %v147_v56 = vld [vmem:[%s1546_s1 + $0x3e8] sm:$0xff]  ;;  %v944_v59 = vpack.c.bf16 %v144_v53, %v142_v51  ;;  %v82_v61 = vld [vmem:[%s1546_s1 + $0x1e0] sm:$0xff] }
  0x2b   :  { %927 = vmatprep.subr.bf16.mxu0 %v926_v0  ;;  %v149_v57 = vld [vmem:[%s1546_s1 + $0x3f8] sm:$0xff]  ;;  %v882_v60 = vpack.c.bf16 %v85_v55, %v83_v54  ;;  %v84_v62 = vld [vmem:[%s1546_s1 + $0x1f0] sm:$0xff]  ;;  %v146_v0 = vld [vmem:[%s1546_s1 + $0x3e0] sm:$0xff] }
  0x2c   :  { %v946_v63 = vpack.c.bf16 %v149_v57, %v147_v56  ;;  %v148_v1 = vld [vmem:[%s1546_s1 + $0x3f0] sm:$0xff]  ;;  %v884_v2 = vpack.c.bf16 %v84_v62, %v82_v61  ;;  %v310_v4 = vld [vmem:[%s1548_s2] sm:$0xff]  ;;  %v311_v5 = vld [vmem:[%s1548_s2 + $0x8] sm:$0xff] }
  0x2d   :  { %865 = vmatpush1.bf16.msra.mxu1 %v864_v6  ;;  %v948_v3 = vpack.c.bf16 %v148_v1, %v146_v0  ;;  %v951_v6 = vpack.c.bf16 %v311_v5, %v310_v4  ;;  %v314_v12 = vld [vmem:[%s1549_s3] sm:$0xff]  ;;  %v316_v15 = vld [vmem:[%s1549_s3 + $0x10] sm:$0xff] }
  0x2e   :  { %929 = vmatpush1.bf16.msra.mxu0 %v928_v8  ;;  %867 = vmatprep.subr.bf16.mxu1 %v866_v9  ;;  %v312_v8 = vld [vmem:[%s1548_s2 + $0x10] sm:$0xff]  ;;  %v313_v9 = vld [vmem:[%s1548_s2 + $0x18] sm:$0xff] }
  0x2f   :  { %931 = vmatprep.subr.bf16.mxu0 %v930_v13  ;;  %v954_v10 = vpack.c.bf16 %v313_v9, %v312_v8  ;;  %v315_v13 = vld [vmem:[%s1549_s3 + $0x8] sm:$0xff] }
  0x30   :  { %v1478_v14 = vpack.c.bf16 %v315_v13, %v314_v12 }
  0x31   :  { %869 = vmatpush1.bf16.msra.mxu1 %v868_v21  ;;  %v150_v21 = vld [vmem:[%s1550_s4] sm:$0x3]  ;;  %s1020_s4 = smov 64  }
  0x32   :  { %933 = vmatpush1.bf16.msra.mxu0 %v932_v23  ;;  %871 = vmatprep.subr.bf16.mxu1 %v870_v24  ;;  %v159_v24 = vrot.slane %v150_v21, %v158_v22 }
  0x33   :  { %935 = vmatprep.subr.bf16.mxu0 %v934_v28 }
  0x35   :  { %873 = vmatpush1.bf16.msra.mxu1 %v872_v34 }
  0x36   :  { %937 = vmatpush1.bf16.msra.mxu0 %v936_v35  ;;  %875 = vmatprep.subr.bf16.mxu1 %v874_v36 }
  0x37   :  { %939 = vmatprep.subr.bf16.mxu0 %v938_v40 }
  0x39   :  { %877 = vmatpush1.bf16.msra.mxu1 %v876_v46 }
  0x3a   :  { %941 = vmatpush1.bf16.msra.mxu0 %v940_v47  ;;  %879 = vmatprep.subr.bf16.mxu1 %v878_v48 }
  0x3b   :  { %943 = vmatprep.subr.bf16.mxu0 %v942_v52 }
  0x3d   :  { %881 = vmatpush1.bf16.msra.mxu1 %v880_v58 }
  0x3e   :  { %945 = vmatpush1.bf16.msra.mxu0 %v944_v59  ;;  %883 = vmatprep.subr.bf16.mxu1 %v882_v60 }
  0x3f   :  { %947 = vmatprep.subr.bf16.mxu0 %v946_v63 }
  0x41   :  { %885 = vmatpush1.bf16.msra.mxu1 %v884_v2 }
  0x42   :  { %949 = vmatpush1.bf16.msra.mxu0 %v948_v3  ;;  %962 = vmatprep.subr.bf16.mxu1 %v1017_v7 }
  0x43   :  { %950 = vmatprep.subr.bf16.mxu0 %v1017_v7 }
  0x44   :  { %233 = vmatmul.mubr.f32.vlgmr.msra.gmra.mrb[0].mxu1 %v1349_v16  ;;  %v317_v16 = vld [vmem:[%s1549_s3 + $0x18] sm:$0xff] }
  0x45   :  { %304 = vmatmul.mubr.f32.vlgmr.msra.gmra.mrb[0].mxu0 %v1362_v20  ;;  %964 = vmatpush3.bf16.msra.mxu1 %v951_v6  ;;  %v1490_v17 = vpack.c.bf16 %v317_v16, %v316_v15  ;;  %v154_v20 = vsub.s32 0, %v153_v19 }
  0x46   :  { %952 = vmatpush3.bf16.msra.mxu0 %v951_v6  ;;  %786 = vmatprep.mubr.msk.f32.mxu0 %vm1018_vm0, %v1019_v11 }
  0x47   :  { %953 = vmatprep.subr.bf16.mxu0 %v1017_v7  ;;  %965 = vmatprep.subr.bf16.mxu1 %v1017_v7  ;;  %v155_v23 = vrot.slane %v150_v21, %v154_v20 }
  0x48   :  { %808 = vmatprep.mubr.msk.f32.mxu1 %vm1018_vm0, %v1019_v11 }
  0x49   :  { %967 = vmatpush3.bf16.msra.mxu1 %v954_v10 }
  0x4a   :  { %955 = vmatpush3.bf16.msra.mxu0 %v954_v10  ;;  %968 = vmatprep.subr.bf16.mxu1 %v1017_v7 }
  0x4b   :  { %956 = vmatprep.subr.bf16.mxu0 %v1017_v7 }
  0x4d   :  { %787 = vmatmul.mubr.f32.vlgmr.msra.gmra.mrb[2].mxu0 %v1019_v11 }
  0x4e   :  { %958 = vmatpush3.bf16.msra.mxu0 %v1478_v14  ;;  %797 = vmatprep.mubr.msk.f32.mxu0 %vm1018_vm0, %v1019_v11 }
  0x4f   :  { %959 = vmatprep.subr.bf16.mxu0 %v1017_v7 }
  0x52   :  { %961 = vmatpush3.bf16.msra.mxu0 %v1490_v17 }
  0x55   :  { %798 = vmatmul.mubr.f32.vlgmr.msra.gmra.mrb[4].mxu0 %v1019_v11 }
 0x117   :  { %v234_v25 = vpop.f32.mrb[0].mxu1 }
 0x118   :  { %v235_v26 = vadd.f32 %v234_v25, %v155_v23  ;;  %v305_v27 = vpop.f32.mrb[0].mxu0  ;;  %v236_v28 = vpop.f32.mrb[1].mxu1 }
 0x119   :  { %v237_v29 = vadd.f32 %v236_v28, %v159_v24  ;;  %v307_v30 = vpop.f32.mrb[1].mxu0 }
 0x11a   :  { %v1500_v31 = vadd.f32 %v305_v27, %v235_v26 }
 0x11b   :  { %v1502_v32 = vadd.f32 %v307_v30, %v237_v29 }
 0x120   :  { %v388_v33 = vpop.f32.mrb[2].mxu0 }
 0x121   :  { %v392_v34 = vadd.f32 %v388_v33, %v1500_v31  ;;  %v788_v35 = vpop.f32.mrb[3].mxu0 }
 0x123   :  { %985 = vtanh.f32 %v392_v34  ;;  %v750_v42 = vmul.f32 -1.442695, %v392_v34 }
 0x128   :  { %v459_v36 = vpop.f32.mrb[4].mxu0 }
 0x129   :  { %v464_v37 = vrot.slane %v459_v36, 6  ;;  %v799_v38 = vpop.f32.mrb[5].mxu0 }
 0x12b   :  { %v466_v39 = vadd.f32 %v464_v37, %v1502_v32 }
 0x12d   :  { %v986_v40 = vpop.eup %985  ;;  %987 = vtanh.f32 %v466_v39  ;;  %v751_v43 = vmul.f32 -1.442695, %v466_v39 }
 0x12e   :  { %476 = vrot.lane.b32.xlu0 %v986_v40, %s1020_s4  ;;  %989 = vpow2.f32 %v750_v42 }
 0x12f   :  { %991 = vpow2.f32 %v751_v43 }
 0x137   :  { %v988_v41 = vpop.eup %987 }
 0x138   :  { %500 = vrot.lane.b32.xlu0 %v988_v41, %s1020_s4  ;;  %v990_v44 = vpop.eup %989 }
 0x139   :  { %v470_v45 = vadd.f32 1.0, %v990_v44  ;;  %v992_v46 = vpop.eup %991 }
 0x13a   :  { %v494_v47 = vadd.f32 1.0, %v992_v46 }
 0x13b   :  { %993 = vrcp.f32 %v470_v45 }
 0x13c   :  { %995 = vrcp.f32 %v494_v47 }
 0x145   :  { %v994_v48 = vpop.eup %993 }
 0x146   :  { %v996_v51 = vpop.eup %995  ;;  %v474_v54 = vmul.f32 0.0, %v994_v48 }
 0x147   :  { %v498_v57 = vmul.f32 0.0, %v996_v51 }
 0x1a0   :  { %v477_v49 = vpop.permute.xlu0 %476 }
 0x1a1   :  { %v479_v50 = vmul.f32 %v994_v48, %v477_v49 }
 0x1a3   :  { %481 = vrot.lane.b32.xlu1 %v479_v50, %s1021_s15 }
 0x1aa   :  { %v501_v52 = vpop.permute.xlu0 %500 }
 0x1ab   :  { %v503_v53 = vmul.f32 %v996_v51, %v501_v52 }
 0x1ad   :  { %505 = vrot.lane.b32.xlu1 %v503_v53, %s1021_s15 }
 0x215   :  { %v482_v55 = vpop.permute.xlu1 %481 }
 0x216   :  { %v484_v56 = vadd.f32 %v482_v55, %v474_v54 }
 0x218   :  { %997 = vtanh.f32 %v484_v56  ;;  %v688_v26 = vrot.slane %v484_v56, 6 }
 0x21f   :  { %v506_v58 = vpop.permute.xlu1 %505 }
 0x220   :  { %v1510_v59 = vadd.f32 %v506_v58, %v498_v57 }
 0x222   :  { %v998_v60 = vpop.eup %997  ;;  %999 = vtanh.f32 %v1510_v59  ;;  %v715_v30 = vrot.slane %v1510_v59, 2 }
 0x223   :  { %487 = vrot.lane.b32.xlu0 %v998_v60, %s1020_s4 }
 0x22c   :  { %v1000_v61 = vpop.eup %999 }
 0x22d   :  { %511 = vrot.lane.b32.xlu1 %v1000_v61, %s1020_s4 }
 0x295   :  { %v488_v62 = vpop.permute.xlu0 %487 }
 0x296   :  { %v490_v63 = vmul.f32 %v994_v48, %v488_v62 }
 0x298   :  { %516 = vrot.lane.b32.xlu0 %v490_v63, %s1021_s15 }
 0x29f   :  { %v512_v0 = vpop.permute.xlu1 %511 }
 0x2a0   :  { %v514_v1 = vmul.f32 %v996_v51, %v512_v0 }
 0x2a2   :  { %v604_v2 = vrot.slane %v514_v1, 2 }
 0x2a4   :  { %605 = vrot.lane.b32.xlu1 %v604_v2, %s1021_s15 }
 0x30a   :  { %v517_v3 = vpop.permute.xlu0 %516 }
 0x30b   :  { %520 = vst.msk [vmem:[%s1551_s5] sm:$0x3] %vm519_vm1, %v517_v3  ;;  %809 = vmatmul.mubr.msk.f32.vlgmr.msra.gmra.mrb[2].mxu1 %vm318_vm2, %v517_v3 }
 0x30c   :  { %970 = vmatpush3.bf16.msra.mxu1 %v1478_v14  ;;  %819 = vmatprep.mubr.msk.f32.mxu1 %vm1018_vm0, %v1019_v11 }
 0x30d   :  { %971 = vmatprep.subr.bf16.mxu1 %v1017_v7 }
 0x310   :  { %973 = vmatpush3.bf16.msra.mxu1 %v1490_v17 }
 0x316   :  { %v606_v4 = vpop.permute.xlu1 %605 }
 0x317   :  { %820 = vmatmul.mubr.msk.f32.vlgmr.msra.gmra.mrb[4].mxu1 %vm318_vm2, %v606_v4 }
 0x3de   :  { %v596_v5 = vpop.f32.mrb[2].mxu1 }
 0x3df   :  { %v601_v6 = vrot.slane %v596_v5, 6  ;;  %v810_v8 = vpop.f32.mrb[3].mxu1 }
 0x3e1   :  { %v603_v9 = vadd.f32 %v601_v6, %v1500_v31 }
 0x3e3   :  { %1001 = vtanh.f32 %v603_v9  ;;  %v755_v7 = vmul.f32 -1.442695, %v603_v9 }
 0x3ea   :  { %v675_v10 = vpop.f32.mrb[4].mxu1 }
 0x3eb   :  { %v679_v12 = vadd.f32 %v675_v10, %v1502_v32  ;;  %v821_v13 = vpop.f32.mrb[5].mxu1 }
 0x3ed   :  { %v1002_v14 = vpop.eup %1001  ;;  %1003 = vtanh.f32 %v679_v12  ;;  %v756_v15 = vmul.f32 -1.442695, %v679_v12 }
 0x3ee   :  { %692 = vrot.lane.b32.xlu0 %v1002_v14, %s1020_s4  ;;  %1005 = vpow2.f32 %v755_v7 }
 0x3ef   :  { %1007 = vpow2.f32 %v756_v15 }
 0x3f7   :  { %v1004_v11 = vpop.eup %1003 }
 0x3f8   :  { %719 = vrot.lane.b32.xlu1 %v1004_v11, %s1020_s4  ;;  %v1006_v16 = vpop.eup %1005 }
 0x3f9   :  { %v683_v17 = vadd.f32 1.0, %v1006_v16  ;;  %v1008_v18 = vpop.eup %1007 }
 0x3fa   :  { %v710_v19 = vadd.f32 1.0, %v1008_v18 }
 0x3fb   :  { %1009 = vrcp.f32 %v683_v17 }
 0x3fc   :  { %1011 = vrcp.f32 %v710_v19 }
 0x405   :  { %v1010_v20 = vpop.eup %1009 }
 0x406   :  { %v1012_v23 = vpop.eup %1011  ;;  %v690_v27 = vmul.f32 %v1010_v20, %v688_v26 }
 0x407   :  { %v717_v31 = vmul.f32 %v1012_v23, %v715_v30 }
 0x460   :  { %v693_v21 = vpop.permute.xlu0 %692 }
 0x461   :  { %v695_v22 = vmul.f32 %v1010_v20, %v693_v21 }
 0x463   :  { %697 = vrot.lane.b32.xlu0 %v695_v22, %s1021_s15 }
 0x46a   :  { %v720_v24 = vpop.permute.xlu1 %719 }
 0x46b   :  { %v722_v25 = vmul.f32 %v1012_v23, %v720_v24 }
 0x46d   :  { %724 = vrot.lane.b32.xlu1 %v722_v25, %s1021_s15 }
 0x4d5   :  { %v698_v28 = vpop.permute.xlu0 %697 }
 0x4d6   :  { %v700_v29 = vadd.f32 %v698_v28, %v690_v27 }
 0x4d8   :  { %1013 = vtanh.f32 %v700_v29 }
 0x4df   :  { %v725_v32 = vpop.permute.xlu1 %724 }
 0x4e0   :  { %v727_v33 = vadd.f32 %v725_v32, %v717_v31 }
 0x4e2   :  { %v1014_v34 = vpop.eup %1013  ;;  %1015 = vtanh.f32 %v727_v33 }
 0x4e3   :  { %703 = vrot.lane.b32.xlu0 %v1014_v34, %s1020_s4 }
 0x4e7   :  { %522 = vrot.lane.b32.xlu0 %v514_v1, %s1020_s4 }
 0x4ec   :  { %v1016_v35 = vpop.eup %1015 }
 0x4ed   :  { %730 = vrot.lane.b32.xlu1 %v1016_v35, %s1020_s4 }
 0x555   :  { %v704_v36 = vpop.permute.xlu0 %703 }
 0x556   :  { %v706_v37 = vmul.f32 %v1010_v20, %v704_v36 }
 0x558   :  { %735 = vrot.lane.b32.xlu1 %v706_v37, %s1021_s15 }
 0x559   :  { %v523_v38 = vpop.permute.xlu0 %522 }
 0x55a   :  { %752 = vst.msk [vmem:[%s1551_s5] sm:$0xc] %vm526_vm3, %v523_v38 }
 0x55f   :  { %v731_v39 = vpop.permute.xlu1 %730 }
 0x560   :  { %v733_v40 = vmul.f32 %v1012_v23, %v731_v39 }
 0x562   :  { %741 = vrot.lane.b32.xlu0 %v733_v40, %s1020_s4 }
 0x5ca   :  { %v736_v41 = vpop.permute.xlu1 %735 }
 0x5cb   :  { %757 = vst.msk [vmem:[%s1551_s5] sm:$0xc] %vm738_vm4, %v736_v41 }
 0x5d4   :  { %v742_v42 = vpop.permute.xlu0 %741 }
 0x5d5   :  { %745 = vst.msk [vmem:[%s1551_s5] sm:$0x3] %vm744_vm5, %v742_v42 }

</bundles_post_ra>
